<compile_context>
chip_gen: v6e
topology: v6e:2x2x1
jax: 0.10.0
libtpu: 0.0.40
codegen_flags: <defaults>
</compile_context>

<pallas_src>
import functools

import jax
import jax.numpy as jnp
import numpy as np
from jax.experimental import pallas as pl
from jax.experimental.pallas import tpu as pltpu

EPS = 1e-5
LANE = 128


def _round_up(x, m):
    return ((x + m - 1) // m) * m


# --------------------------------------------------------------------------
# Kernels
# --------------------------------------------------------------------------
def conv1_kernel(x_ref, w_ref, y_ref, sum_ref, ssq_ref):
    """1x1 conv == matmul.  bf16 operands, f32 MXU accumulation, BN partials."""
    y = jnp.dot(x_ref[...], w_ref[...], preferred_element_type=jnp.float32)
    y_ref[...] = y.astype(y_ref.dtype)
    sum_ref[...] = jnp.sum(y, axis=0, keepdims=True)[None]
    ssq_ref[...] = jnp.sum(y * y, axis=0, keepdims=True)[None]


def conv2_kernel(y1_ref, s_ref, b_ref, w_ref, y2_ref, sum_ref, ssq_ref,
                 pad_ref, col_ref, *, H, W, IPT, HALO):
    """BN1 affine + ReLU + 3x3 conv as one im2col matmul.

    Per-image zero halos in `pad_ref` make the dy (row) taps mask-free; only
    the 6 dx != 0 taps need a column-edge select.  All 9 shifted windows are
    staged into `col_ref` (TM, 9*Pp) and contracted in a single K=9*Pp dot.
    """
    HW = H * W
    Pp = y1_ref.shape[-1]
    STRIDE = HW + 2 * HALO

    # BN1 (pre-folded affine) + ReLU in f32, downcast once for staging / MXU.
    a = jnp.maximum(
        y1_ref[...].astype(jnp.float32) * s_ref[...] + b_ref[...], 0.0
    ).astype(jnp.bfloat16)

    # Column-edge validity masks, shared by all images in the tile.
    wpos = jax.lax.broadcasted_iota(jnp.int32, (HW, 1), 0) % W
    not_left = wpos >= 1          # rows where a dx=-1 read stays inside the row
    not_right = wpos <= W - 2     # rows where a dx=+1 read stays inside the row

    # Stage activations with per-image zero halos (re-zeroed every grid step,
    # so the kernel stays correct when the grid is split across TensorCores).
    zero_halo = jnp.zeros((HALO, Pp), pad_ref.dtype)
    for n in range(IPT):
        base = n * STRIDE
        pad_ref[base:base + HALO, :] = zero_halo
        pad_ref[base + HALO + HW:base + STRIDE, :] = zero_halo
        pad_ref[base + HALO:base + HALO + HW, :] = a[n * HW:(n + 1) * HW, :]

    # im2col staging: 9 shifted (optionally edge-masked) windows.
    for dy in (-1, 0, 1):
        for dx in (-1, 0, 1):
            tap = (dy + 1) * 3 + (dx + 1)
            off = dy * W + dx
            for n in range(IPT):
                lo = n * STRIDE + HALO + off
                win = pad_ref[lo:lo + HW, :]
                if dx == -1:
                    win = jnp.where(not_left, win, jnp.zeros_like(win))
                elif dx == 1:
                    win = jnp.where(not_right, win, jnp.zeros_like(win))
                col_ref[n * HW:(n + 1) * HW, tap * Pp:(tap + 1) * Pp] = win

    # One K = 9*Pp matmul (vs 9 K=Pp matmuls before).
    y = jnp.dot(col_ref[...], w_ref[...], preferred_element_type=jnp.float32)
    y2_ref[...] = y.astype(y2_ref.dtype)
    sum_ref[...] = jnp.sum(y, axis=0, keepdims=True)[None]
    ssq_ref[...] = jnp.sum(y * y, axis=0, keepdims=True)[None]


def conv3_kernel(y2_ref, s_ref, b_ref, w_ref, y_ref, sum_ref, ssq_ref):
    a = jnp.maximum(
        y2_ref[...].astype(jnp.float32) * s_ref[...] + b_ref[...], 0.0
    ).astype(jnp.bfloat16)
    y = jnp.dot(a, w_ref[...], preferred_element_type=jnp.float32)
    y_ref[...] = y.astype(y_ref.dtype)
    sum_ref[...] = jnp.sum(y, axis=0, keepdims=True)[None]
    ssq_ref[...] = jnp.sum(y * y, axis=0, keepdims=True)[None]


def residual_kernel(y3_ref, x_ref, s_ref, b_ref, o_ref):
    o_ref[...] = jnp.maximum(
        y3_ref[...].astype(jnp.float32) * s_ref[...] + b_ref[...]
        + x_ref[...].astype(jnp.float32), 0.0)


# --------------------------------------------------------------------------
# Wrapper helpers
# --------------------------------------------------------------------------
def _fold_bn(sum_t, ssq_t, gamma_pad, beta_pad, count):
    """Fold per-tile (sum, sumsq) partials into an affine scale/shift."""
    tot = jnp.sum(sum_t, axis=(0, 1))
    tot2 = jnp.sum(ssq_t, axis=(0, 1))
    mean = tot / count
    var = jnp.maximum(tot2 / count - mean * mean, 0.0)      # biased variance
    scale = gamma_pad * jax.lax.rsqrt(var + EPS)
    shift = beta_pad - mean * scale
    return scale.reshape(1, -1), shift.reshape(1, -1)


def _conv2_vmem_bytes(ipt, H, W, Pp):
    """Rough VMEM footprint of the conv2 pass for a given tile size (bf16)."""
    HW = H * W
    TM = ipt * HW
    HALO = _round_up(W + 1, 8)
    b = 2 * TM * Pp * 2               # y1 input block, double-buffered
    b += 2 * TM * Pp * 2              # y2 output block, double-buffered
    b += 2 * 9 * Pp * Pp * 2          # w2col (constant index, still 2 buffers)
    b += ipt * (HW + 2 * HALO) * Pp * 2   # haloed staging scratch
    b += TM * 9 * Pp * 2              # im2col scratch
    return b


def _vmem_limit(est_bytes):
    """2x headroom over the estimate, capped below v7x's 64 MiB physical VMEM."""
    return int(min(48 * 1024 * 1024, max(16 * 1024 * 1024, 2 * est_bytes)))


def _pick_imgs_per_tile(N, H, W, Pp, target_rows=2048,
                        vmem_budget=28 * 1024 * 1024):
    """Largest whole-image row tile that divides N, keeps >= 2 grid steps when
    N >= 2 (pipelining + v7x megacore), keeps rows 8-aligned, and keeps the
    conv2 VMEM footprint under budget.  Never falls back to one full-batch
    tile."""
    HW = H * W
    best = 1
    for ipt in range(1, N + 1):
        if N % ipt:
            continue
        if ipt == 1:
            best = 1
            continue
        if N >= 2 and N // ipt < 2:
            continue
        rows = ipt * HW
        if rows % 8 or rows > target_rows:
            continue
        if _conv2_vmem_bytes(ipt, H, W, Pp) > vmem_budget:
            continue
        best = ipt
    return best


# --------------------------------------------------------------------------
# Forward pass
# --------------------------------------------------------------------------
def bottleneck_forward(x_nchw, params, imgs_per_tile=None):
    N, Cin, H, W = x_nchw.shape
    P = params['w1'].shape[0]
    Cout = 4 * P
    assert Cin == Cout, "stride=1, downsample=None requires inplanes == planes*4"

    Cp = _round_up(Cin, LANE)      # lane-padded input / output channels
    Pp = _round_up(P, LANE)        # lane-padded bottleneck width
    HW = H * W
    M = N * HW

    if imgs_per_tile is None:
        imgs_per_tile = _pick_imgs_per_tile(N, H, W, Pp)
    assert N % imgs_per_tile == 0
    T = N // imgs_per_tile         # grid size (>= 2 whenever N >= 2)
    TM = imgs_per_tile * HW        # rows per tile (whole images)
    HALO = _round_up(W + 1, 8)
    count = float(M)

    f32, bf16 = jnp.float32, jnp.bfloat16

    # ---- layout plumbing (plain JAX glue) ----------------------------------
    # TODO(synk): a fully NHWC-resident network would eliminate these two
    # full-tensor transposes; kept because the module's interface is NCHW.
    x2d = jnp.transpose(x_nchw, (0, 2, 3, 1)).reshape(M, Cin)
    x2d = jnp.pad(x2d, ((0, 0), (0, Cp - Cin))).astype(bf16)

    # Lane-padded bf16 weights; padded rows/cols are zero so padded channels
    # stay exactly zero through conv / BN / ReLU.
    w1m = jnp.pad(params['w1'].reshape(P, Cin).T,
                  ((0, Cp - Cin), (0, Pp - P))).astype(bf16)          # (Cp, Pp)
    w2p = jnp.pad(params['w2'], ((0, Pp - P), (0, Pp - P), (0, 0), (0, 0)))
    w2col = jnp.transpose(w2p, (2, 3, 1, 0)).reshape(9 * Pp, Pp).astype(bf16)
    w3m = jnp.pad(params['w3'].reshape(Cout, P).T,
                  ((0, Pp - P), (0, Cp - Cout))).astype(bf16)          # (Pp, Cp)

    g1 = jnp.pad(params['g1'], (0, Pp - P)); be1 = jnp.pad(params['b1'], (0, Pp - P))
    g2 = jnp.pad(params['g2'], (0, Pp - P)); be2 = jnp.pad(params['b2'], (0, Pp - P))
    g3 = jnp.pad(params['g3'], (0, Cp - Cout)); be3 = jnp.pad(params['b3'], (0, Cp - Cout))

    # ---- pass 1: conv1 (1x1) + BN1 partial stats ----------------------------
    est1 = 2 * TM * Cp * 2 + 2 * Cp * Pp * 2 + 2 * TM * Pp * 2
    y1, sum1, ssq1 = pl.pallas_call(
        conv1_kernel,
        grid=(T,),
        in_specs=[pl.BlockSpec((TM, Cp), lambda i: (i, 0)),
                  pl.BlockSpec((Cp, Pp), lambda i: (0, 0))],
        out_specs=[pl.BlockSpec((TM, Pp), lambda i: (i, 0)),
                   pl.BlockSpec((1, 1, Pp), lambda i: (i, 0, 0)),
                   pl.BlockSpec((1, 1, Pp), lambda i: (i, 0, 0))],
        out_shape=(jax.ShapeDtypeStruct((M, Pp), bf16),
                   jax.ShapeDtypeStruct((T, 1, Pp), f32),
                   jax.ShapeDtypeStruct((T, 1, Pp), f32)),
        compiler_params=pltpu.CompilerParams(
            dimension_semantics=("parallel",),
            vmem_limit_bytes=_vmem_limit(est1)),
        cost_estimate=pl.CostEstimate(
            flops=2 * M * Cp * Pp, transcendentals=0,
            bytes_accessed=2 * (M * Cp + Cp * Pp + M * Pp) + 8 * T * Pp),
    )(x2d, w1m)
    s1, sh1 = _fold_bn(sum1, ssq1, g1, be1, count)

    # ---- pass 2: BN1 apply + ReLU + conv2 (3x3, im2col) + BN2 partials ------
    est2 = _conv2_vmem_bytes(imgs_per_tile, H, W, Pp)
    y2, sum2, ssq2 = pl.pallas_call(
        functools.partial(conv2_kernel, H=H, W=W, IPT=imgs_per_tile, HALO=HALO),
        grid=(T,),
        in_specs=[pl.BlockSpec((TM, Pp), lambda i: (i, 0)),
                  pl.BlockSpec((1, Pp), lambda i: (0, 0)),
                  pl.BlockSpec((1, Pp), lambda i: (0, 0)),
                  pl.BlockSpec((9 * Pp, Pp), lambda i: (0, 0))],
        out_specs=[pl.BlockSpec((TM, Pp), lambda i: (i, 0)),
                   pl.BlockSpec((1, 1, Pp), lambda i: (i, 0, 0)),
                   pl.BlockSpec((1, 1, Pp), lambda i: (i, 0, 0))],
        out_shape=(jax.ShapeDtypeStruct((M, Pp), bf16),
                   jax.ShapeDtypeStruct((T, 1, Pp), f32),
                   jax.ShapeDtypeStruct((T, 1, Pp), f32)),
        scratch_shapes=[
            pltpu.VMEM((imgs_per_tile * (HW + 2 * HALO), Pp), bf16),
            pltpu.VMEM((TM, 9 * Pp), bf16)],
        compiler_params=pltpu.CompilerParams(
            dimension_semantics=("parallel",),
            vmem_limit_bytes=_vmem_limit(est2)),
        cost_estimate=pl.CostEstimate(
            flops=2 * M * 9 * Pp * Pp, transcendentals=0,
            bytes_accessed=2 * (2 * M * Pp + 9 * Pp * Pp) + 8 * T * Pp),
    )(y1, s1, sh1, w2col)
    s2, sh2 = _fold_bn(sum2, ssq2, g2, be2, count)

    # ---- pass 3: BN2 apply + ReLU + conv3 (1x1) + BN3 partials --------------
    est3 = 2 * TM * Pp * 2 + 2 * Pp * Cp * 2 + 2 * TM * Cp * 2
    y3, sum3, ssq3 = pl.pallas_call(
        conv3_kernel,
        grid=(T,),
        in_specs=[pl.BlockSpec((TM, Pp), lambda i: (i, 0)),
                  pl.BlockSpec((1, Pp), lambda i: (0, 0)),
                  pl.BlockSpec((1, Pp), lambda i: (0, 0)),
                  pl.BlockSpec((Pp, Cp), lambda i: (0, 0))],
        out_specs=[pl.BlockSpec((TM, Cp), lambda i: (i, 0)),
                   pl.BlockSpec((1, 1, Cp), lambda i: (i, 0, 0)),
                   pl.BlockSpec((1, 1, Cp), lambda i: (i, 0, 0))],
        out_shape=(jax.ShapeDtypeStruct((M, Cp), bf16),
                   jax.ShapeDtypeStruct((T, 1, Cp), f32),
                   jax.ShapeDtypeStruct((T, 1, Cp), f32)),
        compiler_params=pltpu.CompilerParams(
            dimension_semantics=("parallel",),
            vmem_limit_bytes=_vmem_limit(est3)),
        cost_estimate=pl.CostEstimate(
            flops=2 * M * Pp * Cp, transcendentals=0,
            bytes_accessed=2 * (M * Pp + Pp * Cp + M * Cp) + 8 * T * Cp),
    )(y2, s2, sh2, w3m)
    s3, sh3 = _fold_bn(sum3, ssq3, g3, be3, count)

    # ---- pass 4: BN3 apply + residual + ReLU --------------------------------
    est4 = 4 * TM * Cp * 2 + 2 * TM * Cp * 4
    out2d = pl.pallas_call(
        residual_kernel,
        grid=(T,),
        in_specs=[pl.BlockSpec((TM, Cp), lambda i: (i, 0)),
                  pl.BlockSpec((TM, Cp), lambda i: (i, 0)),
                  pl.BlockSpec((1, Cp), lambda i: (0, 0)),
                  pl.BlockSpec((1, Cp), lambda i: (0, 0))],
        out_specs=pl.BlockSpec((TM, Cp), lambda i: (i, 0)),
        out_shape=jax.ShapeDtypeStruct((M, Cp), f32),
        compiler_params=pltpu.CompilerParams(
            dimension_semantics=("parallel",),
            vmem_limit_bytes=_vmem_limit(est4)),
        cost_estimate=pl.CostEstimate(
            flops=3 * M * Cp, transcendentals=0,
            bytes_accessed=4 * M * Cp + 4 * M * Cp),
    )(y3, x2d, s3, sh3)

    out = out2d[:, :Cout].reshape(N, H, W, Cout)
    return jnp.transpose(out, (0, 3, 1, 2))       # back to NCHW


# --------------------------------------------------------------------------
# Pure-JAX reference (training-mode BN, default MXU precision)
# --------------------------------------------------------------------------
def bottleneck_reference(x, params):
    def conv(y, w, stride, pad):
        return jax.lax.conv_general_dilated(
            y, w, window_strides=(stride, stride),
            padding=[(pad, pad), (pad, pad)],
            dimension_numbers=('NCHW', 'OIHW', 'NCHW'))

    def bn(y, g, b):
        mean = jnp.mean(y, axis=(0, 2, 3), keepdims=True)
        var = jnp.mean((y - mean) ** 2, axis=(0, 2, 3), keepdims=True)
        return ((y - mean) * jax.lax.rsqrt(var + EPS)
                * g.reshape(1, -1, 1, 1) + b.reshape(1, -1, 1, 1))

    out = jax.nn.relu(bn(conv(x, params['w1'], 1, 0), params['g1'], params['b1']))
    out = jax.nn.relu(bn(conv(out, params['w2'], 1, 1), params['g2'], params['b2']))
    out = bn(conv(out, params['w3'], 1, 0), params['g3'], params['b3'])
    return jax.nn.relu(out + x)


if __name__ == "__main__":
    key = jax.random.PRNGKey(0)
    ks = jax.random.split(key, 10)

    N, H, W = 2, 16, 16
    planes = 4
    inplanes = planes * 4      # 16, so the residual add works without downsample

    x = jax.random.normal(ks[0], (N, inplanes, H, W), jnp.float32)
    params = {
        'w1': 0.3 * jax.random.normal(ks[1], (planes, inplanes, 1, 1), jnp.float32),
        'w2': 0.3 * jax.random.normal(ks[2], (planes, planes, 3, 3), jnp.float32),
        'w3': 0.3 * jax.random.normal(ks[3], (planes * 4, planes, 1, 1), jnp.float32),
        'g1': 1.0 + 0.1 * jax.random.normal(ks[4], (planes,), jnp.float32),
        'b1': 0.1 * jax.random.normal(ks[5], (planes,), jnp.float32),
        'g2': 1.0 + 0.1 * jax.random.normal(ks[6], (planes,), jnp.float32),
        'b2': 0.1 * jax.random.normal(ks[7], (planes,), jnp.float32),
        'g3': 1.0 + 0.1 * jax.random.normal(ks[8], (planes * 4,), jnp.float32),
        'b3': 0.1 * jax.random.normal(ks[9], (planes * 4,), jnp.float32),
    }

    # Auto tile picker -> imgs_per_tile=1, grid=(2,): exercises multi-tile
    # pipelining, the two-phase BatchNorm stats path and the T>=2 guarantee.
    fwd = jax.jit(bottleneck_forward)
    out = fwd(x, params)
    jax.block_until_ready(out)

    ref = bottleneck_reference(x, params)
    # Tolerance covers the bf16 MXU path and bf16 inter-pass intermediates.
    np.testing.assert_allclose(np.asarray(out), np.asarray(ref), atol=3e-2, rtol=3e-2)

    print("KERNEL_OK")
</pallas_src>

<mosaic_0001>
module attributes {stable_mosaic.version = 11 : i64} {
  func.func @conv1_kernel(%arg0: i32, %arg1: memref<256x128xbf16, #tpu.memory_space<vmem>>, %arg2: memref<128x128xbf16, #tpu.memory_space<vmem>>, %arg3: memref<256x128xbf16, #tpu.memory_space<vmem>>, %arg4: memref<1x1x128xf32, #tpu.memory_space<vmem>>, %arg5: memref<1x1x128xf32, #tpu.memory_space<vmem>>) attributes {dimension_semantics = [#tpu.dimension_semantics<parallel>], iteration_bounds = array<i64: 2>, scalar_prefetch = 0 : i64, scratch_operands = 0 : i64, tpu.core_type = #tpu.core_type<tc>, window_params = [{transform_indices = @transform_0, window_bounds = array<i64: 256, 128>}, {pipeline_mode = #tpu.pipeline_mode<synchronous>, transform_indices = @transform_1, window_bounds = array<i64: 128, 128>}, {transform_indices = @transform_2, window_bounds = array<i64: 256, 128>}, {transform_indices = @transform_3, window_bounds = array<i64: 1, 1, 128>}, {transform_indices = @transform_4, window_bounds = array<i64: 1, 1, 128>}]} {
    %c0 = arith.constant 0 : index
    %c0_0 = arith.constant 0 : index
    %0 = vector.load %arg1[%c0, %c0_0] : memref<256x128xbf16, #tpu.memory_space<vmem>>, vector<256x128xbf16>
    %c0_1 = arith.constant 0 : index
    %c0_2 = arith.constant 0 : index
    %1 = vector.load %arg2[%c0_1, %c0_2] : memref<128x128xbf16, #tpu.memory_space<vmem>>, vector<128x128xbf16>
    %cst = arith.constant dense<0.000000e+00> : vector<256x128xf32>
    %2 = tpu.matmul %0, %1, %cst {dimension_numbers = #tpu.dot_dimension_numbers<[1], [0], [0], [1], [0, 0, 1, 1], [], []>} : vector<256x128xbf16>, vector<128x128xbf16>, vector<256x128xf32> -> vector<256x128xf32>
    %3 = arith.truncf %2 : vector<256x128xf32> to vector<256x128xbf16>
    %c0_3 = arith.constant 0 : index
    %c0_4 = arith.constant 0 : index
    %4 = vector.load %arg3[%c0_3, %c0_4] : memref<256x128xbf16, #tpu.memory_space<vmem>>, vector<256x128xbf16>
    tpu.vector_store %arg3[%c0_3, %c0_4], %3 {strides = array<i32>} : memref<256x128xbf16, #tpu.memory_space<vmem>>, vector<256x128xbf16>,
    %cst_5 = arith.constant dense<0.000000e+00> : vector<128xf32>
    %5 = vector.multi_reduction <add>, %2, %cst_5 [0] : vector<256x128xf32> to vector<128xf32>
    %6 = vector.shape_cast %5 : vector<128xf32> to vector<1x128xf32>
    %7 = vector.shape_cast %6 : vector<1x128xf32> to vector<1x1x128xf32>
    %c0_6 = arith.constant 0 : index
    %c0_7 = arith.constant 0 : index
    %c0_8 = arith.constant 0 : index
    %8 = vector.load %arg4[%c0_6, %c0_7, %c0_8] : memref<1x1x128xf32, #tpu.memory_space<vmem>>, vector<1x1x128xf32>
    tpu.vector_store %arg4[%c0_6, %c0_7, %c0_8], %7 {strides = array<i32>} : memref<1x1x128xf32, #tpu.memory_space<vmem>>, vector<1x1x128xf32>,
    %9 = arith.mulf %2, %2 : vector<256x128xf32>
    %cst_9 = arith.constant dense<0.000000e+00> : vector<128xf32>
    %10 = vector.multi_reduction <add>, %9, %cst_9 [0] : vector<256x128xf32> to vector<128xf32>
    %11 = vector.shape_cast %10 : vector<128xf32> to vector<1x128xf32>
    %12 = vector.shape_cast %11 : vector<1x128xf32> to vector<1x1x128xf32>
    %c0_10 = arith.constant 0 : index
    %c0_11 = arith.constant 0 : index
    %c0_12 = arith.constant 0 : index
    %13 = vector.load %arg5[%c0_10, %c0_11, %c0_12] : memref<1x1x128xf32, #tpu.memory_space<vmem>>, vector<1x1x128xf32>
    tpu.vector_store %arg5[%c0_10, %c0_11, %c0_12], %12 {strides = array<i32>} : memref<1x1x128xf32, #tpu.memory_space<vmem>>, vector<1x1x128xf32>,
    return
  }
  func.func @transform_0(%arg0: i32) -> (i32, i32) {
    %c0_i32 = arith.constant 0 : i32
    %c0_i32_0 = arith.constant 0 : i32
    return %arg0, %c0_i32 : i32, i32
  }
  func.func @transform_1(%arg0: i32) -> (i32, i32) {
    %c0_i32 = arith.constant 0 : i32
    %c0_i32_0 = arith.constant 0 : i32
    %c0_i32_1 = arith.constant 0 : i32
    return %c0_i32, %c0_i32_0 : i32, i32
  }
  func.func @transform_2(%arg0: i32) -> (i32, i32) {
    %c0_i32 = arith.constant 0 : i32
    %c0_i32_0 = arith.constant 0 : i32
    return %arg0, %c0_i32 : i32, i32
  }
  func.func @transform_3(%arg0: i32) -> (i32, i32, i32) {
    %c0_i32 = arith.constant 0 : i32
    %c0_i32_0 = arith.constant 0 : i32
    %c0_i32_1 = arith.constant 0 : i32
    return %arg0, %c0_i32, %c0_i32_0 : i32, i32, i32
  }
  func.func @transform_4(%arg0: i32) -> (i32, i32, i32) {
    %c0_i32 = arith.constant 0 : i32
    %c0_i32_0 = arith.constant 0 : i32
    %c0_i32_1 = arith.constant 0 : i32
    return %arg0, %c0_i32, %c0_i32_0 : i32, i32, i32
  }
}

module attributes {stable_mosaic.version = 11 : i64} {
  func.func @conv2_kernel(%arg0: i32, %arg1: memref<256x128xbf16, #tpu.memory_space<vmem>>, %arg2: memref<1x128xf32, #tpu.memory_space<vmem>>, %arg3: memref<1x128xf32, #tpu.memory_space<vmem>>, %arg4: memref<1152x128xbf16, #tpu.memory_space<vmem>>, %arg5: memref<256x128xbf16, #tpu.memory_space<vmem>>, %arg6: memref<1x1x128xf32, #tpu.memory_space<vmem>>, %arg7: memref<1x1x128xf32, #tpu.memory_space<vmem>>, %arg8: memref<304x128xbf16, #tpu.memory_space<vmem>>, %arg9: memref<256x1152xbf16, #tpu.memory_space<vmem>>) attributes {dimension_semantics = [#tpu.dimension_semantics<parallel>], iteration_bounds = array<i64: 2>, scalar_prefetch = 0 : i64, scratch_operands = 2 : i64, tpu.core_type = #tpu.core_type<tc>, window_params = [{transform_indices = @transform_0, window_bounds = array<i64: 256, 128>}, {pipeline_mode = #tpu.pipeline_mode<synchronous>, transform_indices = @transform_1, window_bounds = array<i64: 1, 128>}, {pipeline_mode = #tpu.pipeline_mode<synchronous>, transform_indices = @transform_2, window_bounds = array<i64: 1, 128>}, {pipeline_mode = #tpu.pipeline_mode<synchronous>, transform_indices = @transform_3, window_bounds = array<i64: 1152, 128>}, {transform_indices = @transform_4, window_bounds = array<i64: 256, 128>}, {transform_indices = @transform_5, window_bounds = array<i64: 1, 1, 128>}, {transform_indices = @transform_6, window_bounds = array<i64: 1, 1, 128>}]} {
    %c0 = arith.constant 0 : index
    %c0_0 = arith.constant 0 : index
    %0 = vector.load %arg1[%c0, %c0_0] : memref<256x128xbf16, #tpu.memory_space<vmem>>, vector<256x128xbf16>
    %1 = arith.extf %0 : vector<256x128xbf16> to vector<256x128xf32>
    %c0_1 = arith.constant 0 : index
    %c0_2 = arith.constant 0 : index
    %2 = vector.load %arg2[%c0_1, %c0_2] : memref<1x128xf32, #tpu.memory_space<vmem>>, vector<1x128xf32>
    %3 = vector.broadcast %2 : vector<1x128xf32> to vector<256x128xf32>
    %4 = arith.mulf %1, %3 : vector<256x128xf32>
    %c0_3 = arith.constant 0 : index
    %c0_4 = arith.constant 0 : index
    %5 = vector.load %arg3[%c0_3, %c0_4] : memref<1x128xf32, #tpu.memory_space<vmem>>, vector<1x128xf32>
    %6 = vector.broadcast %5 : vector<1x128xf32> to vector<256x128xf32>
    %7 = arith.addf %4, %6 : vector<256x128xf32>
    %cst = arith.constant 0.000000e+00 : f32
    %8 = vector.broadcast %cst : f32 to vector<256x128xf32>
    %9 = arith.maximumf %7, %8 : vector<256x128xf32>
    %10 = arith.truncf %9 : vector<256x128xf32> to vector<256x128xbf16>
    %11 = tpu.iota {dimensions = array<i32: 0>} : vector<256x1xi32>
    %c16_i32 = arith.constant 16 : i32
    %c0_i32 = arith.constant 0 : i32
    %12 = arith.cmpi eq, %c16_i32, %c0_i32 : i32
    %c1_i32 = arith.constant 1 : i32
    %13 = arith.select %12, %c1_i32, %c16_i32 : i32
    %14 = vector.broadcast %13 : i32 to vector<256x1xi32>
    %15 = arith.remsi %11, %14 : vector<256x1xi32>
    %c0_i32_5 = arith.constant 0 : i32
    %16 = vector.broadcast %c0_i32_5 : i32 to vector<256x1xi32>
    %17 = arith.cmpi ne, %15, %16 : vector<256x1xi32>
    %c0_i32_6 = arith.constant 0 : i32
    %18 = vector.broadcast %c0_i32_6 : i32 to vector<256x1xi32>
    %19 = arith.cmpi slt, %15, %18 : vector<256x1xi32>
    %c0_i32_7 = arith.constant 0 : i32
    %20 = arith.cmpi slt, %13, %c0_i32_7 : i32
    %21 = vector.broadcast %20 : i1 to vector<256x1xi1>
    %22 = vector.broadcast %21 : vector<256x1xi1> to vector<256x1xi1>
    %23 = arith.xori %19, %22 : vector<256x1xi1>
    %24 = arith.andi %23, %17 : vector<256x1xi1>
    %25 = vector.broadcast %13 : i32 to vector<256x1xi32>
    %26 = arith.addi %15, %25 : vector<256x1xi32>
    %27 = arith.select %24, %26, %15 : vector<256x1xi1>, vector<256x1xi32>
    %c1_i32_8 = arith.constant 1 : i32
    %28 = vector.broadcast %c1_i32_8 : i32 to vector<256x1xi32>
    %29 = arith.cmpi sge, %27, %28 : vector<256x1xi32>
    %c14_i32 = arith.constant 14 : i32
    %30 = vector.broadcast %c14_i32 : i32 to vector<256x1xi32>
    %31 = arith.cmpi sle, %27, %30 : vector<256x1xi32>
    %cst_9 = arith.constant 0.000000e+00 : bf16
    %32 = vector.broadcast %cst_9 : bf16 to vector<24x128xbf16>
    %c0_10 = arith.constant 0 : index
    %c0_11 = arith.constant 0 : index
    %33 = vector.load %arg8[%c0_10, %c0_11] : memref<304x128xbf16, #tpu.memory_space<vmem>>, vector<24x128xbf16>
    tpu.vector_store %arg8[%c0_10, %c0_11], %32 {strides = array<i32>} : memref<304x128xbf16, #tpu.memory_space<vmem>>, vector<24x128xbf16>,
    %c280 = arith.constant 280 : index
    %c0_12 = arith.constant 0 : index
    %34 = vector.load %arg8[%c280, %c0_12] : memref<304x128xbf16, #tpu.memory_space<vmem>>, vector<24x128xbf16>
    tpu.vector_store %arg8[%c280, %c0_12], %32 {strides = array<i32>} : memref<304x128xbf16, #tpu.memory_space<vmem>>, vector<24x128xbf16>,
    %c24 = arith.constant 24 : index
    %c0_13 = arith.constant 0 : index
    %35 = vector.load %arg8[%c24, %c0_13] : memref<304x128xbf16, #tpu.memory_space<vmem>>, vector<256x128xbf16>
    tpu.vector_store %arg8[%c24, %c0_13], %10 {strides = array<i32>} : memref<304x128xbf16, #tpu.memory_space<vmem>>, vector<256x128xbf16>,
    %c7 = arith.constant 7 : index
    %c0_14 = arith.constant 0 : index
    %36 = vector.load %arg8[%c7, %c0_14] : memref<304x128xbf16, #tpu.memory_space<vmem>>, vector<256x128xbf16>
    %cst_15 = arith.constant 0.000000e+00 : bf16
    %37 = vector.broadcast %cst_15 : bf16 to vector<256x128xbf16>
    %38 = vector.shape_cast %29 : vector<256x1xi1> to vector<256x1xi1>
    %39 = vector.broadcast %38 : vector<256x1xi1> to vector<256x128xi1>
    %40 = arith.select %39, %36, %37 : vector<256x128xi1>, vector<256x128xbf16>
    %c0_16 = arith.constant 0 : index
    %c0_17 = arith.constant 0 : index
    %41 = vector.load %arg9[%c0_16, %c0_17] : memref<256x1152xbf16, #tpu.memory_space<vmem>>, vector<256x128xbf16>
    tpu.vector_store %arg9[%c0_16, %c0_17], %40 {strides = array<i32>} : memref<256x1152xbf16, #tpu.memory_space<vmem>>, vector<256x128xbf16>,
    %c8 = arith.constant 8 : index
    %c0_18 = arith.constant 0 : index
    %42 = vector.load %arg8[%c8, %c0_18] : memref<304x128xbf16, #tpu.memory_space<vmem>>, vector<256x128xbf16>
    %c0_19 = arith.constant 0 : index
    %c128 = arith.constant 128 : index
    %43 = vector.load %arg9[%c0_19, %c128] : memref<256x1152xbf16, #tpu.memory_space<vmem>>, vector<256x128xbf16>
    tpu.vector_store %arg9[%c0_19, %c128], %42 {strides = array<i32>} : memref<256x1152xbf16, #tpu.memory_space<vmem>>, vector<256x128xbf16>,
    %c9 = arith.constant 9 : index
    %c0_20 = arith.constant 0 : index
    %44 = vector.load %arg8[%c9, %c0_20] : memref<304x128xbf16, #tpu.memory_space<vmem>>, vector<256x128xbf16>
    %cst_21 = arith.constant 0.000000e+00 : bf16
    %45 = vector.broadcast %cst_21 : bf16 to vector<256x128xbf16>
    %46 = vector.shape_cast %31 : vector<256x1xi1> to vector<256x1xi1>
    %47 = vector.broadcast %46 : vector<256x1xi1> to vector<256x128xi1>
    %48 = arith.select %47, %44, %45 : vector<256x128xi1>, vector<256x128xbf16>
    %c0_22 = arith.constant 0 : index
    %c256 = arith.constant 256 : index
    %49 = vector.load %arg9[%c0_22, %c256] : memref<256x1152xbf16, #tpu.memory_space<vmem>>, vector<256x128xbf16>
    tpu.vector_store %arg9[%c0_22, %c256], %48 {strides = array<i32>} : memref<256x1152xbf16, #tpu.memory_space<vmem>>, vector<256x128xbf16>,
    %c23 = arith.constant 23 : index
    %c0_23 = arith.constant 0 : index
    %50 = vector.load %arg8[%c23, %c0_23] : memref<304x128xbf16, #tpu.memory_space<vmem>>, vector<256x128xbf16>
    %cst_24 = arith.constant 0.000000e+00 : bf16
    %51 = vector.broadcast %cst_24 : bf16 to vector<256x128xbf16>
    %52 = vector.shape_cast %29 : vector<256x1xi1> to vector<256x1xi1>
    %53 = vector.broadcast %52 : vector<256x1xi1> to vector<256x128xi1>
    %54 = arith.select %53, %50, %51 : vector<256x128xi1>, vector<256x128xbf16>
    %c0_25 = arith.constant 0 : index
    %c384 = arith.constant 384 : index
    %55 = vector.load %arg9[%c0_25, %c384] : memref<256x1152xbf16, #tpu.memory_space<vmem>>, vector<256x128xbf16>
    tpu.vector_store %arg9[%c0_25, %c384], %54 {strides = array<i32>} : memref<256x1152xbf16, #tpu.memory_space<vmem>>, vector<256x128xbf16>,
    %c24_26 = arith.constant 24 : index
    %c0_27 = arith.constant 0 : index
    %56 = vector.load %arg8[%c24_26, %c0_27] : memref<304x128xbf16, #tpu.memory_space<vmem>>, vector<256x128xbf16>
    %c0_28 = arith.constant 0 : index
    %c512 = arith.constant 512 : index
    %57 = vector.load %arg9[%c0_28, %c512] : memref<256x1152xbf16, #tpu.memory_space<vmem>>, vector<256x128xbf16>
    tpu.vector_store %arg9[%c0_28, %c512], %56 {strides = array<i32>} : memref<256x1152xbf16, #tpu.memory_space<vmem>>, vector<256x128xbf16>,
    %c25 = arith.constant 25 : index
    %c0_29 = arith.constant 0 : index
    %58 = vector.load %arg8[%c25, %c0_29] : memref<304x128xbf16, #tpu.memory_space<vmem>>, vector<256x128xbf16>
    %cst_30 = arith.constant 0.000000e+00 : bf16
    %59 = vector.broadcast %cst_30 : bf16 to vector<256x128xbf16>
    %60 = vector.shape_cast %31 : vector<256x1xi1> to vector<256x1xi1>
    %61 = vector.broadcast %60 : vector<256x1xi1> to vector<256x128xi1>
    %62 = arith.select %61, %58, %59 : vector<256x128xi1>, vector<256x128xbf16>
    %c0_31 = arith.constant 0 : index
    %c640 = arith.constant 640 : index
    %63 = vector.load %arg9[%c0_31, %c640] : memref<256x1152xbf16, #tpu.memory_space<vmem>>, vector<256x128xbf16>
    tpu.vector_store %arg9[%c0_31, %c640], %62 {strides = array<i32>} : memref<256x1152xbf16, #tpu.memory_space<vmem>>, vector<256x128xbf16>,
    %c39 = arith.constant 39 : index
    %c0_32 = arith.constant 0 : index
    %64 = vector.load %arg8[%c39, %c0_32] : memref<304x128xbf16, #tpu.memory_space<vmem>>, vector<256x128xbf16>
    %cst_33 = arith.constant 0.000000e+00 : bf16
    %65 = vector.broadcast %cst_33 : bf16 to vector<256x128xbf16>
    %66 = vector.shape_cast %29 : vector<256x1xi1> to vector<256x1xi1>
    %67 = vector.broadcast %66 : vector<256x1xi1> to vector<256x128xi1>
    %68 = arith.select %67, %64, %65 : vector<256x128xi1>, vector<256x128xbf16>
    %c0_34 = arith.constant 0 : index
    %c768 = arith.constant 768 : index
    %69 = vector.load %arg9[%c0_34, %c768] : memref<256x1152xbf16, #tpu.memory_space<vmem>>, vector<256x128xbf16>
    tpu.vector_store %arg9[%c0_34, %c768], %68 {strides = array<i32>} : memref<256x1152xbf16, #tpu.memory_space<vmem>>, vector<256x128xbf16>,
    %c40 = arith.constant 40 : index
    %c0_35 = arith.constant 0 : index
    %70 = vector.load %arg8[%c40, %c0_35] : memref<304x128xbf16, #tpu.memory_space<vmem>>, vector<256x128xbf16>
    %c0_36 = arith.constant 0 : index
    %c896 = arith.constant 896 : index
    %71 = vector.load %arg9[%c0_36, %c896] : memref<256x1152xbf16, #tpu.memory_space<vmem>>, vector<256x128xbf16>
    tpu.vector_store %arg9[%c0_36, %c896], %70 {strides = array<i32>} : memref<256x1152xbf16, #tpu.memory_space<vmem>>, vector<256x128xbf16>,
    %c41 = arith.constant 41 : index
    %c0_37 = arith.constant 0 : index
    %72 = vector.load %arg8[%c41, %c0_37] : memref<304x128xbf16, #tpu.memory_space<vmem>>, vector<256x128xbf16>
    %cst_38 = arith.constant 0.000000e+00 : bf16
    %73 = vector.broadcast %cst_38 : bf16 to vector<256x128xbf16>
    %74 = vector.shape_cast %31 : vector<256x1xi1> to vector<256x1xi1>
    %75 = vector.broadcast %74 : vector<256x1xi1> to vector<256x128xi1>
    %76 = arith.select %75, %72, %73 : vector<256x128xi1>, vector<256x128xbf16>
    %c0_39 = arith.constant 0 : index
    %c1024 = arith.constant 1024 : index
    %77 = vector.load %arg9[%c0_39, %c1024] : memref<256x1152xbf16, #tpu.memory_space<vmem>>, vector<256x128xbf16>
    tpu.vector_store %arg9[%c0_39, %c1024], %76 {strides = array<i32>} : memref<256x1152xbf16, #tpu.memory_space<vmem>>, vector<256x128xbf16>,
    %c0_40 = arith.constant 0 : index
    %c0_41 = arith.constant 0 : index
    %78 = vector.load %arg9[%c0_40, %c0_41] : memref<256x1152xbf16, #tpu.memory_space<vmem>>, vector<256x1152xbf16>
    %c0_42 = arith.constant 0 : index
    %c0_43 = arith.constant 0 : index
    %79 = vector.load %arg4[%c0_42, %c0_43] : memref<1152x128xbf16, #tpu.memory_space<vmem>>, vector<1152x128xbf16>
    %cst_44 = arith.constant dense<0.000000e+00> : vector<256x128xf32>
    %80 = tpu.matmul %78, %79, %cst_44 {dimension_numbers = #tpu.dot_dimension_numbers<[1], [0], [0], [1], [0, 0, 1, 1], [], []>} : vector<256x1152xbf16>, vector<1152x128xbf16>, vector<256x128xf32> -> vector<256x128xf32>
    %81 = arith.truncf %80 : vector<256x128xf32> to vector<256x128xbf16>
    %c0_45 = arith.constant 0 : index
    %c0_46 = arith.constant 0 : index
    %82 = vector.load %arg5[%c0_45, %c0_46] : memref<256x128xbf16, #tpu.memory_space<vmem>>, vector<256x128xbf16>
    tpu.vector_store %arg5[%c0_45, %c0_46], %81 {strides = array<i32>} : memref<256x128xbf16, #tpu.memory_space<vmem>>, vector<256x128xbf16>,
    %cst_47 = arith.constant dense<0.000000e+00> : vector<128xf32>
    %83 = vector.multi_reduction <add>, %80, %cst_47 [0] : vector<256x128xf32> to vector<128xf32>
    %84 = vector.shape_cast %83 : vector<128xf32> to vector<1x128xf32>
    %85 = vector.shape_cast %84 : vector<1x128xf32> to vector<1x1x128xf32>
    %c0_48 = arith.constant 0 : index
    %c0_49 = arith.constant 0 : index
    %c0_50 = arith.constant 0 : index
    %86 = vector.load %arg6[%c0_48, %c0_49, %c0_50] : memref<1x1x128xf32, #tpu.memory_space<vmem>>, vector<1x1x128xf32>
    tpu.vector_store %arg6[%c0_48, %c0_49, %c0_50], %85 {strides = array<i32>} : memref<1x1x128xf32, #tpu.memory_space<vmem>>, vector<1x1x128xf32>,
    %87 = arith.mulf %80, %80 : vector<256x128xf32>
    %cst_51 = arith.constant dense<0.000000e+00> : vector<128xf32>
    %88 = vector.multi_reduction <add>, %87, %cst_51 [0] : vector<256x128xf32> to vector<128xf32>
    %89 = vector.shape_cast %88 : vector<128xf32> to vector<1x128xf32>
    %90 = vector.shape_cast %89 : vector<1x128xf32> to vector<1x1x128xf32>
    %c0_52 = arith.constant 0 : index
    %c0_53 = arith.constant 0 : index
    %c0_54 = arith.constant 0 : index
    %91 = vector.load %arg7[%c0_52, %c0_53, %c0_54] : memref<1x1x128xf32, #tpu.memory_space<vmem>>, vector<1x1x128xf32>
    tpu.vector_store %arg7[%c0_52, %c0_53, %c0_54], %90 {strides = array<i32>} : memref<1x1x128xf32, #tpu.memory_space<vmem>>, vector<1x1x128xf32>,
    return
  }
  func.func @transform_0(%arg0: i32) -> (i32, i32) {
    %c0_i32 = arith.constant 0 : i32
    %c0_i32_0 = arith.constant 0 : i32
    return %arg0, %c0_i32 : i32, i32
  }
  func.func @transform_1(%arg0: i32) -> (i32, i32) {
    %c0_i32 = arith.constant 0 : i32
    %c0_i32_0 = arith.constant 0 : i32
    %c0_i32_1 = arith.constant 0 : i32
    return %c0_i32, %c0_i32_0 : i32, i32
  }
  func.func @transform_2(%arg0: i32) -> (i32, i32) {
    %c0_i32 = arith.constant 0 : i32
    %c0_i32_0 = arith.constant 0 : i32
    %c0_i32_1 = arith.constant 0 : i32
    return %c0_i32, %c0_i32_0 : i32, i32
  }
  func.func @transform_3(%arg0: i32) -> (i32, i32) {
    %c0_i32 = arith.constant 0 : i32
    %c0_i32_0 = arith.constant 0 : i32
    %c0_i32_1 = arith.constant 0 : i32
    return %c0_i32, %c0_i32_0 : i32, i32
  }
  func.func @transform_4(%arg0: i32) -> (i32, i32) {
    %c0_i32 = arith.constant 0 : i32
    %c0_i32_0 = arith.constant 0 : i32
    return %arg0, %c0_i32 : i32, i32
  }
  func.func @transform_5(%arg0: i32) -> (i32, i32, i32) {
    %c0_i32 = arith.constant 0 : i32
    %c0_i32_0 = arith.constant 0 : i32
    %c0_i32_1 = arith.constant 0 : i32
    return %arg0, %c0_i32, %c0_i32_0 : i32, i32, i32
  }
  func.func @transform_6(%arg0: i32) -> (i32, i32, i32) {
    %c0_i32 = arith.constant 0 : i32
    %c0_i32_0 = arith.constant 0 : i32
    %c0_i32_1 = arith.constant 0 : i32
    return %arg0, %c0_i32, %c0_i32_0 : i32, i32, i32
  }
}

module attributes {stable_mosaic.version = 11 : i64} {
  func.func @conv3_kernel(%arg0: i32, %arg1: memref<256x128xbf16, #tpu.memory_space<vmem>>, %arg2: memref<1x128xf32, #tpu.memory_space<vmem>>, %arg3: memref<1x128xf32, #tpu.memory_space<vmem>>, %arg4: memref<128x128xbf16, #tpu.memory_space<vmem>>, %arg5: memref<256x128xbf16, #tpu.memory_space<vmem>>, %arg6: memref<1x1x128xf32, #tpu.memory_space<vmem>>, %arg7: memref<1x1x128xf32, #tpu.memory_space<vmem>>) attributes {dimension_semantics = [#tpu.dimension_semantics<parallel>], iteration_bounds = array<i64: 2>, scalar_prefetch = 0 : i64, scratch_operands = 0 : i64, tpu.core_type = #tpu.core_type<tc>, window_params = [{transform_indices = @transform_0, window_bounds = array<i64: 256, 128>}, {pipeline_mode = #tpu.pipeline_mode<synchronous>, transform_indices = @transform_1, window_bounds = array<i64: 1, 128>}, {pipeline_mode = #tpu.pipeline_mode<synchronous>, transform_indices = @transform_2, window_bounds = array<i64: 1, 128>}, {pipeline_mode = #tpu.pipeline_mode<synchronous>, transform_indices = @transform_3, window_bounds = array<i64: 128, 128>}, {transform_indices = @transform_4, window_bounds = array<i64: 256, 128>}, {transform_indices = @transform_5, window_bounds = array<i64: 1, 1, 128>}, {transform_indices = @transform_6, window_bounds = array<i64: 1, 1, 128>}]} {
    %c0 = arith.constant 0 : index
    %c0_0 = arith.constant 0 : index
    %0 = vector.load %arg1[%c0, %c0_0] : memref<256x128xbf16, #tpu.memory_space<vmem>>, vector<256x128xbf16>
    %1 = arith.extf %0 : vector<256x128xbf16> to vector<256x128xf32>
    %c0_1 = arith.constant 0 : index
    %c0_2 = arith.constant 0 : index
    %2 = vector.load %arg2[%c0_1, %c0_2] : memref<1x128xf32, #tpu.memory_space<vmem>>, vector<1x128xf32>
    %3 = vector.broadcast %2 : vector<1x128xf32> to vector<256x128xf32>
    %4 = arith.mulf %1, %3 : vector<256x128xf32>
    %c0_3 = arith.constant 0 : index
    %c0_4 = arith.constant 0 : index
    %5 = vector.load %arg3[%c0_3, %c0_4] : memref<1x128xf32, #tpu.memory_space<vmem>>, vector<1x128xf32>
    %6 = vector.broadcast %5 : vector<1x128xf32> to vector<256x128xf32>
    %7 = arith.addf %4, %6 : vector<256x128xf32>
    %cst = arith.constant 0.000000e+00 : f32
    %8 = vector.broadcast %cst : f32 to vector<256x128xf32>
    %9 = arith.maximumf %7, %8 : vector<256x128xf32>
    %10 = arith.truncf %9 : vector<256x128xf32> to vector<256x128xbf16>
    %c0_5 = arith.constant 0 : index
    %c0_6 = arith.constant 0 : index
    %11 = vector.load %arg4[%c0_5, %c0_6] : memref<128x128xbf16, #tpu.memory_space<vmem>>, vector<128x128xbf16>
    %cst_7 = arith.constant dense<0.000000e+00> : vector<256x128xf32>
    %12 = tpu.matmul %10, %11, %cst_7 {dimension_numbers = #tpu.dot_dimension_numbers<[1], [0], [0], [1], [0, 0, 1, 1], [], []>} : vector<256x128xbf16>, vector<128x128xbf16>, vector<256x128xf32> -> vector<256x128xf32>
    %13 = arith.truncf %12 : vector<256x128xf32> to vector<256x128xbf16>
    %c0_8 = arith.constant 0 : index
    %c0_9 = arith.constant 0 : index
    %14 = vector.load %arg5[%c0_8, %c0_9] : memref<256x128xbf16, #tpu.memory_space<vmem>>, vector<256x128xbf16>
    tpu.vector_store %arg5[%c0_8, %c0_9], %13 {strides = array<i32>} : memref<256x128xbf16, #tpu.memory_space<vmem>>, vector<256x128xbf16>,
    %cst_10 = arith.constant dense<0.000000e+00> : vector<128xf32>
    %15 = vector.multi_reduction <add>, %12, %cst_10 [0] : vector<256x128xf32> to vector<128xf32>
    %16 = vector.shape_cast %15 : vector<128xf32> to vector<1x128xf32>
    %17 = vector.shape_cast %16 : vector<1x128xf32> to vector<1x1x128xf32>
    %c0_11 = arith.constant 0 : index
    %c0_12 = arith.constant 0 : index
    %c0_13 = arith.constant 0 : index
    %18 = vector.load %arg6[%c0_11, %c0_12, %c0_13] : memref<1x1x128xf32, #tpu.memory_space<vmem>>, vector<1x1x128xf32>
    tpu.vector_store %arg6[%c0_11, %c0_12, %c0_13], %17 {strides = array<i32>} : memref<1x1x128xf32, #tpu.memory_space<vmem>>, vector<1x1x128xf32>,
    %19 = arith.mulf %12, %12 : vector<256x128xf32>
    %cst_14 = arith.constant dense<0.000000e+00> : vector<128xf32>
    %20 = vector.multi_reduction <add>, %19, %cst_14 [0] : vector<256x128xf32> to vector<128xf32>
    %21 = vector.shape_cast %20 : vector<128xf32> to vector<1x128xf32>
    %22 = vector.shape_cast %21 : vector<1x128xf32> to vector<1x1x128xf32>
    %c0_15 = arith.constant 0 : index
    %c0_16 = arith.constant 0 : index
    %c0_17 = arith.constant 0 : index
    %23 = vector.load %arg7[%c0_15, %c0_16, %c0_17] : memref<1x1x128xf32, #tpu.memory_space<vmem>>, vector<1x1x128xf32>
    tpu.vector_store %arg7[%c0_15, %c0_16, %c0_17], %22 {strides = array<i32>} : memref<1x1x128xf32, #tpu.memory_space<vmem>>, vector<1x1x128xf32>,
    return
  }
  func.func @transform_0(%arg0: i32) -> (i32, i32) {
    %c0_i32 = arith.constant 0 : i32
    %c0_i32_0 = arith.constant 0 : i32
    return %arg0, %c0_i32 : i32, i32
  }
  func.func @transform_1(%arg0: i32) -> (i32, i32) {
    %c0_i32 = arith.constant 0 : i32
    %c0_i32_0 = arith.constant 0 : i32
    %c0_i32_1 = arith.constant 0 : i32
    return %c0_i32, %c0_i32_0 : i32, i32
  }
  func.func @transform_2(%arg0: i32) -> (i32, i32) {
    %c0_i32 = arith.constant 0 : i32
    %c0_i32_0 = arith.constant 0 : i32
    %c0_i32_1 = arith.constant 0 : i32
    return %c0_i32, %c0_i32_0 : i32, i32
  }
  func.func @transform_3(%arg0: i32) -> (i32, i32) {
    %c0_i32 = arith.constant 0 : i32
    %c0_i32_0 = arith.constant 0 : i32
    %c0_i32_1 = arith.constant 0 : i32
    return %c0_i32, %c0_i32_0 : i32, i32
  }
  func.func @transform_4(%arg0: i32) -> (i32, i32) {
    %c0_i32 = arith.constant 0 : i32
    %c0_i32_0 = arith.constant 0 : i32
    return %arg0, %c0_i32 : i32, i32
  }
  func.func @transform_5(%arg0: i32) -> (i32, i32, i32) {
    %c0_i32 = arith.constant 0 : i32
    %c0_i32_0 = arith.constant 0 : i32
    %c0_i32_1 = arith.constant 0 : i32
    return %arg0, %c0_i32, %c0_i32_0 : i32, i32, i32
  }
  func.func @transform_6(%arg0: i32) -> (i32, i32, i32) {
    %c0_i32 = arith.constant 0 : i32
    %c0_i32_0 = arith.constant 0 : i32
    %c0_i32_1 = arith.constant 0 : i32
    return %arg0, %c0_i32, %c0_i32_0 : i32, i32, i32
  }
}

module attributes {stable_mosaic.version = 11 : i64} {
  func.func @residual_kernel(%arg0: i32, %arg1: memref<256x128xbf16, #tpu.memory_space<vmem>>, %arg2: memref<256x128xbf16, #tpu.memory_space<vmem>>, %arg3: memref<1x128xf32, #tpu.memory_space<vmem>>, %arg4: memref<1x128xf32, #tpu.memory_space<vmem>>, %arg5: memref<256x128xf32, #tpu.memory_space<vmem>>) attributes {dimension_semantics = [#tpu.dimension_semantics<parallel>], iteration_bounds = array<i64: 2>, scalar_prefetch = 0 : i64, scratch_operands = 0 : i64, tpu.core_type = #tpu.core_type<tc>, window_params = [{transform_indices = @transform_0, window_bounds = array<i64: 256, 128>}, {transform_indices = @transform_1, window_bounds = array<i64: 256, 128>}, {pipeline_mode = #tpu.pipeline_mode<synchronous>, transform_indices = @transform_2, window_bounds = array<i64: 1, 128>}, {pipeline_mode = #tpu.pipeline_mode<synchronous>, transform_indices = @transform_3, window_bounds = array<i64: 1, 128>}, {transform_indices = @transform_4, window_bounds = array<i64: 256, 128>}]} {
    %c0 = arith.constant 0 : index
    %c0_0 = arith.constant 0 : index
    %0 = vector.load %arg1[%c0, %c0_0] : memref<256x128xbf16, #tpu.memory_space<vmem>>, vector<256x128xbf16>
    %1 = arith.extf %0 : vector<256x128xbf16> to vector<256x128xf32>
    %c0_1 = arith.constant 0 : index
    %c0_2 = arith.constant 0 : index
    %2 = vector.load %arg3[%c0_1, %c0_2] : memref<1x128xf32, #tpu.memory_space<vmem>>, vector<1x128xf32>
    %3 = vector.broadcast %2 : vector<1x128xf32> to vector<256x128xf32>
    %4 = arith.mulf %1, %3 : vector<256x128xf32>
    %c0_3 = arith.constant 0 : index
    %c0_4 = arith.constant 0 : index
    %5 = vector.load %arg4[%c0_3, %c0_4] : memref<1x128xf32, #tpu.memory_space<vmem>>, vector<1x128xf32>
    %6 = vector.broadcast %5 : vector<1x128xf32> to vector<256x128xf32>
    %7 = arith.addf %4, %6 : vector<256x128xf32>
    %c0_5 = arith.constant 0 : index
    %c0_6 = arith.constant 0 : index
    %8 = vector.load %arg2[%c0_5, %c0_6] : memref<256x128xbf16, #tpu.memory_space<vmem>>, vector<256x128xbf16>
    %9 = arith.extf %8 : vector<256x128xbf16> to vector<256x128xf32>
    %10 = arith.addf %7, %9 : vector<256x128xf32>
    %cst = arith.constant 0.000000e+00 : f32
    %11 = vector.broadcast %cst : f32 to vector<256x128xf32>
    %12 = arith.maximumf %10, %11 : vector<256x128xf32>
    %c0_7 = arith.constant 0 : index
    %c0_8 = arith.constant 0 : index
    %13 = vector.load %arg5[%c0_7, %c0_8] : memref<256x128xf32, #tpu.memory_space<vmem>>, vector<256x128xf32>
    tpu.vector_store %arg5[%c0_7, %c0_8], %12 {strides = array<i32>} : memref<256x128xf32, #tpu.memory_space<vmem>>, vector<256x128xf32>,
    return
  }
  func.func @transform_0(%arg0: i32) -> (i32, i32) {
    %c0_i32 = arith.constant 0 : i32
    %c0_i32_0 = arith.constant 0 : i32
    return %arg0, %c0_i32 : i32, i32
  }
  func.func @transform_1(%arg0: i32) -> (i32, i32) {
    %c0_i32 = arith.constant 0 : i32
    %c0_i32_0 = arith.constant 0 : i32
    return %arg0, %c0_i32 : i32, i32
  }
  func.func @transform_2(%arg0: i32) -> (i32, i32) {
    %c0_i32 = arith.constant 0 : i32
    %c0_i32_0 = arith.constant 0 : i32
    %c0_i32_1 = arith.constant 0 : i32
    return %c0_i32, %c0_i32_0 : i32, i32
  }
  func.func @transform_3(%arg0: i32) -> (i32, i32) {
    %c0_i32 = arith.constant 0 : i32
    %c0_i32_0 = arith.constant 0 : i32
    %c0_i32_1 = arith.constant 0 : i32
    return %c0_i32, %c0_i32_0 : i32, i32
  }
  func.func @transform_4(%arg0: i32) -> (i32, i32) {
    %c0_i32 = arith.constant 0 : i32
    %c0_i32_0 = arith.constant 0 : i32
    return %arg0, %c0_i32 : i32, i32
  }
}

</mosaic_0001>

<bundles_post_ra>
// kernel: bottleneck_forward.4
= control target key start
LH: loop header
LB: loop body
LE: loop exit
PB: predicated region body
PF: predicated region fallthrough
CT: control target
= control target key end

     0   :  { %s1293_s15 = smov 0   ;;  %s1478_s0 = inlined_call_operand.vmem [shape: bf16[512,128], index: 0, kind: input, shape index: {}]   ;;  %s1479_s1 = inlined_call_operand.vmem [shape: bf16[128,128], index: 1, kind: input, shape index: {}]   ;;  %s1480_s2 = inlined_call_operand.vmem [shape: bf16[512,128], index: 2, kind: output, shape index: {0}]   ;;  %s1481_s3 = inlined_call_operand.vmem [shape: f32[2,1,128], index: 3, kind: output, shape index: {1}]   ;;  %s1482_s4 = inlined_call_operand.vmem [shape: f32[2,1,128], index: 4, kind: output, shape index: {2}]  }
   0x1 LB: > { %s1299_s16 = sadd.s32 4294967295, %s1266_s15   ;;  %p950_p0 = scmp.ge.s32.totalorder %s1266_s15, 1  ;;  %s1266_s15 = sphi %s1293_s15, %s15_s15  }
   0x2   : > { %p168_p1 = scmp.lt.s32.totalorder %s1266_s15, 3 }
   0x4   : > { %p169_p2 = pnand %p950_p0, %p168_p1 }
   0x5   : > { %s951_s19 = sshll.u32 (!%p169_p2), %s1299_s16, 5  ;;  %p212_p4 = scmp.lt.s32.totalorder (!%p169_p2), %s1299_s16, 1 }
   0x6   : > { %172 = sbr.rel (%p169_p2) target bundleno = 320 (0x140), region = 28  ;;  %p201_p3 = scmp.lt.s32.totalorder (!%p169_p2), %s951_s19, 63 }
   0xb   : > { %v1236_v0 = vld [vmem:[%s1479_s1 + $0x38] sm:$0xff]   ;;  %v1237_v1 = vld [vmem:[%s1479_s1 + $0x30] sm:$0xff]   ;;  %s1484_s19 = smov (!%p201_p3, %s951_s19), 63  ;;  %v1238_v2 = vld [vmem:[%s1479_s1 + $0x28] sm:$0xff]   ;;  %s1486_s16 = smov (!%p212_p4, %s1299_s16), 1 }
   0xc   : > { %1164 = vmatprep.subr.bf16.mxu0 %v1236_v0  ;;  %1212 = vmatprep.subr.bf16.mxu1 %v1236_v0  ;;  %s952_s24 = sshll.u32 %s1484_s19, 2  ;;  %v1239_v3 = vld [vmem:[%s1479_s1 + $0x20] sm:$0xff]   ;;  %v1240_v5 = vld [vmem:[%s1479_s1 + $0x18] sm:$0xff]   ;;  %v1241_v6 = vld [vmem:[%s1479_s1 + $0x10] sm:$0xff]   ;;  %s214_s19 = scalar_lea.vmem %s1481_s3, %s1486_s16 }
   0xd   : > { %1165 = vmatpush3.bf16.msra.mxu0 %v1236_v0  ;;  %1220 = vmatpush3.bf16.msra.mxu1 %v1236_v0  ;;  %s1321_s27 = scalar_lea.vmem %s1478_s0, %s952_s24  ;;  %v1242_v8 = vld [vmem:[%s1479_s1 + $0x8] sm:$0xff]   ;;  %v1243_v9 = vld [vmem:[%s1479_s1] sm:$0xff]   ;;  %s1363_s14 = scalar_lea.vmem %s1480_s2, %s952_s24 }
   0xe   : > { %1166 = vmatprep.subr.bf16.mxu0 %v1237_v1  ;;  %1213 = vmatprep.subr.bf16.mxu1 %v1237_v1  ;;  %v1244_v4 = vld [vmem:[%s1321_s27] sm:$0xff]   ;;  %v1245_v10 = vld [vmem:[%s1321_s27 + $0x8] sm:$0xff]   ;;  %v1246_v12 = vld [vmem:[%s1321_s27 + $0x10] sm:$0xff]   ;;  %s217_s22 = scalar_lea.vmem %s1482_s4, %s1486_s16 }
   0xf   : > { %1180 = vmatprep.mubr.bf16.mxu0 %v1244_v4  ;;  %v1252_v7 = vld [vmem:[%s1321_s27 + $0x40] sm:$0xff]   ;;  %v1253_v11 = vld [vmem:[%s1321_s27 + $0x48] sm:$0xff]   ;;  %v1254_v13 = vld [vmem:[%s1321_s27 + $0x50] sm:$0xff]  }
  0x10   : > { %1196 = vmatprep.mubr.bf16.mxu1 %v1252_v7  ;;  %v1247_v14 = vld [vmem:[%s1321_s27 + $0x18] sm:$0xff]   ;;  %v1248_v16 = vld [vmem:[%s1321_s27 + $0x20] sm:$0xff]   ;;  %v1249_v18 = vld [vmem:[%s1321_s27 + $0x28] sm:$0xff]  }
  0x11   : > { %1167 = vmatpush3.bf16.msra.mxu0 %v1237_v1  ;;  %1221 = vmatpush3.bf16.msra.mxu1 %v1237_v1  ;;  %v1255_v15 = vld [vmem:[%s1321_s27 + $0x58] sm:$0xff]   ;;  %v1256_v17 = vld [vmem:[%s1321_s27 + $0x60] sm:$0xff]   ;;  %v1257_v19 = vld [vmem:[%s1321_s27 + $0x68] sm:$0xff]  }
  0x12   : > { %1168 = vmatprep.subr.bf16.mxu0 %v1238_v2  ;;  %1214 = vmatprep.subr.bf16.mxu1 %v1238_v2  ;;  %v1250_v20 = vld [vmem:[%s1321_s27 + $0x30] sm:$0xff]   ;;  %v1251_v22 = vld [vmem:[%s1321_s27 + $0x38] sm:$0xff]  }
  0x13   : > { %v1258_v21 = vld [vmem:[%s1321_s27 + $0x70] sm:$0xff]   ;;  %v1259_v23 = vld [vmem:[%s1321_s27 + $0x78] sm:$0xff]  }
  0x15   : > { %1169 = vmatpush3.bf16.msra.mxu0 %v1238_v2  ;;  %1222 = vmatpush3.bf16.msra.mxu1 %v1238_v2 }
  0x16   : > { %1170 = vmatprep.subr.bf16.mxu0 %v1239_v3  ;;  %1215 = vmatprep.subr.bf16.mxu1 %v1239_v3 }
  0x19   : > { %1171 = vmatpush3.bf16.msra.mxu0 %v1239_v3  ;;  %1223 = vmatpush3.bf16.msra.mxu1 %v1239_v3 }
  0x1a   : > { %1172 = vmatprep.subr.bf16.mxu0 %v1240_v5  ;;  %1216 = vmatprep.subr.bf16.mxu1 %v1240_v5 }
  0x1d   : > { %1173 = vmatpush3.bf16.msra.mxu0 %v1240_v5  ;;  %1224 = vmatpush3.bf16.msra.mxu1 %v1240_v5 }
  0x1e   : > { %1174 = vmatprep.subr.bf16.mxu0 %v1241_v6  ;;  %1217 = vmatprep.subr.bf16.mxu1 %v1241_v6 }
  0x21   : > { %1175 = vmatpush3.bf16.msra.mxu0 %v1241_v6  ;;  %1225 = vmatpush3.bf16.msra.mxu1 %v1241_v6 }
  0x22   : > { %1176 = vmatprep.subr.bf16.mxu0 %v1242_v8  ;;  %1218 = vmatprep.subr.bf16.mxu1 %v1242_v8 }
  0x25   : > { %1177 = vmatpush3.bf16.msra.mxu0 %v1242_v8  ;;  %1226 = vmatpush3.bf16.msra.mxu1 %v1242_v8 }
  0x26   : > { %1178 = vmatprep.subr.bf16.mxu0 %v1243_v9  ;;  %1219 = vmatprep.subr.bf16.mxu1 %v1243_v9 }
  0x29   : > { %1179 = vmatpush3.bf16.msra.mxu0 %v1243_v9  ;;  %1227 = vmatpush3.bf16.msra.mxu1 %v1243_v9 }
  0x2c   : > { %1181 = vmatmul.mubr.bf16.vlgmr.msra.gmra.mxu0 %v1245_v10  ;;  %1197 = vmatmul.mubr.bf16.vlgmr.msra.gmra.mxu1 %v1253_v11 }
  0x2d   : > { %1184 = vmatprep.mubr.bf16.mxu0 %v1246_v12  ;;  %1200 = vmatprep.mubr.bf16.mxu1 %v1254_v13 }
  0x34   : > { %1185 = vmatmul.mubr.bf16.gmra.mxu0 %v1247_v14  ;;  %1201 = vmatmul.mubr.bf16.gmra.mxu1 %v1255_v15 }
  0x35   : > { %1188 = vmatprep.mubr.bf16.mxu0 %v1248_v16  ;;  %1204 = vmatprep.mubr.bf16.mxu1 %v1256_v17 }
  0x3c   : > { %1189 = vmatmul.mubr.bf16.gmra.mxu0 %v1249_v18  ;;  %1205 = vmatmul.mubr.bf16.gmra.mxu1 %v1257_v19 }
  0x3d   : > { %1192 = vmatprep.mubr.bf16.mxu0 %v1250_v20  ;;  %1208 = vmatprep.mubr.bf16.mxu1 %v1258_v21 }
  0x44   : > { %1193 = vmatmul.mubr.bf16.gmra.mxu0 %v1251_v22  ;;  %1209 = vmatmul.mubr.bf16.gmra.mxu1 %v1259_v23 }
  0xec   : > { %v1182_v24 = vpop.f32.mrf.mxu0  ;;  %v1354_v25 = vpop.f32.mrf.mxu1 }
  0xed   : > { %v772_v41 = vmul.f32 %v1182_v24, %v1182_v24 }
  0xee   : > { %v445_v26 = vpop.f32.mrf.mxu0  ;;  %v1356_v27 = vpop.f32.mrf.mxu1 }
  0xef   : > { %v770_v32 = vmul.f32 %v445_v26, %v445_v26 }
  0xf0   : > { %v1183_v28 = vpop.f32.mrf.mxu0  ;;  %v1365_v29 = vpop.f32.mrf.mxu1 }
  0xf1   : > { %v1053_v30 = vpack.c.bf16 %v1183_v28, %v1182_v24  ;;  %v1093_v31 = vpack.c.bf16 %v1365_v29, %v1354_v25  ;;  %v773_v46 = vmul.f32 %v1183_v28, %v1183_v28 }
  0xf2   : > { %v448_v33 = vpop.f32.mrf.mxu0  ;;  %v1369_v34 = vpop.f32.mrf.mxu1 }
  0xf3   : > { %1125 = vst [vmem:[%s1363_s14 + $0x8] sm:$0xff] %v1053_v30   ;;  %v1048_v35 = vpack.c.bf16 %v448_v33, %v445_v26  ;;  %v732_v36 = vadd.f32 %v448_v33, %v445_v26  ;;  %v771_v37 = vmul.f32 %v448_v33, %v448_v33  ;;  %1133 = vst [vmem:[%s1363_s14 + $0x48] sm:$0xff] %v1093_v31  }
  0xf4   : > { %v1088_v38 = vpack.c.bf16 %v1369_v34, %v1356_v27  ;;  %v1186_v39 = vpop.f32.mrf.mxu0  ;;  %v1375_v40 = vpop.f32.mrf.mxu1 }
  0xf5   : > { %1049 = vst [vmem:[%s1363_s14] sm:$0xff] %v1048_v35   ;;  %v733_v42 = vadd.f32 %v1182_v24, %v732_v36  ;;  %v802_v43 = vadd.f32 %v771_v37, %v770_v32  ;;  %v776_v1 = vmul.f32 %v1186_v39, %v1186_v39 }
  0xf6   : > { %1132 = vst [vmem:[%s1363_s14 + $0x40] sm:$0xff] %v1088_v38   ;;  %v461_v44 = vpop.f32.mrf.mxu0  ;;  %v1379_v45 = vpop.f32.mrf.mxu1 }
  0xf7   : > { %v803_v47 = vadd.f32 %v802_v43, %v772_v41  ;;  %v734_v48 = vadd.f32 %v1183_v28, %v733_v42  ;;  %v774_v52 = vmul.f32 %v461_v44, %v461_v44 }
  0xf8   : > { %v1187_v49 = vpop.f32.mrf.mxu0  ;;  %v1381_v50 = vpop.f32.mrf.mxu1 }
  0xf9   : > { %v735_v51 = vadd.f32 %v734_v48, %v461_v44  ;;  %v804_v53 = vadd.f32 %v803_v47, %v773_v46  ;;  %v1063_v54 = vpack.c.bf16 %v1187_v49, %v1186_v39  ;;  %v1103_v56 = vpack.c.bf16 %v1381_v50, %v1375_v40 }
  0xfa   : > { %v464_v55 = vpop.f32.mrf.mxu0  ;;  %v1385_v57 = vpop.f32.mrf.mxu1  ;;  %v777_v6 = vmul.f32 %v1187_v49, %v1187_v49 }
  0xfb   : > { %v805_v58 = vadd.f32 %v804_v53, %v774_v52  ;;  %1127 = vst [vmem:[%s1363_s14 + $0x18] sm:$0xff] %v1063_v54   ;;  %v1058_v59 = vpack.c.bf16 %v464_v55, %v461_v44  ;;  %v736_v60 = vadd.f32 %v735_v51, %v464_v55  ;;  %v775_v61 = vmul.f32 %v464_v55, %v464_v55 }
  0xfc   : > { %v1190_v62 = vpop.f32.mrf.mxu0  ;;  %1135 = vst [vmem:[%s1363_s14 + $0x58] sm:$0xff] %v1103_v56   ;;  %v1098_v63 = vpack.c.bf16 %v1385_v57, %v1379_v45  ;;  %v1391_v0 = vpop.f32.mrf.mxu1 }
  0xfd   : > { %1126 = vst [vmem:[%s1363_s14 + $0x10] sm:$0xff] %v1058_v59   ;;  %v737_v2 = vadd.f32 %v1186_v39, %v736_v60  ;;  %v806_v3 = vadd.f32 %v805_v58, %v775_v61  ;;  %v780_v26 = vmul.f32 %v1190_v62, %v1190_v62  ;;  %v786_v61 = vmul.f32 %v1356_v27, %v1356_v27 }
  0xfe   : > { %v477_v4 = vpop.f32.mrf.mxu0  ;;  %1134 = vst [vmem:[%s1363_s14 + $0x50] sm:$0xff] %v1098_v63   ;;  %v1395_v5 = vpop.f32.mrf.mxu1 }
  0xff   : > { %v807_v7 = vadd.f32 %v806_v3, %v776_v1  ;;  %v738_v8 = vadd.f32 %v1187_v49, %v737_v2  ;;  %v778_v12 = vmul.f32 %v477_v4, %v477_v4  ;;  %v787_v2 = vmul.f32 %v1369_v34, %v1369_v34 }
 0x100   : > { %v1191_v9 = vpop.f32.mrf.mxu0  ;;  %v1397_v10 = vpop.f32.mrf.mxu1 }
 0x101   : > { %v739_v11 = vadd.f32 %v738_v8, %v477_v4  ;;  %v808_v13 = vadd.f32 %v807_v7, %v777_v6  ;;  %v1073_v14 = vpack.c.bf16 %v1191_v9, %v1190_v62  ;;  %v1113_v16 = vpack.c.bf16 %v1397_v10, %v1391_v0 }
 0x102   : > { %v480_v15 = vpop.f32.mrf.mxu0  ;;  %v1401_v17 = vpop.f32.mrf.mxu1  ;;  %v781_v33 = vmul.f32 %v1191_v9, %v1191_v9  ;;  %v789_v8 = vmul.f32 %v1365_v29, %v1365_v29 }
 0x103   : > { %v809_v18 = vadd.f32 %v808_v13, %v778_v12  ;;  %1129 = vst [vmem:[%s1363_s14 + $0x28] sm:$0xff] %v1073_v14   ;;  %v1068_v19 = vpack.c.bf16 %v480_v15, %v477_v4  ;;  %v740_v20 = vadd.f32 %v739_v11, %v480_v15  ;;  %v779_v21 = vmul.f32 %v480_v15, %v480_v15 }
 0x104   : > { %v1194_v22 = vpop.f32.mrf.mxu0  ;;  %1137 = vst [vmem:[%s1363_s14 + $0x68] sm:$0xff] %v1113_v16   ;;  %v1108_v23 = vpack.c.bf16 %v1401_v17, %v1395_v5  ;;  %v1407_v24 = vpop.f32.mrf.mxu1  ;;  %v788_v4 = vmul.f32 %v1354_v25, %v1354_v25  ;;  %v790_v12 = vmul.f32 %v1379_v45, %v1379_v45  ;;  %v791_v15 = vmul.f32 %v1385_v57, %v1385_v57 }
 0x105   : > { %1128 = vst [vmem:[%s1363_s14 + $0x20] sm:$0xff] %v1068_v19   ;;  %v741_v28 = vadd.f32 %v1190_v62, %v740_v20  ;;  %v810_v30 = vadd.f32 %v809_v18, %v779_v21  ;;  %v784_v54 = vmul.f32 %v1194_v22, %v1194_v22  ;;  %v794_v21 = vmul.f32 %v1395_v5, %v1395_v5 }
 0x106   : > { %v493_v31 = vpop.f32.mrf.mxu0  ;;  %1136 = vst [vmem:[%s1363_s14 + $0x60] sm:$0xff] %v1108_v23   ;;  %v1411_v32 = vpop.f32.mrf.mxu1 }
 0x107   : > { %v811_v35 = vadd.f32 %v810_v30, %v780_v26  ;;  %v742_v36 = vadd.f32 %v1191_v9, %v741_v28  ;;  %v782_v41 = vmul.f32 %v493_v31, %v493_v31  ;;  %v795_v26 = vmul.f32 %v1401_v17, %v1401_v17 }
 0x108   : > { %v1195_v37 = vpop.f32.mrf.mxu0  ;;  %v1413_v38 = vpop.f32.mrf.mxu1 }
 0x109   : > { %v743_v39 = vadd.f32 %v742_v36, %v493_v31  ;;  %v812_v42 = vadd.f32 %v811_v35, %v781_v33  ;;  %v1083_v43 = vpack.c.bf16 %v1195_v37, %v1194_v22  ;;  %v1123_v46 = vpack.c.bf16 %v1413_v38, %v1407_v24 }
 0x10a   : > { %v496_v44 = vpop.f32.mrf.mxu0  ;;  %v560_v47 = vpop.f32.mrf.mxu1  ;;  %v785_v58 = vmul.f32 %v1195_v37, %v1195_v37  ;;  %v798_v35 = vmul.f32 %v1411_v32, %v1411_v32 }
 0x10b   : > { %v813_v48 = vadd.f32 %v812_v42, %v782_v41  ;;  %1131 = vst [vmem:[%s1363_s14 + $0x38] sm:$0xff] %v1083_v43   ;;  %v1078_v49 = vpack.c.bf16 %v496_v44, %v493_v31  ;;  %v744_v51 = vadd.f32 %v743_v39, %v496_v44  ;;  %v783_v52 = vmul.f32 %v496_v44, %v496_v44 }
 0x10c   : > { %1139 = vst [vmem:[%s1363_s14 + $0x78] sm:$0xff] %v1123_v46   ;;  %v1118_v53 = vpack.c.bf16 %v560_v47, %v1411_v32  ;;  %v799_v39 = vmul.f32 %v560_v47, %v560_v47  ;;  %v801_v43 = vmul.f32 %v1413_v38, %v1413_v38 }
 0x10d   : > { %1130 = vst [vmem:[%s1363_s14 + $0x30] sm:$0xff] %v1078_v49   ;;  %v745_v55 = vadd.f32 %v1194_v22, %v744_v51  ;;  %v814_v56 = vadd.f32 %v813_v48, %v783_v52 }
 0x10e   : > { %1138 = vst [vmem:[%s1363_s14 + $0x70] sm:$0xff] %v1118_v53  }
 0x10f   : > { %v746_v59 = vadd.f32 %v1195_v37, %v745_v55  ;;  %v815_v60 = vadd.f32 %v814_v56, %v784_v54 }
 0x111   : > { %v816_v62 = vadd.f32 %v815_v60, %v785_v58  ;;  %v747_v63 = vadd.f32 %v746_v59, %v1356_v27 }
 0x113   : > { %v748_v1 = vadd.f32 %v747_v63, %v1369_v34  ;;  %v817_v3 = vadd.f32 %v816_v62, %v786_v61 }
 0x115   : > { %v749_v6 = vadd.f32 %v1354_v25, %v748_v1  ;;  %v818_v7 = vadd.f32 %v817_v3, %v787_v2  ;;  %v792_v25 = vmul.f32 %v1375_v40, %v1375_v40 }
 0x117   : > { %v819_v9 = vadd.f32 %v818_v7, %v788_v4  ;;  %v750_v11 = vadd.f32 %v1365_v29, %v749_v6  ;;  %v793_v29 = vmul.f32 %v1381_v50, %v1381_v50 }
 0x119   : > { %v751_v27 = vadd.f32 %v750_v11, %v1379_v45  ;;  %v820_v13 = vadd.f32 %v819_v9, %v789_v8 }
 0x11b   : > { %v821_v34 = vadd.f32 %v820_v13, %v790_v12  ;;  %v752_v14 = vadd.f32 %v751_v27, %v1385_v57 }
 0x11d   : > { %v753_v16 = vadd.f32 %v1375_v40, %v752_v14  ;;  %v822_v18 = vadd.f32 %v821_v34, %v791_v15  ;;  %v796_v40 = vmul.f32 %v1391_v0, %v1391_v0 }
 0x11f   : > { %v823_v19 = vadd.f32 %v822_v18, %v792_v25  ;;  %v754_v20 = vadd.f32 %v1381_v50, %v753_v16  ;;  %v797_v50 = vmul.f32 %v1397_v10, %v1397_v10 }
 0x121   : > { %v755_v45 = vadd.f32 %v754_v20, %v1395_v5  ;;  %v824_v22 = vadd.f32 %v823_v19, %v793_v29 }
 0x123   : > { %v825_v23 = vadd.f32 %v824_v22, %v794_v21  ;;  %v756_v57 = vadd.f32 %v755_v45, %v1401_v17 }
 0x125   : > { %v757_v28 = vadd.f32 %v1391_v0, %v756_v57  ;;  %v826_v30 = vadd.f32 %v825_v23, %v795_v26  ;;  %v800_v0 = vmul.f32 %v1407_v24, %v1407_v24 }
 0x127   : > { %v827_v31 = vadd.f32 %v826_v30, %v796_v40  ;;  %v758_v5 = vadd.f32 %v1397_v10, %v757_v28 }
 0x129   : > { %v759_v33 = vadd.f32 %v758_v5, %v1411_v32  ;;  %v828_v36 = vadd.f32 %v827_v31, %v797_v50 }
 0x12b   : > { %v829_v17 = vadd.f32 %v828_v36, %v798_v35  ;;  %v760_v37 = vadd.f32 %v759_v33, %v560_v47 }
 0x12d   : > { %v761_v41 = vadd.f32 %v1407_v24, %v760_v37  ;;  %v830_v42 = vadd.f32 %v829_v17, %v799_v39 }
 0x12f   : > { %v762_v10 = vadd.f32 %v1413_v38, %v761_v41  ;;  %v831_v44 = vadd.f32 %v830_v42, %v800_v0 }
 0x131   : > { %v763_v46 = vrot.slane %v762_v10, 4  ;;  %v832_v48 = vadd.f32 %v831_v44, %v801_v43 }
 0x133   : > { %v764_v32 = vadd.f32 %v763_v46, %v762_v10  ;;  %v833_v49 = vrot.slane %v832_v48, 4 }
 0x135   : > { %v765_v51 = vrot.slane %v764_v32, 2  ;;  %v834_v52 = vadd.f32 %v833_v49, %v832_v48 }
 0x137   : > { %v766_v47 = vadd.f32 %v765_v51, %v764_v32  ;;  %v835_v53 = vrot.slane %v834_v52, 2 }
 0x139   : > { %v767_v54 = vrot.slane %v766_v47, 1  ;;  %v836_v55 = vadd.f32 %v835_v53, %v834_v52 }
 0x13b   : > { %v768_v24 = vadd.f32 %v767_v54, %v766_v47  ;;  %v837_v56 = vrot.slane %v836_v55, 1 }
 0x13d   : > { %769 = vst [vmem:[%s214_s19] sm:$0x1] %v768_v24  ;;  %v838_v38 = vadd.f32 %v837_v56, %v836_v55 }
 0x13f   : > { %839 = vst [vmem:[%s217_s22] sm:$0x1] %v838_v38 }
 0x140 PF: > { %s15_s15 = sadd.s32 1, %s1266_s15  }
 0x141   : > { %p12_p5 = scmp.ge.s32.totalorder %s15_s15, 4  }
 0x143   :  { %14 = sbr.rel (!%p12_p5) target bundleno = 1 (0x1), region = 82 }

// kernel: bottleneck_forward.6
= control target key start
LH: loop header
LB: loop body
LE: loop exit
PB: predicated region body
PF: predicated region fallthrough
CT: control target
= control target key end

     0   :  { %s1468_s21 = smov 0   ;;  %s1745_s0 = inlined_call_operand.vmem [shape: bf16[512,128], index: 0, kind: input, shape index: {}]   ;;  %s1746_s1 = inlined_call_operand.vmem [shape: f32[1,128], index: 1, kind: input, shape index: {}]   ;;  %s1747_s2 = inlined_call_operand.vmem [shape: f32[1,128], index: 2, kind: input, shape index: {}]   ;;  %s1748_s3 = inlined_call_operand.vmem [shape: bf16[128,128], index: 3, kind: input, shape index: {}]   ;;  %s1749_s4 = inlined_call_operand.vmem [shape: bf16[512,128], index: 4, kind: output, shape index: {0}]   ;;  %s1750_s5 = inlined_call_operand.vmem [shape: f32[2,1,128], index: 5, kind: output, shape index: {1}]   ;;  %s1751_s6 = inlined_call_operand.vmem [shape: f32[2,1,128], index: 6, kind: output, shape index: {2}]  }
   0x1 LB: > { %s1474_s22 = sadd.s32 4294967295, %s1431_s21   ;;  %p1066_p0 = scmp.ge.s32.totalorder %s1431_s21, 1  ;;  %s1431_s21 = sphi %s1468_s21, %s17_s21  }
   0x2   : > { %p218_p1 = scmp.lt.s32.totalorder %s1431_s21, 3 }
   0x4   : > { %p219_p2 = pnand %p1066_p0, %p218_p1 }
   0x5   : > { %s1067_s25 = sshll.u32 (!%p219_p2), %s1474_s22, 5  ;;  %p266_p4 = scmp.lt.s32.totalorder (!%p219_p2), %s1474_s22, 1 }
   0x6   : > { %222 = sbr.rel (%p219_p2) target bundleno = 320 (0x140), region = 36  ;;  %p255_p3 = scmp.lt.s32.totalorder (!%p219_p2), %s1067_s25, 63 }
   0xb   : > { %v1417_v0 = vld [vmem:[%s1748_s3 + $0x38] sm:$0xff]   ;;  %v1418_v1 = vld [vmem:[%s1748_s3 + $0x30] sm:$0xff]   ;;  %s1753_s25 = smov (!%p255_p3, %s1067_s25), 63  ;;  %v1419_v2 = vld [vmem:[%s1748_s3 + $0x28] sm:$0xff]   ;;  %s1755_s22 = smov (!%p266_p4, %s1474_s22), 1 }
   0xc   : > { %1345 = vmatprep.subr.bf16.mxu0 %v1417_v0  ;;  %1393 = vmatprep.subr.bf16.mxu1 %v1417_v0  ;;  %s1068_s30 = sshll.u32 %s1753_s25, 2  ;;  %v1420_v3 = vld [vmem:[%s1748_s3 + $0x20] sm:$0xff]   ;;  %v1421_v21 = vld [vmem:[%s1748_s3 + $0x18] sm:$0xff]   ;;  %v1422_v35 = vld [vmem:[%s1748_s3 + $0x10] sm:$0xff]   ;;  %s268_s7 = scalar_lea.vmem %s1750_s5, %s1755_s22 }
   0xd   : > { %1346 = vmatpush3.bf16.msra.mxu0 %v1417_v0  ;;  %1401 = vmatpush3.bf16.msra.mxu1 %v1417_v0  ;;  %s1496_s9 = scalar_lea.vmem %s1745_s0, %s1068_s30  ;;  %v1505_v5 = vld [vmem:[%s1746_s1] ss:$0 sm:$0xff]  ;;  %v1423_v50 = vld [vmem:[%s1748_s3 + $0x8] sm:$0xff]   ;;  %s1646_s29 = scalar_lea.vmem %s1749_s4, %s1068_s30 }
   0xe   : > { %1347 = vmatprep.subr.bf16.mxu0 %v1418_v1  ;;  %1394 = vmatprep.subr.bf16.mxu1 %v1418_v1  ;;  %v1148_v4 = vld [vmem:[%s1496_s9] sm:$0xff]   ;;  %v1291_v8 = vld [vmem:[%s1496_s9 + $0x8] sm:$0xff]   ;;  %v1292_v9 = vld [vmem:[%s1496_s9 + $0x10] sm:$0xff]   ;;  %s271_s10 = scalar_lea.vmem %s1751_s6, %s1755_s22 }
   0xf   : > { %v1149_v6 = vunpack.c.l.bf16 %v1148_v4  ;;  %v1150_v7 = vunpack.c.h.bf16 %v1148_v4  ;;  %v1293_v10 = vld [vmem:[%s1496_s9 + $0x18] sm:$0xff]   ;;  %v1513_v11 = vld [vmem:[%s1747_s2] ss:$0 sm:$0xff]  ;;  %v1153_v12 = vunpack.c.l.bf16 %v1291_v8  ;;  %v1154_v13 = vunpack.c.h.bf16 %v1291_v8  ;;  %v1295_v34 = vld [vmem:[%s1496_s9 + $0x28] sm:$0xff]  }
  0x10   : > { %v1157_v14 = vunpack.c.l.bf16 %v1292_v9  ;;  %v1158_v15 = vunpack.c.h.bf16 %v1292_v9  ;;  %v1161_v18 = vunpack.c.l.bf16 %v1293_v10  ;;  %v1162_v19 = vunpack.c.h.bf16 %v1293_v10  ;;  %v1294_v20 = vld [vmem:[%s1496_s9 + $0x20] sm:$0xff]   ;;  %v1296_v39 = vld [vmem:[%s1496_s9 + $0x30] sm:$0xff]   ;;  %v1550_v59 = vld [vmem:[%s1496_s9 + $0x38] sm:$0xff]  }
  0x11   : > { %1348 = vmatpush3.bf16.msra.mxu0 %v1418_v1  ;;  %1402 = vmatpush3.bf16.msra.mxu1 %v1418_v1  ;;  %v344_v16 = vmul.f32 %v1149_v6, %v1505_v5  ;;  %v345_v17 = vmul.f32 %v1150_v7, %v1505_v5  ;;  %v346_v22 = vmul.f32 %v1153_v12, %v1505_v5  ;;  %v1165_v30 = vunpack.c.l.bf16 %v1294_v20  ;;  %v1298_v60 = vld [vmem:[%s1496_s9 + $0x40] sm:$0xff]   ;;  %v1299_v6 = vld [vmem:[%s1496_s9 + $0x48] sm:$0xff]  }
  0x12   : > { %1349 = vmatprep.subr.bf16.mxu0 %v1419_v2  ;;  %1395 = vmatprep.subr.bf16.mxu1 %v1419_v2  ;;  %v347_v23 = vmul.f32 %v1154_v13, %v1505_v5  ;;  %v348_v24 = vmul.f32 %v1157_v14, %v1505_v5  ;;  %v349_v27 = vmul.f32 %v1158_v15, %v1505_v5  ;;  %v1166_v43 = vunpack.c.h.bf16 %v1294_v20  ;;  %v1424_v0 = vld [vmem:[%s1748_s3] sm:$0xff]  }
  0x13   : > { %v383_v25 = vadd.f32 %v1513_v11, %v344_v16  ;;  %v384_v26 = vadd.f32 %v1513_v11, %v345_v17  ;;  %v350_v28 = vmul.f32 %v1161_v18, %v1505_v5  ;;  %v351_v29 = vmul.f32 %v1162_v19, %v1505_v5  ;;  %v1300_v16 = vld [vmem:[%s1496_s9 + $0x50] sm:$0xff]  }
  0x14   : > { %v385_v33 = vadd.f32 %v1513_v11, %v346_v22  ;;  %v386_v36 = vadd.f32 %v1513_v11, %v347_v23  ;;  %v387_v37 = vadd.f32 %v1513_v11, %v348_v24  ;;  %v388_v38 = vadd.f32 %v1513_v11, %v349_v27 }
  0x15   : > { %1350 = vmatpush3.bf16.msra.mxu0 %v1419_v2  ;;  %1403 = vmatpush3.bf16.msra.mxu1 %v1419_v2  ;;  %v415_v31 = vmax.f32 %v383_v25, 0.0  ;;  %v416_v32 = vmax.f32 %v384_v26, 0.0  ;;  %v389_v41 = vadd.f32 %v1513_v11, %v350_v28  ;;  %v390_v42 = vadd.f32 %v1513_v11, %v351_v29 }
  0x16   : > { %1351 = vmatprep.subr.bf16.mxu0 %v1420_v3  ;;  %1396 = vmatprep.subr.bf16.mxu1 %v1420_v3  ;;  %v352_v44 = vmul.f32 %v1165_v30, %v1505_v5  ;;  %v1169_v45 = vunpack.c.l.bf16 %v1295_v34  ;;  %v417_v46 = vmax.f32 %v385_v33, 0.0  ;;  %v353_v47 = vmul.f32 %v1166_v43, %v1505_v5  ;;  %v1302_v30 = vld [vmem:[%s1496_s9 + $0x60] sm:$0xff]  }
  0x17   : > { %v447_v40 = vpack.c.bf16 %v416_v32, %v415_v31  ;;  %v1170_v48 = vunpack.c.h.bf16 %v1295_v34  ;;  %v1173_v49 = vunpack.c.l.bf16 %v1296_v39  ;;  %v418_v51 = vmax.f32 %v386_v36, 0.0 }
  0x18   : > { %v419_v52 = vmax.f32 %v387_v37, 0.0  ;;  %v420_v53 = vmax.f32 %v388_v38, 0.0  ;;  %v354_v54 = vmul.f32 %v1169_v45, %v1505_v5  ;;  %v421_v55 = vmax.f32 %v389_v41, 0.0 }
  0x19   : > { %1352 = vmatpush3.bf16.msra.mxu0 %v1420_v3  ;;  %1404 = vmatpush3.bf16.msra.mxu1 %v1420_v3  ;;  %v422_v56 = vmax.f32 %v390_v42, 0.0  ;;  %v1547_v57 = vadd.f32 %v1513_v11, %v352_v44  ;;  %v1174_v58 = vunpack.c.h.bf16 %v1296_v39  ;;  %v1554_v61 = vadd.f32 %v1513_v11, %v353_v47  ;;  %v1303_v47 = vld [vmem:[%s1496_s9 + $0x68] sm:$0xff]  }
  0x1a   : > { %1353 = vmatprep.subr.bf16.mxu0 %v1421_v21  ;;  %1397 = vmatprep.subr.bf16.mxu1 %v1421_v21  ;;  %v355_v62 = vmul.f32 %v1170_v48, %v1505_v5  ;;  %v356_v63 = vmul.f32 %v1173_v49, %v1505_v5  ;;  %v448_v1 = vpack.c.bf16 %v418_v51, %v417_v46  ;;  %v1177_v3 = vunpack.c.l.bf16 %v1550_v59 }
  0x1b   : > { %1361 = vmatprep.mubr.bf16.mxu0 %v447_v40  ;;  %v1562_v2 = vadd.f32 %v1513_v11, %v354_v54  ;;  %v1181_v4 = vunpack.c.l.bf16 %v1298_v60  ;;  %v449_v7 = vpack.c.bf16 %v420_v53, %v419_v52  ;;  %v1566_v8 = vpack.c.bf16 %v422_v56, %v421_v55  ;;  %v1304_v52 = vld [vmem:[%s1496_s9 + $0x70] sm:$0xff]  }
  0x1c   : > { %v423_v9 = vmax.f32 %v1547_v57, 0.0  ;;  %v357_v10 = vmul.f32 %v1174_v58, %v1505_v5  ;;  %v424_v12 = vmax.f32 %v1554_v61, 0.0  ;;  %v1178_v13 = vunpack.c.h.bf16 %v1550_v59 }
  0x1d   : > { %1354 = vmatpush3.bf16.msra.mxu0 %v1421_v21  ;;  %1405 = vmatpush3.bf16.msra.mxu1 %v1421_v21  ;;  %v1182_v14 = vunpack.c.h.bf16 %v1298_v60  ;;  %v360_v15 = vmul.f32 %v1181_v4, %v1505_v5  ;;  %v1575_v17 = vadd.f32 %v1513_v11, %v355_v62  ;;  %v1578_v18 = vadd.f32 %v1513_v11, %v356_v63  ;;  %v1301_v21 = vld [vmem:[%s1496_s9 + $0x58] sm:$0xff]  }
  0x1e   : > { %1355 = vmatprep.subr.bf16.mxu0 %v1422_v35  ;;  %1398 = vmatprep.subr.bf16.mxu1 %v1422_v35  ;;  %v1185_v19 = vunpack.c.l.bf16 %v1299_v6  ;;  %v1186_v20 = vunpack.c.h.bf16 %v1299_v6  ;;  %v425_v22 = vmax.f32 %v1562_v2, 0.0  ;;  %v1583_v23 = vmul.f32 %v1177_v3, %v1505_v5  ;;  %v1305_v6 = vld [vmem:[%s1496_s9 + $0x78] sm:$0xff]  }
  0x1f   : > { %v361_v24 = vmul.f32 %v1182_v14, %v1505_v5  ;;  %v399_v25 = vadd.f32 %v1513_v11, %v360_v15  ;;  %v1189_v28 = vunpack.c.l.bf16 %v1300_v16  ;;  %v1190_v29 = vunpack.c.h.bf16 %v1300_v16 }
  0x20   : > { %v362_v26 = vmul.f32 %v1185_v19, %v1505_v5  ;;  %v363_v27 = vmul.f32 %v1186_v20, %v1505_v5  ;;  %v1591_v31 = vadd.f32 %v1513_v11, %v357_v10  ;;  %v1193_v34 = vunpack.c.l.bf16 %v1301_v21 }
  0x21   : > { %1356 = vmatpush3.bf16.msra.mxu0 %v1422_v35  ;;  %1406 = vmatpush3.bf16.msra.mxu1 %v1422_v35  ;;  %v400_v32 = vadd.f32 %v1513_v11, %v361_v24  ;;  %v431_v33 = vmax.f32 %v399_v25, 0.0  ;;  %v364_v37 = vmul.f32 %v1189_v28, %v1505_v5  ;;  %v365_v38 = vmul.f32 %v1190_v29, %v1505_v5 }
  0x22   : > { %1357 = vmatprep.subr.bf16.mxu0 %v1423_v50  ;;  %1399 = vmatprep.subr.bf16.mxu1 %v1423_v50  ;;  %v401_v35 = vadd.f32 %v1513_v11, %v362_v26  ;;  %v402_v36 = vadd.f32 %v1513_v11, %v363_v27  ;;  %v1194_v40 = vunpack.c.h.bf16 %v1301_v21  ;;  %v366_v41 = vmul.f32 %v1193_v34, %v1505_v5 }
  0x23   : > { %v432_v39 = vmax.f32 %v400_v32, 0.0  ;;  %v1197_v42 = vunpack.c.l.bf16 %v1302_v30  ;;  %v403_v45 = vadd.f32 %v1513_v11, %v364_v37  ;;  %v404_v46 = vadd.f32 %v1513_v11, %v365_v38 }
  0x24   : > { %v433_v43 = vmax.f32 %v401_v35, 0.0  ;;  %v434_v44 = vmax.f32 %v402_v36, 0.0  ;;  %v367_v49 = vmul.f32 %v1194_v40, %v1505_v5  ;;  %v1198_v51 = vunpack.c.h.bf16 %v1302_v30 }
  0x25   : > { %1358 = vmatpush3.bf16.msra.mxu0 %v1423_v50  ;;  %1407 = vmatpush3.bf16.msra.mxu1 %v1423_v50  ;;  %v455_v48 = vpack.c.bf16 %v432_v39, %v431_v33  ;;  %v405_v50 = vadd.f32 %v1513_v11, %v366_v41  ;;  %v435_v54 = vmax.f32 %v403_v45, 0.0  ;;  %v436_v55 = vmax.f32 %v404_v46, 0.0 }
  0x26   : > { %1359 = vmatprep.subr.bf16.mxu0 %v1424_v0  ;;  %1400 = vmatprep.subr.bf16.mxu1 %v1424_v0  ;;  %v456_v53 = vpack.c.bf16 %v434_v44, %v433_v43  ;;  %v368_v56 = vmul.f32 %v1197_v42, %v1505_v5  ;;  %v406_v58 = vadd.f32 %v1513_v11, %v367_v49  ;;  %v1201_v63 = vunpack.c.l.bf16 %v1303_v47 }
  0x27   : > { %1377 = vmatprep.mubr.bf16.mxu1 %v455_v48  ;;  %v437_v60 = vmax.f32 %v405_v50, 0.0  ;;  %v369_v62 = vmul.f32 %v1198_v51, %v1505_v5  ;;  %v1202_v3 = vunpack.c.h.bf16 %v1303_v47  ;;  %v1205_v4 = vunpack.c.l.bf16 %v1304_v52 }
  0x28   : > { %v370_v14 = vmul.f32 %v1201_v63, %v1505_v5  ;;  %v1206_v15 = vunpack.c.h.bf16 %v1304_v52  ;;  %v451_v16 = vpack.c.bf16 %v424_v12, %v423_v9  ;;  %v359_v24 = vmul.f32 %v1178_v13, %v1505_v5 }
  0x29   : > { %1360 = vmatpush3.bf16.msra.mxu0 %v1424_v0  ;;  %1408 = vmatpush3.bf16.msra.mxu1 %v1424_v0  ;;  %v457_v0 = vpack.c.bf16 %v436_v55, %v435_v54  ;;  %v408_v10 = vadd.f32 %v1513_v11, %v369_v62  ;;  %v371_v20 = vmul.f32 %v1202_v3, %v1505_v5  ;;  %v1209_v27 = vunpack.c.l.bf16 %v1305_v6 }
  0x2a   : > { %v372_v21 = vmul.f32 %v1205_v4, %v1505_v5  ;;  %v373_v26 = vmul.f32 %v1206_v15, %v1505_v5  ;;  %v409_v57 = vadd.f32 %v1513_v11, %v370_v14  ;;  %v1210_v9 = vunpack.c.h.bf16 %v1305_v6 }
  0x2b   : > { %v440_v25 = vmax.f32 %v408_v10, 0.0  ;;  %v410_v61 = vadd.f32 %v1513_v11, %v371_v20  ;;  %v426_v12 = vmax.f32 %v1575_v17, 0.0  ;;  %v427_v13 = vmax.f32 %v1578_v18, 0.0 }
  0x2c   : > { %1362 = vmatmul.mubr.bf16.vlgmr.msra.gmra.mxu0 %v448_v1  ;;  %1378 = vmatmul.mubr.bf16.vlgmr.msra.gmra.mxu1 %v456_v53  ;;  %v407_v1 = vadd.f32 %v1513_v11, %v368_v56  ;;  %v411_v30 = vadd.f32 %v1513_v11, %v372_v21  ;;  %v412_v59 = vadd.f32 %v1513_v11, %v373_v26  ;;  %v428_v32 = vmax.f32 %v1591_v31, 0.0 }
  0x2d   : > { %1365 = vmatprep.mubr.bf16.mxu0 %v449_v7  ;;  %v438_v7 = vmax.f32 %v406_v58, 0.0  ;;  %1381 = vmatprep.mubr.bf16.mxu1 %v457_v0  ;;  %v397_v33 = vadd.f32 %v1513_v11, %v1583_v23  ;;  %v441_v34 = vmax.f32 %v409_v57, 0.0  ;;  %v442_v35 = vmax.f32 %v410_v61, 0.0 }
  0x2e   : > { %v439_v19 = vmax.f32 %v407_v1, 0.0  ;;  %v375_v17 = vmul.f32 %v1210_v9, %v1505_v5  ;;  %v452_v36 = vpack.c.bf16 %v426_v12, %v425_v22  ;;  %v398_v37 = vadd.f32 %v1513_v11, %v359_v24 }
  0x2f   : > { %v458_v28 = vpack.c.bf16 %v438_v7, %v437_v60  ;;  %v443_v38 = vmax.f32 %v411_v30, 0.0  ;;  %v444_v18 = vmax.f32 %v412_v59, 0.0  ;;  %v453_v39 = vpack.c.bf16 %v428_v32, %v427_v13 }
  0x30   : > { %v459_v29 = vpack.c.bf16 %v440_v25, %v439_v19  ;;  %v460_v31 = vpack.c.bf16 %v442_v35, %v441_v34  ;;  %v414_v23 = vadd.f32 %v1513_v11, %v375_v17  ;;  %v429_v41 = vmax.f32 %v397_v33, 0.0 }
  0x31   : > { %v430_v42 = vmax.f32 %v398_v37, 0.0  ;;  %v461_v43 = vpack.c.bf16 %v444_v18, %v443_v38 }
  0x32   : > { %v446_v2 = vmax.f32 %v414_v23, 0.0 }
  0x33   : > { %v454_v22 = vpack.c.bf16 %v430_v42, %v429_v41 }
  0x34   : > { %1366 = vmatmul.mubr.bf16.gmra.mxu0 %v1566_v8  ;;  %1382 = vmatmul.mubr.bf16.gmra.mxu1 %v458_v28  ;;  %v374_v8 = vmul.f32 %v1209_v27, %v1505_v5 }
  0x35   : > { %1369 = vmatprep.mubr.bf16.mxu0 %v451_v16  ;;  %1385 = vmatprep.mubr.bf16.mxu1 %v459_v29 }
  0x36   : > { %v413_v40 = vadd.f32 %v1513_v11, %v374_v8 }
  0x38   : > { %v445_v5 = vmax.f32 %v413_v40, 0.0 }
  0x3a   : > { %v462_v44 = vpack.c.bf16 %v446_v2, %v445_v5 }
  0x3c   : > { %1370 = vmatmul.mubr.bf16.gmra.mxu0 %v452_v36  ;;  %1386 = vmatmul.mubr.bf16.gmra.mxu1 %v460_v31 }
  0x3d   : > { %1373 = vmatprep.mubr.bf16.mxu0 %v453_v39  ;;  %1389 = vmatprep.mubr.bf16.mxu1 %v461_v43 }
  0x44   : > { %1374 = vmatmul.mubr.bf16.gmra.mxu0 %v454_v22  ;;  %1390 = vmatmul.mubr.bf16.gmra.mxu1 %v462_v44 }
  0xec   : > { %v1363_v45 = vpop.f32.mrf.mxu0  ;;  %v1639_v47 = vpop.f32.mrf.mxu1 }
  0xed   : > { %v888_v60 = vmul.f32 %v1363_v45, %v1363_v45 }
  0xee   : > { %v561_v46 = vpop.f32.mrf.mxu0  ;;  %v1648_v49 = vpop.f32.mrf.mxu1 }
  0xef   : > { %v886_v51 = vmul.f32 %v561_v46, %v561_v46 }
  0xf0   : > { %v1364_v11 = vpop.f32.mrf.mxu0  ;;  %v1651_v55 = vpop.f32.mrf.mxu1 }
  0xf1   : > { %v1219_v48 = vpack.c.bf16 %v1364_v11, %v1363_v45  ;;  %v1259_v58 = vpack.c.bf16 %v1651_v55, %v1639_v47  ;;  %v889_v4 = vmul.f32 %v1364_v11, %v1364_v11 }
  0xf2   : > { %v564_v50 = vpop.f32.mrf.mxu0  ;;  %v1656_v0 = vpop.f32.mrf.mxu1 }
  0xf3   : > { %1306 = vst [vmem:[%s1646_s29 + $0x8] sm:$0xff] %v1219_v48   ;;  %v1214_v52 = vpack.c.bf16 %v564_v50, %v561_v46  ;;  %v848_v53 = vadd.f32 %v564_v50, %v561_v46  ;;  %v887_v54 = vmul.f32 %v564_v50, %v564_v50  ;;  %1314 = vst [vmem:[%s1646_s29 + $0x48] sm:$0xff] %v1259_v58  }
  0xf4   : > { %v1367_v56 = vpop.f32.mrf.mxu0  ;;  %v1254_v3 = vpack.c.bf16 %v1656_v0, %v1648_v49  ;;  %v1661_v10 = vpop.f32.mrf.mxu1 }
  0xf5   : > { %1215 = vst [vmem:[%s1646_s29] sm:$0xff] %v1214_v52   ;;  %v849_v62 = vadd.f32 %v1363_v45, %v848_v53  ;;  %v918_v63 = vadd.f32 %v887_v54, %v886_v51  ;;  %v892_v12 = vmul.f32 %v1367_v56, %v1367_v56 }
  0xf6   : > { %v577_v1 = vpop.f32.mrf.mxu0  ;;  %1313 = vst [vmem:[%s1646_s29 + $0x40] sm:$0xff] %v1254_v3   ;;  %v1664_v21 = vpop.f32.mrf.mxu1 }
  0xf7   : > { %v919_v6 = vadd.f32 %v918_v63, %v888_v60  ;;  %v850_v7 = vadd.f32 %v1364_v11, %v849_v62  ;;  %v890_v16 = vmul.f32 %v577_v1, %v577_v1 }
  0xf8   : > { %v1368_v14 = vpop.f32.mrf.mxu0  ;;  %v1667_v57 = vpop.f32.mrf.mxu1 }
  0xf9   : > { %v851_v15 = vadd.f32 %v850_v7, %v577_v1  ;;  %v920_v19 = vadd.f32 %v919_v6, %v889_v4  ;;  %v1229_v20 = vpack.c.bf16 %v1368_v14, %v1367_v56  ;;  %v1269_v9 = vpack.c.bf16 %v1667_v57, %v1661_v10 }
  0xfa   : > { %v580_v24 = vpop.f32.mrf.mxu0  ;;  %v1672_v59 = vpop.f32.mrf.mxu1  ;;  %v893_v33 = vmul.f32 %v1368_v14, %v1368_v14 }
  0xfb   : > { %v921_v25 = vadd.f32 %v920_v19, %v890_v16  ;;  %1308 = vst [vmem:[%s1646_s29 + $0x18] sm:$0xff] %v1229_v20   ;;  %v1224_v26 = vpack.c.bf16 %v580_v24, %v577_v1  ;;  %v852_v27 = vadd.f32 %v851_v15, %v580_v24  ;;  %v891_v28 = vmul.f32 %v580_v24, %v580_v24 }
  0xfc   : > { %v1371_v61 = vpop.f32.mrf.mxu0  ;;  %1316 = vst [vmem:[%s1646_s29 + $0x58] sm:$0xff] %v1269_v9   ;;  %v1264_v32 = vpack.c.bf16 %v1672_v59, %v1664_v21  ;;  %v1677_v8 = vpop.f32.mrf.mxu1 }
  0xfd   : > { %1307 = vst [vmem:[%s1646_s29 + $0x10] sm:$0xff] %v1224_v26   ;;  %v853_v29 = vadd.f32 %v1367_v56, %v852_v27  ;;  %v922_v30 = vadd.f32 %v921_v25, %v891_v28  ;;  %v896_v22 = vmul.f32 %v1371_v61, %v1371_v61 }
  0xfe   : > { %v593_v13 = vpop.f32.mrf.mxu0  ;;  %1315 = vst [vmem:[%s1646_s29 + $0x50] sm:$0xff] %v1264_v32   ;;  %v1680_v39 = vpop.f32.mrf.mxu1  ;;  %v904_v32 = vmul.f32 %v1639_v47, %v1639_v47 }
  0xff   : > { %v923_v34 = vadd.f32 %v922_v30, %v892_v12  ;;  %v854_v35 = vadd.f32 %v1368_v14, %v853_v29  ;;  %v894_v37 = vmul.f32 %v593_v13, %v593_v13  ;;  %v903_v30 = vmul.f32 %v1656_v0, %v1656_v0 }
 0x100   : > { %v1372_v17 = vpop.f32.mrf.mxu0  ;;  %v1683_v43 = vpop.f32.mrf.mxu1 }
 0x101   : > { %v855_v36 = vadd.f32 %v854_v35, %v593_v13  ;;  %v924_v38 = vadd.f32 %v923_v34, %v893_v33  ;;  %v1239_v18 = vpack.c.bf16 %v1372_v17, %v1371_v61  ;;  %v1279_v2 = vpack.c.bf16 %v1683_v43, %v1677_v8 }
 0x102   : > { %v596_v31 = vpop.f32.mrf.mxu0  ;;  %v660_v46 = vpop.f32.mrf.mxu1  ;;  %v897_v50 = vmul.f32 %v1372_v17, %v1372_v17  ;;  %v905_v35 = vmul.f32 %v1651_v55, %v1651_v55 }
 0x103   : > { %v925_v40 = vadd.f32 %v924_v38, %v894_v37  ;;  %1310 = vst [vmem:[%s1646_s29 + $0x28] sm:$0xff] %v1239_v18   ;;  %v1234_v23 = vpack.c.bf16 %v596_v31, %v593_v13  ;;  %v856_v41 = vadd.f32 %v855_v36, %v596_v31  ;;  %v895_v42 = vmul.f32 %v596_v31, %v596_v31 }
 0x104   : > { %v1375_v5 = vpop.f32.mrf.mxu0  ;;  %1318 = vst [vmem:[%s1646_s29 + $0x68] sm:$0xff] %v1279_v2   ;;  %v1274_v48 = vpack.c.bf16 %v660_v46, %v1680_v39  ;;  %v1690_v53 = vpop.f32.mrf.mxu1  ;;  %v906_v37 = vmul.f32 %v1664_v21, %v1664_v21  ;;  %v907_v31 = vmul.f32 %v1672_v59, %v1672_v59 }
 0x105   : > { %1309 = vst [vmem:[%s1646_s29 + $0x20] sm:$0xff] %v1234_v23   ;;  %v857_v44 = vadd.f32 %v1371_v61, %v856_v41  ;;  %v926_v45 = vadd.f32 %v925_v40, %v895_v42  ;;  %v900_v16 = vmul.f32 %v1375_v5, %v1375_v5  ;;  %v902_v61 = vmul.f32 %v1648_v49, %v1648_v49 }
 0x106   : > { %v609_v11 = vpop.f32.mrf.mxu0  ;;  %1317 = vst [vmem:[%s1646_s29 + $0x60] sm:$0xff] %v1274_v48   ;;  %v673_v63 = vpop.f32.mrf.mxu1  ;;  %v913_v48 = vmul.f32 %v1683_v43, %v1683_v43 }
 0x107   : > { %v927_v51 = vadd.f32 %v926_v45, %v896_v22  ;;  %v858_v52 = vadd.f32 %v1372_v17, %v857_v44  ;;  %v898_v58 = vmul.f32 %v609_v11, %v609_v11  ;;  %v911_v44 = vmul.f32 %v660_v46, %v660_v46 }
 0x108   : > { %v1376_v54 = vpop.f32.mrf.mxu0  ;;  %v1392_v14 = vpop.f32.mrf.mxu1  ;;  %v912_v45 = vmul.f32 %v1677_v8, %v1677_v8 }
 0x109   : > { %v859_v56 = vadd.f32 %v858_v52, %v609_v11  ;;  %v928_v60 = vadd.f32 %v927_v51, %v897_v50  ;;  %v1249_v62 = vpack.c.bf16 %v1376_v54, %v1375_v5  ;;  %v1289_v15 = vpack.c.bf16 %v1392_v14, %v1690_v53 }
 0x10a   : > { %v612_v1 = vpop.f32.mrf.mxu0  ;;  %v676_v24 = vpop.f32.mrf.mxu1  ;;  %v901_v26 = vmul.f32 %v1376_v54, %v1376_v54  ;;  %v914_v52 = vmul.f32 %v673_v63, %v673_v63 }
 0x10b   : > { %v929_v3 = vadd.f32 %v928_v60, %v898_v58  ;;  %1312 = vst [vmem:[%s1646_s29 + $0x38] sm:$0xff] %v1249_v62   ;;  %v1244_v4 = vpack.c.bf16 %v612_v1, %v609_v11  ;;  %v860_v6 = vadd.f32 %v859_v56, %v612_v1  ;;  %v899_v7 = vmul.f32 %v612_v1, %v612_v1 }
 0x10c   : > { %1320 = vst [vmem:[%s1646_s29 + $0x78] sm:$0xff] %v1289_v15   ;;  %v1284_v25 = vpack.c.bf16 %v676_v24, %v673_v63  ;;  %v916_v58 = vmul.f32 %v1690_v53, %v1690_v53  ;;  %v917_v62 = vmul.f32 %v1392_v14, %v1392_v14 }
 0x10d   : > { %1311 = vst [vmem:[%s1646_s29 + $0x30] sm:$0xff] %v1244_v4   ;;  %v861_v19 = vadd.f32 %v1375_v5, %v860_v6  ;;  %v930_v20 = vadd.f32 %v929_v3, %v899_v7  ;;  %v910_v5 = vmul.f32 %v1680_v39, %v1680_v39 }
 0x10e   : > { %1319 = vst [vmem:[%s1646_s29 + $0x70] sm:$0xff] %v1284_v25  }
 0x10f   : > { %v862_v27 = vadd.f32 %v1376_v54, %v861_v19  ;;  %v931_v28 = vadd.f32 %v930_v20, %v900_v16 }
 0x111   : > { %v932_v9 = vadd.f32 %v931_v28, %v901_v26  ;;  %v863_v12 = vadd.f32 %v862_v27, %v1648_v49 }
 0x113   : > { %v864_v29 = vadd.f32 %v863_v12, %v1656_v0  ;;  %v933_v13 = vadd.f32 %v932_v9, %v902_v61 }
 0x115   : > { %v865_v33 = vadd.f32 %v1639_v47, %v864_v29  ;;  %v934_v34 = vadd.f32 %v933_v13, %v903_v30  ;;  %v908_v47 = vmul.f32 %v1661_v10, %v1661_v10 }
 0x117   : > { %v935_v17 = vadd.f32 %v934_v34, %v904_v32  ;;  %v866_v36 = vadd.f32 %v1651_v55, %v865_v33  ;;  %v909_v55 = vmul.f32 %v1667_v57, %v1667_v57 }
 0x119   : > { %v867_v49 = vadd.f32 %v866_v36, %v1664_v21  ;;  %v936_v38 = vadd.f32 %v935_v17, %v905_v35 }
 0x11b   : > { %v937_v0 = vadd.f32 %v936_v38, %v906_v37  ;;  %v868_v18 = vadd.f32 %v867_v49, %v1672_v59 }
 0x11d   : > { %v869_v40 = vadd.f32 %v1661_v10, %v868_v18  ;;  %v938_v23 = vadd.f32 %v937_v0, %v907_v31 }
 0x11f   : > { %v939_v41 = vadd.f32 %v938_v23, %v908_v47  ;;  %v870_v42 = vadd.f32 %v1667_v57, %v869_v40 }
 0x121   : > { %v871_v21 = vadd.f32 %v870_v42, %v1680_v39  ;;  %v940_v2 = vadd.f32 %v939_v41, %v909_v55 }
 0x123   : > { %v941_v22 = vadd.f32 %v940_v2, %v910_v5  ;;  %v872_v59 = vadd.f32 %v871_v21, %v660_v46  ;;  %v915_v46 = vmul.f32 %v676_v24, %v676_v24 }
 0x125   : > { %v873_v10 = vadd.f32 %v1677_v8, %v872_v59  ;;  %v942_v11 = vadd.f32 %v941_v22, %v911_v44 }
 0x127   : > { %v943_v50 = vadd.f32 %v942_v11, %v912_v45  ;;  %v874_v57 = vadd.f32 %v1683_v43, %v873_v10 }
 0x129   : > { %v875_v51 = vadd.f32 %v874_v57, %v673_v63  ;;  %v944_v39 = vadd.f32 %v943_v50, %v913_v48 }
 0x12b   : > { %v945_v54 = vadd.f32 %v944_v39, %v914_v52  ;;  %v876_v56 = vadd.f32 %v875_v51, %v676_v24 }
 0x12d   : > { %v877_v8 = vadd.f32 %v1690_v53, %v876_v56  ;;  %v946_v60 = vadd.f32 %v945_v54, %v915_v46 }
 0x12f   : > { %v878_v1 = vadd.f32 %v1392_v14, %v877_v8  ;;  %v947_v3 = vadd.f32 %v946_v60, %v916_v58 }
 0x131   : > { %v879_v4 = vrot.slane %v878_v1, 4  ;;  %v948_v6 = vadd.f32 %v947_v3, %v917_v62 }
 0x133   : > { %v880_v43 = vadd.f32 %v879_v4, %v878_v1  ;;  %v949_v7 = vrot.slane %v948_v6, 4 }
 0x135   : > { %v881_v63 = vrot.slane %v880_v43, 2  ;;  %v950_v15 = vadd.f32 %v949_v7, %v948_v6 }
 0x137   : > { %v882_v16 = vadd.f32 %v881_v63, %v880_v43  ;;  %v951_v19 = vrot.slane %v950_v15, 2 }
 0x139   : > { %v883_v20 = vrot.slane %v882_v16, 1  ;;  %v952_v24 = vadd.f32 %v951_v19, %v950_v15 }
 0x13b   : > { %v884_v53 = vadd.f32 %v883_v20, %v882_v16  ;;  %v953_v25 = vrot.slane %v952_v24, 1 }
 0x13d   : > { %885 = vst [vmem:[%s268_s7] sm:$0x1] %v884_v53  ;;  %v954_v14 = vadd.f32 %v953_v25, %v952_v24 }
 0x13f   : > { %955 = vst [vmem:[%s271_s10] sm:$0x1] %v954_v14 }
 0x140 PF: > { %s17_s21 = sadd.s32 1, %s1431_s21  }
 0x141   : > { %p14_p5 = scmp.ge.s32.totalorder %s17_s21, 4  }
 0x143   :  { %16 = sbr.rel (!%p14_p5) target bundleno = 1 (0x1), region = 90 }

// kernel: bottleneck_forward.7
= control target key start
LH: loop header
LB: loop body
LE: loop exit
PB: predicated region body
PF: predicated region fallthrough
CT: control target
= control target key end

     0   :  { %s807_s15 = smov 0   ;;  %s975_s0 = inlined_call_operand.vmem [shape: bf16[512,128], index: 0, kind: input, shape index: {}]   ;;  %s976_s1 = inlined_call_operand.vmem [shape: bf16[512,128], index: 1, kind: input, shape index: {}]   ;;  %s977_s2 = inlined_call_operand.vmem [shape: f32[1,128], index: 2, kind: input, shape index: {}]   ;;  %s978_s3 = inlined_call_operand.vmem [shape: f32[1,128], index: 3, kind: input, shape index: {}]   ;;  %s979_s4 = inlined_call_operand.vmem [shape: f32[512,128], index: 4, kind: output, shape index: {}]  }
   0x1 LB: > { %s593_s16 = sadd.s32 4294967295, %s780_s15   ;;  %p597_p0 = scmp.ge.s32.totalorder %s780_s15, 1  ;;  %s780_s15 = sphi %s807_s15, %s14_s15  }
   0x2   : > { %p174_p1 = scmp.lt.s32.totalorder %s780_s15, 3 }
   0x4   : > { %p175_p2 = pnand %p597_p0, %p174_p1 }
   0x5   : > { %s598_s17 = sshll.u32 (!%p175_p2), %s593_s16, 5 }
   0x6   : > { %178 = sbr.rel (%p175_p2) target bundleno = 69 (0x45), region = 36  ;;  %p206_p3 = scmp.lt.s32.totalorder (!%p175_p2), %s598_s17, 63 }
   0xb   : > { %s981_s17 = smov (!%p206_p3, %s598_s17), 63  ;;  %v831_v0 = vld [vmem:[%s977_s2] ss:$0 sm:$0xff] }
   0xc   : > { %s599_s18 = sshll.u32 %s981_s17, 2  ;;  %v842_v11 = vld [vmem:[%s978_s3] ss:$0 sm:$0xff]  ;;  %s603_s29 = sshll.u32 %s981_s17, 3 }
   0xd   : > { %s821_s21 = scalar_lea.vmem %s975_s0, %s599_s18  ;;  %s826_s24 = scalar_lea.vmem %s976_s1, %s599_s18 }
   0xe   : > { %v609_v1 = vld [vmem:[%s821_s21] sm:$0xff]   ;;  %v736_v3 = vld [vmem:[%s821_s21 + $0x8] sm:$0xff]   ;;  %v737_v9 = vld [vmem:[%s821_s21 + $0x10] sm:$0xff]   ;;  %s862_s6 = scalar_lea.vmem %s979_s4, %s603_s29 }
   0xf   : > { %v673_v2 = vld [vmem:[%s826_s24] sm:$0xff]   ;;  %v610_v4 = vunpack.c.l.bf16 %v609_v1  ;;  %v611_v6 = vunpack.c.h.bf16 %v609_v1  ;;  %v751_v8 = vld [vmem:[%s826_s24 + $0x8] sm:$0xff]   ;;  %v752_v10 = vld [vmem:[%s826_s24 + $0x10] sm:$0xff]   ;;  %v614_v12 = vunpack.c.l.bf16 %v736_v3  ;;  %v615_v14 = vunpack.c.h.bf16 %v736_v3 }
  0x10   : > { %v674_v5 = vunpack.c.l.bf16 %v673_v2  ;;  %v675_v7 = vunpack.c.h.bf16 %v673_v2  ;;  %v678_v13 = vunpack.c.l.bf16 %v751_v8  ;;  %v679_v15 = vunpack.c.h.bf16 %v751_v8  ;;  %v738_v16 = vld [vmem:[%s821_s21 + $0x18] sm:$0xff]   ;;  %v739_v42 = vld [vmem:[%s821_s21 + $0x20] sm:$0xff]   ;;  %v740_v52 = vld [vmem:[%s821_s21 + $0x28] sm:$0xff]  }
  0x11   : > { %v294_v17 = vmul.f32 %v610_v4, %v831_v0  ;;  %v295_v18 = vmul.f32 %v611_v6, %v831_v0  ;;  %v618_v19 = vunpack.c.l.bf16 %v737_v9  ;;  %v682_v20 = vunpack.c.l.bf16 %v752_v10  ;;  %v753_v21 = vld [vmem:[%s826_s24 + $0x18] sm:$0xff]   ;;  %v754_v47 = vld [vmem:[%s826_s24 + $0x20] sm:$0xff]   ;;  %v755_v57 = vld [vmem:[%s826_s24 + $0x28] sm:$0xff]  }
  0x12   : > { %v296_v22 = vmul.f32 %v614_v12, %v831_v0  ;;  %v297_v23 = vmul.f32 %v615_v14, %v831_v0  ;;  %v619_v24 = vunpack.c.h.bf16 %v737_v9  ;;  %v683_v25 = vunpack.c.h.bf16 %v752_v10  ;;  %v741_v62 = vld [vmem:[%s821_s21 + $0x30] sm:$0xff]   ;;  %v742_v14 = vld [vmem:[%s821_s21 + $0x38] sm:$0xff]  }
  0x13   : > { %v333_v26 = vadd.f32 %v842_v11, %v294_v17  ;;  %v334_v27 = vadd.f32 %v842_v11, %v295_v18  ;;  %v298_v28 = vmul.f32 %v618_v19, %v831_v0  ;;  %v622_v29 = vunpack.c.l.bf16 %v738_v16  ;;  %v756_v4 = vld [vmem:[%s826_s24 + $0x30] sm:$0xff]  }
  0x14   : > { %v335_v30 = vadd.f32 %v842_v11, %v296_v22  ;;  %v336_v31 = vadd.f32 %v842_v11, %v297_v23  ;;  %v299_v32 = vmul.f32 %v619_v24, %v831_v0  ;;  %v686_v33 = vunpack.c.l.bf16 %v753_v21  ;;  %v757_v23 = vld [vmem:[%s826_s24 + $0x38] sm:$0xff]  }
  0x15   : > { %v429_v34 = vadd.f32 %v674_v5, %v333_v26  ;;  %v430_v35 = vadd.f32 %v675_v7, %v334_v27  ;;  %v337_v36 = vadd.f32 %v842_v11, %v298_v28  ;;  %v300_v37 = vmul.f32 %v622_v29, %v831_v0 }
  0x16   : > { %v431_v38 = vadd.f32 %v678_v13, %v335_v30  ;;  %v432_v39 = vadd.f32 %v679_v15, %v336_v31  ;;  %v338_v40 = vadd.f32 %v842_v11, %v299_v32  ;;  %v623_v41 = vunpack.c.h.bf16 %v738_v16  ;;  %v743_v32 = vld [vmem:[%s821_s21 + $0x40] sm:$0xff]  }
  0x17   : > { %v461_v43 = vmax.f32 %v429_v34, 0.0  ;;  %v462_v44 = vmax.f32 %v430_v35, 0.0  ;;  %v433_v45 = vadd.f32 %v682_v20, %v337_v36  ;;  %v339_v46 = vadd.f32 %v842_v11, %v300_v37  ;;  %v758_v37 = vld [vmem:[%s826_s24 + $0x40] sm:$0xff]  }
  0x18   : > { %v463_v48 = vmax.f32 %v431_v38, 0.0  ;;  %v464_v49 = vmax.f32 %v432_v39, 0.0  ;;  %v434_v50 = vadd.f32 %v683_v25, %v338_v40  ;;  %v301_v51 = vmul.f32 %v623_v41, %v831_v0 }
  0x19   : > { %493 = vst [vmem:[%s862_s6] sm:$0xff] %v461_v43  ;;  %494 = vst [vmem:[%s862_s6 + $0x8] sm:$0xff] %v462_v44  ;;  %v465_v53 = vmax.f32 %v433_v45, 0.0  ;;  %v435_v54 = vadd.f32 %v686_v33, %v339_v46  ;;  %v687_v55 = vunpack.c.h.bf16 %v753_v21  ;;  %v626_v56 = vunpack.c.l.bf16 %v739_v42  ;;  %v744_v46 = vld [vmem:[%s821_s21 + $0x48] sm:$0xff]  }
  0x1a   : > { %495 = vst [vmem:[%s862_s6 + $0x10] sm:$0xff] %v463_v48  ;;  %496 = vst [vmem:[%s862_s6 + $0x18] sm:$0xff] %v464_v49  ;;  %v466_v58 = vmax.f32 %v434_v50, 0.0  ;;  %v340_v59 = vadd.f32 %v842_v11, %v301_v51  ;;  %v690_v60 = vunpack.c.l.bf16 %v754_v47  ;;  %v627_v61 = vunpack.c.h.bf16 %v739_v42 }
  0x1b   : > { %497 = vst [vmem:[%s862_s6 + $0x20] sm:$0xff] %v465_v53  ;;  %v467_v63 = vmax.f32 %v435_v54, 0.0  ;;  %v302_v1 = vmul.f32 %v626_v56, %v831_v0  ;;  %v691_v2 = vunpack.c.h.bf16 %v754_v47  ;;  %v630_v3 = vunpack.c.l.bf16 %v740_v52  ;;  %v759_v47 = vld [vmem:[%s826_s24 + $0x48] sm:$0xff]   ;;  %v745_v56 = vld [vmem:[%s821_s21 + $0x50] sm:$0xff]  }
  0x1c   : > { %498 = vst [vmem:[%s862_s6 + $0x28] sm:$0xff] %v466_v58  ;;  %v436_v5 = vadd.f32 %v687_v55, %v340_v59  ;;  %v303_v6 = vmul.f32 %v627_v61, %v831_v0  ;;  %v694_v7 = vunpack.c.l.bf16 %v755_v57  ;;  %v631_v8 = vunpack.c.h.bf16 %v740_v52  ;;  %v760_v61 = vld [vmem:[%s826_s24 + $0x50] sm:$0xff]  }
  0x1d   : > { %499 = vst [vmem:[%s862_s6 + $0x30] sm:$0xff] %v467_v63  ;;  %v341_v9 = vadd.f32 %v842_v11, %v302_v1  ;;  %v304_v10 = vmul.f32 %v630_v3, %v831_v0  ;;  %v695_v12 = vunpack.c.h.bf16 %v755_v57  ;;  %v634_v13 = vunpack.c.l.bf16 %v741_v62 }
  0x1e   : > { %v468_v15 = vmax.f32 %v436_v5, 0.0  ;;  %v342_v16 = vadd.f32 %v842_v11, %v303_v6  ;;  %v305_v17 = vmul.f32 %v631_v8, %v831_v0  ;;  %v698_v18 = vunpack.c.l.bf16 %v756_v4 }
  0x1f   : > { %v437_v19 = vadd.f32 %v690_v60, %v341_v9  ;;  %v343_v20 = vadd.f32 %v842_v11, %v304_v10  ;;  %v306_v21 = vmul.f32 %v634_v13, %v831_v0  ;;  %v635_v22 = vunpack.c.h.bf16 %v741_v62 }
  0x20   : > { %500 = vst [vmem:[%s862_s6 + $0x38] sm:$0xff] %v468_v15  ;;  %v438_v24 = vadd.f32 %v691_v2, %v342_v16  ;;  %v344_v25 = vadd.f32 %v842_v11, %v305_v17  ;;  %v699_v26 = vunpack.c.h.bf16 %v756_v4  ;;  %v638_v27 = vunpack.c.l.bf16 %v742_v14  ;;  %v761_v17 = vld [vmem:[%s826_s24 + $0x58] sm:$0xff]  }
  0x21   : > { %v469_v28 = vmax.f32 %v437_v19, 0.0  ;;  %v439_v29 = vadd.f32 %v694_v7, %v343_v20  ;;  %v345_v30 = vadd.f32 %v842_v11, %v306_v21  ;;  %v307_v31 = vmul.f32 %v635_v22, %v831_v0 }
  0x22   : > { %v470_v33 = vmax.f32 %v438_v24, 0.0  ;;  %v440_v34 = vadd.f32 %v695_v12, %v344_v25  ;;  %v308_v35 = vmul.f32 %v638_v27, %v831_v0  ;;  %v702_v36 = vunpack.c.l.bf16 %v757_v23  ;;  %v746_v12 = vld [vmem:[%s821_s21 + $0x58] sm:$0xff]  }
  0x23   : > { %501 = vst [vmem:[%s862_s6 + $0x40] sm:$0xff] %v469_v28  ;;  %v471_v38 = vmax.f32 %v439_v29, 0.0  ;;  %v441_v39 = vadd.f32 %v698_v18, %v345_v30  ;;  %v346_v40 = vadd.f32 %v842_v11, %v307_v31  ;;  %v639_v41 = vunpack.c.h.bf16 %v742_v14  ;;  %v762_v31 = vld [vmem:[%s826_s24 + $0x60] sm:$0xff]  }
  0x24   : > { %502 = vst [vmem:[%s862_s6 + $0x48] sm:$0xff] %v470_v33  ;;  %v472_v42 = vmax.f32 %v440_v34, 0.0  ;;  %v347_v43 = vadd.f32 %v842_v11, %v308_v35  ;;  %v703_v44 = vunpack.c.h.bf16 %v757_v23  ;;  %v642_v45 = vunpack.c.l.bf16 %v743_v32 }
  0x25   : > { %503 = vst [vmem:[%s862_s6 + $0x50] sm:$0xff] %v471_v38  ;;  %v473_v48 = vmax.f32 %v441_v39, 0.0  ;;  %v442_v49 = vadd.f32 %v699_v26, %v346_v40  ;;  %v309_v50 = vmul.f32 %v639_v41, %v831_v0  ;;  %v706_v51 = vunpack.c.l.bf16 %v758_v37  ;;  %v747_v26 = vld [vmem:[%s821_s21 + $0x60] sm:$0xff]   ;;  %v748_v40 = vld [vmem:[%s821_s21 + $0x68] sm:$0xff]  }
  0x26   : > { %504 = vst [vmem:[%s862_s6 + $0x58] sm:$0xff] %v472_v42  ;;  %v443_v52 = vadd.f32 %v702_v36, %v347_v43  ;;  %v310_v53 = vmul.f32 %v642_v45, %v831_v0  ;;  %v643_v54 = vunpack.c.h.bf16 %v743_v32  ;;  %v707_v55 = vunpack.c.h.bf16 %v758_v37  ;;  %v763_v41 = vld [vmem:[%s826_s24 + $0x68] sm:$0xff]  }
  0x27   : > { %505 = vst [vmem:[%s862_s6 + $0x60] sm:$0xff] %v473_v48  ;;  %v474_v57 = vmax.f32 %v442_v49, 0.0  ;;  %v348_v58 = vadd.f32 %v842_v11, %v309_v50  ;;  %v646_v59 = vunpack.c.l.bf16 %v744_v46  ;;  %v710_v60 = vunpack.c.l.bf16 %v759_v47  ;;  %v749_v50 = vld [vmem:[%s821_s21 + $0x70] sm:$0xff]  }
  0x28   : > { %v475_v62 = vmax.f32 %v443_v52, 0.0  ;;  %v349_v63 = vadd.f32 %v842_v11, %v310_v53  ;;  %v311_v1 = vmul.f32 %v643_v54, %v831_v0  ;;  %v647_v2 = vunpack.c.h.bf16 %v744_v46 }
  0x29   : > { %506 = vst [vmem:[%s862_s6 + $0x68] sm:$0xff] %v474_v57  ;;  %v444_v3 = vadd.f32 %v703_v44, %v348_v58  ;;  %v312_v4 = vmul.f32 %v646_v59, %v831_v0  ;;  %v711_v5 = vunpack.c.h.bf16 %v759_v47  ;;  %v650_v6 = vunpack.c.l.bf16 %v745_v56  ;;  %v764_v59 = vld [vmem:[%s826_s24 + $0x70] sm:$0xff]  }
  0x2a   : > { %507 = vst [vmem:[%s862_s6 + $0x70] sm:$0xff] %v475_v62  ;;  %v445_v7 = vadd.f32 %v706_v51, %v349_v63  ;;  %v350_v8 = vadd.f32 %v842_v11, %v311_v1  ;;  %v313_v9 = vmul.f32 %v647_v2, %v831_v0  ;;  %v714_v10 = vunpack.c.l.bf16 %v760_v61 }
  0x2b   : > { %v476_v13 = vmax.f32 %v444_v3, 0.0  ;;  %v351_v14 = vadd.f32 %v842_v11, %v312_v4  ;;  %v314_v15 = vmul.f32 %v650_v6, %v831_v0  ;;  %v651_v16 = vunpack.c.h.bf16 %v745_v56 }
  0x2c   : > { %v477_v18 = vmax.f32 %v445_v7, 0.0  ;;  %v446_v19 = vadd.f32 %v707_v55, %v350_v8  ;;  %v352_v20 = vadd.f32 %v842_v11, %v313_v9  ;;  %v715_v21 = vunpack.c.h.bf16 %v760_v61 }
  0x2d   : > { %508 = vst [vmem:[%s862_s6 + $0x78] sm:$0xff] %v476_v13  ;;  %v447_v22 = vadd.f32 %v710_v60, %v351_v14  ;;  %v353_v23 = vadd.f32 %v842_v11, %v314_v15  ;;  %v315_v24 = vmul.f32 %v651_v16, %v831_v0  ;;  %v654_v25 = vunpack.c.l.bf16 %v746_v12 }
  0x2e   : > { %509 = vst [vmem:[%s862_s6 + $0x80] sm:$0xff] %v477_v18  ;;  %v478_v27 = vmax.f32 %v446_v19, 0.0  ;;  %v448_v28 = vadd.f32 %v711_v5, %v352_v20  ;;  %v718_v29 = vunpack.c.l.bf16 %v761_v17  ;;  %v655_v30 = vunpack.c.h.bf16 %v746_v12  ;;  %v750_v5 = vld [vmem:[%s821_s21 + $0x78] sm:$0xff]  }
  0x2f   : > { %v479_v32 = vmax.f32 %v447_v22, 0.0  ;;  %v449_v33 = vadd.f32 %v714_v10, %v353_v23  ;;  %v354_v34 = vadd.f32 %v842_v11, %v315_v24  ;;  %v316_v35 = vmul.f32 %v654_v25, %v831_v0  ;;  %v765_v10 = vld [vmem:[%s826_s24 + $0x78] sm:$0xff]  }
  0x30   : > { %510 = vst [vmem:[%s862_s6 + $0x88] sm:$0xff] %v478_v27  ;;  %v480_v36 = vmax.f32 %v448_v28, 0.0  ;;  %v317_v37 = vmul.f32 %v655_v30, %v831_v0  ;;  %v719_v38 = vunpack.c.h.bf16 %v761_v17  ;;  %v658_v39 = vunpack.c.l.bf16 %v747_v26 }
  0x31   : > { %511 = vst [vmem:[%s862_s6 + $0x90] sm:$0xff] %v479_v32  ;;  %v481_v42 = vmax.f32 %v449_v33, 0.0  ;;  %v450_v43 = vadd.f32 %v715_v21, %v354_v34  ;;  %v355_v44 = vadd.f32 %v842_v11, %v316_v35  ;;  %v722_v45 = vunpack.c.l.bf16 %v762_v31 }
  0x32   : > { %512 = vst [vmem:[%s862_s6 + $0x98] sm:$0xff] %v480_v36  ;;  %v356_v46 = vadd.f32 %v842_v11, %v317_v37  ;;  %v318_v47 = vmul.f32 %v658_v39, %v831_v0  ;;  %v659_v48 = vunpack.c.h.bf16 %v747_v26  ;;  %v723_v49 = vunpack.c.h.bf16 %v762_v31 }
  0x33   : > { %513 = vst [vmem:[%s862_s6 + $0xa0] sm:$0xff] %v481_v42  ;;  %v482_v51 = vmax.f32 %v450_v43, 0.0  ;;  %v451_v52 = vadd.f32 %v718_v29, %v355_v44  ;;  %v662_v53 = vunpack.c.l.bf16 %v748_v40  ;;  %v726_v54 = vunpack.c.l.bf16 %v763_v41 }
  0x34   : > { %v452_v55 = vadd.f32 %v719_v38, %v356_v46  ;;  %v357_v56 = vadd.f32 %v842_v11, %v318_v47  ;;  %v319_v57 = vmul.f32 %v659_v48, %v831_v0  ;;  %v663_v58 = vunpack.c.h.bf16 %v748_v40 }
  0x35   : > { %514 = vst [vmem:[%s862_s6 + $0xa8] sm:$0xff] %v482_v51  ;;  %v483_v60 = vmax.f32 %v451_v52, 0.0  ;;  %v320_v61 = vmul.f32 %v662_v53, %v831_v0  ;;  %v727_v62 = vunpack.c.h.bf16 %v763_v41  ;;  %v666_v63 = vunpack.c.l.bf16 %v749_v50 }
  0x36   : > { %v484_v1 = vmax.f32 %v452_v55, 0.0  ;;  %v453_v2 = vadd.f32 %v722_v45, %v357_v56  ;;  %v358_v3 = vadd.f32 %v842_v11, %v319_v57  ;;  %v321_v4 = vmul.f32 %v663_v58, %v831_v0 }
  0x37   : > { %515 = vst [vmem:[%s862_s6 + $0xb0] sm:$0xff] %v483_v60  ;;  %v359_v6 = vadd.f32 %v842_v11, %v320_v61  ;;  %v322_v7 = vmul.f32 %v666_v63, %v831_v0  ;;  %v730_v8 = vunpack.c.l.bf16 %v764_v59  ;;  %v667_v9 = vunpack.c.h.bf16 %v749_v50 }
  0x38   : > { %516 = vst [vmem:[%s862_s6 + $0xb8] sm:$0xff] %v484_v1  ;;  %v485_v12 = vmax.f32 %v453_v2, 0.0  ;;  %v454_v13 = vadd.f32 %v723_v49, %v358_v3  ;;  %v360_v14 = vadd.f32 %v842_v11, %v321_v4  ;;  %v731_v15 = vunpack.c.h.bf16 %v764_v59 }
  0x39   : > { %v455_v16 = vadd.f32 %v726_v54, %v359_v6  ;;  %v361_v17 = vadd.f32 %v842_v11, %v322_v7  ;;  %v323_v18 = vmul.f32 %v667_v9, %v831_v0  ;;  %v670_v19 = vunpack.c.l.bf16 %v750_v5 }
  0x3a   : > { %517 = vst [vmem:[%s862_s6 + $0xc0] sm:$0xff] %v485_v12  ;;  %v486_v20 = vmax.f32 %v454_v13, 0.0  ;;  %v456_v21 = vadd.f32 %v727_v62, %v360_v14  ;;  %v734_v22 = vunpack.c.l.bf16 %v765_v10  ;;  %v671_v23 = vunpack.c.h.bf16 %v750_v5 }
  0x3b   : > { %v487_v24 = vmax.f32 %v455_v16, 0.0  ;;  %v457_v25 = vadd.f32 %v730_v8, %v361_v17  ;;  %v362_v26 = vadd.f32 %v842_v11, %v323_v18  ;;  %v324_v27 = vmul.f32 %v670_v19, %v831_v0 }
  0x3c   : > { %518 = vst [vmem:[%s862_s6 + $0xc8] sm:$0xff] %v486_v20  ;;  %v488_v28 = vmax.f32 %v456_v21, 0.0  ;;  %v325_v29 = vmul.f32 %v671_v23, %v831_v0  ;;  %v735_v30 = vunpack.c.h.bf16 %v765_v10 }
  0x3d   : > { %519 = vst [vmem:[%s862_s6 + $0xd0] sm:$0xff] %v487_v24  ;;  %v489_v31 = vmax.f32 %v457_v25, 0.0  ;;  %v458_v32 = vadd.f32 %v731_v15, %v362_v26  ;;  %v363_v33 = vadd.f32 %v842_v11, %v324_v27 }
  0x3e   : > { %520 = vst [vmem:[%s862_s6 + $0xd8] sm:$0xff] %v488_v28  ;;  %v364_v34 = vadd.f32 %v842_v11, %v325_v29 }
  0x3f   : > { %521 = vst [vmem:[%s862_s6 + $0xe0] sm:$0xff] %v489_v31  ;;  %v490_v35 = vmax.f32 %v458_v32, 0.0  ;;  %v459_v36 = vadd.f32 %v734_v22, %v363_v33 }
  0x40   : > { %v460_v37 = vadd.f32 %v735_v30, %v364_v34 }
  0x41   : > { %522 = vst [vmem:[%s862_s6 + $0xe8] sm:$0xff] %v490_v35  ;;  %v491_v38 = vmax.f32 %v459_v36, 0.0 }
  0x42   : > { %v492_v39 = vmax.f32 %v460_v37, 0.0 }
  0x43   : > { %523 = vst [vmem:[%s862_s6 + $0xf0] sm:$0xff] %v491_v38 }
  0x44   : > { %524 = vst [vmem:[%s862_s6 + $0xf8] sm:$0xff] %v492_v39 }
  0x45 PF: > { %s14_s15 = sadd.s32 1, %s780_s15  }
  0x46   : > { %p11_p4 = scmp.ge.s32.totalorder %s14_s15, 4  }
  0x48   :  { %13 = sbr.rel (!%p11_p4) target bundleno = 1 (0x1), region = 69 }

// kernel: bottleneck_forward.5
= control target key start
LH: loop header
LB: loop body
LE: loop exit
PB: predicated region body
PF: predicated region fallthrough
CT: control target
= control target key end

     0   :  { %s9004_s21 = smov 0   ;;  %s12208_s0 = inlined_call_operand.vmem [shape: bf16[512,128], index: 0, kind: input, shape index: {}]   ;;  %s12209_s1 = inlined_call_operand.vmem [shape: f32[1,128], index: 1, kind: input, shape index: {}]   ;;  %s12210_s2 = inlined_call_operand.vmem [shape: f32[1,128], index: 2, kind: input, shape index: {}]   ;;  %s12211_s3 = inlined_call_operand.vmem [shape: bf16[1152,128], index: 3, kind: input, shape index: {}]   ;;  %s12212_s4 = inlined_call_operand.vmem [shape: bf16[512,128], index: 4, kind: output, shape index: {0}]   ;;  %s12213_s5 = inlined_call_operand.vmem [shape: f32[2,1,128], index: 5, kind: output, shape index: {1}]   ;;  %s12214_s6 = inlined_call_operand.vmem [shape: f32[2,1,128], index: 6, kind: output, shape index: {2}]  }
   0x1 LB: > { %s9010_s22 = sadd.s32 4294967295, %s8965_s21   ;;  %p7505_p0 = scmp.ge.s32.totalorder %s8965_s21, 1  ;;  %s8965_s21 = sphi %s9004_s21, %s17_s21  }
   0x2   : > { %p218_p1 = scmp.lt.s32.totalorder %s8965_s21, 3 }
   0x4   : > { %p219_p2 = pnand %p7505_p0, %p218_p1 }
   0x6   : > { %222 = sbr.rel (%p219_p2) target bundleno = 855 (0x357), region = 36 }
   0xb   : > { %v8671_v0 = vld [vmem:[%s12211_s3 + $0x78] sm:$0xff]   ;;  %v12229_v2 = vmov 0   ;;  %v8673_v3 = vld [vmem:[%s12211_s3 + $0x70] sm:$0xff]   ;;  %v465_v4 = vlaneseq  ;;  %v8675_v6 = vld [vmem:[%s12211_s3 + $0x68] sm:$0xff]   ;;  %s7506_s9 = sshll.u32 %s9010_s22, 5  ;;  %vm8968_vm4 = vmmov 1  }
   0xc   : > { %v8672_v1 = vld [vmem:[%s12211_s3 + $0x38] sm:$0xff]   ;;  %946 = vst [vmem:[#allocation2] sm:$0xf] %v12229_v2  ;;  %947 = vst [vmem:[#allocation2 + $0x4] sm:$0xf] %v12229_v2  ;;  %8125 = vmatprep.subr.bf16.mxu0 %v8671_v0  ;;  %8645 = vmatprep.subr.bf16.mxu1 %v8671_v0  ;;  %v8674_v5 = vld [vmem:[%s12211_s3 + $0x30] sm:$0xff]  }
   0xd   : > { %948 = vst [vmem:[#allocation2 + $0x8] sm:$0xf] %v12229_v2  ;;  %949 = vst [vmem:[#allocation2 + $0x8c] sm:$0xf] %v12229_v2  ;;  %8126 = vmatpush3.bf16.msra.mxu0 %v8672_v1  ;;  %8653 = vmatpush3.bf16.msra.mxu1 %v8672_v1  ;;  %v9035_v7 = vshrl.u32 %v465_v4, 7  ;;  %v8676_v8 = vld [vmem:[%s12211_s3 + $0x28] sm:$0xff]  }
   0xe   : > { %950 = vst [vmem:[#allocation2 + $0x90] sm:$0xf] %v12229_v2  ;;  %951 = vst [vmem:[#allocation2 + $0x94] sm:$0xf] %v12229_v2  ;;  %8127 = vmatprep.subr.bf16.mxu0 %v8673_v3  ;;  %8646 = vmatprep.subr.bf16.mxu1 %v8673_v3  ;;  %v8677_v9 = vld [vmem:[%s12211_s3 + $0x60] sm:$0xff]   ;;  %p255_p3 = scmp.lt.s32.totalorder %s7506_s9, 63 }
   0xf   : > { %v468_v10 = vadd.s32 16, %v9035_v7  ;;  %v502_v11 = vand.u32 15, %v9035_v7  ;;  %v8678_v12 = vld [vmem:[%s12211_s3 + $0x20] sm:$0xff]   ;;  %v8679_v13 = vld [vmem:[%s12211_s3 + $0x58] sm:$0xff]   ;;  %v9056_v15 = vadd.s32 192, %v9035_v7  ;;  %v8681_v18 = vld [vmem:[%s12211_s3 + $0x50] sm:$0xff]  }
  0x10   : > { %s12835_s9 = smov (!%p255_p3, %s7506_s9), 63  ;;  %v8680_v17 = vld [vmem:[%s12211_s3 + $0x18] sm:$0xff]   ;;  %v8682_v20 = vld [vmem:[%s12211_s3 + $0x10] sm:$0xff]   ;;  %vm1257_vm3 = vsmask.f32 3328  ;;  %v9086_v21 = vadd.s32 208, %v9035_v7  ;;  %vm1194_vm5 = vmpackc.low %vm8968_vm4, %vm8968_vm4 }
  0x11   : > { %8128 = vmatpush3.bf16.msra.mxu0 %v8674_v5  ;;  %8654 = vmatpush3.bf16.msra.mxu1 %v8674_v5  ;;  %v516_v14 = vand.u32 15, %v468_v10  ;;  %s7507_s18 = sshll.u32 %s12835_s9, 2  ;;  %vm9058_vm0 = vcmp.ge.s32.totalorder %v502_v11, 1  ;;  %v670_v22 = vand.u32 15, %v9056_v15  ;;  %v8683_v23 = vld [vmem:[%s12211_s3 + $0x48] sm:$0xff]   ;;  %v9100_v27 = vsel %vm1194_vm5, 65537, %v12229_v2 }
  0x12   : > { %8129 = vmatprep.subr.bf16.mxu0 %v8675_v6  ;;  %8647 = vmatprep.subr.bf16.mxu1 %v8675_v6  ;;  %s9070_s25 = scalar_lea.vmem %s12208_s0, %s7507_s18  ;;  %vm1193_vm2 = vmpackc.low %vm9058_vm0, %vm9058_vm0  ;;  %vm1258_vm6 = vsmask.f32 7440  ;;  %v1270_v34 = vshll.u32 %v9100_v27, 16  ;;  %v1274_v35 = vshrl.u32 %v9100_v27, 16  ;;  %v8684_v38 = vld [vmem:[%s12211_s3 + $0x8] sm:$0xff]   ;;  %v8685_v48 = vld [vmem:[%s12211_s3 + $0x40] sm:$0xff]   ;;  %s12093_s13 = scalar_lea.vmem %s12212_s4, %s7507_s18 }
  0x13   : > { %vm9075_vm1 = vcmp.ge.s32.totalorder %v516_v14, 1  ;;  %v1225_v24 = vsel %vm1193_vm2, 65537, %v12229_v2  ;;  %v2004_v25 = vld [vmem:[#allocation2 + $0x4] sm:$0xf]  ;;  %v9094_v26 = vld [vmem:[%s9070_s25 + $0x50] sm:$0xff]   ;;  %v8090_v31 = vld [vmem:[%s9070_s25 + $0x58] sm:$0xff]  }
  0x14   : > { %vm1195_vm7 = vmpackc.low %vm9075_vm1, %vm9075_vm1  ;;  %v1261_v28 = vshll.u32 %v1225_v24, 16  ;;  %v1264_v29 = vshrl.u32 %v1225_v24, 16  ;;  %v2005_v30 = vld [vmem:[#allocation2 + $0x8] sm:$0xf]  ;;  %2036 = vst [vmem:[#allocation3 + $0x4] sm:$0xf] %v2004_v25  ;;  %v7904_v36 = vunpack.c.h.bf16 %v9094_v26  ;;  %v7907_v46 = vunpack.c.l.bf16 %v8090_v31 }
  0x15   : > { %8130 = vmatpush3.bf16.msra.mxu0 %v8676_v8  ;;  %8655 = vmatpush3.bf16.msra.mxu1 %v8676_v8  ;;  %v1096_v32 = vld [vmem:[#allocation2] sm:$0x8]  ;;  %v1227_v33 = vsel %vm1195_vm7, 65537, %v12229_v2  ;;  %2037 = vst [vmem:[#allocation3 + $0x28] sm:$0xf] %v2005_v30  ;;  %v9122_v44 = vrot.slane %v1270_v34, 5  ;;  %v7908_v47 = vunpack.c.h.bf16 %v8090_v31  ;;  %vm9133_vm11 = vmor %vm1257_vm3, %vm1258_vm6 }
  0x16   : > { %8131 = vmatprep.subr.bf16.mxu0 %v8677_v9  ;;  %8648 = vmatprep.subr.bf16.mxu1 %v8677_v9  ;;  %v9108_v37 = vld [vmem:[%s9070_s25 + $0x60] sm:$0xff]   ;;  %v9113_v39 = vrot.slane %v1261_v28, 5  ;;  %v1266_v40 = vrot.slane %v1264_v29, 4  ;;  %v1280_v41 = vshll.u32 %v1227_v33, 16  ;;  %v1284_v42 = vshrl.u32 %v1227_v33, 16  ;;  %v8693_v6 = vld [vmem:[%s12211_s3 + $0xf8] sm:$0xff]  }
  0x17   : > { %vm1645_vm8 = vsmask.f32 256  ;;  %vm1646_vm9 = vsmask.f32 4368  ;;  %v9118_v43 = vld [vmem:[%s12209_s1] ss:$0 sm:$0xff]  ;;  %v7911_v56 = vunpack.c.l.bf16 %v9108_v37 }
  0x18   : > { %12353 = vst [vmem:[#allocation4_spill] sm:$0xff] %v9113_v39  ;;  %v1276_v45 = vrot.slane %v1274_v35, 4  ;;  %v1267_v49 = vor.u32 %v1266_v40, %v9113_v39  ;;  %v1282_v50 = vrot.slane %v1280_v41, 5  ;;  %v1286_v51 = vrot.slane %v1284_v42, 4  ;;  %v1097_v52 = vld [vmem:[#allocation2 + $0x4] sm:$0xf]  ;;  %vm9192_vm14 = vmor %vm1645_vm8, %vm1646_vm9 }
  0x19   : > { %8132 = vmatpush3.bf16.msra.mxu0 %v8678_v12  ;;  %8656 = vmatpush3.bf16.msra.mxu1 %v8678_v12  ;;  %vm12215_vm10 = vcmp.ne.s16.totalorder %v9113_v39, 0  ;;  %v9144_v57 = vld [vmem:[%s12210_s2] ss:$0 sm:$0xff]  ;;  %v684_v58 = vand.u32 15, %v9086_v21  ;;  %v1098_v60 = vld [vmem:[#allocation2 + $0x8] sm:$0xf]  ;;  %v367_v0 = vmul.f32 %v7904_v36, %v9118_v43  ;;  %v368_v3 = vmul.f32 %v7907_v46, %v9118_v43 }
  0x1a   : > { %8133 = vmatprep.subr.bf16.mxu0 %v8679_v13  ;;  %8649 = vmatprep.subr.bf16.mxu1 %v8679_v13  ;;  %v1277_v54 = vor.u32 %v1276_v45, %v9122_v44  ;;  %v1612_v55 = vsel %vm12215_vm10, %v1096_v32, 0  ;;  %v8686_v59 = vld [vmem:[%s12211_s3] sm:$0xff]   ;;  %v1268_v61 = vrot.slane %v1267_v49, 4  ;;  %v1287_v62 = vor.u32 %v1286_v51, %v1282_v50  ;;  %v9188_v30 = vld [vmem:[%s9070_s25 + $0x8] sm:$0xff]   ;;  %p266_p4 = scmp.lt.s32.totalorder %s9010_s22, 1 }
  0x1b   : > { %v1649_v63 = vshrl.u32 %v1612_v55, 16  ;;  %v369_v4 = vmul.f32 %v7908_v47, %v9118_v43  ;;  %v370_v5 = vmul.f32 %v7911_v56, %v9118_v43  ;;  %v406_v11 = vadd.f32 %v9144_v57, %v367_v0  ;;  %v7862_v29 = vld [vmem:[%s9070_s25] sm:$0xff]  }
  0x1c   : > { %v9151_v1 = vrot.slane %v1277_v54, 4  ;;  %v1273_v8 = vsel %vm9133_vm11, %v1268_v61, %v9122_v44  ;;  %v9162_v9 = vrot.slane %v1287_v62, 4  ;;  %v12357_v13 = vmov 0  ;;  %s12837_s22 = smov (!%p266_p4, %s9010_s22), 1 }
  0x1d   : > { %8134 = vmatpush3.bf16.msra.mxu0 %v8680_v17  ;;  %8657 = vmatpush3.bf16.msra.mxu1 %v8680_v17  ;;  %v7544_v10 = vrot.slane %v1649_v63, 11  ;;  %vm9168_vm12 = vcmp.ne.s16.totalorder %v1273_v8, 0  ;;  %v407_v14 = vadd.f32 %v9144_v57, %v368_v3  ;;  %v408_v16 = vadd.f32 %v9144_v57, %v369_v4  ;;  %v8694_v17 = vld [vmem:[%s12211_s3 + $0x178] sm:$0xff]   ;;  %v9218_v3 = vld [vmem:[%s9070_s25 + $0x68] sm:$0xff]   ;;  %s268_s14 = scalar_lea.vmem %s12213_s5, %s12837_s22  ;;  %s271_s17 = scalar_lea.vmem %s12214_s6, %s12837_s22 }
  0x1e   : > { %8135 = vmatprep.subr.bf16.mxu0 %v8681_v18  ;;  %8650 = vmatprep.subr.bf16.mxu1 %v8681_v18  ;;  %12356 = vst [vmem:[#allocation5_spill] sm:$0xff] %v9151_v1  ;;  %v1283_v12 = vsel %vm9133_vm11, %v9151_v1, %v1282_v50  ;;  %v12358_v13 = vsel %vm9168_vm12, 4294967295, %v12357_v13  ;;  %v12360_v18 = vmov 0  ;;  %v1613_v19 = vsel %vm9168_vm12, %v1097_v52, 0 }
  0x1f   : > { %12359 = vst [vmem:[#allocation6_spill] sm:$0xff] %v12358_v13  ;;  %vm9177_vm13 = vcmp.ne.s16.totalorder %v1283_v12, 0  ;;  %v438_v21 = vmax.f32 %v406_v11, 0.0  ;;  %v1654_v24 = vshrl.u32 %v1613_v19, 16  ;;  %v1657_v25 = vshll.u32 %v1613_v19, 16 }
  0x20   : > { %v12361_v18 = vsel %vm9177_vm13, 4294967295, %v12360_v18  ;;  %v439_v28 = vmax.f32 %v407_v14, 0.0  ;;  %v440_v33 = vmax.f32 %v408_v16, 0.0  ;;  %vm906_vm15 = vcmp.ge.s32.totalorder %v670_v22, 1 }
  0x21   : > { %8136 = vmatpush3.bf16.msra.mxu0 %v8682_v20  ;;  %8658 = vmatpush3.bf16.msra.mxu1 %v8682_v20  ;;  %12362 = vst [vmem:[#allocation7_spill] sm:$0xff] %v12361_v18  ;;  %v409_v20 = vadd.f32 %v9144_v57, %v370_v5  ;;  %v1656_v40 = vrot.slane %v1654_v24, 7  ;;  %vm9198_vm0 = vcmp.ge.s32.totalorder %v684_v58, 1  ;;  %vm1217_vm1 = vmpackc.low %vm906_vm15, %vm906_vm15  ;;  %v7863_v47 = vunpack.c.l.bf16 %v7862_v29 }
  0x22   : > { %8137 = vmatprep.subr.bf16.mxu0 %v8683_v23  ;;  %8651 = vmatprep.subr.bf16.mxu1 %v8683_v23  ;;  %v1614_v23 = vsel %vm9177_vm13, %v1098_v60, 0  ;;  %v7978_v42 = vpack.c.bf16 %v439_v28, %v438_v21  ;;  %vm1219_vm2 = vmpackc.low %vm9198_vm0, %vm9198_vm0  ;;  %v1249_v15 = vsel %vm1217_vm1, 65537, %v12229_v2  ;;  %v7867_v22 = vunpack.c.l.bf16 %v9188_v30 }
  0x23   : > { %v1663_v31 = vshrl.u32 %v1614_v23, 16  ;;  %v1666_v32 = vshll.u32 %v1614_v23, 16  ;;  %v441_v36 = vmax.f32 %v409_v20, 0.0  ;;  %v1659_v49 = vor.u32 %v1657_v25, %v1656_v40 }
  0x24   : > { %v1661_v50 = vrot.slane %v1656_v40, 4  ;;  %8105 = vst [vmem:[#allocation2 + $0x60] sm:$0xff] %v7978_v42   ;;  %v1251_v52 = vsel %vm1219_vm2, 65537, %v12229_v2  ;;  %v1500_v54 = vshll.u32 %v1249_v15, 16  ;;  %v1504_v55 = vshrl.u32 %v1249_v15, 16 }
  0x25   : > { %8138 = vmatpush3.bf16.msra.mxu0 %v8684_v38  ;;  %8659 = vmatpush3.bf16.msra.mxu1 %v8684_v38  ;;  %v9202_v45 = vrot.slane %v1663_v31, 7  ;;  %v7983_v46 = vpack.c.bf16 %v441_v36, %v440_v33  ;;  %v1660_v56 = vsel %vm9192_vm14, %v7544_v10, %v1659_v49  ;;  %v1520_v58 = vshll.u32 %v1251_v52, 16 }
  0x26   : > { %8139 = vmatprep.subr.bf16.mxu0 %v8685_v48  ;;  %8652 = vmatprep.subr.bf16.mxu1 %v8685_v48  ;;  %v7864_v48 = vunpack.c.h.bf16 %v7862_v29  ;;  %v346_v60 = vmul.f32 %v7863_v47, %v9118_v43  ;;  %1972 = vst [vmem:[#allocation3] sm:$0xf] %v1660_v56  ;;  %v1502_v62 = vrot.slane %v1500_v54, 5  ;;  %v1506_v63 = vrot.slane %v1504_v55, 4 }
  0x27   : > { %v1668_v51 = vor.u32 %v1666_v32, %v9202_v45  ;;  %8106 = vst [vmem:[#allocation2 + $0x68] sm:$0xff] %v7983_v46   ;;  %v7912_v4 = vunpack.c.h.bf16 %v9108_v37  ;;  %v1522_v5 = vrot.slane %v1520_v58, 5  ;;  %v348_v8 = vmul.f32 %v7867_v22, %v9118_v43  ;;  %v8698_v22 = vld [vmem:[%s12211_s3 + $0x138] sm:$0xff]  }
  0x28   : > { %v347_v0 = vmul.f32 %v7864_v48, %v9118_v43  ;;  %v1503_v10 = vsel %vm9133_vm11, %v9151_v1, %v1502_v62  ;;  %v1507_v11 = vor.u32 %v1506_v63, %v1502_v62  ;;  %v385_v12 = vadd.f32 %v9144_v57, %v346_v60  ;;  %v8711_v63 = vld [vmem:[%s12211_s3 + $0x170] sm:$0xff]  }
  0x29   : > { %8140 = vmatpush3.bf16.msra.mxu0 %v8686_v59  ;;  %8660 = vmatpush3.bf16.msra.mxu1 %v8686_v59  ;;  %v1524_v59 = vshrl.u32 %v1251_v52, 16  ;;  %v1669_v61 = vsel %vm9192_vm14, %v1661_v50, %v1668_v51  ;;  %v1523_v16 = vsel %vm9133_vm11, %v9151_v1, %v1522_v5  ;;  %vm9230_vm3 = vcmp.ne.s16.totalorder %v1503_v10, 0  ;;  %v8689_v52 = vld [vmem:[#allocation3 + $0x4] ss:$36 sps:$4 sm:$0xff]  }
  0x2a   : > { %8237 = vmatprep.subr.bf16.mxu1 %v8693_v6  ;;  %8349 = vmatprep.subr.bf16.mxu0 %v8694_v17  ;;  %1973 = vst [vmem:[#allocation3 + $0x24] sm:$0xf] %v1669_v61  ;;  %v386_v14 = vadd.f32 %v9144_v57, %v347_v0  ;;  %v12367_v37 = vmov 0  ;;  %v470_v19 = vadd.s32 32, %v9035_v7  ;;  %v1508_v23 = vrot.slane %v1507_v11, 4 }
  0x2b   : > { %v1526_v6 = vrot.slane %v1524_v59, 4  ;;  %v12368_v37 = vsel %vm9230_vm3, 4294967295, %v12367_v37  ;;  %v1120_v20 = vld [vmem:[#allocation2 + $0x60] sm:$0xf]  ;;  %v1121_v21 = vld [vmem:[#allocation2 + $0x64] sm:$0xf]  ;;  %v387_v25 = vadd.f32 %v9144_v57, %v348_v8  ;;  %v7915_v28 = vunpack.c.l.bf16 %v9218_v3  ;;  %6354 = vmatprep.mubr.bf16.mxu0 %v8689_v52 }
  0x2c   : > { %12369 = vst [vmem:[#allocation8_spill] sm:$0xff] %v12368_v37  ;;  %vm9235_vm4 = vcmp.ne.s16.totalorder %v1523_v16, 0  ;;  %v12370_v24 = vmov 0  ;;  %v9243_v32 = vsel %vm9230_vm3, %v1120_v20, 0  ;;  %v2028_v33 = vld [vmem:[#allocation2 + $0x64] sm:$0xf]  ;;  %v1293_v36 = vsel %vm9133_vm11, %v9162_v9, %v9122_v44 }
  0x2d   : > { %v1527_v17 = vor.u32 %v1526_v6, %v1522_v5  ;;  %v12371_v24 = vsel %vm9235_vm4, 4294967295, %v12370_v24  ;;  %v371_v40 = vmul.f32 %v7912_v4, %v9118_v43  ;;  %v1513_v41 = vsel %vm9133_vm11, %v1508_v23, %v9122_v44  ;;  %2060 = vst [vmem:[#allocation3 + $0x364] sm:$0xf] %v2028_v33 }
  0x2e   : > { %12372 = vst [vmem:[#allocation9_spill] sm:$0xff] %v12371_v24  ;;  %v1122_v29 = vld [vmem:[#allocation2 + $0x68] sm:$0xf]  ;;  %v1861_v46 = vshrl.u32 %v9243_v32, 16  ;;  %vm9257_vm5 = vcmp.ne.s16.totalorder %v1513_v41, 0  ;;  %v12373_v49 = vmov 0  ;;  %v372_v55 = vmul.f32 %v7915_v28, %v9118_v43 }
  0x2f   : > { %v1528_v31 = vrot.slane %v1527_v17, 4  ;;  %v1638_v42 = vsel %vm9235_vm4, %v1122_v29, 0  ;;  %v2029_v48 = vld [vmem:[#allocation2 + $0x68] sm:$0xf]  ;;  %v12374_v49 = vsel %vm9257_vm5, 4294967295, %v12373_v49  ;;  %v417_v15 = vmax.f32 %v385_v12, 0.0 }
  0x30   : > { %12375 = vst [vmem:[#allocation10_spill] sm:$0xff] %v12374_v49  ;;  %v1879_v9 = vshrl.u32 %v1638_v42, 16  ;;  %v1882_v50 = vshll.u32 %v1638_v42, 16  ;;  %2061 = vst [vmem:[#allocation3 + $0x388] sm:$0xf] %v2029_v48  ;;  %v1637_v54 = vsel %vm9257_vm5, %v1121_v21, 0  ;;  %v410_v56 = vadd.f32 %v9144_v57, %v371_v40 }
  0x31   : > { %v8687_v51 = vld [vmem:[#allocation3] ss:$36 sps:$4 sm:$0xff]   ;;  %v7868_v58 = vunpack.c.h.bf16 %v9188_v30  ;;  %v9269_v59 = vrot.slane %v1861_v46, 7  ;;  %v1870_v60 = vshrl.u32 %v1637_v54, 16  ;;  %v1873_v61 = vshll.u32 %v1637_v54, 16  ;;  %v8713_v30 = vld [vmem:[%s12211_s3 + $0x130] sm:$0xff]  }
  0x32   : > { %v9271_v62 = vrot.slane %v1879_v9, 7  ;;  %v418_v0 = vmax.f32 %v386_v14, 0.0  ;;  %v419_v4 = vmax.f32 %v387_v25, 0.0  ;;  %v530_v5 = vand.u32 15, %v470_v19  ;;  %v2030_v8 = vld [vmem:[#allocation2 + $0x6c] sm:$0xf]  ;;  %6355 = vmatmul.mubr.bf16.vlgmr.msra.gmra.mxu0 %v8687_v51 }
  0x33   : > { %v7797_v6 = vpack.c.bf16 %v417_v15, %v417_v15  ;;  %v1868_v10 = vrot.slane %v9269_v59, 4  ;;  %v1872_v11 = vrot.slane %v1870_v60, 7  ;;  %v1123_v16 = vld [vmem:[#allocation2 + $0x6c] sm:$0xf]  ;;  %v1533_v14 = vsel %vm9133_vm11, %v1528_v31, %v9122_v44  ;;  %2062 = vst [vmem:[#allocation3 + $0x3ac] sm:$0xf] %v2030_v8  ;;  %8350 = vmatpush3.bf16.msra.mxu0 %v8698_v22 }
  0x34   : > { %v1884_v12 = vor.u32 %v1882_v50, %v9271_v62  ;;  %vm886_vm6 = vcmp.ge.s32.totalorder %v530_v5, 1  ;;  %v7928_v17 = vpack.c.bf16 %v419_v4, %v418_v0  ;;  %vm9284_vm7 = vcmp.ne.s16.totalorder %v1293_v36, 0  ;;  %v9291_v29 = vld [vmem:[%s9070_s25 + $0x10] sm:$0xff]   ;;  %8351 = vmatprep.subr.bf16.mxu0 %v8711_v63  ;;  %v8727_v51 = vld [vmem:[%s12211_s3 + $0x168] sm:$0xff]  }
  0x35   : > { %1064 = vst [vmem:[#allocation2 + $0xc] sm:$0xf] %v7797_v6  ;;  %v12376_v19 = vmov 0  ;;  %v411_v20 = vadd.f32 %v9144_v57, %v372_v55  ;;  %v1875_v21 = vor.u32 %v1873_v61, %v1872_v11  ;;  %v1877_v23 = vrot.slane %v1872_v11, 4  ;;  %vm1197_vm8 = vmpackc.low %vm886_vm6, %vm886_vm6  ;;  %v9317_v4 = vld [vmem:[%s9070_s25 + $0x70] sm:$0xff]  }
  0x36   : > { %v12377_v19 = vsel %vm9284_vm7, 4294967295, %v12376_v19  ;;  %v442_v25 = vmax.f32 %v410_v56, 0.0  ;;  %v494_v28 = vadd.s32 224, %v9035_v7  ;;  %8095 = vst [vmem:[#allocation2 + $0x10] sm:$0xff] %v7928_v17   ;;  %v1229_v31 = vsel %vm1197_vm8, 65537, %v12229_v2 }
  0x37   : > { %12378 = vst [vmem:[#allocation11_spill] sm:$0xff] %v12377_v19  ;;  %v1670_v33 = vrot.slane %v9202_v45, 4  ;;  %v443_v36 = vmax.f32 %v411_v20, 0.0  ;;  %vm9295_vm9 = vcmp.ne.s16.totalorder %v1533_v14, 0  ;;  %v12379_v40 = vmov 0  ;;  %8352 = vmatpush3.bf16.msra.mxu0 %v8713_v30  ;;  %v8732_v14 = vld [vmem:[%s12211_s3 + $0x128] sm:$0xff]  }
  0x38   : > { %v12380_v40 = vsel %vm9295_vm9, 4294967295, %v12379_v40  ;;  %v1876_v41 = vsel %vm9192_vm14, %v1868_v10, %v1875_v21  ;;  %v1885_v42 = vsel %vm9192_vm14, %v1877_v23, %v1884_v12  ;;  %v1300_v46 = vshll.u32 %v1229_v31, 16  ;;  %8353 = vmatprep.subr.bf16.mxu0 %v8727_v51  ;;  %v8692_v51 = vld [vmem:[#allocation3 + $0x364] ss:$36 sps:$4 sm:$0xff]  }
  0x39   : > { %12381 = vst [vmem:[#allocation12_spill] sm:$0xff] %v12380_v40  ;;  %v1304_v48 = vshrl.u32 %v1229_v31, 16  ;;  %1996 = vst [vmem:[#allocation3 + $0x360] sm:$0xf] %v1876_v41  ;;  %v698_v9 = vand.u32 15, %v494_v28  ;;  %v7988_v50 = vpack.c.bf16 %v443_v36, %v442_v25  ;;  %v1639_v15 = vsel %vm9295_vm9, %v1123_v16, 0  ;;  %6450 = vmatprep.mubr.bf16.mxu1 %v8692_v51 }
  0x3a   : > { %1997 = vst [vmem:[#allocation3 + $0x384] sm:$0xf] %v1885_v42  ;;  %v7871_v22 = vunpack.c.l.bf16 %v9291_v29  ;;  %v1302_v52 = vrot.slane %v1300_v46, 5  ;;  %v1888_v54 = vshrl.u32 %v1639_v15, 16  ;;  %v1891_v55 = vshll.u32 %v1639_v15, 16  ;;  %v8697_v36 = vld [vmem:[%s12211_s3 + $0xb8] sm:$0xff]  }
  0x3b   : > { %v349_v56 = vmul.f32 %v7868_v58, %v9118_v43  ;;  %vm9310_vm15 = vcmp.ge.s32.totalorder %v698_v9, 1  ;;  %8107 = vst [vmem:[#allocation2 + $0x70] sm:$0xff] %v7988_v50   ;;  %v1886_v61 = vrot.slane %v9271_v62, 4  ;;  %v1306_v0 = vrot.slane %v1304_v48, 4  ;;  %8354 = vmatpush3.bf16.msra.mxu0 %v8732_v14 }
  0x3c   : > { %v350_v63 = vmul.f32 %v7871_v22, %v9118_v43  ;;  %v1099_v5 = vld [vmem:[#allocation2 + $0xc] sm:$0xf]  ;;  %v1303_v6 = vsel %vm9133_vm11, %v9151_v1, %v1302_v52  ;;  %vm1221_vm0 = vmpackc.low %vm9310_vm15, %vm9310_vm15  ;;  %v9325_v58 = vrot.slane %v1888_v54, 7  ;;  %v472_v30 = vadd.s32 48, %v9035_v7 }
  0x3d   : > { %v2006_v8 = vld [vmem:[#allocation2 + $0xc] sm:$0xf]  ;;  %v388_v62 = vadd.f32 %v9144_v57, %v349_v56  ;;  %vm9329_vm1 = vcmp.ne.s16.totalorder %v1303_v6, 0  ;;  %v12384_v10 = vmov 0  ;;  %v1615_v11 = vsel %vm9284_vm7, %v1099_v5, 0 }
  0x3e   : > { %v12385_v10 = vsel %vm9329_vm1, 4294967295, %v12384_v10  ;;  %2038 = vst [vmem:[#allocation3 + $0x4c] sm:$0xf] %v2006_v8  ;;  %v9336_v12 = vsel %vm1221_vm0, 65537, %v12229_v2  ;;  %v389_v16 = vadd.f32 %v9144_v57, %v350_v63  ;;  %v1100_v17 = vld [vmem:[#allocation2 + $0x10] sm:$0xf]  ;;  %v1893_v25 = vor.u32 %v1891_v55, %v9325_v58 }
  0x3f   : > { %12386 = vst [vmem:[#allocation13_spill] sm:$0xff] %v12385_v10  ;;  %v1672_v20 = vshrl.u32 %v1615_v11, 16  ;;  %v1675_v21 = vshll.u32 %v1615_v11, 16  ;;  %v2007_v23 = vld [vmem:[#allocation2 + $0x10] sm:$0xf]  ;;  %v7916_v28 = vunpack.c.h.bf16 %v9218_v3  ;;  %v1616_v31 = vsel %vm9329_vm1, %v1100_v17, 0 }
  0x40   : > { %2039 = vst [vmem:[#allocation3 + $0x70] sm:$0xf] %v2007_v23  ;;  %v1540_v41 = vshll.u32 %v9336_v12, 16  ;;  %v1544_v42 = vshrl.u32 %v9336_v12, 16  ;;  %v1307_v46 = vor.u32 %v1306_v0, %v1302_v52  ;;  %v1681_v50 = vshrl.u32 %v1616_v31, 16  ;;  %v8700_v3 = vld [vmem:[%s12211_s3 + $0xf0] sm:$0xff]  }
  0x41   : > { %v8690_v48 = vld [vmem:[#allocation3 + $0x360] ss:$36 sps:$4 sm:$0xff]   ;;  %v1674_v9 = vrot.slane %v1672_v20, 7  ;;  %v1894_v15 = vsel %vm9192_vm14, %v1886_v61, %v1893_v25  ;;  %v7919_v22 = vunpack.c.l.bf16 %v9317_v4  ;;  %v1684_v54 = vshll.u32 %v1616_v31, 16  ;;  %v8701_v61 = vld [vmem:[%s12211_s3 + $0xb0] sm:$0xff]  }
  0x42   : > { %v9357_v55 = vrot.slane %v1540_v41, 5  ;;  %1998 = vst [vmem:[#allocation3 + $0x3a8] sm:$0xf] %v1894_v15  ;;  %v420_v56 = vmax.f32 %v388_v62, 0.0  ;;  %v421_v52 = vmax.f32 %v389_v16, 0.0  ;;  %v9359_v0 = vrot.slane %v1681_v50, 7  ;;  %6451 = vmatmul.mubr.bf16.vlgmr.msra.gmra.mxu1 %v8690_v48 }
  0x43   : > { %v1677_v60 = vor.u32 %v1675_v21, %v1674_v9  ;;  %v1679_v63 = vrot.slane %v1674_v9, 4  ;;  %v1124_v5 = vld [vmem:[#allocation2 + $0x70] sm:$0xf]  ;;  %v373_v8 = vmul.f32 %v7916_v28, %v9118_v43  ;;  %v544_v62 = vand.u32 15, %v472_v30  ;;  %v1101_v14 = vld [vmem:[#allocation2 + $0x14] sm:$0xf]  ;;  %8238 = vmatpush3.bf16.msra.mxu1 %v8697_v36 }
  0x44   : > { %v2031_v6 = vld [vmem:[#allocation2 + $0x70] sm:$0xf]  ;;  %v1543_v11 = vsel %vm9133_vm11, %v9151_v1, %v9357_v55  ;;  %v7933_v16 = vpack.c.bf16 %v421_v52, %v420_v56  ;;  %v1308_v17 = vrot.slane %v1307_v46, 4  ;;  %v2008_v20 = vld [vmem:[#allocation2 + $0x14] sm:$0xf]  ;;  %v1686_v23 = vor.u32 %v1684_v54, %v9359_v0  ;;  %8239 = vmatprep.subr.bf16.mxu1 %v8700_v3  ;;  %v8704_v36 = vld [vmem:[%s12211_s3 + $0xe8] sm:$0xff]  }
  0x45   : > { %2063 = vst [vmem:[#allocation3 + $0x3d0] sm:$0xf] %v2031_v6  ;;  %v1678_v21 = vsel %vm9192_vm14, %v1670_v33, %v1677_v60  ;;  %vm9374_vm2 = vcmp.ne.s16.totalorder %v1543_v11, 0  ;;  %v12387_v25 = vmov 0  ;;  %v1895_v28 = vrot.slane %v9325_v58, 4  ;;  %v8708_v52 = vld [vmem:[%s12211_s3 + $0xa8] sm:$0xff]  }
  0x46   : > { %v12388_v25 = vsel %vm9374_vm2, 4294967295, %v12387_v25  ;;  %2040 = vst [vmem:[#allocation3 + $0x94] sm:$0xf] %v2008_v20  ;;  %v2032_v30 = vld [vmem:[#allocation2 + $0x74] sm:$0xf]  ;;  %v1640_v31 = vsel %vm9374_vm2, %v1124_v5, 0  ;;  %v1313_v45 = vsel %vm9133_vm11, %v1308_v17, %v9122_v44  ;;  %v374_v33 = vmul.f32 %v7919_v22, %v9118_v43 }
  0x47   : > { %12389 = vst [vmem:[#allocation14_spill] sm:$0xff] %v12388_v25  ;;  %1974 = vst [vmem:[#allocation3 + $0x48] sm:$0xf] %v1678_v21  ;;  %vm888_vm6 = vcmp.ge.s32.totalorder %v544_v62, 1  ;;  %v1687_v41 = vsel %vm9192_vm14, %v1679_v63, %v1686_v23  ;;  %v1897_v58 = vshrl.u32 %v1640_v31, 16  ;;  %v1900_v46 = vshll.u32 %v1640_v31, 16  ;;  %8240 = vmatpush3.bf16.msra.mxu1 %v8701_v61 }
  0x48   : > { %8096 = vst [vmem:[#allocation2 + $0x18] sm:$0xff] %v7933_v16   ;;  %2064 = vst [vmem:[#allocation3 + $0x3f4] sm:$0xf] %v2032_v30  ;;  %vm9390_vm15 = vcmp.ne.s16.totalorder %v1313_v45, 0  ;;  %v12390_v48 = vmov 0  ;;  %v412_v15 = vadd.f32 %v9144_v57, %v373_v8  ;;  %v413_v3 = vadd.f32 %v9144_v57, %v374_v33  ;;  %8241 = vmatprep.subr.bf16.mxu1 %v8704_v36  ;;  %v9417_v61 = vld [vmem:[%s9070_s25 + $0x18] sm:$0xff]  }
  0x49   : > { %vm1199_vm8 = vmpackc.low %vm888_vm6, %vm888_vm6  ;;  %v12391_v48 = vsel %vm9390_vm15, 4294967295, %v12390_v48  ;;  %1975 = vst [vmem:[#allocation3 + $0x6c] sm:$0xf] %v1687_v41  ;;  %v1617_v50 = vsel %vm9390_vm15, %v1101_v14, 0  ;;  %v9399_v22 = vrot.slane %v1897_v58, 7  ;;  %v1688_v54 = vrot.slane %v9359_v0, 4 }
  0x4a   : > { %12392 = vst [vmem:[#allocation15_spill] sm:$0xff] %v12391_v48  ;;  %v1231_v9 = vsel %vm1199_vm8, 65537, %v12229_v2  ;;  %v1690_v56 = vshrl.u32 %v1617_v50, 16  ;;  %v1693_v60 = vshll.u32 %v1617_v50, 16  ;;  %v444_v63 = vmax.f32 %v412_v15, 0.0  ;;  %v8710_v0 = vld [vmem:[%s12211_s3 + $0xe0] sm:$0xff]  }
  0x4b   : > { %v1320_v51 = vshll.u32 %v1231_v9, 16  ;;  %v445_v5 = vmax.f32 %v413_v3, 0.0  ;;  %v496_v6 = vadd.s32 240, %v9035_v7  ;;  %v1902_v8 = vor.u32 %v1900_v46, %v9399_v22  ;;  %8242 = vmatpush3.bf16.msra.mxu1 %v8708_v52  ;;  %v8716_v58 = vld [vmem:[%s12211_s3 + $0xd8] sm:$0xff]   ;;  %v2071_v10 = vld [vmem:[#allocation2 + $0x10] sm:$0xf] }
  0x4c   : > { %v9409_v62 = vrot.slane %v1690_v56, 7  ;;  %v1546_v16 = vrot.slane %v1544_v42, 4  ;;  %v1324_v14 = vshrl.u32 %v1231_v9, 16  ;;  %v7872_v21 = vunpack.c.h.bf16 %v9291_v29  ;;  %v8712_v29 = vld [vmem:[%s12211_s3 + $0xa0] sm:$0xff]   ;;  %8243 = vmatprep.subr.bf16.mxu1 %v8710_v0  ;;  %v8720_v0 = vld [vmem:[%s12211_s3 + $0x98] sm:$0xff]  }
  0x4d   : > { %v9407_v11 = vrot.slane %v1320_v51, 5  ;;  %v712_v17 = vand.u32 15, %v496_v6  ;;  %v7993_v20 = vpack.c.bf16 %v445_v5, %v444_v63  ;;  %v1903_v23 = vsel %vm9192_vm14, %v1895_v28, %v1902_v8  ;;  %v8695_v9 = vld [vmem:[#allocation3 + $0x4c] ss:$36 sps:$4 sm:$0xff]   ;;  %v1125_v5 = vld [vmem:[#allocation2 + $0x74] sm:$0xf] }
  0x4e   : > { %v1695_v45 = vor.u32 %v1693_v60, %v9409_v62  ;;  %v1904_v42 = vrot.slane %v9399_v22, 4  ;;  %1999 = vst [vmem:[#allocation3 + $0x3cc] sm:$0xf] %v1903_v23  ;;  %v12393_v33 = vmov 0  ;;  %v1547_v41 = vor.u32 %v1546_v16, %v9357_v55  ;;  %6362 = vmatprep.mubr.bf16.mxu0 %v8695_v9  ;;  %v8094_v23 = vld [vmem:[%s9070_s25 + $0x78] sm:$0xff]  }
  0x4f   : > { %v1102_v30 = vld [vmem:[#allocation2 + $0x18] sm:$0xf]  ;;  %v1323_v31 = vsel %vm9133_vm11, %v9151_v1, %v9407_v11  ;;  %vm9435_vm6 = vcmp.ge.s32.totalorder %v712_v17, 1  ;;  %8108 = vst [vmem:[#allocation2 + $0x78] sm:$0xff] %v7993_v20   ;;  %v7875_v46 = vunpack.c.l.bf16 %v9417_v61  ;;  %v2010_v36 = vld [vmem:[#allocation2 + $0x1c] sm:$0xf]  ;;  %v351_v51 = vmul.f32 %v7872_v21, %v9118_v43  ;;  %8244 = vmatpush3.bf16.msra.mxu1 %v8712_v29 }
  0x50   : > { %v2009_v12 = vld [vmem:[#allocation2 + $0x18] sm:$0xf]  ;;  %vm9428_vm0 = vcmp.ne.s16.totalorder %v1323_v31, 0  ;;  %v8699_v50 = vld [vmem:[#allocation3 + $0x48] ss:$36 sps:$4 sm:$0xff]   ;;  %v1696_v3 = vsel %vm9192_vm14, %v1688_v54, %v1695_v45  ;;  %v7920_v55 = vunpack.c.h.bf16 %v9317_v4  ;;  %vm1223_vm8 = vmpackc.low %vm9435_vm6, %vm9435_vm6  ;;  %v1548_v60 = vrot.slane %v1547_v41, 4  ;;  %8245 = vmatprep.subr.bf16.mxu1 %v8716_v58 }
  0x51   : > { %v12394_v33 = vsel %vm9428_vm0, 4294967295, %v12393_v33  ;;  %2041 = vst [vmem:[#allocation3 + $0xb8] sm:$0xf] %v2009_v12  ;;  %v1618_v15 = vsel %vm9428_vm0, %v1102_v30, 0  ;;  %2042 = vst [vmem:[#allocation3 + $0xdc] sm:$0xf] %v2010_v36  ;;  %v352_v63 = vmul.f32 %v7875_v46, %v9118_v43  ;;  %v390_v6 = vadd.f32 %v9144_v57, %v351_v51  ;;  %6363 = vmatmul.mubr.bf16.gmra.mxu0 %v8699_v50 }
  0x52   : > { %12395 = vst [vmem:[#allocation16_spill] sm:$0xff] %v12394_v33  ;;  %v1699_v56 = vshrl.u32 %v1618_v15, 16  ;;  %v1702_v52 = vshll.u32 %v1618_v15, 16  ;;  %1976 = vst [vmem:[#allocation3 + $0x90] sm:$0xf] %v1696_v3  ;;  %v9455_v54 = vsel %vm1223_vm8, 65537, %v12229_v2  ;;  %v1553_v20 = vsel %vm9133_vm11, %v1548_v60, %v9122_v44 }
  0x53   : > { %v474_v4 = vadd.s32 64, %v9035_v7  ;;  %v1326_v8 = vrot.slane %v1324_v14, 4  ;;  %v1697_v16 = vrot.slane %v9409_v62, 4  ;;  %v1560_v21 = vshll.u32 %v9455_v54, 16  ;;  %v8722_v14 = vld [vmem:[%s12211_s3 + $0xd0] sm:$0xff]   ;;  %v8744_v30 = vld [vmem:[%s12211_s3 + $0x160] sm:$0xff]   ;;  %8246 = vmatpush3.bf16.msra.mxu1 %v8720_v0 }
  0x54   : > { %v9463_v17 = vrot.slane %v1699_v56, 7  ;;  %vm9476_vm6 = vcmp.ne.s16.totalorder %v1553_v20, 0  ;;  %v12398_v62 = vmov 0  ;;  %v391_v31 = vadd.f32 %v9144_v57, %v352_v63  ;;  %v8745_v29 = vld [vmem:[%s12211_s3 + $0x120] sm:$0xff]   ;;  %v8723_v58 = vld [vmem:[%s12211_s3 + $0x90] sm:$0xff]   ;;  %8355 = vmatprep.subr.bf16.mxu0 %v8744_v30  ;;  %8247 = vmatprep.subr.bf16.mxu1 %v8722_v14 }
  0x55   : > { %v12399_v62 = vsel %vm9476_vm6, 4294967295, %v12398_v62  ;;  %v422_v45 = vmax.f32 %v390_v6, 0.0  ;;  %v558_v12 = vand.u32 15, %v474_v4  ;;  %v9485_v41 = vrot.slane %v1560_v21, 5  ;;  %v8702_v9 = vld [vmem:[#allocation3 + $0x3ac] ss:$36 sps:$4 sm:$0xff]   ;;  %8356 = vmatpush3.bf16.msra.mxu0 %v8745_v29 }
  0x56   : > { %12400 = vst [vmem:[#allocation17_spill] sm:$0xff] %v12399_v62  ;;  %v1704_v28 = vor.u32 %v1702_v52, %v9463_v17  ;;  %v1641_v46 = vsel %vm9476_vm6, %v1125_v5, 0  ;;  %v1327_v36 = vor.u32 %v1326_v8, %v9407_v11  ;;  %v8707_v50 = vld [vmem:[#allocation3 + $0x3a8] ss:$36 sps:$4 sm:$0xff]   ;;  %v7923_v3 = vunpack.c.l.bf16 %v8094_v23  ;;  %v1126_v52 = vld [vmem:[#allocation2 + $0x78] sm:$0xf]  ;;  %6458 = vmatprep.mubr.bf16.mxu1 %v8702_v9 }
  0x57   : > { %v1906_v15 = vshrl.u32 %v1641_v46, 16  ;;  %v375_v51 = vmul.f32 %v7920_v55, %v9118_v43  ;;  %v1563_v11 = vsel %vm9133_vm11, %v9151_v1, %v9485_v41  ;;  %v1909_v60 = vshll.u32 %v1641_v46, 16  ;;  %v2033_v63 = vld [vmem:[#allocation2 + $0x78] sm:$0xf]  ;;  %6459 = vmatmul.mubr.bf16.gmra.mxu1 %v8707_v50  ;;  %v1103_v23 = vld [vmem:[#allocation2 + $0x1c] sm:$0xf] }
  0x58   : > { %v1705_v56 = vsel %vm9192_vm14, %v1697_v16, %v1704_v28  ;;  %v423_v5 = vmax.f32 %v391_v31, 0.0  ;;  %vm9500_vm8 = vcmp.ne.s16.totalorder %v1563_v11, 0  ;;  %v12401_v6 = vmov 0  ;;  %2065 = vst [vmem:[#allocation3 + $0x418] sm:$0xf] %v2033_v63  ;;  %v8726_v16 = vld [vmem:[%s12211_s3 + $0xc8] sm:$0xff]   ;;  %8248 = vmatpush3.bf16.msra.mxu1 %v8723_v58 }
  0x59   : > { %1977 = vst [vmem:[#allocation3 + $0xb4] sm:$0xf] %v1705_v56  ;;  %v12402_v6 = vsel %vm9500_vm8, 4294967295, %v12401_v6  ;;  %v1908_v55 = vrot.slane %v1906_v15, 7  ;;  %vm9504_vm10 = vcmp.ge.s32.totalorder %v558_v12, 1  ;;  %v1328_v8 = vrot.slane %v1327_v36, 4  ;;  %8249 = vmatprep.subr.bf16.mxu1 %v8726_v16 }
  0x5a   : > { %12403 = vst [vmem:[#allocation18_spill] sm:$0xff] %v12402_v6  ;;  %v1564_v0 = vshrl.u32 %v9455_v54, 16  ;;  %v1642_v20 = vsel %vm9500_vm8, %v1126_v52, 0  ;;  %v7938_v21 = vpack.c.bf16 %v423_v5, %v422_v45  ;;  %vm1201_vm6 = vmpackc.low %vm9504_vm10, %vm9504_vm10  ;;  %v376_v30 = vmul.f32 %v7923_v3, %v9118_v43  ;;  %v2034_v31 = vld [vmem:[#allocation2 + $0x7c] sm:$0xf]  ;;  %v9520_v46 = vld [vmem:[%s9070_s25 + $0x20] sm:$0xff]  }
  0x5b   : > { %v1911_v12 = vor.u32 %v1909_v60, %v1908_v55  ;;  %v1915_v29 = vshrl.u32 %v1642_v20, 16  ;;  %v1918_v28 = vshll.u32 %v1642_v20, 16  ;;  %2066 = vst [vmem:[#allocation3 + $0x43c] sm:$0xf] %v2034_v31  ;;  %v8731_v54 = vld [vmem:[%s12211_s3 + $0x88] sm:$0xff]   ;;  %v8754_v45 = vld [vmem:[%s12211_s3 + $0x158] sm:$0xff]   ;;  %v1333_v9 = vsel %vm9133_vm11, %v1328_v8, %v9122_v44 }
  0x5c   : > { %8097 = vst [vmem:[#allocation2 + $0x20] sm:$0xff] %v7938_v21   ;;  %v9529_v36 = vsel %vm1201_vm6, 65537, %v12229_v2  ;;  %v1706_v50 = vrot.slane %v9463_v17, 4  ;;  %v414_v15 = vadd.f32 %v9144_v57, %v375_v51  ;;  %v1913_v56 = vrot.slane %v1908_v55, 4  ;;  %v8734_v60 = vld [vmem:[%s12211_s3 + $0xc0] sm:$0xff]   ;;  %8357 = vmatprep.subr.bf16.mxu0 %v8754_v45  ;;  %v8759_v63 = vld [vmem:[%s12211_s3 + $0x118] sm:$0xff]   ;;  %8250 = vmatpush3.bf16.msra.mxu1 %v8731_v54 }
  0x5d   : > { %v1912_v3 = vsel %vm9192_vm14, %v1904_v42, %v1911_v12  ;;  %v9540_v52 = vrot.slane %v1915_v29, 7  ;;  %v1340_v11 = vshll.u32 %v9529_v36, 16  ;;  %v1344_v58 = vshrl.u32 %v9529_v36, 16  ;;  %v8735_v16 = vld [vmem:[%s12211_s3 + $0x80] sm:$0xff]   ;;  %v8705_v20 = vld [vmem:[#allocation3 + $0x94] ss:$36 sps:$4 sm:$0xff]   ;;  %8358 = vmatpush3.bf16.msra.mxu0 %v8759_v63  ;;  %8251 = vmatprep.subr.bf16.mxu1 %v8734_v60 }
  0x5e   : > { %2000 = vst [vmem:[#allocation3 + $0x3f0] sm:$0xf] %v1912_v3  ;;  %vm9547_vm10 = vcmp.ne.s16.totalorder %v1333_v9, 0  ;;  %v12406_v51 = vmov 0  ;;  %v415_v22 = vadd.f32 %v9144_v57, %v376_v30  ;;  %v1566_v42 = vrot.slane %v1564_v0, 4  ;;  %6370 = vmatprep.mubr.bf16.mxu0 %v8705_v20  ;;  %v8768_v17 = vld [vmem:[%s12211_s3 + $0x150] sm:$0xff]  }
  0x5f   : > { %v12407_v51 = vsel %vm9547_vm10, 4294967295, %v12406_v51  ;;  %v1920_v5 = vor.u32 %v1918_v28, %v9540_v52  ;;  %v9556_v55 = vrot.slane %v1340_v11, 5  ;;  %v1619_v4 = vsel %vm9547_vm10, %v1103_v23, 0  ;;  %v1127_v9 = vld [vmem:[#allocation2 + $0x7c] sm:$0xf]  ;;  %8359 = vmatprep.subr.bf16.mxu0 %v8768_v17 }
  0x60   : > { %12408 = vst [vmem:[#allocation19_spill] sm:$0xff] %v12407_v51  ;;  %v446_v8 = vmax.f32 %v414_v15, 0.0  ;;  %v8709_v21 = vld [vmem:[#allocation3 + $0x90] ss:$36 sps:$4 sm:$0xff]   ;;  %v1708_v30 = vshrl.u32 %v1619_v4, 16  ;;  %v1567_v0 = vor.u32 %v1566_v42, %v9485_v41  ;;  %v7876_v31 = vunpack.c.h.bf16 %v9417_v61  ;;  %v8739_v41 = vld [vmem:[%s12211_s3 + $0x1f8] sm:$0xff]   ;;  %8252 = vmatpush3.bf16.msra.mxu1 %v8735_v16 }
  0x61   : > { %v7879_v12 = vunpack.c.l.bf16 %v9520_v46  ;;  %v1921_v29 = vsel %vm9192_vm14, %v1913_v56, %v1920_v5  ;;  %v1343_v23 = vsel %vm9133_vm11, %v9151_v1, %v9556_v55  ;;  %v1711_v28 = vshll.u32 %v1619_v4, 16  ;;  %6371 = vmatmul.mubr.bf16.gmra.mxu0 %v8709_v21  ;;  %8461 = vmatprep.subr.bf16.mxu1 %v8739_v41  ;;  %v2073_v33 = vld [vmem:[#allocation2 + $0x18] sm:$0xf] }
  0x62   : > { %v447_v45 = vmax.f32 %v415_v22, 0.0  ;;  %2001 = vst [vmem:[#allocation3 + $0x414] sm:$0xf] %v1921_v29  ;;  %vm9575_vm6 = vcmp.ne.s16.totalorder %v1343_v23, 0  ;;  %v12409_v61 = vmov 0  ;;  %v1710_v54 = vrot.slane %v1708_v30, 7 }
  0x63   : > { %v12410_v61 = vsel %vm9575_vm6, 4294967295, %v12409_v61  ;;  %v1568_v15 = vrot.slane %v1567_v0, 4  ;;  %v1922_v3 = vrot.slane %v9540_v52, 4  ;;  %v1104_v56 = vld [vmem:[#allocation2 + $0x20] sm:$0xf]  ;;  %v353_v22 = vmul.f32 %v7876_v31, %v9118_v43 }
  0x64   : > { %12411 = vst [vmem:[#allocation20_spill] sm:$0xff] %v12410_v61  ;;  %v2011_v11 = vld [vmem:[#allocation2 + $0x20] sm:$0xf]  ;;  %v7998_v60 = vpack.c.bf16 %v447_v45, %v446_v8  ;;  %v354_v42 = vmul.f32 %v7879_v12, %v9118_v43  ;;  %v476_v63 = vadd.s32 80, %v9035_v7  ;;  %v1620_v5 = vsel %vm9575_vm6, %v1104_v56, 0 }
  0x65   : > { %v1713_v4 = vor.u32 %v1711_v28, %v1710_v54  ;;  %v1715_v20 = vrot.slane %v1710_v54, 4  ;;  %2043 = vst [vmem:[#allocation3 + $0x100] sm:$0xf] %v2011_v11  ;;  %v1573_v21 = vsel %vm9133_vm11, %v1568_v15, %v9122_v44  ;;  %v2012_v30 = vld [vmem:[#allocation2 + $0x24] sm:$0xf]  ;;  %v1717_v8 = vshrl.u32 %v1620_v5, 16 }
  0x66   : > { %v1720_v0 = vshll.u32 %v1620_v5, 16  ;;  %8109 = vst [vmem:[#allocation2 + $0x80] sm:$0xff] %v7998_v60   ;;  %vm9589_vm8 = vcmp.ne.s16.totalorder %v1573_v21, 0  ;;  %v12412_v43 = vmov 0  ;;  %v392_v31 = vadd.f32 %v9144_v57, %v353_v22  ;;  %2044 = vst [vmem:[#allocation3 + $0x124] sm:$0xf] %v2012_v30 }
  0x67   : > { %v12413_v43 = vsel %vm9589_vm8, 4294967295, %v12412_v43  ;;  %v1714_v12 = vsel %vm9192_vm14, %v1706_v50, %v1713_v4  ;;  %v1643_v29 = vsel %vm9589_vm8, %v1127_v9, 0  ;;  %v393_v16 = vadd.f32 %v9144_v57, %v354_v42  ;;  %v9602_v28 = vld [vmem:[%s9070_s25 + $0x28] sm:$0xff]   ;;  %v2075_v61 = vld [vmem:[#allocation2 + $0x20] sm:$0xf] }
  0x68   : > { %12414 = vst [vmem:[#allocation21_spill] sm:$0xff] %v12413_v43  ;;  %v572_v23 = vand.u32 15, %v476_v63  ;;  %v9604_v45 = vrot.slane %v1717_v8, 7  ;;  %1978 = vst [vmem:[#allocation3 + $0xd8] sm:$0xf] %v1714_v12  ;;  %v1924_v54 = vshrl.u32 %v1643_v29, 16  ;;  %v7880_v42 = vunpack.c.h.bf16 %v9520_v46 }
  0x69   : > { %v1927_v15 = vshll.u32 %v1643_v29, 16  ;;  %v424_v56 = vmax.f32 %v392_v31, 0.0  ;;  %v425_v41 = vmax.f32 %v393_v16, 0.0  ;;  %v1346_v50 = vrot.slane %v1344_v58, 4  ;;  %v8714_v57 = vld [vmem:[#allocation3 + $0x3f4] ss:$36 sps:$4 sm:$0xff]  }
  0x6a   : > { %vm9606_vm2 = vcmp.ge.s32.totalorder %v572_v23, 1  ;;  %v467_v9 = vadd.s32 8, %v9035_v7  ;;  %v1722_v11 = vor.u32 %v1720_v0, %v9604_v45  ;;  %v8719_v60 = vld [vmem:[#allocation3 + $0x3f0] ss:$36 sps:$4 sm:$0xff]   ;;  %v9614_v22 = vrot.slane %v1924_v54, 7  ;;  %6466 = vmatprep.mubr.bf16.mxu1 %v8714_v57 }
  0x6b   : > { %v7883_v63 = vunpack.c.l.bf16 %v9602_v28  ;;  %v7943_v5 = vpack.c.bf16 %v425_v41, %v424_v56  ;;  %vm1203_vm8 = vmpackc.low %vm9606_vm2, %vm9606_vm2  ;;  %v1347_v36 = vor.u32 %v1346_v50, %v9556_v55  ;;  %v1724_v58 = vrot.slane %v9604_v45, 4  ;;  %v2970_v21 = vld [vmem:[#allocation2 + $0x8] sm:$0x8]  ;;  %v1105_v0 = vld [vmem:[#allocation2 + $0x24] sm:$0xf]  ;;  %6467 = vmatmul.mubr.bf16.gmra.mxu1 %v8719_v60 }
  0x6c   : > { %v509_v4 = vand.u32 15, %v467_v9  ;;  %v1723_v30 = vsel %vm9192_vm14, %v1715_v20, %v1722_v11  ;;  %v1929_v8 = vor.u32 %v1927_v15, %v9614_v22  ;;  %v1931_v46 = vrot.slane %v9614_v22, 4  ;;  %v9634_v20 = vld [vmem:[%s12209_s1] ss:$0 sm:$0xff] }
  0x6d   : > { %v9628_v31 = vsel %vm1203_vm8, 65537, %v12229_v2  ;;  %1979 = vst [vmem:[#allocation3 + $0xfc] sm:$0xf] %v1723_v30  ;;  %v1128_v12 = vld [vmem:[#allocation2 + $0x80] sm:$0xf]  ;;  %8098 = vst [vmem:[#allocation2 + $0x28] sm:$0xff] %v7943_v5   ;;  %v355_v23 = vmul.f32 %v9634_v20, %v7880_v42  ;;  %v356_v54 = vmul.f32 %v9634_v20, %v7883_v63 }
  0x6e   : > { %v2035_v55 = vld [vmem:[#allocation2 + $0x80] sm:$0xf]  ;;  %v1348_v29 = vrot.slane %v1347_v36, 4  ;;  %v1360_v16 = vshll.u32 %v9628_v31, 16  ;;  %vm12417_vm2 = vcmp.ne.s16.totalorder %v9151_v1, 0  ;;  %v1930_v56 = vsel %vm9192_vm14, %v1922_v3, %v1929_v8 }
  0x6f   : > { %v1644_v15 = vsel %vm12417_vm2, %v1128_v12, 0  ;;  %2067 = vst [vmem:[#allocation3 + $0x460] sm:$0xf] %v2035_v55  ;;  %vm915_vm8 = vcmp.le.s32.totalorder %v509_v4, 14  ;;  %2002 = vst [vmem:[#allocation3 + $0x438] sm:$0xf] %v1930_v56 }
  0x70   : > { %v1933_v50 = vshrl.u32 %v1644_v15, 16  ;;  %v1936_v9 = vshll.u32 %v1644_v15, 16  ;;  %v1353_v57 = vsel %vm9133_vm11, %v1348_v29, %v9122_v44  ;;  %v9651_v11 = vrot.slane %v1360_v16, 5  ;;  %vm2166_vm2 = vmpackc.low %vm915_vm8, %vm915_vm8  ;;  %v8769_v4 = vld [vmem:[%s12211_s3 + $0x110] sm:$0xff]   ;;  %v2068_v55 = vld [vmem:[#allocation2 + $0x4] sm:$0xf] }
  0x71   : > { %vm9653_vm9 = vcmp.ne.s16.totalorder %v1353_v57, 0  ;;  %v12418_v52 = vmov 0  ;;  %v2198_v3 = vsel %vm2166_vm2, 65537, %v12229_v2  ;;  %v2232_v60 = vrot.slane %v1274_v35, 7  ;;  %8360 = vmatpush3.bf16.msra.mxu0 %v8769_v4  ;;  %v8717_v15 = vld [vmem:[#allocation3 + $0xdc] ss:$36 sps:$4 sm:$0xff]  }
  0x72   : > { %v12419_v52 = vsel %vm9653_vm9, 4294967295, %v12418_v52  ;;  %vm12421_vm4 = vcmp.ne.s16.totalorder %v9113_v39, 0  ;;  %v1935_v42 = vrot.slane %v1933_v50, 7  ;;  %v1363_v63 = vsel %vm9133_vm11, %v9151_v1, %v9651_v11  ;;  %v2069_v50 = vld [vmem:[#allocation2 + $0x8] sm:$0xf]  ;;  %6378 = vmatprep.mubr.bf16.mxu0 %v8717_v15 }
  0x73   : > { %12420 = vst [vmem:[#allocation22_spill] sm:$0xff] %v12419_v52  ;;  %v9662_v22 = vsel %vm12421_vm4, %v2970_v21, 0  ;;  %v1621_v5 = vsel %vm9653_vm9, %v1105_v0, 0  ;;  %v2238_v36 = vshrl.u32 %v2198_v3, 16  ;;  %vm9673_vm8 = vcmp.ne.s16.totalorder %v1363_v63, 0 }
  0x74   : > { %v12422_v35 = vmov 0  ;;  %v1726_v21 = vshrl.u32 %v1621_v5, 16  ;;  %v1729_v30 = vshll.u32 %v1621_v5, 16  ;;  %v9679_v8 = vor.u32 %v2232_v60, %v1270_v34  ;;  %v8721_v56 = vld [vmem:[#allocation3 + $0xd8] ss:$36 sps:$4 sm:$0xff]  }
  0x75   : > { %v12423_v35 = vsel %vm9673_vm8, 4294967295, %v12422_v35  ;;  %v1938_v12 = vor.u32 %v1936_v9, %v1935_v42  ;;  %v9681_v29 = vrot.slane %v2232_v60, 4  ;;  %v2240_v0 = vrot.slane %v2238_v36, 7  ;;  %v9686_v57 = vld [vmem:[%s12210_s2] ss:$0 sm:$0xff]  ;;  %6379 = vmatmul.mubr.bf16.gmra.mxu0 %v8721_v56 }
  0x76   : > { %12424 = vst [vmem:[#allocation23_spill] sm:$0xff] %v12423_v35  ;;  %v2241_v16 = vshll.u32 %v2198_v3, 16  ;;  %v1728_v17 = vrot.slane %v1726_v21, 7  ;;  %v9689_v27 = vadd.f32 %v9686_v57, %v355_v23  ;;  %v9692_v34 = vadd.f32 %v9686_v57, %v356_v54  ;;  %v1106_v60 = vld [vmem:[#allocation2 + $0x28] sm:$0xf] }
  0x77   : > { %v1939_v3 = vsel %vm9192_vm14, %v1931_v46, %v1938_v12  ;;  %v2013_v42 = vld [vmem:[#allocation2 + $0x28] sm:$0xf]  ;;  %v2245_v5 = vrot.slane %v2240_v0, 4  ;;  %vm12228_vm4 = vcmp.ne.s16.totalorder %v9679_v8, 0  ;;  %v1622_v23 = vsel %vm9673_vm8, %v1106_v60, 0 }
  0x78   : > { %v2243_v63 = vor.u32 %v2241_v16, %v2240_v0  ;;  %2003 = vst [vmem:[#allocation3 + $0x45c] sm:$0xf] %v1939_v3  ;;  %v1731_v36 = vor.u32 %v1729_v30, %v1728_v17  ;;  %v1733_v4 = vrot.slane %v1728_v17, 4  ;;  %2045 = vst [vmem:[#allocation3 + $0x148] sm:$0xf] %v2013_v42  ;;  %v2549_v21 = vsel %vm12228_vm4, %v2068_v55, 0 }
  0x79   : > { %v2070_v54 = vld [vmem:[#allocation2 + $0xc] sm:$0xf]  ;;  %v1735_v46 = vshrl.u32 %v1622_v23, 16  ;;  %v1738_v12 = vshll.u32 %v1622_v23, 16  ;;  %v9708_v16 = vsel %vm9192_vm14, %v2245_v5, %v9679_v8  ;;  %v12426_v56 = vmov 0 }
  0x7a   : > { %v2244_v0 = vsel %vm9192_vm14, %v9681_v29, %v2243_v63  ;;  %12425 = vst [vmem:[#allocation24_spill] sm:$0xff] %v9708_v16  ;;  %v2971_v30 = vld [vmem:[#allocation2 + $0xc] sm:$0xf]  ;;  %v1732_v55 = vsel %vm9192_vm14, %v1724_v58, %v1731_v36  ;;  %vm12233_vm4 = vcmp.ne.s16.totalorder %v9708_v16, 0  ;;  %v2583_v17 = vshrl.u32 %v2549_v21, 16  ;;  %v9726_v58 = vld [vmem:[%s9070_s25 + $0x30] sm:$0xff]  }
  0x7b   : > { %v2014_v15 = vld [vmem:[#allocation2 + $0x2c] sm:$0xf]  ;;  %vm9714_vm2 = vcmp.ne.s16.totalorder %v2244_v0, 0  ;;  %v2972_v3 = vld [vmem:[#allocation2 + $0x10] sm:$0xf]  ;;  %v9719_v60 = vrot.slane %v1735_v46, 7 }
  0x7c   : > { %v12427_v56 = vsel %vm9714_vm2, 4294967295, %v12426_v56  ;;  %2046 = vst [vmem:[#allocation3 + $0x16c] sm:$0xf] %v2014_v15  ;;  %1980 = vst [vmem:[#allocation3 + $0x120] sm:$0xf] %v1732_v55  ;;  %v2550_v42 = vsel %vm9714_vm2, %v2069_v50, 0 }
  0x7d   : > { %12428 = vst [vmem:[#allocation25_spill] sm:$0xff] %v12427_v56  ;;  %v2551_v45 = vsel %vm12233_vm4, %v2070_v54, 0  ;;  %v2586_v63 = vshll.u32 %v2549_v21, 16  ;;  %v2585_v5 = vrot.slane %v2583_v17, 4  ;;  %v2592_v23 = vshll.u32 %v2550_v42, 16  ;;  %v8780_v50 = vld [vmem:[%s12211_s3 + $0x148] sm:$0xff]  }
  0x7e   : > { %v2596_v36 = vshrl.u32 %v2550_v42, 16  ;;  %v2602_v0 = vshll.u32 %v2551_v45, 16  ;;  %v1740_v47 = vor.u32 %v1738_v12, %v9719_v60  ;;  %v2606_v15 = vshrl.u32 %v2551_v45, 16  ;;  %v8724_v42 = vld [vmem:[#allocation3 + $0x43c] ss:$36 sps:$4 sm:$0xff]   ;;  %8361 = vmatprep.subr.bf16.mxu0 %v8780_v50 }
  0x7f   : > { %v2588_v14 = vrot.slane %v2586_v63, 5  ;;  %v3004_v46 = vsel %vm9168_vm12, %v2971_v30, 0  ;;  %v2594_v55 = vrot.slane %v2592_v23, 5  ;;  %v3005_v17 = vsel %vm9177_vm13, %v2972_v3, 0  ;;  %v8730_v63 = vld [vmem:[#allocation3 + $0x438] ss:$36 sps:$4 sm:$0xff]   ;;  %6474 = vmatprep.mubr.bf16.mxu1 %v8724_v42 }
  0x80   : > { %v2598_v54 = vrot.slane %v2596_v36, 4  ;;  %v9734_v21 = vrot.slane %v2602_v0, 5  ;;  %v1741_v12 = vsel %vm9192_vm14, %v1733_v4, %v1740_v47  ;;  %v3037_v2 = vshrl.u32 %v9662_v22, 16  ;;  %6475 = vmatmul.mubr.bf16.gmra.mxu1 %v8730_v63 }
  0x81   : > { %v2589_v45 = vor.u32 %v2588_v14, %v2585_v5  ;;  %v7887_v30 = vunpack.c.l.bf16 %v9726_v58  ;;  %1981 = vst [vmem:[#allocation3 + $0x144] sm:$0xf] %v1741_v12  ;;  %v3042_v23 = vshrl.u32 %v3004_v46, 16  ;;  %v3045_v36 = vshll.u32 %v3004_v46, 16  ;;  %v2974_v12 = vld [vmem:[#allocation2 + $0x18] sm:$0xf] }
  0x82   : > { %v2599_v9 = vor.u32 %v2598_v54, %v2594_v55  ;;  %v3051_v0 = vshrl.u32 %v3005_v17, 16  ;;  %v7545_v18 = vrot.slane %v3037_v2, 11  ;;  %v3054_v3 = vshll.u32 %v3005_v17, 16  ;;  %v2973_v17 = vld [vmem:[#allocation2 + $0x14] sm:$0xf] }
  0x83   : > { %v2590_v41 = vrot.slane %v2589_v45, 4  ;;  %v426_v13 = vmax.f32 %v9689_v27, 0.0  ;;  %v3044_v4 = vrot.slane %v3042_v23, 7  ;;  %v427_v22 = vmax.f32 %v9692_v34, 0.0 }
  0x84   : > { %v2600_v47 = vrot.slane %v2599_v9, 4  ;;  %v9743_v14 = vrot.slane %v3051_v0, 7  ;;  %v478_v50 = vadd.s32 96, %v9035_v7  ;;  %v12429_v46 = vshrl.u32 %v9628_v31, 16 }
  0x85   : > { %v2595_v5 = vsel %vm9133_vm11, %v2590_v41, %v2594_v55  ;;  %v3047_v9 = vor.u32 %v3045_v36, %v3044_v4  ;;  %v3049_v42 = vrot.slane %v3044_v4, 4  ;;  %v8784_v41 = vld [vmem:[%s12211_s3 + $0x108] sm:$0xff]   ;;  %v7948_v55 = vpack.c.bf16 %v427_v22, %v426_v13 }
  0x86   : > { %v1366_v54 = vrot.slane %v12429_v46, 4  ;;  %v2605_v27 = vsel %vm9133_vm11, %v2600_v47, %v9734_v21  ;;  %2938 = vst [vmem:[#allocation3 + $0x8] sm:$0xf] %v2595_v5  ;;  %v3056_v34 = vor.u32 %v3054_v3, %v9743_v14  ;;  %v586_v31 = vand.u32 15, %v478_v50  ;;  %8362 = vmatpush3.bf16.msra.mxu0 %v8784_v41  ;;  %v8728_v47 = vld [vmem:[#allocation3 + $0x124] ss:$36 sps:$4 sm:$0xff]  }
  0x87   : > { %2939 = vst [vmem:[#allocation3 + $0x2c] sm:$0xf] %v2605_v27  ;;  %v469_v45 = vadd.s32 24, %v9035_v7  ;;  %v3048_v23 = vsel %vm9192_vm14, %v7545_v18, %v3047_v9  ;;  %v2608_v0 = vrot.slane %v2606_v15, 4  ;;  %v3006_v3 = vsel %vm9284_vm7, %v2973_v17, 0  ;;  %8099 = vst [vmem:[#allocation2 + $0x30] sm:$0xff] %v7948_v55   ;;  %6386 = vmatprep.mubr.bf16.mxu0 %v8728_v47 }
  0x88   : > { %v1367_v63 = vor.u32 %v1366_v54, %v9651_v11  ;;  %v3057_v36 = vsel %vm9192_vm14, %v3049_v42, %v3056_v34  ;;  %v8733_v4 = vld [vmem:[#allocation3 + $0x120] ss:$36 sps:$4 sm:$0xff]   ;;  %3360 = vst [vmem:[#allocation3 + $0xc] sm:$0xf] %v3048_v23  ;;  %vm894_vm4 = vcmp.ge.s32.totalorder %v586_v31, 1  ;;  %v12430_v11 = vunpack.c.h.bf16 %v9602_v28 }
  0x89   : > { %3361 = vst [vmem:[#allocation3 + $0x30] sm:$0xf] %v3057_v36  ;;  %v1107_v13 = vld [vmem:[#allocation2 + $0x2c] sm:$0xf]  ;;  %v358_v18 = vmul.f32 %v9634_v20, %v7887_v30  ;;  %vm1205_vm13 = vmpackc.low %vm894_vm4, %vm894_vm4  ;;  %v523_v50 = vand.u32 15, %v469_v45  ;;  %v2609_v46 = vor.u32 %v2608_v0, %v9734_v21  ;;  %v3007_v54 = vsel %vm9329_vm1, %v2974_v12, 0  ;;  %6387 = vmatmul.mubr.bf16.gmra.mxu0 %v8733_v4 }
  0x8a   : > { %v357_v22 = vmul.f32 %v9634_v20, %v12430_v11  ;;  %v1368_v15 = vrot.slane %v1367_v63, 4  ;;  %v12431_v17 = vmov 0   ;;  %v3058_v28 = vrot.slane %v9743_v14, 4  ;;  %v2027_v11 = vld [vmem:[#allocation2 + $0x60] sm:$0xf] }
  0x8b   : > { %v9776_v27 = vsel %vm1205_vm13, 65537, %v12431_v17  ;;  %v3060_v9 = vshrl.u32 %v3006_v3, 16  ;;  %v3063_v42 = vshll.u32 %v3006_v3, 16  ;;  %vm917_vm4 = vcmp.le.s32.totalorder %v523_v50, 14  ;;  %v8742_v3 = vld [vmem:[%s12211_s3 + $0x1b8] sm:$0xff]  }
  0x8c   : > { %v1373_v30 = vsel %vm9133_vm11, %v1368_v15, %v9122_v44  ;;  %v1380_v34 = vshll.u32 %v9776_v27, 16  ;;  %v12432_v12 = vmov 0  ;;  %vm2168_vm13 = vmpackc.low %vm917_vm4, %vm917_vm4  ;;  %v9788_v41 = vrot.slane %v2609_v46, 4  ;;  %2059 = vst [vmem:[#allocation3 + $0x340] sm:$0xf] %v2027_v11 }
  0x8d   : > { %vm9784_vm7 = vcmp.ne.s16.totalorder %v1373_v30, 0  ;;  %v3062_v14 = vrot.slane %v3060_v9, 7  ;;  %v3069_v31 = vshrl.u32 %v3007_v54, 16  ;;  %v2200_v45 = vsel %vm2168_vm13, 65537, %v12431_v17 }
  0x8e   : > { %v12433_v12 = vsel %vm9784_vm7, 4294967295, %v12432_v12  ;;  %v9790_v55 = vrot.slane %v1380_v34, 5  ;;  %v1623_v63 = vsel %vm9784_vm7, %v1107_v13, 0  ;;  %v3072_v23 = vshll.u32 %v3007_v54, 16  ;;  %v8736_v15 = vld [vmem:[#allocation3 + $0x8] ss:$36 sps:$4 sm:$0xff]  }
  0x8f   : > { %12434 = vst [vmem:[#allocation26_spill] sm:$0xff] %v12433_v12  ;;  %v1744_v36 = vshrl.u32 %v1623_v63, 16  ;;  %v1747_v0 = vshll.u32 %v1623_v63, 16  ;;  %v2256_v47 = vshrl.u32 %v2200_v45, 16  ;;  %v2259_v4 = vshll.u32 %v2200_v45, 16 }
  0x90   : > { %v1383_v50 = vsel %vm9133_vm11, %v9151_v1, %v9790_v55  ;;  %v3065_v46 = vor.u32 %v3063_v42, %v3062_v14  ;;  %v3067_v13 = vrot.slane %v3062_v14, 4  ;;  %v9802_v9 = vrot.slane %v3069_v31, 7  ;;  %v8738_v54 = vld [vmem:[#allocation3 + $0xc] ss:$36 sps:$4 sm:$0xff]   ;;  %v1108_v30 = vld [vmem:[#allocation2 + $0x30] sm:$0xf] }
  0x91   : > { %vm9804_vm4 = vcmp.ne.s16.totalorder %v1383_v50, 0  ;;  %v12435_v34 = vmov 0  ;;  %v1746_v63 = vrot.slane %v1744_v36, 7  ;;  %v9809_v45 = vadd.f32 %v9686_v57, %v357_v22  ;;  %v2015_v14 = vld [vmem:[#allocation2 + $0x30] sm:$0xf]  ;;  %6515 = vmatprep.mubr.bf16.mxu1 %v8738_v54 }
  0x92   : > { %v12436_v34 = vsel %vm9804_vm4, 4294967295, %v12435_v34  ;;  %v9812_v5 = vadd.f32 %v9686_v57, %v358_v18  ;;  %v1624_v42 = vsel %vm9804_vm4, %v1108_v30, 0  ;;  %v2258_v31 = vrot.slane %v2256_v47, 7  ;;  %v8755_v36 = vld [vmem:[%s12211_s3 + $0x1f0] sm:$0xff]   ;;  %2047 = vst [vmem:[#allocation3 + $0x190] sm:$0xf] %v2015_v14  ;;  %6516 = vmatmul.mubr.bf16.vlgmr.msra.gmra.mxu1 %v8736_v15 }
  0x93   : > { %12437 = vst [vmem:[#allocation27_spill] sm:$0xff] %v12436_v34  ;;  %v3066_v11 = vsel %vm9192_vm14, %v3058_v28, %v3065_v46  ;;  %v3074_v50 = vor.u32 %v3072_v23, %v9802_v9  ;;  %v1749_v22 = vor.u32 %v1747_v0, %v1746_v63  ;;  %v1751_v21 = vrot.slane %v1746_v63, 4  ;;  %v2016_v30 = vld [vmem:[#allocation2 + $0x34] sm:$0xf]  ;;  %v4399_v23 = vld [vmem:[#allocation2 + $0x20] sm:$0xf]  ;;  %8462 = vmatpush3.bf16.msra.mxu1 %v8742_v3 }
  0x94   : > { %v1753_v2 = vshrl.u32 %v1624_v42, 16  ;;  %v1756_v18 = vshll.u32 %v1624_v42, 16  ;;  %3362 = vst [vmem:[#allocation3 + $0x54] sm:$0xf] %v3066_v11  ;;  %v2072_v47 = vld [vmem:[#allocation2 + $0x14] sm:$0xf]  ;;  %v2261_v19 = vor.u32 %v2259_v4, %v2258_v31  ;;  %8463 = vmatprep.subr.bf16.mxu1 %v8755_v36 }
  0x95   : > { %v2263_v39 = vrot.slane %v2258_v31, 4  ;;  %v3075_v28 = vsel %vm9192_vm14, %v3067_v13, %v3074_v50  ;;  %v428_v46 = vmax.f32 %v9809_v45, 0.0  ;;  %2048 = vst [vmem:[#allocation3 + $0x1b4] sm:$0xf] %v2016_v30  ;;  %v12438_v0 = vrot.slane %v9719_v60, 4  ;;  %v8760_v13 = vld [vmem:[%s12211_s3 + $0x1b0] sm:$0xff]  }
  0x96   : > { %v9829_v63 = vrot.slane %v1753_v2, 7  ;;  %3363 = vst [vmem:[#allocation3 + $0x78] sm:$0xf] %v3075_v28  ;;  %v4400_v15 = vld [vmem:[#allocation2 + $0x24] sm:$0xf]  ;;  %v429_v4 = vmax.f32 %v9812_v5, 0.0  ;;  %v2262_v60 = vsel %vm9192_vm14, %v9681_v29, %v2261_v19 }
  0x97   : > { %v1750_v54 = vsel %vm9192_vm14, %v12438_v0, %v1749_v22  ;;  %v480_v42 = vadd.s32 112, %v9035_v7  ;;  %v9842_v2 = vsel %vm9192_vm14, %v2263_v39, %v9679_v8  ;;  %v12439_v3 = vshrl.u32 %v9776_v27, 16  ;;  %v8772_v14 = vld [vmem:[%s12211_s3 + $0x1e8] sm:$0xff]   ;;  %v8794_v11 = vld [vmem:[%s12211_s3 + $0x140] sm:$0xff]   ;;  %8464 = vmatpush3.bf16.msra.mxu1 %v8760_v13 }
  0x98   : > { %1982 = vst [vmem:[#allocation3 + $0x168] sm:$0xf] %v1750_v54  ;;  %v9847_v5 = vadd.s32 40, %v9035_v7  ;;  %v1758_v31 = vor.u32 %v1756_v18, %v9829_v63  ;;  %vm9853_vm13 = vcmp.ne.s16.totalorder %v2262_v60, 0  ;;  %vm12244_vm1 = vcmp.ne.s16.totalorder %v9842_v2, 0  ;;  %v8776_v27 = vld [vmem:[%s12211_s3 + $0x1a8] sm:$0xff]   ;;  %8363 = vmatprep.subr.bf16.mxu0 %v8794_v11  ;;  %8465 = vmatprep.subr.bf16.mxu1 %v8772_v14 }
  0x99   : > { %v1386_v45 = vrot.slane %v12439_v3, 4  ;;  %v600_v39 = vand.u32 15, %v480_v42  ;;  %v2552_v50 = vsel %vm9853_vm13, %v2071_v10, 0  ;;  %v2553_v36 = vsel %vm12244_vm1, %v2072_v47, 0  ;;  %v8788_v30 = vld [vmem:[%s12211_s3 + $0x1e0] sm:$0xff]  }
  0x9a   : > { %v4432_v22 = vsel %vm9853_vm13, %v4399_v23, 0  ;;  %v9872_v18 = vsel %vm12244_vm1, %v4400_v15, 0  ;;  %v1759_v28 = vsel %vm9192_vm14, %v1751_v21, %v1758_v31  ;;  %v2612_v0 = vshll.u32 %v2552_v50, 16  ;;  %v8795_v47 = vld [vmem:[%s12211_s3 + $0x100] sm:$0xff]   ;;  %v2975_v21 = vld [vmem:[#allocation2 + $0x1c] sm:$0xf] }
  0x9b   : > { %12442 = vst [vmem:[#allocation28_spill] sm:$0xff] %v9872_v18  ;;  %v2616_v54 = vshrl.u32 %v2552_v50, 16  ;;  %v2622_v10 = vshll.u32 %v2553_v36, 16  ;;  %1983 = vst [vmem:[#allocation3 + $0x18c] sm:$0xf] %v1759_v28  ;;  %v2626_v23 = vshrl.u32 %v2553_v36, 16  ;;  %8364 = vmatpush3.bf16.msra.mxu0 %v8795_v47  ;;  %v7953_v62 = vpack.c.bf16 %v429_v4, %v428_v46  ;;  %8466 = vmatpush3.bf16.msra.mxu1 %v8776_v27 }
  0x9c   : > { %v4492_v15 = vshll.u32 %v4432_v22, 16  ;;  %v4496_v42 = vshrl.u32 %v4432_v22, 16  ;;  %v4502_v60 = vshll.u32 %v9872_v18, 16  ;;  %v2614_v3 = vrot.slane %v2612_v0, 5  ;;  %v2976_v31 = vld [vmem:[#allocation2 + $0x20] sm:$0xf]  ;;  %8467 = vmatprep.subr.bf16.mxu1 %v8788_v30 }
  0x9d   : > { %v2618_v43 = vrot.slane %v2616_v54, 4  ;;  %v2624_v6 = vrot.slane %v2622_v10, 5  ;;  %vm896_vm1 = vcmp.ge.s32.totalorder %v600_v39, 1  ;;  %v3392_v36 = vld [vmem:[#allocation2 + $0xc] sm:$0xf]  ;;  %v1387_v39 = vor.u32 %v1386_v45, %v9790_v55  ;;  %v8792_v0 = vld [vmem:[%s12211_s3 + $0x1a0] sm:$0xff]  }
  0x9e   : > { %v9883_v13 = vrot.slane %v4492_v15, 5  ;;  %v4498_v11 = vrot.slane %v4496_v42, 4  ;;  %v9885_v50 = vrot.slane %v4502_v60, 5  ;;  %vm1207_vm12 = vmpackc.low %vm896_vm1, %vm896_vm1  ;;  %v2615_v22 = vsel %vm9133_vm11, %v9788_v41, %v2614_v3  ;;  %v3393_v54 = vld [vmem:[#allocation2 + $0x10] sm:$0xf]  ;;  %8100 = vst [vmem:[#allocation2 + $0x38] sm:$0xff] %v7953_v62  }
  0x9f   : > { %v2619_v14 = vor.u32 %v2618_v43, %v2614_v3  ;;  %v9891_v28 = vsel %vm1207_vm12, 65537, %v12431_v17  ;;  %3424 = vst [vmem:[#allocation3 + $0x10] sm:$0xf] %v3392_v36  ;;  %2940 = vst [vmem:[#allocation3 + $0x50] sm:$0xf] %v2615_v22  ;;  %v1388_v27 = vrot.slane %v1387_v39, 4  ;;  %8468 = vmatpush3.bf16.msra.mxu1 %v8792_v0 }
  0xa0   : > { %12443 = vst [vmem:[#allocation29_spill] sm:$0xff] %v9883_v13  ;;  %12444 = vst [vmem:[#allocation30_spill] sm:$0xff] %v9885_v50  ;;  %v4499_v46 = vor.u32 %v4498_v11, %v9883_v13  ;;  %v1400_v4 = vshll.u32 %v9891_v28, 16  ;;  %v1109_v45 = vld [vmem:[#allocation2 + $0x34] sm:$0xf]  ;;  %v537_v10 = vand.u32 15, %v9847_v5 }
  0xa1   : > { %3425 = vst [vmem:[#allocation3 + $0x34] sm:$0xf] %v3393_v54  ;;  %v2620_v55 = vrot.slane %v2619_v14, 4  ;;  %v2628_v47 = vrot.slane %v2626_v23, 4  ;;  %v3008_v62 = vsel %vm9390_vm15, %v2975_v21, 0  ;;  %v9910_v60 = vsel %vm9428_vm0, %v2976_v31, 0 }
  0xa2   : > { %v9902_v15 = vrot.slane %v4499_v46, 4  ;;  %v9904_v42 = vrot.slane %v1400_v4, 5  ;;  %v8740_v30 = vld [vmem:[#allocation3 + $0x16c] ss:$36 sps:$4 sm:$0xff]   ;;  %v1393_v5 = vsel %vm9133_vm11, %v1388_v27, %v9122_v44  ;;  %vm919_vm12 = vcmp.le.s32.totalorder %v537_v10, 14  ;;  %v9927_v14 = vld [vmem:[%s9070_s25 + $0x38] sm:$0xff]  }
  0xa3   : > { %v8743_v3 = vld [vmem:[#allocation3 + $0x168] ss:$36 sps:$4 sm:$0xff]   ;;  %v2625_v11 = vsel %vm9133_vm11, %v2620_v55, %v2624_v6  ;;  %v2629_v23 = vor.u32 %v2628_v47, %v2624_v6  ;;  %vm9921_vm1 = vcmp.ne.s16.totalorder %v1393_v5, 0  ;;  %v12446_v31 = vmov 0  ;;  %vm2170_vm0 = vmpackc.low %vm919_vm12, %vm919_vm12  ;;  %6394 = vmatprep.mubr.bf16.mxu0 %v8740_v30 }
  0xa4   : > { %12445 = vst [vmem:[#allocation31_spill] sm:$0xff] %v9902_v15  ;;  %2941 = vst [vmem:[#allocation3 + $0x74] sm:$0xf] %v2625_v11  ;;  %v1403_v21 = vsel %vm9133_vm11, %v9151_v1, %v9904_v42  ;;  %v12447_v31 = vsel %vm9921_vm1, 4294967295, %v12446_v31  ;;  %v3076_v36 = vrot.slane %v9802_v9, 4  ;;  %v3078_v22 = vshrl.u32 %v3008_v62, 16  ;;  %6395 = vmatmul.mubr.bf16.gmra.mxu0 %v8743_v3 }
  0xa5   : > { %12448 = vst [vmem:[#allocation32_spill] sm:$0xff] %v12447_v31  ;;  %vm9929_vm15 = vcmp.ne.s16.totalorder %v1403_v21, 0  ;;  %v12449_v6 = vmov 0  ;;  %v1625_v39 = vsel %vm9921_vm1, %v1109_v45, 0  ;;  %v2202_v0 = vsel %vm2170_vm0, 65537, %v12431_v17 }
  0xa6   : > { %v12450_v6 = vsel %vm9929_vm15, 4294967295, %v12449_v6  ;;  %v9936_v54 = vrot.slane %v2629_v23, 4  ;;  %v1762_v46 = vshrl.u32 %v1625_v39, 16  ;;  %v1765_v4 = vshll.u32 %v1625_v39, 16  ;;  %v1110_v27 = vld [vmem:[#allocation2 + $0x38] sm:$0xf] }
  0xa7   : > { %12451 = vst [vmem:[#allocation33_spill] sm:$0xff] %v12450_v6  ;;  %v2274_v55 = vshrl.u32 %v2202_v0, 16  ;;  %v2277_v9 = vshll.u32 %v2202_v0, 16  ;;  %v2017_v10 = vld [vmem:[#allocation2 + $0x38] sm:$0xf]  ;;  %v9938_v47 = vrot.slane %v3078_v22, 7  ;;  %v7891_v30 = vunpack.c.l.bf16 %v9927_v14 }
  0xa8   : > { %v12452_v11 = vunpack.c.h.bf16 %v9726_v58  ;;  %v1626_v23 = vsel %vm9929_vm15, %v1110_v27, 0  ;;  %v1764_v3 = vrot.slane %v1762_v46, 7  ;;  %2049 = vst [vmem:[#allocation3 + $0x1d8] sm:$0xf] %v2017_v10  ;;  %v3081_v39 = vshll.u32 %v3008_v62, 16 }
  0xa9   : > { %v2276_v21 = vrot.slane %v2274_v55, 7  ;;  %v1771_v0 = vshrl.u32 %v1626_v23, 16  ;;  %v1774_v43 = vshll.u32 %v1626_v23, 16  ;;  %v3085_v22 = vrot.slane %v9938_v47, 4  ;;  %v2018_v13 = vld [vmem:[#allocation2 + $0x3c] sm:$0xf] }
  0xaa   : > { %v359_v5 = vmul.f32 %v9634_v20, %v12452_v11  ;;  %v3087_v41 = vshrl.u32 %v9910_v60, 16  ;;  %v1767_v18 = vor.u32 %v1765_v4, %v1764_v3  ;;  %v1769_v58 = vrot.slane %v1764_v3, 4  ;;  %v2074_v11 = vld [vmem:[#allocation2 + $0x1c] sm:$0xf]  ;;  %2050 = vst [vmem:[#allocation3 + $0x1fc] sm:$0xf] %v2018_v13 }
  0xab   : > { %v2279_v48 = vor.u32 %v2277_v9, %v2276_v21  ;;  %v2281_v45 = vrot.slane %v2276_v21, 4  ;;  %v8746_v15 = vld [vmem:[#allocation3 + $0x54] ss:$36 sps:$4 sm:$0xff]   ;;  %v9949_v27 = vrot.slane %v1771_v0, 7  ;;  %v3083_v62 = vor.u32 %v3081_v39, %v9938_v47  ;;  %v2977_v0 = vld [vmem:[#allocation2 + $0x24] sm:$0xf] }
  0xac   : > { %v8750_v46 = vld [vmem:[#allocation3 + $0x50] ss:$36 sps:$4 sm:$0xff]   ;;  %v360_v55 = vmul.f32 %v9634_v20, %v7891_v30  ;;  %v398_v10 = vadd.f32 %v9686_v57, %v359_v5  ;;  %v12453_v23 = vrot.slane %v9829_v63, 4  ;;  %v9966_v3 = vrot.slane %v3087_v41, 7  ;;  %6523 = vmatprep.mubr.bf16.mxu1 %v8746_v15  ;;  %v3395_v30 = vld [vmem:[#allocation2 + $0x18] sm:$0xf] }
  0xad   : > { %v2280_v9 = vsel %vm9192_vm14, %v9681_v29, %v2279_v48  ;;  %v9964_v13 = vsel %vm9192_vm14, %v2281_v45, %v9679_v8  ;;  %v1776_v47 = vor.u32 %v1774_v43, %v9949_v27  ;;  %v12455_v63 = vmov 0  ;;  %6524 = vmatmul.mubr.bf16.gmra.mxu1 %v8750_v46  ;;  %3427 = vst [vmem:[#allocation3 + $0x7c] sm:$0xf] %v3395_v30  ;;  %v2978_v46 = vld [vmem:[#allocation2 + $0x28] sm:$0xf] }
  0xae   : > { %v1768_v4 = vsel %vm9192_vm14, %v12453_v23, %v1767_v18  ;;  %12454 = vst [vmem:[#allocation34_spill] sm:$0xff] %v9964_v13  ;;  %vm9969_vm0 = vcmp.ne.s16.totalorder %v2280_v9, 0  ;;  %vm12254_vm12 = vcmp.ne.s16.totalorder %v9964_v13, 0  ;;  %v3084_v48 = vsel %vm9192_vm14, %v3076_v36, %v3083_v62  ;;  %v3394_v18 = vld [vmem:[#allocation2 + $0x14] sm:$0xf] }
  0xaf   : > { %1984 = vst [vmem:[#allocation3 + $0x1b0] sm:$0xf] %v1768_v4  ;;  %v12456_v63 = vsel %vm9969_vm0, 4294967295, %v12455_v63  ;;  %v2554_v41 = vsel %vm9969_vm0, %v2073_v33, 0  ;;  %v2555_v15 = vsel %vm12254_vm12, %v2074_v11, 0  ;;  %v3090_v43 = vshll.u32 %v9910_v60, 16 }
  0xb0   : > { %12457 = vst [vmem:[#allocation35_spill] sm:$0xff] %v12456_v63  ;;  %3364 = vst [vmem:[#allocation3 + $0x9c] sm:$0xf] %v3084_v48  ;;  %v399_v5 = vadd.f32 %v9686_v57, %v360_v55  ;;  %v1777_v45 = vsel %vm9192_vm14, %v1769_v58, %v1776_v47  ;;  %v2632_v36 = vshll.u32 %v2554_v41, 16  ;;  %v2636_v21 = vshrl.u32 %v2554_v41, 16 }
  0xb1   : > { %3426 = vst [vmem:[#allocation3 + $0x58] sm:$0xf] %v3394_v18  ;;  %v2642_v39 = vshll.u32 %v2555_v15, 16  ;;  %1985 = vst [vmem:[#allocation3 + $0x1d4] sm:$0xf] %v1777_v45  ;;  %v2646_v33 = vshrl.u32 %v2555_v15, 16  ;;  %v3092_v62 = vor.u32 %v3090_v43, %v9966_v3 }
  0xb2   : > { %v430_v11 = vmax.f32 %v398_v10, 0.0  ;;  %v431_v23 = vmax.f32 %v399_v5, 0.0  ;;  %v2634_v60 = vrot.slane %v2632_v36, 5  ;;  %v2638_v4 = vrot.slane %v2636_v21, 4  ;;  %v10001_v36 = vld [vmem:[%s9070_s25 + $0x40] sm:$0xff]  }
  0xb3   : > { %v2644_v9 = vrot.slane %v2642_v39, 5  ;;  %v482_v55 = vadd.s32 128, %v9035_v7  ;;  %v3093_v58 = vsel %vm9192_vm14, %v3085_v22, %v3092_v62  ;;  %v12458_v48 = vshrl.u32 %v9891_v28, 16 }
  0xb4   : > { %v7958_v47 = vpack.c.bf16 %v431_v23, %v430_v11  ;;  %v2635_v10 = vsel %vm9133_vm11, %v9936_v54, %v2634_v60  ;;  %v2639_v41 = vor.u32 %v2638_v4, %v2634_v60  ;;  %3365 = vst [vmem:[#allocation3 + $0xc0] sm:$0xf] %v3093_v58  ;;  %v473_v43 = vadd.s32 56, %v9035_v7  ;;  %v1111_v54 = vld [vmem:[#allocation2 + $0x3c] sm:$0xf] }
  0xb5   : > { %v1406_v18 = vrot.slane %v12458_v48, 4  ;;  %v614_v15 = vand.u32 15, %v482_v55  ;;  %2942 = vst [vmem:[#allocation3 + $0x98] sm:$0xf] %v2635_v10  ;;  %v2648_v22 = vrot.slane %v2646_v33, 4  ;;  %v3010_v28 = vsel %vm9547_vm10, %v2977_v0, 0 }
  0xb6   : > { %8101 = vst [vmem:[#allocation2 + $0x40] sm:$0xff] %v7958_v47   ;;  %v3011_v45 = vsel %vm9575_vm6, %v2978_v46, 0  ;;  %v2640_v21 = vrot.slane %v2639_v41, 4  ;;  %v551_v39 = vand.u32 15, %v473_v43  ;;  %v3094_v62 = vrot.slane %v9966_v3, 4  ;;  %v8804_v0 = vld [vmem:[%s12211_s3 + $0x1d8] sm:$0xff]  }
  0xb7   : > { %v1407_v5 = vor.u32 %v1406_v18, %v9904_v42  ;;  %vm898_vm12 = vcmp.ge.s32.totalorder %v614_v15, 1  ;;  %v2649_v23 = vor.u32 %v2648_v22, %v2644_v9  ;;  %v3096_v60 = vshrl.u32 %v3010_v28, 16  ;;  %v8805_v46 = vld [vmem:[%s12211_s3 + $0x238] sm:$0xff]   ;;  %v8748_v33 = vld [vmem:[#allocation3 + $0x1b4] ss:$36 sps:$4 sm:$0xff]   ;;  %8469 = vmatprep.subr.bf16.mxu1 %v8804_v0 }
  0xb8   : > { %vm1209_vm5 = vmpackc.low %vm898_vm12, %vm898_vm12  ;;  %v3099_v42 = vshll.u32 %v3010_v28, 16  ;;  %v8751_v4 = vld [vmem:[#allocation3 + $0x1b0] ss:$36 sps:$4 sm:$0xff]   ;;  %v2645_v55 = vsel %vm9133_vm11, %v2640_v21, %v2644_v9  ;;  %v7895_v58 = vunpack.c.l.bf16 %v10001_v36  ;;  %v12459_v47 = vunpack.c.h.bf16 %v9927_v14  ;;  %8597 = vmatprep.subr.bf16.mxu0 %v8805_v46  ;;  %v8809_v9 = vld [vmem:[%s12211_s3 + $0x198] sm:$0xff]   ;;  %6402 = vmatprep.mubr.bf16.mxu0 %v8748_v33 }
  0xb9   : > { %v1408_v11 = vrot.slane %v1407_v5, 4  ;;  %v10013_v3 = vsel %vm1209_vm5, 65537, %v12431_v17  ;;  %2943 = vst [vmem:[#allocation3 + $0xbc] sm:$0xf] %v2645_v55  ;;  %vm921_vm12 = vcmp.le.s32.totalorder %v551_v39, 14  ;;  %v12460_v14 = vmov 0  ;;  %6403 = vmatmul.mubr.bf16.gmra.mxu0 %v8751_v4  ;;  %8470 = vmatpush3.bf16.msra.mxu1 %v8809_v9 }
  0xba   : > { %v361_v48 = vmul.f32 %v9634_v20, %v12459_v47  ;;  %v1420_v10 = vshll.u32 %v10013_v3, 16  ;;  %vm2172_vm6 = vmpackc.low %vm921_vm12, %vm921_vm12  ;;  %v10031_v15 = vrot.slane %v2649_v23, 4  ;;  %v3098_v43 = vrot.slane %v3096_v60, 7 }
  0xbb   : > { %v1413_v18 = vsel %vm9133_vm11, %v1408_v11, %v9122_v44  ;;  %v3105_v5 = vshrl.u32 %v3011_v45, 16  ;;  %v2204_v21 = vsel %vm2172_vm6, 65537, %v12431_v17  ;;  %v3108_v39 = vshll.u32 %v3011_v45, 16  ;;  %v3396_v11 = vld [vmem:[#allocation2 + $0x1c] sm:$0xf] }
  0xbc   : > { %vm10027_vm5 = vcmp.ne.s16.totalorder %v1413_v18, 0  ;;  %v10033_v22 = vrot.slane %v1420_v10, 5  ;;  %v2292_v55 = vshrl.u32 %v2204_v21, 16  ;;  %v3101_v47 = vor.u32 %v3099_v42, %v3098_v43  ;;  %3428 = vst [vmem:[#allocation3 + $0xa0] sm:$0xf] %v3396_v11 }
  0xbd   : > { %v12461_v14 = vsel %vm10027_vm5, 4294967295, %v12460_v14  ;;  %v1627_v28 = vsel %vm10027_vm5, %v1111_v54, 0  ;;  %v1112_v0 = vld [vmem:[#allocation2 + $0x40] sm:$0xf]  ;;  %v2295_v4 = vshll.u32 %v2204_v21, 16  ;;  %v3103_v18 = vrot.slane %v3098_v43, 4 }
  0xbe   : > { %12462 = vst [vmem:[#allocation36_spill] sm:$0xff] %v12461_v14  ;;  %v1780_v46 = vshrl.u32 %v1627_v28, 16  ;;  %v1783_v33 = vshll.u32 %v1627_v28, 16  ;;  %v1423_v23 = vsel %vm9133_vm11, %v9151_v1, %v10033_v22  ;;  %v2019_v60 = vld [vmem:[#allocation2 + $0x40] sm:$0xf]  ;;  %v10042_v54 = vrot.slane %v3105_v5, 7 }
  0xbf   : > { %vm10044_vm6 = vcmp.ne.s16.totalorder %v1423_v23, 0  ;;  %v12463_v45 = vmov 0  ;;  %2051 = vst [vmem:[#allocation3 + $0x220] sm:$0xf] %v2019_v60  ;;  %v2294_v9 = vrot.slane %v2292_v55, 7  ;;  %v3102_v42 = vsel %vm9192_vm14, %v3094_v62, %v3101_v47 }
  0xc0   : > { %v12464_v45 = vsel %vm10044_vm6, 4294967295, %v12463_v45  ;;  %v1782_v10 = vrot.slane %v1780_v46, 7  ;;  %v1628_v28 = vsel %vm10044_vm6, %v1112_v0, 0  ;;  %v3110_v11 = vor.u32 %v3108_v39, %v10042_v54  ;;  %3366 = vst [vmem:[#allocation3 + $0xe4] sm:$0xf] %v3102_v42 }
  0xc1   : > { %12465 = vst [vmem:[#allocation37_spill] sm:$0xff] %v12464_v45  ;;  %v362_v43 = vmul.f32 %v9634_v20, %v7895_v58  ;;  %v400_v5 = vadd.f32 %v9686_v57, %v361_v48  ;;  %v2020_v21 = vld [vmem:[#allocation2 + $0x44] sm:$0xf]  ;;  %v8752_v23 = vld [vmem:[#allocation3 + $0x9c] ss:$36 sps:$4 sm:$0xff]   ;;  %v1789_v46 = vshrl.u32 %v1628_v28, 16  ;;  %v2297_v62 = vor.u32 %v2295_v4, %v2294_v9 }
  0xc2   : > { %v1785_v41 = vor.u32 %v1783_v33, %v1782_v10  ;;  %v1787_v30 = vrot.slane %v1782_v10, 4  ;;  %v1792_v60 = vshll.u32 %v1628_v28, 16  ;;  %2052 = vst [vmem:[#allocation3 + $0x244] sm:$0xf] %v2020_v21  ;;  %v8758_v55 = vld [vmem:[#allocation3 + $0x98] ss:$36 sps:$4 sm:$0xff]   ;;  %v3111_v0 = vsel %vm9192_vm14, %v3103_v18, %v3110_v11  ;;  %6531 = vmatprep.mubr.bf16.mxu1 %v8752_v23 }
  0xc3   : > { %v2299_v47 = vrot.slane %v2294_v9, 4  ;;  %v401_v39 = vadd.f32 %v9686_v57, %v362_v43  ;;  %v12466_v20 = vrot.slane %v9949_v27, 4  ;;  %v10062_v48 = vrot.slane %v1789_v46, 7  ;;  %v2076_v33 = vld [vmem:[#allocation2 + $0x24] sm:$0xf]  ;;  %6532 = vmatmul.mubr.bf16.gmra.mxu1 %v8758_v55 }
  0xc4   : > { %3367 = vst [vmem:[#allocation3 + $0x108] sm:$0xf] %v3111_v0  ;;  %v432_v10 = vmax.f32 %v400_v5, 0.0  ;;  %v484_v42 = vadd.s32 144, %v9035_v7  ;;  %v2298_v4 = vsel %vm9192_vm14, %v9681_v29, %v2297_v62  ;;  %v3397_v9 = vld [vmem:[#allocation2 + $0x20] sm:$0xf] }
  0xc5   : > { %v1786_v58 = vsel %vm9192_vm14, %v12466_v20, %v1785_v41  ;;  %v10071_v57 = vsel %vm9192_vm14, %v2299_v47, %v9679_v8  ;;  %v433_v27 = vmax.f32 %v401_v39, 0.0  ;;  %v12468_v41 = vshrl.u32 %v10013_v3, 16  ;;  %3429 = vst [vmem:[#allocation3 + $0xc4] sm:$0xf] %v3397_v9  ;;  %v2979_v46 = vld [vmem:[#allocation2 + $0x2c] sm:$0xf] }
  0xc6   : > { %1986 = vst [vmem:[#allocation3 + $0x1f8] sm:$0xf] %v1786_v58  ;;  %12467 = vst [vmem:[#allocation38_spill] sm:$0xff] %v10071_v57  ;;  %v1794_v28 = vor.u32 %v1792_v60, %v10062_v48  ;;  %vm10076_vm12 = vcmp.ne.s16.totalorder %v2298_v4, 0  ;;  %v12469_v11 = vmov 0  ;;  %vm12262_vm10 = vcmp.ne.s16.totalorder %v10071_v57, 0 }
  0xc7   : > { %v1426_v18 = vrot.slane %v12468_v41, 4  ;;  %v12470_v11 = vsel %vm10076_vm12, 4294967295, %v12469_v11  ;;  %v628_v43 = vand.u32 15, %v484_v42  ;;  %v2556_v5 = vsel %vm10076_vm12, %v2075_v61, 0  ;;  %v2980_v0 = vld [vmem:[#allocation2 + $0x30] sm:$0xf] }
  0xc8   : > { %12471 = vst [vmem:[#allocation39_spill] sm:$0xff] %v12470_v11  ;;  %v2557_v21 = vsel %vm12262_vm10, %v2076_v33, 0  ;;  %v7963_v23 = vpack.c.bf16 %v433_v27, %v432_v10  ;;  %v1795_v60 = vsel %vm9192_vm14, %v1787_v30, %v1794_v28  ;;  %v2652_v55 = vshll.u32 %v2556_v5, 16  ;;  %v1113_v20 = vld [vmem:[#allocation2 + $0x44] sm:$0xf] }
  0xc9   : > { %v1427_v3 = vor.u32 %v1426_v18, %v10033_v22  ;;  %v2656_v62 = vshrl.u32 %v2556_v5, 16  ;;  %v2662_v47 = vshll.u32 %v2557_v21, 16  ;;  %1987 = vst [vmem:[#allocation3 + $0x21c] sm:$0xf] %v1795_v60  ;;  %v2666_v39 = vshrl.u32 %v2557_v21, 16 }
  0xca   : > { %vm900_vm3 = vcmp.ge.s32.totalorder %v628_v43, 1  ;;  %8102 = vst [vmem:[#allocation2 + $0x48] sm:$0xff] %v7963_v23   ;;  %v1796_v58 = vrot.slane %v10062_v48, 4  ;;  %v2654_v33 = vrot.slane %v2652_v55, 5  ;;  %v475_v22 = vadd.s32 72, %v9035_v7 }
  0xcb   : > { %v1428_v61 = vrot.slane %v1427_v3, 4  ;;  %v2658_v10 = vrot.slane %v2656_v62, 4  ;;  %v2664_v42 = vrot.slane %v2662_v47, 5  ;;  %vm1211_vm10 = vmpackc.low %vm900_vm3, %vm900_vm3  ;;  %v2668_v27 = vrot.slane %v2666_v39, 4  ;;  %v10112_v3 = vld [vmem:[%s9070_s25 + $0x48] sm:$0xff]  }
  0xcc   : > { %v10091_v30 = vsel %vm1211_vm10, 65537, %v12431_v17  ;;  %v3012_v41 = vsel %vm9653_vm9, %v2979_v46, 0  ;;  %v2655_v48 = vsel %vm9133_vm11, %v10031_v15, %v2654_v33  ;;  %v12472_v43 = vmov 0 }
  0xcd   : > { %v1433_v4 = vsel %vm9133_vm11, %v1428_v61, %v9122_v44  ;;  %v2659_v18 = vor.u32 %v2658_v10, %v2654_v33  ;;  %v1440_v9 = vshll.u32 %v10091_v30, 16  ;;  %v1444_v28 = vshrl.u32 %v10091_v30, 16  ;;  %2944 = vst [vmem:[#allocation3 + $0xe0] sm:$0xf] %v2655_v48  ;;  %v8756_v33 = vld [vmem:[#allocation3 + $0x1fc] ss:$36 sps:$4 sm:$0xff]  }
  0xce   : > { %vm10103_vm3 = vcmp.ne.s16.totalorder %v1433_v4, 0  ;;  %v565_v5 = vand.u32 15, %v475_v22  ;;  %v2669_v21 = vor.u32 %v2668_v27, %v2664_v42  ;;  %v10109_v23 = vsel %vm9673_vm8, %v2980_v0, 0  ;;  %v3398_v0 = vld [vmem:[#allocation2 + $0x24] sm:$0xf]  ;;  %6410 = vmatprep.mubr.bf16.mxu0 %v8756_v33 }
  0xcf   : > { %v12473_v43 = vsel %vm10103_vm3, 4294967295, %v12472_v43  ;;  %v2660_v46 = vrot.slane %v2659_v18, 4  ;;  %v10114_v15 = vrot.slane %v1440_v9, 5  ;;  %v1629_v60 = vsel %vm10103_vm3, %v1113_v20, 0  ;;  %3430 = vst [vmem:[#allocation3 + $0xe8] sm:$0xf] %v3398_v0 }
  0xd0   : > { %12474 = vst [vmem:[#allocation40_spill] sm:$0xff] %v12473_v43  ;;  %v3112_v55 = vrot.slane %v10042_v54, 4  ;;  %v1798_v62 = vshrl.u32 %v1629_v60, 16  ;;  %v1801_v47 = vshll.u32 %v1629_v60, 16  ;;  %vm10119_vm10 = vcmp.le.s32.totalorder %v565_v5, 14 }
  0xd1   : > { %v10123_v61 = vrot.slane %v2669_v21, 4  ;;  %v8761_v10 = vld [vmem:[#allocation3 + $0x1f8] ss:$36 sps:$4 sm:$0xff]   ;;  %v2665_v22 = vsel %vm9133_vm11, %v2660_v46, %v2664_v42  ;;  %v1443_v20 = vsel %vm9133_vm11, %v9151_v1, %v10114_v15  ;;  %v3114_v54 = vshrl.u32 %v3012_v41, 16  ;;  %v1114_v4 = vld [vmem:[#allocation2 + $0x48] sm:$0xf]  ;;  %vm2174_vm9 = vmpackc.low %vm10119_vm10, %vm10119_vm10 }
  0xd2   : > { %v7896_v30 = vunpack.c.h.bf16 %v10001_v36  ;;  %2945 = vst [vmem:[#allocation3 + $0x104] sm:$0xf] %v2665_v22  ;;  %vm10132_vm8 = vcmp.ne.s16.totalorder %v1443_v20, 0  ;;  %v12477_v27 = vmov 0  ;;  %v1800_v48 = vrot.slane %v1798_v62, 7  ;;  %6411 = vmatmul.mubr.bf16.gmra.mxu0 %v8761_v10 }
  0xd3   : > { %v12478_v27 = vsel %vm10132_vm8, 4294967295, %v12477_v27  ;;  %v2021_v18 = vld [vmem:[#allocation2 + $0x48] sm:$0xf]  ;;  %v7899_v42 = vunpack.c.l.bf16 %v10112_v3  ;;  %v7900_v9 = vunpack.c.h.bf16 %v10112_v3  ;;  %v1630_v36 = vsel %vm10132_vm8, %v1114_v4, 0  ;;  %v2022_v22 = vld [vmem:[#allocation2 + $0x4c] sm:$0xf] }
  0xd4   : > { %12479 = vst [vmem:[#allocation41_spill] sm:$0xff] %v12478_v27  ;;  %2053 = vst [vmem:[#allocation3 + $0x268] sm:$0xf] %v2021_v18  ;;  %v2206_v5 = vsel %vm2174_vm9, 65537, %v12431_v17  ;;  %v3116_v21 = vrot.slane %v3114_v54, 7  ;;  %v3117_v46 = vshll.u32 %v3012_v41, 16  ;;  %v1803_v60 = vor.u32 %v1801_v47, %v1800_v48 }
  0xd5   : > { %v1805_v62 = vrot.slane %v1800_v48, 4  ;;  %v1807_v0 = vshrl.u32 %v1630_v36, 16  ;;  %v1810_v39 = vshll.u32 %v1630_v36, 16  ;;  %v2310_v20 = vshrl.u32 %v2206_v5, 16  ;;  %2054 = vst [vmem:[#allocation3 + $0x28c] sm:$0xf] %v2022_v22 }
  0xd6   : > { %v2313_v35 = vshll.u32 %v2206_v5, 16  ;;  %v3119_v52 = vor.u32 %v3117_v46, %v3116_v21  ;;  %v3121_v51 = vrot.slane %v3116_v21, 4  ;;  %v1804_v33 = vsel %vm9192_vm14, %v1796_v58, %v1803_v60  ;;  %v10155_v54 = vld [vmem:[%s12209_s1] ss:$0 sm:$0xff]  ;;  %v2077_v5 = vld [vmem:[#allocation2 + $0x28] sm:$0xf] }
  0xd7   : > { %v10146_v4 = vrot.slane %v1807_v0, 7  ;;  %v3123_v18 = vshrl.u32 %v10109_v23, 16  ;;  %v3126_v41 = vshll.u32 %v10109_v23, 16  ;;  %1988 = vst [vmem:[#allocation3 + $0x240] sm:$0xf] %v1804_v33  ;;  %v2312_v47 = vrot.slane %v2310_v20, 7 }
  0xd8   : > { %v3120_v10 = vsel %vm9192_vm14, %v3112_v55, %v3119_v52  ;;  %v363_v48 = vmul.f32 %v10155_v54, %v7896_v30  ;;  %v364_v58 = vmul.f32 %v10155_v54, %v7899_v42  ;;  %v486_v23 = vadd.s32 160, %v9035_v7  ;;  %v3399_v60 = vld [vmem:[#allocation2 + $0x28] sm:$0xf]  ;;  %v8762_v52 = vld [vmem:[#allocation3 + $0xe4] ss:$36 sps:$4 sm:$0xff]  }
  0xd9   : > { %v1812_v36 = vor.u32 %v1810_v39, %v10146_v4  ;;  %v10160_v21 = vrot.slane %v3123_v18, 7  ;;  %3368 = vst [vmem:[#allocation3 + $0x12c] sm:$0xf] %v3120_v10  ;;  %v1446_v46 = vrot.slane %v1444_v28, 4  ;;  %v8766_v55 = vld [vmem:[#allocation3 + $0xe0] ss:$36 sps:$4 sm:$0xff]   ;;  %v2315_v0 = vor.u32 %v2313_v35, %v2312_v47  ;;  %6539 = vmatprep.mubr.bf16.mxu1 %v8762_v52 }
  0xda   : > { %v2317_v22 = vrot.slane %v2312_v47, 4  ;;  %v10166_v30 = vld [vmem:[%s12210_s2] ss:$0 sm:$0xff]  ;;  %3431 = vst [vmem:[#allocation3 + $0x10c] sm:$0xf] %v3399_v60  ;;  %v642_v18 = vand.u32 15, %v486_v23  ;;  %6540 = vmatmul.mubr.bf16.gmra.mxu1 %v8766_v55 }
  0xdb   : > { %v402_v42 = vadd.f32 %v10166_v30, %v363_v48  ;;  %v403_v39 = vadd.f32 %v10166_v30, %v364_v58  ;;  %v1813_v20 = vsel %vm9192_vm14, %v1805_v62, %v1812_v36  ;;  %v2078_v33 = vld [vmem:[#allocation2 + $0x2c] sm:$0xf]  ;;  %v3128_v28 = vor.u32 %v3126_v41, %v10160_v21  ;;  %v8819_v47 = vld [vmem:[%s12211_s3 + $0x1d0] sm:$0xff]  }
  0xdc   : > { %v1447_v35 = vor.u32 %v1446_v46, %v10114_v15  ;;  %v8824_v10 = vld [vmem:[%s12211_s3 + $0x190] sm:$0xff]   ;;  %1989 = vst [vmem:[#allocation3 + $0x264] sm:$0xf] %v1813_v20  ;;  %v2316_v62 = vsel %vm9192_vm14, %v9681_v29, %v2315_v0  ;;  %v10186_v41 = vsel %vm9192_vm14, %v2317_v22, %v9679_v8  ;;  %v12481_v58 = vmov 0  ;;  %8471 = vmatprep.subr.bf16.mxu1 %v8819_v47 }
  0xdd   : > { %12480 = vst [vmem:[#allocation42_spill] sm:$0xff] %v10186_v41  ;;  %v434_v15 = vmax.f32 %v402_v42, 0.0  ;;  %v435_v48 = vmax.f32 %v403_v39, 0.0  ;;  %vm10188_vm9 = vcmp.ne.s16.totalorder %v2316_v62, 0  ;;  %vm12272_vm10 = vcmp.ne.s16.totalorder %v10186_v41, 0  ;;  %8472 = vmatpush3.bf16.msra.mxu1 %v8824_v10 }
  0xde   : > { %v12482_v58 = vsel %vm10188_vm9, 4294967295, %v12481_v58  ;;  %v3129_v36 = vsel %vm9192_vm14, %v3121_v51, %v3128_v28  ;;  %vm10195_vm12 = vcmp.ge.s32.totalorder %v642_v18, 1  ;;  %v2558_v46 = vsel %vm10188_vm9, %v2077_v5, 0  ;;  %v1115_v39 = vld [vmem:[#allocation2 + $0x4c] sm:$0xf] }
  0xdf   : > { %12483 = vst [vmem:[#allocation43_spill] sm:$0xff] %v12482_v58  ;;  %v2559_v60 = vsel %vm12272_vm10, %v2078_v33, 0  ;;  %3369 = vst [vmem:[#allocation3 + $0x150] sm:$0xf] %v3129_v36  ;;  %v7968_v52 = vpack.c.bf16 %v435_v48, %v434_v15  ;;  %v1448_v55 = vrot.slane %v1447_v35, 4  ;;  %v2672_v51 = vshll.u32 %v2558_v46, 16 }
  0xe0   : > { %vm1213_vm0 = vmpackc.low %vm10195_vm12, %vm10195_vm12  ;;  %v2676_v0 = vshrl.u32 %v2558_v46, 16  ;;  %v2682_v22 = vshll.u32 %v2559_v60, 16  ;;  %v2686_v42 = vshrl.u32 %v2559_v60, 16  ;;  %v2981_v20 = vld [vmem:[#allocation2 + $0x34] sm:$0xf]  ;;  %v1814_v28 = vrot.slane %v10146_v4, 4 }
  0xe1   : > { %8103 = vst [vmem:[#allocation2 + $0x50] sm:$0xff] %v7968_v52   ;;  %v10207_v5 = vsel %vm1213_vm0, 65537, %v12431_v17  ;;  %v1453_v33 = vsel %vm9133_vm11, %v1448_v55, %v9122_v44  ;;  %v477_v18 = vadd.s32 88, %v9035_v7  ;;  %v3400_v35 = vld [vmem:[#allocation2 + $0x2c] sm:$0xf]  ;;  %v2674_v47 = vrot.slane %v2672_v51, 5 }
  0xe2   : > { %v2678_v10 = vrot.slane %v2676_v0, 4  ;;  %v2684_v62 = vrot.slane %v2682_v22, 5  ;;  %v1460_v15 = vshll.u32 %v10207_v5, 16  ;;  %v3401_v48 = vld [vmem:[#allocation2 + $0x30] sm:$0xf]  ;;  %vm10216_vm0 = vcmp.ne.s16.totalorder %v1453_v33, 0 }
  0xe3   : > { %3432 = vst [vmem:[#allocation3 + $0x130] sm:$0xf] %v3400_v35  ;;  %v12486_v23 = vmov 0  ;;  %v579_v46 = vand.u32 15, %v477_v18  ;;  %v2688_v60 = vrot.slane %v2686_v42, 4  ;;  %v2675_v51 = vsel %vm9133_vm11, %v10123_v61, %v2674_v47 }
  0xe4   : > { %v12487_v23 = vsel %vm10216_vm0, 4294967295, %v12486_v23  ;;  %v2982_v52 = vld [vmem:[#allocation2 + $0x38] sm:$0xf]  ;;  %3433 = vst [vmem:[#allocation3 + $0x154] sm:$0xf] %v3401_v48  ;;  %v2679_v0 = vor.u32 %v2678_v10, %v2674_v47  ;;  %v10223_v22 = vrot.slane %v1460_v15, 5  ;;  %v365_v33 = vmul.f32 %v10155_v54, %v7900_v9 }
  0xe5   : > { %12488 = vst [vmem:[#allocation44_spill] sm:$0xff] %v12487_v23  ;;  %v8764_v4 = vld [vmem:[#allocation3 + $0x244] ss:$36 sps:$4 sm:$0xff]   ;;  %2946 = vst [vmem:[#allocation3 + $0x128] sm:$0xf] %v2675_v51  ;;  %v1631_v18 = vsel %vm10216_vm0, %v1115_v39, 0  ;;  %v2689_v42 = vor.u32 %v2688_v60, %v2684_v62 }
  0xe6   : > { %v8767_v55 = vld [vmem:[#allocation3 + $0x240] ss:$36 sps:$4 sm:$0xff]   ;;  %vm925_vm12 = vcmp.le.s32.totalorder %v579_v46, 14  ;;  %v3014_v35 = vsel %vm9784_vm7, %v2981_v20, 0  ;;  %6418 = vmatprep.mubr.bf16.mxu0 %v8764_v4  ;;  %v2680_v48 = vrot.slane %v2679_v0, 4  ;;  %v1463_v61 = vsel %vm9133_vm11, %v9151_v1, %v10223_v22 }
  0xe7   : > { %v1816_v47 = vshrl.u32 %v1631_v18, 16  ;;  %v1819_v3 = vshll.u32 %v1631_v18, 16  ;;  %vm2176_vm10 = vmpackc.low %vm925_vm12, %vm925_vm12  ;;  %6419 = vmatmul.mubr.bf16.gmra.mxu0 %v8767_v55  ;;  %vm10236_vm9 = vcmp.ne.s16.totalorder %v1463_v61, 0  ;;  %v12489_v9 = vmov 0 }
  0xe8   : > { %v12490_v9 = vsel %vm10236_vm9, 4294967295, %v12489_v9  ;;  %v2208_v39 = vsel %vm2176_vm10, 65537, %v12431_v17  ;;  %v10241_v10 = vrot.slane %v2689_v42, 4  ;;  %v3015_v20 = vsel %vm9804_vm4, %v2982_v52, 0  ;;  %v1116_v46 = vld [vmem:[#allocation2 + $0x50] sm:$0xf] }
  0xe9   : > { %12491 = vst [vmem:[#allocation45_spill] sm:$0xff] %v12490_v9  ;;  %v2685_v15 = vsel %vm9133_vm11, %v2680_v48, %v2684_v62  ;;  %v1818_v60 = vrot.slane %v1816_v47, 7  ;;  %v2023_v4 = vld [vmem:[#allocation2 + $0x50] sm:$0xf]  ;;  %v2328_v51 = vshrl.u32 %v2208_v39, 16  ;;  %v12492_v55 = vunpack.c.l.bf16 %v9094_v26 }
  0xea   : > { %2947 = vst [vmem:[#allocation3 + $0x14c] sm:$0xf] %v2685_v15  ;;  %v1632_v18 = vsel %vm10236_vm9, %v1116_v46, 0  ;;  %2055 = vst [vmem:[#allocation3 + $0x2b0] sm:$0xf] %v2023_v4  ;;  %v2331_v42 = vshll.u32 %v2208_v39, 16  ;;  %v404_v39 = vadd.f32 %v10166_v30, %v365_v33 }
  0xeb   : > { %v366_v0 = vmul.f32 %v10155_v54, %v12492_v55  ;;  %v3130_v61 = vrot.slane %v10160_v21, 4  ;;  %v3132_v52 = vshrl.u32 %v3014_v35, 16  ;;  %v1821_v36 = vor.u32 %v1819_v3, %v1818_v60  ;;  %v2024_v47 = vld [vmem:[#allocation2 + $0x54] sm:$0xf] }
  0xec   : > { %v1823_v34 = vrot.slane %v1818_v60, 4  ;;  %v1825_v62 = vshrl.u32 %v1632_v18, 16  ;;  %v1828_v48 = vshll.u32 %v1632_v18, 16  ;;  %v2330_v12 = vrot.slane %v2328_v51, 7  ;;  %2056 = vst [vmem:[#allocation3 + $0x2d4] sm:$0xf] %v2024_v47 }
  0xed   : > { %v3134_v50 = vrot.slane %v3132_v52, 7  ;;  %v3135_v25 = vshll.u32 %v3014_v35, 16  ;;  %v3141_v26 = vshrl.u32 %v3015_v20, 16  ;;  %v1822_v54 = vsel %vm9192_vm14, %v1814_v28, %v1821_v36  ;;  %v2079_v51 = vld [vmem:[#allocation2 + $0x30] sm:$0xf] }
  0xee   : > { %v10255_v15 = vrot.slane %v1825_v62, 7  ;;  %v3144_v46 = vshll.u32 %v3015_v20, 16  ;;  %1990 = vst [vmem:[#allocation3 + $0x288] sm:$0xf] %v1822_v54  ;;  %v2333_v21 = vor.u32 %v2331_v42, %v2330_v12  ;;  %v2335_v3 = vrot.slane %v2330_v12, 4 }
  0xef   : > { %v3137_v60 = vor.u32 %v3135_v25, %v3134_v50  ;;  %v3139_v4 = vrot.slane %v3134_v50, 4  ;;  %v10259_v18 = vrot.slane %v3141_v26, 7  ;;  %v405_v35 = vadd.f32 %v10166_v30, %v366_v0  ;;  %v2080_v47 = vld [vmem:[#allocation2 + $0x34] sm:$0xf]  ;;  %v8770_v50 = vld [vmem:[#allocation3 + $0x12c] ss:$36 sps:$4 sm:$0xff]  }
  0xf0   : > { %v1830_v55 = vor.u32 %v1828_v48, %v10255_v15  ;;  %v436_v52 = vmax.f32 %v404_v39, 0.0  ;;  %v2334_v28 = vsel %vm9192_vm14, %v9681_v29, %v2333_v21  ;;  %v10268_v36 = vsel %vm9192_vm14, %v2335_v3, %v9679_v8  ;;  %v3402_v48 = vld [vmem:[#allocation2 + $0x34] sm:$0xf]  ;;  %6547 = vmatprep.mubr.bf16.mxu1 %v8770_v50 }
  0xf1   : > { %12493 = vst [vmem:[#allocation46_spill] sm:$0xff] %v10268_v36  ;;  %v3138_v25 = vsel %vm9192_vm14, %v3130_v61, %v3137_v60  ;;  %v488_v12 = vadd.s32 176, %v9035_v7  ;;  %v8775_v33 = vld [vmem:[#allocation3 + $0x128] ss:$36 sps:$4 sm:$0xff]   ;;  %vm10275_vm10 = vcmp.ne.s16.totalorder %v2334_v28, 0  ;;  %v12494_v20 = vmov 0 }
  0xf2   : > { %v1831_v30 = vsel %vm9192_vm14, %v1823_v34, %v1830_v55  ;;  %v12495_v20 = vsel %vm10275_vm10, 4294967295, %v12494_v20  ;;  %v3146_v0 = vor.u32 %v3144_v46, %v10259_v18  ;;  %3370 = vst [vmem:[#allocation3 + $0x174] sm:$0xf] %v3138_v25  ;;  %vm12282_vm12 = vcmp.ne.s16.totalorder %v10268_v36, 0  ;;  %v3403_v46 = vld [vmem:[#allocation2 + $0x38] sm:$0xf]  ;;  %6548 = vmatmul.mubr.bf16.gmra.mxu1 %v8775_v33 }
  0xf3   : > { %12496 = vst [vmem:[#allocation47_spill] sm:$0xff] %v12495_v20  ;;  %1991 = vst [vmem:[#allocation3 + $0x2ac] sm:$0xf] %v1831_v30  ;;  %v2560_v42 = vsel %vm10275_vm10, %v2079_v51, 0  ;;  %v437_v61 = vmax.f32 %v405_v35, 0.0  ;;  %v656_v62 = vand.u32 15, %v488_v12 }
  0xf4   : > { %v2561_v34 = vsel %vm12282_vm12, %v2080_v47, 0  ;;  %v2692_v26 = vshll.u32 %v2560_v42, 16  ;;  %v2696_v54 = vshrl.u32 %v2560_v42, 16  ;;  %v3147_v39 = vsel %vm9192_vm14, %v3139_v4, %v3146_v0  ;;  %3434 = vst [vmem:[#allocation3 + $0x178] sm:$0xf] %v3402_v48 }
  0xf5   : > { %v2702_v21 = vshll.u32 %v2561_v34, 16  ;;  %v2706_v3 = vshrl.u32 %v2561_v34, 16  ;;  %3371 = vst [vmem:[#allocation3 + $0x198] sm:$0xf] %v3147_v39  ;;  %vm904_vm4 = vcmp.ge.s32.totalorder %v656_v62, 1  ;;  %v7973_v60 = vpack.c.bf16 %v437_v61, %v436_v52 }
  0xf6   : > { %v2983_v55 = vld [vmem:[#allocation2 + $0x3c] sm:$0xf]  ;;  %3435 = vst [vmem:[#allocation3 + $0x19c] sm:$0xf] %v3403_v46  ;;  %v2694_v51 = vrot.slane %v2692_v26, 5  ;;  %v2698_v35 = vrot.slane %v2696_v54, 4  ;;  %vm1215_vm7 = vmpackc.low %vm904_vm4, %vm904_vm4 }
  0xf7   : > { %v12497_v47 = vshrl.u32 %v10207_v5, 16  ;;  %v2704_v12 = vrot.slane %v2702_v21, 5  ;;  %8104 = vst [vmem:[#allocation2 + $0x58] sm:$0xff] %v7973_v60   ;;  %v1247_v4 = vsel %vm1215_vm7, 65537, %v12431_v17  ;;  %v479_v50 = vadd.s32 104, %v9035_v7 }
  0xf8   : > { %v2708_v30 = vrot.slane %v2706_v3, 4  ;;  %v2695_v52 = vsel %vm9133_vm11, %v10241_v10, %v2694_v51  ;;  %v2699_v33 = vor.u32 %v2698_v35, %v2694_v51  ;;  %v1480_v42 = vshll.u32 %v1247_v4, 16  ;;  %v2984_v48 = vld [vmem:[#allocation2 + $0x40] sm:$0xf]  ;;  %v8773_v26 = vld [vmem:[#allocation3 + $0x28c] ss:$36 sps:$4 sm:$0xff]  }
  0xf9   : > { %v1466_v28 = vrot.slane %v12497_v47, 4  ;;  %2948 = vst [vmem:[#allocation3 + $0x170] sm:$0xf] %v2695_v52  ;;  %v1484_v5 = vshrl.u32 %v1247_v4, 16  ;;  %v593_v61 = vand.u32 15, %v479_v50  ;;  %v3016_v34 = vsel %vm9921_vm1, %v2983_v55, 0  ;;  %6426 = vmatprep.mubr.bf16.mxu0 %v8773_v26 }
  0xfa   : > { %v2709_v62 = vor.u32 %v2708_v30, %v2704_v12  ;;  %v8777_v54 = vld [vmem:[#allocation3 + $0x288] ss:$36 sps:$4 sm:$0xff]   ;;  %v2700_v39 = vrot.slane %v2699_v33, 4  ;;  %v10298_v21 = vrot.slane %v1480_v42, 5  ;;  %v1117_v3 = vld [vmem:[#allocation2 + $0x54] sm:$0xf] }
  0xfb   : > { %v1467_v0 = vor.u32 %v1466_v28, %v10223_v22  ;;  %vm927_vm7 = vcmp.le.s32.totalorder %v593_v61, 14  ;;  %v10306_v60 = vsel %vm9929_vm15, %v2984_v48, 0  ;;  %v3148_v55 = vrot.slane %v10259_v18, 4  ;;  %v8834_v35 = vld [vmem:[%s12211_s3 + $0x1c8] sm:$0xff]   ;;  %6427 = vmatmul.mubr.bf16.gmra.mxu0 %v8777_v54  ;;  %v2997_v20 = vld [vmem:[#allocation2 + $0x74] sm:$0xf] }
  0xfc   : > { %v10300_v10 = vrot.slane %v2709_v62, 4  ;;  %v2705_v22 = vsel %vm9133_vm11, %v2700_v39, %v2704_v12  ;;  %vm2178_vm4 = vmpackc.low %vm927_vm7, %vm927_vm7  ;;  %v3150_v51 = vshrl.u32 %v3016_v34, 16  ;;  %v1483_v28 = vsel %vm9133_vm11, %v9151_v1, %v10298_v21  ;;  %v8839_v18 = vld [vmem:[%s12211_s3 + $0x188] sm:$0xff]   ;;  %8473 = vmatprep.subr.bf16.mxu1 %v8834_v35 }
  0xfd   : > { %v1468_v46 = vrot.slane %v1467_v0, 4  ;;  %2949 = vst [vmem:[#allocation3 + $0x194] sm:$0xf] %v2705_v22  ;;  %v2210_v12 = vsel %vm2178_vm4, 65537, %v12431_v17  ;;  %v3153_v4 = vshll.u32 %v3016_v34, 16  ;;  %v12498_v30 = vmov 0  ;;  %8474 = vmatpush3.bf16.msra.mxu1 %v8839_v18 }
  0xfe   : > { %v1118_v50 = vld [vmem:[#allocation2 + $0x58] sm:$0xf]  ;;  %vm10327_vm12 = vcmp.ne.s16.totalorder %v1483_v28, 0  ;;  %v12501_v52 = vmov 0  ;;  %v2346_v61 = vshrl.u32 %v2210_v12, 16  ;;  %v2349_v62 = vshll.u32 %v2210_v12, 16 }
  0xff   : > { %v1473_v47 = vsel %vm9133_vm11, %v1468_v46, %v9122_v44  ;;  %v12502_v52 = vsel %vm10327_vm12, 4294967295, %v12501_v52  ;;  %v2025_v33 = vld [vmem:[#allocation2 + $0x58] sm:$0xf]  ;;  %v1634_v42 = vsel %vm10327_vm12, %v1118_v50, 0  ;;  %v3152_v46 = vrot.slane %v3150_v51, 7 }
 0x100   : > { %vm10323_vm7 = vcmp.ne.s16.totalorder %v1473_v47, 0  ;;  %12503 = vst [vmem:[#allocation49_spill] sm:$0xff] %v12502_v52  ;;  %2057 = vst [vmem:[#allocation3 + $0x2f8] sm:$0xf] %v2025_v33  ;;  %v1843_v26 = vshrl.u32 %v1634_v42, 16  ;;  %v1846_v54 = vshll.u32 %v1634_v42, 16 }
 0x101   : > { %v12499_v30 = vsel %vm10323_vm7, 4294967295, %v12498_v30  ;;  %v1633_v0 = vsel %vm10323_vm7, %v1117_v3, 0  ;;  %v2348_v39 = vrot.slane %v2346_v61, 7  ;;  %v3159_v22 = vshrl.u32 %v10306_v60, 16  ;;  %v2026_v47 = vld [vmem:[#allocation2 + $0x5c] sm:$0xf] }
 0x102   : > { %12500 = vst [vmem:[#allocation48_spill] sm:$0xff] %v12499_v30  ;;  %v1834_v48 = vshrl.u32 %v1633_v0, 16  ;;  %v1837_v34 = vshll.u32 %v1633_v0, 16  ;;  %v3162_v35 = vshll.u32 %v10306_v60, 16  ;;  %v10337_v3 = vrot.slane %v1843_v26, 7 }
 0x103   : > { %v1486_v25 = vrot.slane %v1484_v5, 4  ;;  %2058 = vst [vmem:[#allocation3 + $0x31c] sm:$0xf] %v2026_v47  ;;  %v481_v50 = vadd.s32 120, %v9035_v7  ;;  %v2081_v12 = vld [vmem:[#allocation2 + $0x38] sm:$0xf]  ;;  %v2351_v33 = vor.u32 %v2349_v62, %v2348_v39  ;;  %v3155_v6 = vor.u32 %v3153_v4, %v3152_v46 }
 0x104   : > { %v1836_v28 = vrot.slane %v1834_v48, 7  ;;  %v2082_v18 = vld [vmem:[#allocation2 + $0x3c] sm:$0xf]  ;;  %v2353_v0 = vrot.slane %v2348_v39, 4  ;;  %v3157_v42 = vrot.slane %v3152_v46, 4  ;;  %v1848_v1 = vor.u32 %v1846_v54, %v10337_v3 }
 0x105   : > { %v8778_v61 = vld [vmem:[#allocation3 + $0x174] ss:$36 sps:$4 sm:$0xff]   ;;  %v1487_v48 = vor.u32 %v1486_v25, %v10298_v21  ;;  %v2352_v5 = vsel %vm9192_vm14, %v9681_v29, %v2351_v33  ;;  %v3156_v4 = vsel %vm9192_vm14, %v3148_v55, %v3155_v6  ;;  %v10352_v62 = vrot.slane %v3159_v22, 7  ;;  %v2985_v6 = vld [vmem:[#allocation2 + $0x44] sm:$0xf] }
 0x106   : > { %v1839_v51 = vor.u32 %v1837_v34, %v1836_v28  ;;  %v1841_v31 = vrot.slane %v1836_v28, 4  ;;  %v8783_v60 = vld [vmem:[#allocation3 + $0x170] ss:$36 sps:$4 sm:$0xff]   ;;  %v10348_v26 = vsel %vm9192_vm14, %v2353_v0, %v9679_v8  ;;  %v3404_v34 = vld [vmem:[#allocation2 + $0x3c] sm:$0xf]  ;;  %6555 = vmatprep.mubr.bf16.mxu1 %v8778_v61  ;;  %v12505_v54 = vrot.slane %v10255_v15, 4 }
 0x107   : > { %12504 = vst [vmem:[#allocation50_spill] sm:$0xff] %v10348_v26  ;;  %vm10360_vm4 = vcmp.ne.s16.totalorder %v2352_v5, 0  ;;  %v12506_v39 = vmov 0  ;;  %vm12288_vm15 = vcmp.ne.s16.totalorder %v10348_v26, 0  ;;  %3372 = vst [vmem:[#allocation3 + $0x1bc] sm:$0xf] %v3156_v4  ;;  %6556 = vmatmul.mubr.bf16.gmra.mxu1 %v8783_v60 }
 0x108   : > { %v1840_v25 = vsel %vm9192_vm14, %v12505_v54, %v1839_v51  ;;  %v1849_v21 = vsel %vm9192_vm14, %v1841_v31, %v1848_v1  ;;  %v12507_v39 = vsel %vm10360_vm4, 4294967295, %v12506_v39  ;;  %v3405_v55 = vld [vmem:[#allocation2 + $0x40] sm:$0xf]  ;;  %3436 = vst [vmem:[#allocation3 + $0x1c0] sm:$0xf] %v3404_v34  ;;  %v2562_v15 = vsel %vm10360_vm4, %v2081_v12, 0 }
 0x109   : > { %12508 = vst [vmem:[#allocation51_spill] sm:$0xff] %v12507_v39  ;;  %1992 = vst [vmem:[#allocation3 + $0x2d0] sm:$0xf] %v1840_v25  ;;  %v2563_v46 = vsel %vm12288_vm15, %v2082_v18, 0  ;;  %v3164_v1 = vor.u32 %v3162_v35, %v10352_v62  ;;  %v1119_v31 = vld [vmem:[#allocation2 + $0x5c] sm:$0xf] }
 0x10a   : > { %1993 = vst [vmem:[#allocation3 + $0x2f4] sm:$0xf] %v1849_v21  ;;  %v1488_v22 = vrot.slane %v1487_v48, 4  ;;  %3437 = vst [vmem:[#allocation3 + $0x1e4] sm:$0xf] %v3405_v55  ;;  %v2712_v47 = vshll.u32 %v2562_v15, 16 }
 0x10b   : > { %v2716_v28 = vshrl.u32 %v2562_v15, 16  ;;  %v2722_v33 = vshll.u32 %v2563_v46, 16  ;;  %v2726_v0 = vshrl.u32 %v2563_v46, 16  ;;  %v3165_v61 = vsel %vm9192_vm14, %v3157_v42, %v3164_v1  ;;  %v2986_v4 = vld [vmem:[#allocation2 + $0x48] sm:$0xf] }
 0x10c   : > { %v1493_v51 = vsel %vm9133_vm11, %v1488_v22, %v9122_v44  ;;  %v1850_v12 = vrot.slane %v10337_v3, 4  ;;  %v607_v60 = vand.u32 15, %v481_v50  ;;  %v2714_v18 = vrot.slane %v2712_v47, 5  ;;  %3373 = vst [vmem:[#allocation3 + $0x1e0] sm:$0xf] %v3165_v61 }
 0x10d   : > { %v2718_v5 = vrot.slane %v2716_v28, 4  ;;  %v2724_v35 = vrot.slane %v2722_v33, 5  ;;  %vm10376_vm15 = vcmp.ne.s16.totalorder %v1493_v51, 0  ;;  %v12509_v48 = vmov 0  ;;  %v3456_v1 = vld [vmem:[#allocation2 + $0xc] sm:$0xf] }
 0x10e   : > { %v12510_v48 = vsel %vm10376_vm15, 4294967295, %v12509_v48  ;;  %v1635_v34 = vsel %vm10376_vm15, %v1119_v31, 0  ;;  %vm929_vm1 = vcmp.le.s32.totalorder %v607_v60, 14  ;;  %v2728_v42 = vrot.slane %v2726_v0, 4  ;;  %v3457_v31 = vld [vmem:[#allocation2 + $0x10] sm:$0xf] }
 0x10f   : > { %12511 = vst [vmem:[#allocation52_spill] sm:$0xff] %v12510_v48  ;;  %v3018_v44 = vsel %vm10027_vm5, %v2985_v6, 0  ;;  %v2715_v3 = vsel %vm9133_vm11, %v10300_v10, %v2714_v18  ;;  %v2719_v50 = vor.u32 %v2718_v5, %v2714_v18  ;;  %v1852_v54 = vshrl.u32 %v1635_v34, 16  ;;  %vm2180_vm4 = vmpackc.low %vm929_vm1, %vm929_vm1  ;;  %v8781_v6 = vld [vmem:[#allocation3 + $0x2d4] ss:$36 sps:$4 sm:$0xff]  }
 0x110   : > { %v1855_v25 = vshll.u32 %v1635_v34, 16  ;;  %2950 = vst [vmem:[#allocation3 + $0x1b8] sm:$0xf] %v2715_v3  ;;  %v2212_v21 = vsel %vm2180_vm4, 65537, %v12431_v17  ;;  %v2729_v55 = vor.u32 %v2728_v42, %v2724_v35  ;;  %v3019_v15 = vsel %vm10044_vm6, %v2986_v4, 0  ;;  %6434 = vmatprep.mubr.bf16.mxu0 %v8781_v6 }
 0x111   : > { %v3166_v46 = vrot.slane %v10352_v62, 4  ;;  %v2720_v22 = vrot.slane %v2719_v50, 4  ;;  %v1854_v47 = vrot.slane %v1852_v54, 7  ;;  %v12512_v10 = vshll.u32 %v9243_v32, 16  ;;  %v8785_v33 = vld [vmem:[#allocation3 + $0x2d0] ss:$36 sps:$4 sm:$0xff]  }
 0x112   : > { %v2364_v0 = vshrl.u32 %v2212_v21, 16  ;;  %v2367_v61 = vshll.u32 %v2212_v21, 16  ;;  %v10394_v51 = vrot.slane %v2729_v55, 4  ;;  %v3168_v60 = vshrl.u32 %v3018_v44, 16  ;;  %v3458_v18 = vld [vmem:[#allocation2 + $0x14] sm:$0xf]  ;;  %6435 = vmatmul.mubr.bf16.gmra.mxu0 %v8785_v33 }
 0x113   : > { %v1866_v28 = vor.u32 %v12512_v10, %v9269_v59  ;;  %v2725_v62 = vsel %vm9133_vm11, %v2720_v22, %v2724_v35  ;;  %v1857_v5 = vor.u32 %v1855_v25, %v1854_v47  ;;  %v1859_v4 = vrot.slane %v1854_v47, 4  ;;  %v2083_v21 = vld [vmem:[#allocation2 + $0x40] sm:$0xf]  ;;  %v2084_v55 = vld [vmem:[#allocation2 + $0x44] sm:$0xf] }
 0x114   : > { %v3171_v34 = vshll.u32 %v3018_v44, 16  ;;  %2951 = vst [vmem:[#allocation3 + $0x1dc] sm:$0xf] %v2725_v62  ;;  %v2366_v42 = vrot.slane %v2364_v0, 7  ;;  %v3170_v3 = vrot.slane %v3168_v60, 7  ;;  %v3177_v32 = vshrl.u32 %v3019_v15, 16 }
 0x115   : > { %v3180_v59 = vshll.u32 %v3019_v15, 16  ;;  %v1858_v50 = vsel %vm9192_vm14, %v1850_v12, %v1857_v5  ;;  %v1867_v54 = vsel %vm9192_vm14, %v1859_v4, %v1866_v28  ;;  %vm12513_vm1 = vcmp.ne.s16.totalorder %v9679_v8, 0  ;;  %v3406_v25 = vld [vmem:[#allocation2 + $0x44] sm:$0xf]  ;;  %v3407_v6 = vld [vmem:[#allocation2 + $0x48] sm:$0xf] }
 0x116   : > { %v3489_v35 = vsel %vm12513_vm1, %v3456_v1, 0  ;;  %v3490_v44 = vsel %vm9714_vm2, %v3457_v31, 0  ;;  %1994 = vst [vmem:[#allocation3 + $0x318] sm:$0xf] %v1858_v50  ;;  %1995 = vst [vmem:[#allocation3 + $0x33c] sm:$0xf] %v1867_v54  ;;  %v2369_v22 = vor.u32 %v2367_v61, %v2366_v42  ;;  %v3173_v47 = vor.u32 %v3171_v34, %v3170_v3 }
 0x117   : > { %v2371_v15 = vrot.slane %v2366_v42, 4  ;;  %v3175_v10 = vrot.slane %v3170_v3, 4  ;;  %3438 = vst [vmem:[#allocation3 + $0x208] sm:$0xf] %v3406_v25  ;;  %3439 = vst [vmem:[#allocation3 + $0x22c] sm:$0xf] %v3407_v6 }
 0x118   : > { %v10406_v12 = vrot.slane %v3177_v32, 7  ;;  %vm12514_vm4 = vcmp.ne.s16.totalorder %v9708_v16, 0  ;;  %v3523_v1 = vshrl.u32 %v3489_v35, 16  ;;  %v3526_v33 = vshll.u32 %v3489_v35, 16 }
 0x119   : > { %v10410_v28 = vsel %vm12514_vm4, %v3458_v18, 0  ;;  %v2370_v31 = vsel %vm9192_vm14, %v9681_v29, %v2369_v22  ;;  %v10418_v0 = vsel %vm9192_vm14, %v2371_v15, %v9679_v8  ;;  %v3174_v61 = vsel %vm9192_vm14, %v3166_v46, %v3173_v47  ;;  %v8786_v46 = vld [vmem:[#allocation3 + $0x1bc] ss:$36 sps:$4 sm:$0xff]   ;;  %v2987_v22 = vld [vmem:[#allocation2 + $0x4c] sm:$0xf] }
 0x11a   : > { %12515 = vst [vmem:[#allocation53_spill] sm:$0xff] %v10418_v0  ;;  %v3532_v60 = vshll.u32 %v3490_v44, 16  ;;  %vm10422_vm1 = vcmp.ne.s16.totalorder %v2370_v31, 0  ;;  %v12516_v62 = vmov 0  ;;  %vm12292_vm4 = vcmp.ne.s16.totalorder %v10418_v0, 0  ;;  %6563 = vmatprep.mubr.bf16.mxu1 %v8786_v46 }
 0x11b   : > { %v12517_v62 = vsel %vm10422_vm1, 4294967295, %v12516_v62  ;;  %v3182_v18 = vor.u32 %v3180_v59, %v10406_v12  ;;  %3374 = vst [vmem:[#allocation3 + $0x204] sm:$0xf] %v3174_v61  ;;  %v3525_v5 = vrot.slane %v3523_v1, 4  ;;  %v2564_v4 = vsel %vm10422_vm1, %v2083_v21, 0 }
 0x11c   : > { %12518 = vst [vmem:[#allocation54_spill] sm:$0xff] %v12517_v62  ;;  %v2565_v34 = vsel %vm12292_vm4, %v2084_v55, 0  ;;  %v3528_v42 = vrot.slane %v3526_v33, 5  ;;  %v3534_v3 = vrot.slane %v3532_v60, 5  ;;  %v8791_v32 = vld [vmem:[#allocation3 + $0x1b8] ss:$36 sps:$4 sm:$0xff]  }
 0x11d   : > { %v2732_v50 = vshll.u32 %v2564_v4, 16  ;;  %v3183_v54 = vsel %vm9192_vm14, %v3175_v10, %v3182_v18  ;;  %v2736_v35 = vshrl.u32 %v2564_v4, 16  ;;  %v2742_v25 = vshll.u32 %v2565_v34, 16  ;;  %v2988_v15 = vld [vmem:[#allocation2 + $0x50] sm:$0xf]  ;;  %6564 = vmatmul.mubr.bf16.gmra.mxu1 %v8791_v32 }
 0x11e   : > { %v2746_v6 = vshrl.u32 %v2565_v34, 16  ;;  %3375 = vst [vmem:[#allocation3 + $0x228] sm:$0xf] %v3183_v54  ;;  %v3529_v59 = vor.u32 %v3528_v42, %v3525_v5  ;;  %v8789_v21 = vld [vmem:[#allocation3 + $0x31c] ss:$36 sps:$4 sm:$0xff]   ;;  %v3536_v1 = vshrl.u32 %v3490_v44, 16 }
 0x11f   : > { %v2734_v47 = vrot.slane %v2732_v50, 5  ;;  %v8793_v55 = vld [vmem:[#allocation3 + $0x318] ss:$36 sps:$4 sm:$0xff]   ;;  %v2738_v33 = vrot.slane %v2736_v35, 4  ;;  %v2744_v31 = vrot.slane %v2742_v25, 5  ;;  %v3542_v60 = vshll.u32 %v10410_v28, 16  ;;  %6442 = vmatprep.mubr.bf16.mxu0 %v8789_v21 }
 0x120   : > { %v3530_v61 = vrot.slane %v3529_v59, 4  ;;  %v3538_v18 = vrot.slane %v3536_v1, 4  ;;  %v3546_v5 = vshrl.u32 %v10410_v28, 16  ;;  %v483_v4 = vadd.s32 136, %v9035_v7  ;;  %v8849_v44 = vld [vmem:[%s12211_s3 + $0x1c0] sm:$0xff]   ;;  %6443 = vmatmul.mubr.bf16.gmra.mxu0 %v8793_v55 }
 0x121   : > { %v2735_v10 = vsel %vm9133_vm11, %v10394_v51, %v2734_v47  ;;  %v8854_v34 = vld [vmem:[%s12211_s3 + $0x180] sm:$0xff]   ;;  %v2739_v42 = vor.u32 %v2738_v33, %v2734_v47  ;;  %v10448_v51 = vrot.slane %v3542_v60, 5  ;;  %v2748_v32 = vrot.slane %v2746_v6, 4  ;;  %v3459_v25 = vld [vmem:[#allocation2 + $0x18] sm:$0xf]  ;;  %8475 = vmatprep.subr.bf16.mxu1 %v8849_v44 }
 0x122   : > { %2952 = vst [vmem:[#allocation3 + $0x200] sm:$0xf] %v2735_v10  ;;  %v3535_v46 = vsel %vm9133_vm11, %v3530_v61, %v3534_v3  ;;  %v3539_v28 = vor.u32 %v3538_v18, %v3534_v3  ;;  %v621_v50 = vand.u32 15, %v483_v4  ;;  %v3020_v54 = vsel %vm10103_vm3, %v2987_v22, 0  ;;  %8476 = vmatpush3.bf16.msra.mxu1 %v8854_v34  ;;  %v3408_v55 = vld [vmem:[#allocation2 + $0x4c] sm:$0xf] }
 0x123   : > { %3878 = vst [vmem:[#allocation3 + $0x14] sm:$0xf] %v3535_v46  ;;  %v3021_v35 = vsel %vm10132_vm8, %v2988_v15, 0  ;;  %v2740_v59 = vrot.slane %v2739_v42, 4  ;;  %v2749_v21 = vor.u32 %v2748_v32, %v2744_v31  ;;  %v3184_v47 = vrot.slane %v10406_v12, 4 }
 0x124   : > { %v3186_v1 = vshrl.u32 %v3020_v54, 16  ;;  %v3540_v33 = vrot.slane %v3539_v28, 4  ;;  %vm931_vm4 = vcmp.le.s32.totalorder %v621_v50, 14  ;;  %v3189_v3 = vshll.u32 %v3020_v54, 16  ;;  %v3409_v61 = vld [vmem:[#allocation2 + $0x50] sm:$0xf] }
 0x125   : > { %v3195_v6 = vshrl.u32 %v3021_v35, 16  ;;  %3440 = vst [vmem:[#allocation3 + $0x250] sm:$0xf] %v3408_v55  ;;  %v2745_v22 = vsel %vm9133_vm11, %v2740_v59, %v2744_v31  ;;  %vm2182_vm3 = vmpackc.low %vm931_vm4, %vm931_vm4  ;;  %v10457_v15 = vrot.slane %v2749_v21, 4  ;;  %v3198_v10 = vshll.u32 %v3021_v35, 16 }
 0x126   : > { %v3188_v60 = vrot.slane %v3186_v1, 7  ;;  %v3460_v18 = vld [vmem:[#allocation2 + $0x1c] sm:$0xf]  ;;  %3441 = vst [vmem:[#allocation3 + $0x274] sm:$0xf] %v3409_v61  ;;  %v3545_v12 = vsel %vm9133_vm11, %v3540_v33, %v10448_v51  ;;  %v2214_v4 = vsel %vm2182_vm3, 65537, %v12431_v17 }
 0x127   : > { %2953 = vst [vmem:[#allocation3 + $0x224] sm:$0xf] %v2745_v22  ;;  %v10463_v44 = vrot.slane %v3195_v6, 7  ;;  %v3492_v34 = vsel %vm9853_vm13, %v3459_v25, 0  ;;  %3879 = vst [vmem:[#allocation3 + $0x38] sm:$0xf] %v3545_v12 }
 0x128   : > { %v2382_v31 = vshrl.u32 %v2214_v4, 16  ;;  %v2385_v42 = vshll.u32 %v2214_v4, 16  ;;  %v3191_v46 = vor.u32 %v3189_v3, %v3188_v60  ;;  %v3193_v32 = vrot.slane %v3188_v60, 4  ;;  %v2989_v28 = vld [vmem:[#allocation2 + $0x54] sm:$0xf] }
 0x129   : > { %v3200_v50 = vor.u32 %v3198_v10, %v10463_v44  ;;  %vm12519_vm4 = vcmp.ne.s16.totalorder %v9842_v2, 0  ;;  %v3548_v35 = vrot.slane %v3546_v5, 4  ;;  %v3552_v59 = vshll.u32 %v3492_v34, 16  ;;  %v2990_v55 = vld [vmem:[#allocation2 + $0x58] sm:$0xf] }
 0x12a   : > { %v10470_v54 = vsel %vm12519_vm4, %v3460_v18, 0  ;;  %v2384_v21 = vrot.slane %v2382_v31, 7  ;;  %v3192_v1 = vsel %vm9192_vm14, %v3184_v47, %v3191_v46  ;;  %v3556_v19 = vshrl.u32 %v3492_v34, 16  ;;  %v2085_v33 = vld [vmem:[#allocation2 + $0x48] sm:$0xf] }
 0x12b   : > { %v3562_v25 = vshll.u32 %v10470_v54, 16  ;;  %v3201_v3 = vsel %vm9192_vm14, %v3193_v32, %v3200_v50  ;;  %3376 = vst [vmem:[#allocation3 + $0x24c] sm:$0xf] %v3192_v1  ;;  %v3549_v6 = vor.u32 %v3548_v35, %v10448_v51  ;;  %v3554_v2 = vrot.slane %v3552_v59, 5  ;;  %v4332_v5 = vld [vmem:[#allocation2 + $0x14] sm:$0xf] }
 0x12c   : > { %v4333_v22 = vld [vmem:[#allocation2 + $0x18] sm:$0xf]  ;;  %v2086_v60 = vld [vmem:[#allocation2 + $0x4c] sm:$0xf]  ;;  %v2387_v10 = vor.u32 %v2385_v42, %v2384_v21  ;;  %v2389_v18 = vrot.slane %v2384_v21, 4  ;;  %v3558_v47 = vrot.slane %v3556_v19, 4 }
 0x12d   : > { %3377 = vst [vmem:[#allocation3 + $0x270] sm:$0xf] %v3201_v3  ;;  %v10479_v12 = vrot.slane %v3562_v25, 5  ;;  %4364 = vst [vmem:[#allocation3 + $0x1c] sm:$0xf] %v4332_v5  ;;  %v3550_v34 = vrot.slane %v3549_v6, 4 }
 0x12e   : > { %4365 = vst [vmem:[#allocation3 + $0x40] sm:$0xf] %v4333_v22  ;;  %v3410_v4 = vld [vmem:[#allocation2 + $0x54] sm:$0xf]  ;;  %v485_v31 = vadd.s32 152, %v9035_v7  ;;  %v3022_v51 = vsel %vm10216_vm0, %v2989_v28, 0  ;;  %v2388_v35 = vsel %vm9192_vm14, %v9681_v29, %v2387_v10  ;;  %v10494_v59 = vsel %vm9192_vm14, %v2389_v18, %v9679_v8 }
 0x12f   : > { %v10486_v46 = vsel %vm10236_vm9, %v2990_v55, 0  ;;  %v3411_v32 = vld [vmem:[#allocation2 + $0x58] sm:$0xf]  ;;  %3442 = vst [vmem:[#allocation3 + $0x298] sm:$0xf] %v3410_v4  ;;  %12520 = vst [vmem:[#allocation55_spill] sm:$0xff] %v10494_v59  ;;  %v3559_v21 = vor.u32 %v3558_v47, %v3554_v2  ;;  %v3555_v55 = vsel %vm9133_vm11, %v3550_v34, %v3554_v2 }
 0x130   : > { %v8796_v42 = vld [vmem:[#allocation3 + $0x204] ss:$36 sps:$4 sm:$0xff]   ;;  %3443 = vst [vmem:[#allocation3 + $0x2bc] sm:$0xf] %v3411_v32  ;;  %v8799_v1 = vld [vmem:[#allocation3 + $0x10] ss:$36 sps:$4 sm:$0xff]  }
 0x131   : > { %v8798_v50 = vld [vmem:[#allocation3 + $0x200] ss:$36 sps:$4 sm:$0xff]   ;;  %v8801_v19 = vld [vmem:[#allocation3 + $0x14] ss:$36 sps:$4 sm:$0xff]   ;;  %vm10497_vm13 = vcmp.ne.s16.totalorder %v2388_v35, 0  ;;  %v12521_v25 = vmov 0  ;;  %6571 = vmatprep.mubr.bf16.mxu1 %v8796_v42 }
 0x132   : > { %v12522_v25 = vsel %vm10497_vm13, 4294967295, %v12521_v25  ;;  %vm12294_vm3 = vcmp.ne.s16.totalorder %v10494_v59, 0  ;;  %v2566_v3 = vsel %vm10497_vm13, %v2085_v33, 0  ;;  %v3560_v6 = vrot.slane %v3559_v21, 4  ;;  %3880 = vst [vmem:[#allocation3 + $0x5c] sm:$0xf] %v3555_v55  ;;  %6572 = vmatmul.mubr.bf16.gmra.mxu1 %v8798_v50  ;;  %6676 = vmatprep.mubr.bf16.mxu0 %v8801_v19 }
 0x133   : > { %12523 = vst [vmem:[#allocation56_spill] sm:$0xff] %v12522_v25  ;;  %v635_v5 = vand.u32 15, %v485_v31  ;;  %v8820_v22 = vld [vmem:[%s12211_s3 + $0x230] sm:$0xff]   ;;  %v2567_v10 = vsel %vm12294_vm3, %v2086_v60, 0  ;;  %v2752_v18 = vshll.u32 %v2566_v3, 16  ;;  %v2756_v2 = vshrl.u32 %v2566_v3, 16  ;;  %6677 = vmatmul.mubr.bf16.vlgmr.msra.gmra.mxu0 %v8799_v1 }
 0x134   : > { %v3204_v47 = vshrl.u32 %v3022_v51, 16  ;;  %v2762_v4 = vshll.u32 %v2567_v10, 16  ;;  %v2766_v34 = vshrl.u32 %v2567_v10, 16  ;;  %v3565_v33 = vsel %vm9133_vm11, %v3560_v6, %v10479_v12  ;;  %v3461_v31 = vld [vmem:[#allocation2 + $0x20] sm:$0xf]  ;;  %v8835_v32 = vld [vmem:[%s12211_s3 + $0x228] sm:$0xff]  }
 0x135   : > { %vm933_vm4 = vcmp.le.s32.totalorder %v635_v5, 14  ;;  %v2754_v42 = vrot.slane %v2752_v18, 5  ;;  %v2758_v50 = vrot.slane %v2756_v2, 4  ;;  %3881 = vst [vmem:[#allocation3 + $0x80] sm:$0xf] %v3565_v33  ;;  %v8955_v60 = vld [vmem:[%s12211_s3 + $0x238] sm:$0xff]  }
 0x136   : > { %8598 = vmatpush3.bf16.msra.mxu0 %v8955_v60  ;;  %vm2184_vm3 = vmpackc.low %vm933_vm4, %vm933_vm4  ;;  %v3206_v35 = vrot.slane %v3204_v47, 7  ;;  %v3207_v21 = vshll.u32 %v3022_v51, 16  ;;  %v3462_v1 = vld [vmem:[#allocation2 + $0x24] sm:$0xf]  ;;  %v4334_v19 = vld [vmem:[#allocation2 + $0x1c] sm:$0xf] }
 0x137   : > { %v2764_v55 = vrot.slane %v2762_v4, 5  ;;  %v2216_v3 = vsel %vm2184_vm3, 65537, %v12431_v17  ;;  %v2768_v6 = vrot.slane %v2766_v34, 4  ;;  %v3213_v5 = vshrl.u32 %v10486_v46, 16  ;;  %8599 = vmatprep.subr.bf16.mxu0 %v8820_v22  ;;  %v4335_v10 = vld [vmem:[#allocation2 + $0x20] sm:$0xf] }
 0x138   : > { %4366 = vst [vmem:[#allocation3 + $0x64] sm:$0xf] %v4334_v19  ;;  %v2755_v18 = vsel %vm9133_vm11, %v10457_v15, %v2754_v42  ;;  %v2759_v2 = vor.u32 %v2758_v50, %v2754_v42  ;;  %v2400_v33 = vshrl.u32 %v2216_v3, 16  ;;  %v2403_v60 = vshll.u32 %v2216_v3, 16  ;;  %4367 = vst [vmem:[#allocation3 + $0x88] sm:$0xf] %v4335_v10 }
 0x139   : > { %v3412_v51 = vld [vmem:[#allocation2 + $0x5c] sm:$0xf]  ;;  %v3413_v47 = vld [vmem:[#allocation2 + $0x60] sm:$0xf]  ;;  %2954 = vst [vmem:[#allocation3 + $0x248] sm:$0xf] %v2755_v18  ;;  %v2769_v4 = vor.u32 %v2768_v6, %v2764_v55  ;;  %v3209_v61 = vor.u32 %v3207_v21, %v3206_v35  ;;  %vm12524_vm3 = vnez %v12456_v63 }
 0x13a   : > { %v3211_v28 = vrot.slane %v3206_v35, 4  ;;  %v10525_v34 = vrot.slane %v3213_v5, 7  ;;  %3444 = vst [vmem:[#allocation3 + $0x2e0] sm:$0xf] %v3412_v51  ;;  %3445 = vst [vmem:[#allocation3 + $0x304] sm:$0xf] %v3413_v47  ;;  %8600 = vmatpush3.bf16.msra.mxu0 %v8820_v22 }
 0x13b   : > { %v2760_v9 = vrot.slane %v2759_v2, 4  ;;  %v2402_v19 = vrot.slane %v2400_v33, 7  ;;  %v3216_v23 = vshll.u32 %v10486_v46, 16  ;;  %v3494_v15 = vsel %vm12524_vm3, %v3461_v31, 0  ;;  %8601 = vmatprep.subr.bf16.mxu0 %v8835_v32  ;;  %v8850_v46 = vld [vmem:[%s12211_s3 + $0x220] sm:$0xff]  }
 0x13c   : > { %v10530_v42 = vrot.slane %v2769_v4, 4  ;;  %v12525_v50 = vrot.slane %v10463_v44, 4  ;;  %vm12526_vm4 = vcmp.ne.s16.totalorder %v9964_v13, 0  ;;  %v12527_v3 = vshrl.u32 %v10470_v54, 16  ;;  %v2087_v31 = vld [vmem:[#allocation2 + $0x50] sm:$0xf] }
 0x13d   : > { %v10538_v35 = vsel %vm12526_vm4, %v3462_v1, 0  ;;  %v2765_v22 = vsel %vm9133_vm11, %v2760_v9, %v2764_v55  ;;  %v2088_v44 = vld [vmem:[#allocation2 + $0x54] sm:$0xf]  ;;  %v2405_v5 = vor.u32 %v2403_v60, %v2402_v19  ;;  %v2407_v10 = vrot.slane %v2402_v19, 4  ;;  %v8865_v60 = vld [vmem:[%s12211_s3 + $0x218] sm:$0xff]  }
 0x13e   : > { %v3210_v21 = vsel %vm9192_vm14, %v12525_v50, %v3209_v61  ;;  %v3568_v6 = vrot.slane %v12527_v3, 4  ;;  %v3218_v61 = vor.u32 %v3216_v23, %v10525_v34  ;;  %2955 = vst [vmem:[#allocation3 + $0x26c] sm:$0xf] %v2765_v22  ;;  %v8807_v1 = vld [vmem:[#allocation3 + $0x5c] ss:$36 sps:$4 sm:$0xff]   ;;  %v3572_v2 = vshll.u32 %v3494_v15, 16  ;;  %8602 = vmatpush3.bf16.msra.mxu0 %v8835_v32 }
 0x13f   : > { %3378 = vst [vmem:[#allocation3 + $0x294] sm:$0xf] %v3210_v21  ;;  %v8810_v18 = vld [vmem:[#allocation3 + $0x58] ss:$36 sps:$4 sm:$0xff]   ;;  %v2406_v33 = vsel %vm9192_vm14, %v9681_v29, %v2405_v5  ;;  %v10555_v9 = vsel %vm9192_vm14, %v2407_v10, %v9679_v8  ;;  %v3576_v23 = vshrl.u32 %v3494_v15, 16  ;;  %6684 = vmatprep.mubr.bf16.mxu0 %v8807_v1  ;;  %8603 = vmatprep.subr.bf16.mxu0 %v8850_v46  ;;  %v3582_v15 = vshll.u32 %v10538_v35, 16 }
 0x140   : > { %v3569_v54 = vor.u32 %v3568_v6, %v10479_v12  ;;  %12528 = vst [vmem:[#allocation57_spill] sm:$0xff] %v10555_v9  ;;  %v3219_v55 = vsel %vm9192_vm14, %v3211_v28, %v3218_v61  ;;  %vm10562_vm4 = vcmp.ne.s16.totalorder %v2406_v33, 0  ;;  %v12529_v12 = vmov 0  ;;  %v4336_v4 = vld [vmem:[#allocation2 + $0x24] sm:$0xf]  ;;  %6685 = vmatmul.mubr.bf16.gmra.mxu0 %v8810_v18 }
 0x141   : > { %v12530_v12 = vsel %vm10562_vm4, 4294967295, %v12529_v12  ;;  %vm12298_vm9 = vcmp.ne.s16.totalorder %v10555_v9, 0  ;;  %3379 = vst [vmem:[#allocation3 + $0x2b8] sm:$0xf] %v3219_v55  ;;  %v3574_v47 = vrot.slane %v3572_v2, 5  ;;  %v2568_v28 = vsel %vm10562_vm4, %v2087_v31, 0 }
 0x142   : > { %12531 = vst [vmem:[#allocation58_spill] sm:$0xff] %v12530_v12  ;;  %v3570_v51 = vrot.slane %v3569_v54, 4  ;;  %v2569_v32 = vsel %vm12298_vm9, %v2088_v44, 0  ;;  %v3578_v19 = vrot.slane %v3576_v23, 4  ;;  %4368 = vst [vmem:[#allocation3 + $0xac] sm:$0xf] %v4336_v4  ;;  %8604 = vmatpush3.bf16.msra.mxu0 %v8850_v46 }
 0x143   : > { %v2772_v50 = vshll.u32 %v2568_v28, 16  ;;  %v2776_v21 = vshrl.u32 %v2568_v28, 16  ;;  %v2782_v3 = vshll.u32 %v2569_v32, 16  ;;  %v2786_v6 = vshrl.u32 %v2569_v32, 16  ;;  %v2992_v22 = vld [vmem:[#allocation2 + $0x60] sm:$0xf]  ;;  %8605 = vmatprep.subr.bf16.mxu0 %v8865_v60 }
 0x144   : > { %v4337_v5 = vld [vmem:[#allocation2 + $0x28] sm:$0xf]  ;;  %v3575_v10 = vsel %vm9133_vm11, %v3570_v51, %v3574_v47  ;;  %v3579_v61 = vor.u32 %v3578_v19, %v3574_v47  ;;  %v10574_v1 = vrot.slane %v3582_v15, 5  ;;  %v3586_v31 = vshrl.u32 %v10538_v35, 16  ;;  %v3414_v44 = vld [vmem:[#allocation2 + $0x64] sm:$0xf] }
 0x145   : > { %4369 = vst [vmem:[#allocation3 + $0xd0] sm:$0xf] %v4337_v5  ;;  %v3415_v18 = vld [vmem:[#allocation2 + $0x68] sm:$0xf]  ;;  %v2774_v54 = vrot.slane %v2772_v50, 5  ;;  %v2778_v2 = vrot.slane %v2776_v21, 4 }
 0x146   : > { %v2784_v33 = vrot.slane %v2782_v3, 5  ;;  %3882 = vst [vmem:[#allocation3 + $0xa4] sm:$0xf] %v3575_v10  ;;  %v487_v55 = vadd.s32 168, %v9035_v7  ;;  %v2991_v23 = vld [vmem:[#allocation2 + $0x5c] sm:$0xf]  ;;  %8606 = vmatpush3.bf16.msra.mxu0 %v8865_v60 }
 0x147   : > { %3446 = vst [vmem:[#allocation3 + $0x328] sm:$0xf] %v3414_v44  ;;  %3447 = vst [vmem:[#allocation3 + $0x34c] sm:$0xf] %v3415_v18  ;;  %v8802_v51 = vld [vmem:[#allocation3 + $0x24c] ss:$36 sps:$4 sm:$0xff]   ;;  %v2775_v35 = vsel %vm9133_vm11, %v10530_v42, %v2774_v54  ;;  %v2779_v46 = vor.u32 %v2778_v2, %v2774_v54 }
 0x148   : > { %v8806_v47 = vld [vmem:[#allocation3 + $0x248] ss:$36 sps:$4 sm:$0xff]   ;;  %v3580_v4 = vrot.slane %v3579_v61, 4  ;;  %v649_v28 = vand.u32 15, %v487_v55  ;;  %v2788_v32 = vrot.slane %v2786_v6, 4  ;;  %v8877_v15 = vld [vmem:[%s12211_s3 + $0x210] sm:$0xff]   ;;  %6579 = vmatprep.mubr.bf16.mxu1 %v8802_v51 }
 0x149   : > { %v3463_v19 = vld [vmem:[#allocation2 + $0x28] sm:$0xf]  ;;  %2956 = vst [vmem:[#allocation3 + $0x290] sm:$0xf] %v2775_v35  ;;  %v3024_v21 = vsel %vm10323_vm7, %v2991_v23, 0  ;;  %v3025_v42 = vsel %vm10327_vm12, %v2992_v22, 0  ;;  %6580 = vmatmul.mubr.bf16.gmra.mxu1 %v8806_v47  ;;  %8607 = vmatprep.subr.bf16.mxu0 %v8877_v15  ;;  %vm12532_vm7 = vnez %v12470_v11 }
 0x14a   : > { %v3585_v50 = vsel %vm9133_vm11, %v3580_v4, %v10574_v1  ;;  %v3220_v3 = vrot.slane %v10525_v34, 4  ;;  %v2780_v6 = vrot.slane %v2779_v46, 4  ;;  %vm935_vm9 = vcmp.le.s32.totalorder %v649_v28, 14  ;;  %v3464_v61 = vld [vmem:[#allocation2 + $0x2c] sm:$0xf]  ;;  %8608 = vmatpush3.bf16.msra.mxu0 %v8877_v15 }
 0x14b   : > { %3883 = vst [vmem:[#allocation3 + $0xc8] sm:$0xf] %v3585_v50  ;;  %v2789_v5 = vor.u32 %v2788_v32, %v2784_v33  ;;  %v3222_v10 = vshrl.u32 %v3024_v21, 16  ;;  %vm2186_vm0 = vmpackc.low %vm935_vm9, %vm935_vm9  ;;  %v3225_v44 = vshll.u32 %v3024_v21, 16  ;;  %v3231_v18 = vshrl.u32 %v3025_v42, 16 }
 0x14c   : > { %v3234_v54 = vshll.u32 %v3025_v42, 16  ;;  %v3496_v2 = vsel %vm12532_vm7, %v3463_v19, 0  ;;  %v4338_v55 = vld [vmem:[#allocation2 + $0x2c] sm:$0xf]  ;;  %v2785_v34 = vsel %vm9133_vm11, %v2780_v6, %v2784_v33  ;;  %v2218_v60 = vsel %vm2186_vm0, 65537, %v12431_v17 }
 0x14d   : > { %v10597_v22 = vrot.slane %v2789_v5, 4  ;;  %v3224_v23 = vrot.slane %v3222_v10, 7  ;;  %v4339_v51 = vld [vmem:[#allocation2 + $0x30] sm:$0xf]  ;;  %4370 = vst [vmem:[#allocation3 + $0xf4] sm:$0xf] %v4338_v55  ;;  %vm12534_vm0 = vnez %v12368_v37 }
 0x14e   : > { %2957 = vst [vmem:[#allocation3 + $0x2b4] sm:$0xf] %v2785_v34  ;;  %v2418_v47 = vshrl.u32 %v2218_v60, 16  ;;  %v2421_v4 = vshll.u32 %v2218_v60, 16  ;;  %v10599_v35 = vrot.slane %v3231_v18, 7  ;;  %vm12533_vm9 = vcmp.ne.s16.totalorder %v10071_v57, 0 }
 0x14f   : > { %v10603_v46 = vsel %vm12533_vm9, %v3464_v61, 0  ;;  %4371 = vst [vmem:[#allocation3 + $0x118] sm:$0xf] %v4339_v51  ;;  %v3227_v28 = vor.u32 %v3225_v44, %v3224_v23  ;;  %v3229_v33 = vrot.slane %v3224_v23, 4  ;;  %v3588_v32 = vrot.slane %v3586_v31, 4 }
 0x150   : > { %v3592_v19 = vshll.u32 %v3496_v2, 16  ;;  %v2993_v50 = vld [vmem:[#allocation2 + $0x64] sm:$0xf]  ;;  %v2994_v21 = vld [vmem:[#allocation2 + $0x68] sm:$0xf]  ;;  %v2420_v6 = vrot.slane %v2418_v47, 7  ;;  %v3236_v5 = vor.u32 %v3234_v54, %v10599_v35 }
 0x151   : > { %v3416_v42 = vld [vmem:[#allocation2 + $0x6c] sm:$0xf]  ;;  %v3596_v10 = vshrl.u32 %v3496_v2, 16  ;;  %v3602_v18 = vshll.u32 %v10603_v46, 16  ;;  %v3417_v55 = vld [vmem:[#allocation2 + $0x70] sm:$0xf]  ;;  %v3228_v15 = vsel %vm9192_vm14, %v3220_v3, %v3227_v28  ;;  %v3589_v61 = vor.u32 %v3588_v32, %v10574_v1 }
 0x152   : > { %3448 = vst [vmem:[#allocation3 + $0x370] sm:$0xf] %v3416_v42  ;;  %v2089_v34 = vld [vmem:[#allocation2 + $0x58] sm:$0xf]  ;;  %v3594_v44 = vrot.slane %v3592_v19, 5  ;;  %v2423_v51 = vor.u32 %v2421_v4, %v2420_v6  ;;  %v2425_v47 = vrot.slane %v2420_v6, 4  ;;  %v3237_v54 = vsel %vm9192_vm14, %v3229_v33, %v3236_v5 }
 0x153   : > { %3449 = vst [vmem:[#allocation3 + $0x394] sm:$0xf] %v3417_v55  ;;  %v8814_v60 = vld [vmem:[#allocation3 + $0xa4] ss:$36 sps:$4 sm:$0xff]   ;;  %3380 = vst [vmem:[#allocation3 + $0x2dc] sm:$0xf] %v3228_v15 }
 0x154   : > { %v8816_v23 = vld [vmem:[#allocation3 + $0xa0] ss:$36 sps:$4 sm:$0xff]   ;;  %3381 = vst [vmem:[#allocation3 + $0x300] sm:$0xf] %v3237_v54  ;;  %v3590_v42 = vrot.slane %v3589_v61, 4  ;;  %v3598_v52 = vrot.slane %v3596_v10, 4  ;;  %6692 = vmatprep.mubr.bf16.mxu0 %v8814_v60  ;;  %v2424_v3 = vsel %vm9192_vm14, %v9681_v29, %v2423_v51  ;;  %v10622_v4 = vsel %vm9192_vm14, %v2425_v47, %v9679_v8  ;;  %v10640_v61 = vpop.f32.mrf.mxu0 }
 0x155   : > { %v2090_v2 = vld [vmem:[#allocation2 + $0x5c] sm:$0xf]  ;;  %v10613_v30 = vrot.slane %v3602_v18, 5  ;;  %v489_v1 = vadd.s32 184, %v9035_v7  ;;  %v3026_v28 = vsel %vm10376_vm15, %v2993_v50, 0  ;;  %v10628_v33 = vsel %vm12534_vm0, %v2994_v21, 0  ;;  %6693 = vmatmul.mubr.bf16.gmra.mxu0 %v8816_v23 }
 0x156   : > { %v4340_v32 = vld [vmem:[#allocation2 + $0x34] sm:$0xf]  ;;  %v4341_v19 = vld [vmem:[#allocation2 + $0x38] sm:$0xf]  ;;  %v8811_v6 = vld [vmem:[#allocation3 + $0x294] ss:$36 sps:$4 sm:$0xff]   ;;  %v3595_v18 = vsel %vm9133_vm11, %v3590_v42, %v3594_v44  ;;  %v3599_v55 = vor.u32 %v3598_v52, %v3594_v44 }
 0x157   : > { %v8813_v5 = vld [vmem:[#allocation3 + $0x290] ss:$36 sps:$4 sm:$0xff]   ;;  %vm10630_vm9 = vcmp.ne.s16.totalorder %v2424_v3, 0  ;;  %4372 = vst [vmem:[#allocation3 + $0x13c] sm:$0xf] %v4340_v32  ;;  %vm12304_vm15 = vcmp.ne.s16.totalorder %v10622_v4, 0  ;;  %6587 = vmatprep.mubr.bf16.mxu1 %v8811_v6 }
 0x158   : > { %4373 = vst [vmem:[#allocation3 + $0x160] sm:$0xf] %v4341_v19  ;;  %v2570_v50 = vsel %vm10630_vm9, %v2089_v34, 0  ;;  %3884 = vst [vmem:[#allocation3 + $0xec] sm:$0xf] %v3595_v18  ;;  %v663_v21 = vand.u32 15, %v489_v1  ;;  %6588 = vmatmul.mubr.bf16.gmra.mxu1 %v8813_v5  ;;  %v10644_v1 = vpop.f32.mrf.mxu0 }
 0x159   : > { %v3238_v15 = vrot.slane %v10599_v35, 4  ;;  %v3418_v60 = vld [vmem:[#allocation2 + $0x74] sm:$0xf]  ;;  %v2571_v23 = vsel %vm12304_vm15, %v2090_v2, 0  ;;  %v2792_v51 = vshll.u32 %v2570_v50, 16  ;;  %v2796_v52 = vshrl.u32 %v2570_v50, 16 }
 0x15a   : > { %v3600_v44 = vrot.slane %v3599_v55, 4  ;;  %v3419_v47 = vld [vmem:[#allocation2 + $0x78] sm:$0xf]  ;;  %3450 = vst [vmem:[#allocation3 + $0x3b8] sm:$0xf] %v3418_v60  ;;  %v2802_v54 = vshll.u32 %v2571_v23, 16 }
 0x15b   : > { %v2806_v42 = vshrl.u32 %v2571_v23, 16  ;;  %vm937_vm0 = vcmp.le.s32.totalorder %v663_v21, 14  ;;  %v3240_v34 = vshrl.u32 %v3026_v28, 16  ;;  %3451 = vst [vmem:[#allocation3 + $0x3dc] sm:$0xf] %v3419_v47  ;;  %v2794_v35 = vrot.slane %v2792_v51, 5  ;;  %v10653_v21 = vpop.f32.mrf.mxu0 }
 0x15c   : > { %v2798_v3 = vrot.slane %v2796_v52, 4  ;;  %v3605_v32 = vsel %vm9133_vm11, %v3600_v44, %v10613_v30  ;;  %vm2188_vm15 = vmpackc.low %vm937_vm0, %vm937_vm0  ;;  %v3243_v2 = vshll.u32 %v3026_v28, 16  ;;  %v8890_v19 = vld [vmem:[%s12211_s3 + $0x208] sm:$0xff]   ;;  %v2804_v6 = vrot.slane %v2802_v54, 5  ;;  %v3465_v50 = vld [vmem:[#allocation2 + $0x30] sm:$0xf] }
 0x15d   : > { %3885 = vst [vmem:[#allocation3 + $0x110] sm:$0xf] %v3605_v32  ;;  %v2220_v5 = vsel %vm2188_vm15, 65537, %v12431_v17  ;;  %v2808_v18 = vrot.slane %v2806_v42, 4  ;;  %v3242_v55 = vrot.slane %v3240_v34, 7  ;;  %v2795_v60 = vsel %vm9133_vm11, %v10597_v22, %v2794_v35  ;;  %8609 = vmatprep.subr.bf16.mxu0 %v8890_v19  ;;  %v10659_v42 = vpop.f32.mrf.mxu0  ;;  %v10661_v34 = vpop.f32.mrf.mxu1 }
 0x15e   : > { %v2799_v23 = vor.u32 %v2798_v3, %v2794_v35  ;;  %v2436_v51 = vshrl.u32 %v2220_v5, 16  ;;  %v2439_v28 = vshll.u32 %v2220_v5, 16  ;;  %v3466_v52 = vld [vmem:[#allocation2 + $0x34] sm:$0xf]  ;;  %2958 = vst [vmem:[#allocation3 + $0x2d8] sm:$0xf] %v2795_v60  ;;  %8610 = vmatpush3.bf16.msra.mxu0 %v8890_v19  ;;  %vm12537_vm15 = vnez %v12482_v58 }
 0x15f   : > { %v2809_v44 = vor.u32 %v2808_v18, %v2804_v6  ;;  %v3245_v47 = vor.u32 %v3243_v2, %v3242_v55  ;;  %v3247_v54 = vrot.slane %v3242_v55, 4  ;;  %v3249_v32 = vshrl.u32 %v10628_v33, 16  ;;  %v4342_v31 = vld [vmem:[#allocation2 + $0x3c] sm:$0xf]  ;;  %v4343_v37 = vld [vmem:[#allocation2 + $0x40] sm:$0xf]  ;;  %v10676_v55 = vpop.f32.mrf.mxu0  ;;  %v8214_v58 = vpop.f32.mrf.mxu1 }
 0x160   : > { %v2800_v48 = vrot.slane %v2799_v23, 4  ;;  %v2438_v22 = vrot.slane %v2436_v51, 7  ;;  %v3252_v35 = vshll.u32 %v10628_v33, 16  ;;  %v3498_v3 = vsel %vm12537_vm15, %v3465_v50, 0  ;;  %4374 = vst [vmem:[#allocation3 + $0x184] sm:$0xf] %v4342_v31 }
 0x161   : > { %4375 = vst [vmem:[#allocation3 + $0x1a8] sm:$0xf] %v4343_v37  ;;  %v10666_v2 = vrot.slane %v2809_v44, 4  ;;  %v3246_v5 = vsel %vm9192_vm14, %v3238_v15, %v3245_v47  ;;  %v10670_v18 = vrot.slane %v3249_v32, 7  ;;  %vm12538_vm0 = vcmp.ne.s16.totalorder %v10186_v41, 0  ;;  %v10684_v57 = vpop.f32.mrf.mxu0 }
 0x162   : > { %v10674_v19 = vsel %vm12538_vm0, %v3466_v52, 0  ;;  %v3420_v60 = vld [vmem:[#allocation2 + $0x7c] sm:$0xf]  ;;  %v2805_v33 = vsel %vm9133_vm11, %v2800_v48, %v2804_v6  ;;  %v2091_v50 = vld [vmem:[#allocation2 + $0x60] sm:$0xf]  ;;  %v2441_v31 = vor.u32 %v2439_v28, %v2438_v22  ;;  %v2443_v37 = vrot.slane %v2438_v22, 4 }
 0x163   : > { %3382 = vst [vmem:[#allocation3 + $0x324] sm:$0xf] %v3246_v5  ;;  %v12539_v23 = vshrl.u32 %v10603_v46, 16  ;;  %v3421_v15 = vld [vmem:[#allocation2 + $0x80] sm:$0xf]  ;;  %v3254_v52 = vor.u32 %v3252_v35, %v10670_v18  ;;  %v3612_v47 = vshll.u32 %v3498_v3, 16  ;;  %vm12547_vm15 = vnez %v12371_v24 }
 0x164   : > { %3452 = vst [vmem:[#allocation3 + $0x400] sm:$0xf] %v3420_v60  ;;  %2959 = vst [vmem:[#allocation3 + $0x2fc] sm:$0xf] %v2805_v33  ;;  %v2092_v44 = vld [vmem:[#allocation2 + $0x64] sm:$0xf]  ;;  %v2442_v46 = vsel %vm9192_vm14, %v9681_v29, %v2441_v31  ;;  %v10692_v28 = vsel %vm9192_vm14, %v2443_v37, %v9679_v8  ;;  %v10703_v33 = vpop.f32.mrf.mxu1  ;;  %v10705_v31 = vpop.f32.mrf.mxu0 }
 0x165   : > { %v3608_v51 = vrot.slane %v12539_v23, 4  ;;  %v3616_v32 = vshrl.u32 %v3498_v3, 16  ;;  %v3622_v41 = vshll.u32 %v10674_v19, 16  ;;  %3453 = vst [vmem:[#allocation3 + $0x424] sm:$0xf] %v3421_v15  ;;  %12540 = vst [vmem:[#allocation59_spill] sm:$0xff] %v10692_v28  ;;  %v3255_v5 = vsel %vm9192_vm14, %v3247_v54, %v3254_v52 }
 0x166   : > { %v8822_v48 = vld [vmem:[#allocation3 + $0xec] ss:$36 sps:$4 sm:$0xff]   ;;  %vm10696_vm0 = vcmp.ne.s16.totalorder %v2442_v46, 0  ;;  %vm12316_vm12 = vcmp.ne.s16.totalorder %v10692_v28, 0  ;;  %v3614_v60 = vrot.slane %v3612_v47, 5  ;;  %12543 = vst [vmem:[#allocation60_spill] sm:$0xff] %v10703_v33  ;;  %v10711_v47 = vpop.f32.mrf.mxu1  ;;  %v10713_v33 = vpop.f32.mrf.mxu0 }
 0x167   : > { %v8825_v6 = vld [vmem:[#allocation3 + $0xe8] ss:$36 sps:$4 sm:$0xff]   ;;  %v3609_v22 = vor.u32 %v3608_v51, %v10613_v30  ;;  %6700 = vmatprep.mubr.bf16.mxu0 %v8822_v48  ;;  %v2572_v30 = vsel %vm10696_vm0, %v2091_v50, 0  ;;  %v2573_v37 = vsel %vm12316_vm12, %v2092_v44, 0  ;;  %3383 = vst [vmem:[#allocation3 + $0x348] sm:$0xf] %v3255_v5  ;;  %vm12546_vm12 = vnez %v12374_v49 }
 0x168   : > { %v3618_v51 = vrot.slane %v3616_v32, 4  ;;  %6701 = vmatmul.mubr.bf16.gmra.mxu0 %v8825_v6  ;;  %v2812_v15 = vshll.u32 %v2572_v30, 16  ;;  %v2816_v46 = vshrl.u32 %v2572_v30, 16  ;;  %v2822_v35 = vshll.u32 %v2573_v37, 16  ;;  %v2995_v52 = vld [vmem:[#allocation2 + $0x6c] sm:$0xf]  ;;  %v10720_v63 = vpop.f32.mrf.mxu1  ;;  %v10722_v27 = vpop.f32.mrf.mxu0 }
 0x169   : > { %v3610_v23 = vrot.slane %v3609_v22, 4  ;;  %v2826_v54 = vshrl.u32 %v2573_v37, 16  ;;  %12544 = vst [vmem:[#allocation61_spill] sm:$0xff] %v10711_v47  ;;  %v4344_v48 = vld [vmem:[#allocation2 + $0x44] sm:$0xf]  ;;  %v10717_v44 = vrot.slane %v3622_v41, 5 }
 0x16a   : > { %v3619_v11 = vor.u32 %v3618_v51, %v3614_v60  ;;  %v491_v32 = vadd.s32 200, %v9035_v7  ;;  %v4345_v6 = vld [vmem:[#allocation2 + $0x48] sm:$0xf]  ;;  %4376 = vst [vmem:[#allocation3 + $0x1cc] sm:$0xf] %v4344_v48  ;;  %v2814_v5 = vrot.slane %v2812_v15, 5  ;;  %v10730_v15 = vadd.f32 %v10644_v1, %v10640_v61  ;;  %v10738_v43 = vpop.f32.mrf.mxu1  ;;  %v10740_v41 = vpop.f32.mrf.mxu0 }
 0x16b   : > { %v3615_v50 = vsel %vm9133_vm11, %v3610_v23, %v3614_v60  ;;  %v3422_v22 = vld [vmem:[#allocation2 + $0x84] sm:$0xf]  ;;  %v2818_v30 = vrot.slane %v2816_v46, 4  ;;  %v2824_v37 = vrot.slane %v2822_v35, 5  ;;  %v2828_v47 = vrot.slane %v2826_v54, 4  ;;  %v10725_v60 = vld [vmem:[%s9070_s25 + $0x78] sm:$0xff]  }
 0x16c   : > { %3886 = vst [vmem:[#allocation3 + $0x134] sm:$0xf] %v3615_v50  ;;  %v2996_v13 = vld [vmem:[#allocation2 + $0x70] sm:$0xf]  ;;  %4377 = vst [vmem:[#allocation3 + $0x1f0] sm:$0xf] %v4345_v6  ;;  %v10733_v35 = vadd.f32 %v8214_v58, %v10661_v34  ;;  %v2815_v46 = vsel %vm9133_vm11, %v10666_v2, %v2814_v5 }
 0x16d   : > { %3454 = vst [vmem:[#allocation3 + $0x448] sm:$0xf] %v3422_v22  ;;  %v8817_v23 = vld [vmem:[#allocation3 + $0x2dc] ss:$36 sps:$4 sm:$0xff]   ;;  %v3620_v48 = vrot.slane %v3619_v11, 4  ;;  %v2819_v54 = vor.u32 %v2818_v30, %v2814_v5  ;;  %v677_v50 = vand.u32 15, %v491_v32  ;;  %v2829_v6 = vor.u32 %v2828_v47, %v2824_v37  ;;  %v10755_v30 = vpop.f32.mrf.mxu1 }
 0x16e   : > { %v8821_v51 = vld [vmem:[#allocation3 + $0x2d8] ss:$36 sps:$4 sm:$0xff]   ;;  %12545 = vst [vmem:[#allocation62_spill] sm:$0xff] %v10733_v35  ;;  %v3467_v22 = vld [vmem:[#allocation2 + $0x38] sm:$0xf]  ;;  %v8903_v11 = vld [vmem:[%s12211_s3 + $0x200] sm:$0xff]   ;;  %6595 = vmatprep.mubr.bf16.mxu1 %v8817_v23  ;;  %v10757_v23 = vpop.f32.mrf.mxu0 }
 0x16f   : > { %2960 = vst [vmem:[#allocation3 + $0x320] sm:$0xf] %v2815_v46  ;;  %v3625_v58 = vsel %vm9133_vm11, %v3620_v48, %v10717_v44  ;;  %v3028_v61 = vsel %vm12546_vm12, %v2995_v52, 0  ;;  %v3029_v1 = vsel %vm12547_vm15, %v2996_v13, 0  ;;  %v3256_v34 = vrot.slane %v10670_v18, 4  ;;  %6596 = vmatmul.mubr.bf16.gmra.mxu1 %v8821_v51  ;;  %12548 = vst [vmem:[#allocation63_spill] sm:$0xff] %v10755_v30  ;;  %8611 = vmatprep.subr.bf16.mxu0 %v8903_v11 }
 0x170   : > { %v3468_v2 = vld [vmem:[#allocation2 + $0x3c] sm:$0xf]  ;;  %v2820_v47 = vrot.slane %v2819_v54, 4  ;;  %3887 = vst [vmem:[#allocation3 + $0x158] sm:$0xf] %v3625_v58  ;;  %vm939_vm7 = vcmp.le.s32.totalorder %v677_v50, 14  ;;  %8612 = vmatpush3.bf16.msra.mxu0 %v8903_v11  ;;  %v10770_v58 = vpop.f32.mrf.mxu0 }
 0x171   : > { %v10753_v32 = vrot.slane %v2829_v6, 4  ;;  %v3258_v5 = vshrl.u32 %v3028_v61, 16  ;;  %vm2190_vm3 = vmpackc.low %vm939_vm7, %vm939_vm7  ;;  %v3261_v52 = vshll.u32 %v3028_v61, 16  ;;  %v3267_v48 = vshrl.u32 %v3029_v1, 16  ;;  %v10768_v6 = vpop.f32.mrf.mxu1  ;;  %12551 = vst [vmem:[#allocation65_spill] sm:$0xff] %v10770_v58 }
 0x172   : > { %v3270_v46 = vshll.u32 %v3029_v1, 16  ;;  %v3500_v13 = vsel %vm10275_vm10, %v3467_v22, 0  ;;  %v2825_v18 = vsel %vm9133_vm11, %v2820_v47, %v2824_v37  ;;  %v2222_v51 = vsel %vm2190_vm3, 65537, %v12431_v17  ;;  %12550 = vst [vmem:[#allocation64_spill] sm:$0xff] %v10768_v6  ;;  %v4346_v61 = vld [vmem:[#allocation2 + $0x4c] sm:$0xf]  ;;  %v10778_v49 = vpop.f32.mrf.mxu0 }
 0x173   : > { %v3260_v54 = vrot.slane %v3258_v5, 7  ;;  %vm12549_vm15 = vcmp.ne.s16.totalorder %v10268_v36, 0  ;;  %2961 = vst [vmem:[#allocation3 + $0x344] sm:$0xf] %v2825_v18  ;;  %v2454_v1 = vshrl.u32 %v2222_v51, 16  ;;  %v2457_v30 = vshll.u32 %v2222_v51, 16 }
 0x174   : > { %v10766_v50 = vsel %vm12549_vm15, %v3468_v2, 0  ;;  %v10772_v22 = vrot.slane %v3267_v48, 7  ;;  %v12552_v11 = vshrl.u32 %v10674_v19, 16  ;;  %4378 = vst [vmem:[#allocation3 + $0x214] sm:$0xf] %v4346_v61  ;;  %v3632_v35 = vshll.u32 %v3500_v13, 16  ;;  %v10776_v2 = vpop.f32.mrf.mxu1 }
 0x175   : > { %v3263_v47 = vor.u32 %v3261_v52, %v3260_v54  ;;  %v3265_v5 = vrot.slane %v3260_v54, 4  ;;  %v3636_v24 = vshrl.u32 %v3500_v13, 16  ;;  %v4347_v6 = vld [vmem:[#allocation2 + $0x50] sm:$0xf]  ;;  %v2456_v36 = vrot.slane %v2454_v1, 7 }
 0x176   : > { %v3628_v37 = vrot.slane %v12552_v11, 4  ;;  %v3272_v18 = vor.u32 %v3270_v46, %v10772_v22  ;;  %v3642_v48 = vshll.u32 %v10766_v50, 16  ;;  %4379 = vst [vmem:[#allocation3 + $0x238] sm:$0xf] %v4347_v6  ;;  %v3634_v52 = vrot.slane %v3632_v35, 5  ;;  %v10786_v11 = vpop.f32.mrf.mxu1 }
 0x177   : > { %v3264_v19 = vsel %vm9192_vm14, %v3256_v34, %v3263_v47  ;;  %v3638_v54 = vrot.slane %v3636_v24, 4  ;;  %v2998_v61 = vld [vmem:[#allocation2 + $0x78] sm:$0xf]  ;;  %v8829_v16 = vld [vmem:[#allocation3 + $0x134] ss:$36 sps:$4 sm:$0xff]   ;;  %v2459_v56 = vor.u32 %v2457_v30, %v2456_v36  ;;  %v2461_v46 = vrot.slane %v2456_v36, 4  ;;  %v10794_v34 = vpop.f32.mrf.mxu0 }
 0x178   : > { %v3629_v51 = vor.u32 %v3628_v37, %v10717_v44  ;;  %v8831_v1 = vld [vmem:[#allocation3 + $0x130] ss:$36 sps:$4 sm:$0xff]   ;;  %v3273_v44 = vsel %vm9192_vm14, %v3265_v5, %v3272_v18  ;;  %3384 = vst [vmem:[#allocation3 + $0x36c] sm:$0xf] %v3264_v19  ;;  %v10792_v6 = vadd.f32 %v10684_v57, %v10676_v55  ;;  %v10796_v47 = vrot.slane %v3642_v48, 5  ;;  %6708 = vmatprep.mubr.bf16.mxu0 %v8829_v16 }
 0x179   : > { %v2093_v24 = vld [vmem:[#allocation2 + $0x68] sm:$0xf]  ;;  %3385 = vst [vmem:[#allocation3 + $0x390] sm:$0xf] %v3273_v44  ;;  %v3639_v37 = vor.u32 %v3638_v54, %v3634_v52  ;;  %v493_v13 = vadd.s32 216, %v9035_v7  ;;  %v2460_v30 = vsel %vm9192_vm14, %v9681_v29, %v2459_v56  ;;  %v10805_v57 = vsel %vm9192_vm14, %v2461_v46, %v9679_v8  ;;  %6709 = vmatmul.mubr.bf16.gmra.mxu0 %v8831_v1 }
 0x17a   : > { %v3630_v35 = vrot.slane %v3629_v51, 4  ;;  %v2094_v36 = vld [vmem:[#allocation2 + $0x6c] sm:$0xf]  ;;  %12553 = vst [vmem:[#allocation66_spill] sm:$0xff] %v10805_v57  ;;  %vm12554_vm7 = vnez %v12380_v40  ;;  %v10811_v51 = vpop.f32.mrf.mxu1  ;;  %v8957_v16 = vld [vmem:[%s12209_s1] ss:$0 sm:$0xff]  ;;  %v12558_v48 = vunpack.c.h.bf16 %v10725_v60 }
 0x17b   : > { %v3030_v55 = vsel %vm12554_vm7, %v2997_v20, 0  ;;  %v12555_v5 = vld [vmem:[#allocation14_spill] sm:$0xff]  ;;  %12557 = vst [vmem:[#allocation67_spill] sm:$0xff] %v10811_v51  ;;  %v8826_v19 = vld [vmem:[#allocation3 + $0x324] ss:$36 sps:$4 sm:$0xff]   ;;  %vm10820_vm15 = vcmp.ne.s16.totalorder %v2460_v30, 0 }
 0x17c   : > { %vm12556_vm3 = vnez %v12555_v5  ;;  %v10818_v56 = vmul.f32 %v8957_v16, %v12558_v48  ;;  %v8828_v54 = vld [vmem:[#allocation3 + $0x320] ss:$36 sps:$4 sm:$0xff]   ;;  %v12559_v46 = vmov 0  ;;  %v3635_v20 = vsel %vm9133_vm11, %v3630_v35, %v3634_v52  ;;  %v10829_v16 = vpop.f32.mrf.mxu0  ;;  %v4348_v48 = vld [vmem:[#allocation2 + $0x54] sm:$0xf]  ;;  %6603 = vmatprep.mubr.bf16.mxu1 %v8826_v19 }
 0x17d   : > { %v3031_v18 = vsel %vm12556_vm3, %v2998_v61, 0  ;;  %v12560_v46 = vsel %vm10820_vm15, 4294967295, %v12559_v46  ;;  %vm12324_vm3 = vcmp.ne.s16.totalorder %v10805_v57, 0  ;;  %v2574_v61 = vsel %vm10820_vm15, %v2093_v24, 0  ;;  %3888 = vst [vmem:[#allocation3 + $0x17c] sm:$0xf] %v3635_v20  ;;  %6604 = vmatmul.mubr.bf16.gmra.mxu1 %v8828_v54  ;;  %v10837_v24 = vpop.f32.mrf.mxu1 }
 0x17e   : > { %12561 = vst [vmem:[#allocation68_spill] sm:$0xff] %v12560_v46  ;;  %v3640_v44 = vrot.slane %v3639_v37, 4  ;;  %v691_v60 = vand.u32 15, %v493_v13  ;;  %12562 = vst [vmem:[#allocation69_spill] sm:$0xff] %v10829_v16  ;;  %v2575_v1 = vsel %vm12324_vm3, %v2094_v36, 0  ;;  %v2832_v30 = vshll.u32 %v2574_v61, 16  ;;  %v10840_v45 = vpop.f32.mrf.mxu0 }
 0x17f   : > { %v2836_v51 = vshrl.u32 %v2574_v61, 16  ;;  %v3274_v5 = vrot.slane %v10772_v22, 4  ;;  %v4349_v52 = vld [vmem:[#allocation2 + $0x58] sm:$0xf]  ;;  %4380 = vst [vmem:[#allocation3 + $0x25c] sm:$0xf] %v4348_v48 }
 0x180   : > { %v2842_v35 = vshll.u32 %v2575_v1, 16  ;;  %v2846_v40 = vshrl.u32 %v2575_v1, 16  ;;  %v3645_v13 = vsel %vm9133_vm11, %v3640_v44, %v10796_v47  ;;  %vm941_vm7 = vcmp.le.s32.totalorder %v691_v60, 14  ;;  %12563 = vst [vmem:[#allocation70_spill] sm:$0xff] %v10837_v24  ;;  %4381 = vst [vmem:[#allocation3 + $0x280] sm:$0xf] %v4349_v52  ;;  %v10847_v24 = vpop.f32.mrf.mxu1 }
 0x181   : > { %v2834_v37 = vrot.slane %v2832_v30, 5  ;;  %v2838_v19 = vrot.slane %v2836_v51, 4  ;;  %3889 = vst [vmem:[#allocation3 + $0x1a0] sm:$0xf] %v3645_v13  ;;  %vm2192_vm3 = vmpackc.low %vm941_vm7, %vm941_vm7  ;;  %v3276_v36 = vshrl.u32 %v3030_v55, 16  ;;  %v3279_v20 = vshll.u32 %v3030_v55, 16 }
 0x182   : > { %v3469_v22 = vld [vmem:[#allocation2 + $0x40] sm:$0xf]  ;;  %v2844_v61 = vrot.slane %v2842_v35, 5  ;;  %v2224_v54 = vsel %vm2192_vm3, 65537, %v12431_v17  ;;  %v2848_v48 = vrot.slane %v2846_v40, 4  ;;  %v3285_v1 = vshrl.u32 %v3031_v18, 16 }
 0x183   : > { %v3470_v16 = vld [vmem:[#allocation2 + $0x44] sm:$0xf]  ;;  %12564 = vst [vmem:[#allocation71_spill] sm:$0xff] %v10840_v45  ;;  %v2835_v44 = vsel %vm9133_vm11, %v10753_v32, %v2834_v37  ;;  %v2839_v60 = vor.u32 %v2838_v19, %v2834_v37  ;;  %v2472_v30 = vshrl.u32 %v2224_v54, 16  ;;  %v2475_v51 = vshll.u32 %v2224_v54, 16  ;;  %v10858_v54 = vpop.f32.mrf.mxu0 }
 0x184   : > { %2962 = vst [vmem:[#allocation3 + $0x368] sm:$0xf] %v2835_v44  ;;  %v2849_v52 = vor.u32 %v2848_v48, %v2844_v61  ;;  %v3278_v13 = vrot.slane %v3276_v36, 7  ;;  %v10845_v55 = vrot.slane %v3285_v1, 7  ;;  %v3288_v35 = vshll.u32 %v3031_v18, 16  ;;  %v12681_v46 = vld [vmem:[#allocation29_spill] sm:$0xff] }
 0x185   : > { %v2840_v40 = vrot.slane %v2839_v60, 4  ;;  %v2474_v14 = vrot.slane %v2472_v30, 7  ;;  %vm12565_vm7 = vnez %v12507_v39  ;;  %vm12566_vm3 = vcmp.ne.s16.totalorder %v10348_v26, 0  ;;  %v2095_v48 = vld [vmem:[#allocation2 + $0x70] sm:$0xf] }
 0x186   : > { %v3502_v45 = vsel %vm12565_vm7, %v3469_v22, 0  ;;  %v10853_v58 = vsel %vm12566_vm3, %v3470_v16, 0  ;;  %v10855_v32 = vrot.slane %v2849_v52, 4  ;;  %v3281_v37 = vor.u32 %v3279_v20, %v3278_v13  ;;  %v2096_v1 = vld [vmem:[#allocation2 + $0x74] sm:$0xf] }
 0x187   : > { %v3283_v19 = vrot.slane %v3278_v13, 4  ;;  %v3290_v36 = vor.u32 %v3288_v35, %v10845_v55  ;;  %v2845_v18 = vsel %vm9133_vm11, %v2840_v40, %v2844_v61  ;;  %v2477_v44 = vor.u32 %v2475_v51, %v2474_v14  ;;  %v8840_v52 = vld [vmem:[#allocation3 + $0x178] ss:$36 sps:$4 sm:$0xff]   ;;  %v10872_v40 = vpop.f32.mrf.mxu1 }
 0x188   : > { %v2479_v60 = vrot.slane %v2474_v14, 4  ;;  %v12567_v22 = vshrl.u32 %v10766_v50, 16  ;;  %2963 = vst [vmem:[#allocation3 + $0x38c] sm:$0xf] %v2845_v18  ;;  %v8837_v16 = vld [vmem:[#allocation3 + $0x17c] ss:$36 sps:$4 sm:$0xff]   ;;  %v3282_v20 = vsel %vm9192_vm14, %v3274_v5, %v3281_v37  ;;  %v10870_v61 = vadd.f32 %v10738_v43, %v10720_v63  ;;  %v10889_v18 = vpop.f32.mrf.mxu0 }
 0x189   : > { %v3291_v13 = vsel %vm9192_vm14, %v3283_v19, %v3290_v36  ;;  %v3652_v35 = vshll.u32 %v3502_v45, 16  ;;  %v2478_v14 = vsel %vm9192_vm14, %v9681_v29, %v2477_v44  ;;  %3386 = vst [vmem:[#allocation3 + $0x3b4] sm:$0xf] %v3282_v20  ;;  %v3656_v51 = vshrl.u32 %v3502_v45, 16  ;;  %v4350_v37 = vld [vmem:[#allocation2 + $0x5c] sm:$0xf]  ;;  %6716 = vmatprep.mubr.bf16.mxu0 %v8837_v16 }
 0x18a   : > { %v3648_v30 = vrot.slane %v12567_v22, 4  ;;  %12568 = vst [vmem:[#allocation72_spill] sm:$0xff] %v10870_v61  ;;  %v10880_v50 = vsel %vm9192_vm14, %v2479_v60, %v9679_v8  ;;  %3387 = vst [vmem:[#allocation3 + $0x3d8] sm:$0xf] %v3291_v13  ;;  %v4351_v19 = vld [vmem:[#allocation2 + $0x60] sm:$0xf]  ;;  %6717 = vmatmul.mubr.bf16.gmra.mxu0 %v8840_v52  ;;  %v10895_v13 = vpop.f32.mrf.mxu1 }
 0x18b   : > { %12569 = vst [vmem:[#allocation73_spill] sm:$0xff] %v10880_v50  ;;  %vm10883_vm3 = vcmp.ne.s16.totalorder %v2478_v14, 0  ;;  %v12570_v63 = vmov 0  ;;  %vm12328_vm12 = vcmp.ne.s16.totalorder %v10880_v50, 0  ;;  %v3654_v43 = vrot.slane %v3652_v35, 5  ;;  %12573 = vst [vmem:[#allocation75_spill] sm:$0xff] %v10895_v13 }
 0x18c   : > { %v3649_v5 = vor.u32 %v3648_v30, %v10796_v47  ;;  %v12571_v63 = vsel %vm10883_vm3, 4294967295, %v12570_v63  ;;  %v3662_v36 = vshll.u32 %v10853_v58, 16  ;;  %4382 = vst [vmem:[#allocation3 + $0x2a4] sm:$0xf] %v4350_v37  ;;  %4383 = vst [vmem:[#allocation3 + $0x2c8] sm:$0xf] %v4351_v19 }
 0x18d   : > { %12572 = vst [vmem:[#allocation74_spill] sm:$0xff] %v12571_v63  ;;  %v2576_v45 = vsel %vm10883_vm3, %v2095_v48, 0  ;;  %v2577_v47 = vsel %vm12328_vm12, %v2096_v1, 0  ;;  %v3658_v60 = vrot.slane %v3656_v51, 4  ;;  %v3666_v52 = vshrl.u32 %v10853_v58, 16 }
 0x18e   : > { %v3650_v44 = vrot.slane %v3649_v5, 4  ;;  %v2852_v22 = vshll.u32 %v2576_v45, 16  ;;  %v2856_v30 = vshrl.u32 %v2576_v45, 16  ;;  %v2862_v16 = vshll.u32 %v2577_v47, 16  ;;  %v2999_v48 = vld [vmem:[#allocation2 + $0x7c] sm:$0xf]  ;;  %v10903_v45 = vpop.f32.mrf.mxu0 }
 0x18f   : > { %v2866_v20 = vshrl.u32 %v2577_v47, 16  ;;  %v3659_v14 = vor.u32 %v3658_v60, %v3654_v43  ;;  %v10899_v37 = vrot.slane %v3662_v36, 5  ;;  %v495_v5 = vadd.s32 232, %v9035_v7  ;;  %v3000_v51 = vld [vmem:[#allocation2 + $0x80] sm:$0xf]  ;;  %12574 = vst [vmem:[#allocation76_spill] sm:$0xff] %v10903_v45 }
 0x190   : > { %v3655_v35 = vsel %vm9133_vm11, %v3650_v44, %v3654_v43  ;;  %v2854_v19 = vrot.slane %v2852_v22, 5  ;;  %v2858_v61 = vrot.slane %v2856_v30, 4  ;;  %v2864_v1 = vrot.slane %v2862_v16, 5  ;;  %v8832_v47 = vld [vmem:[#allocation3 + $0x36c] ss:$36 sps:$4 sm:$0xff]  }
 0x191   : > { %3890 = vst [vmem:[#allocation3 + $0x1c4] sm:$0xf] %v3655_v35  ;;  %v8836_v13 = vld [vmem:[#allocation3 + $0x368] ss:$36 sps:$4 sm:$0xff]   ;;  %v3660_v26 = vrot.slane %v3659_v14, 4  ;;  %v10913_v58 = vadd.f32 %v10740_v41, %v10722_v27  ;;  %v705_v22 = vand.u32 15, %v495_v5  ;;  %v10918_v35 = vpop.f32.mrf.mxu1  ;;  %6611 = vmatprep.mubr.bf16.mxu1 %v8832_v47  ;;  %v10928_v47 = vpop.f32.mrf.mxu0 }
 0x192   : > { %v8958_v43 = vld [vmem:[%s12210_s2] ss:$0 sm:$0xff]  ;;  %v2855_v44 = vsel %vm9133_vm11, %v10855_v32, %v2854_v19  ;;  %v2859_v60 = vor.u32 %v2858_v61, %v2854_v19  ;;  %v2868_v30 = vrot.slane %v2866_v20, 4  ;;  %v3471_v16 = vld [vmem:[#allocation2 + $0x48] sm:$0xf]  ;;  %12576 = vst [vmem:[#allocation78_spill] sm:$0xff] %v10918_v35  ;;  %6612 = vmatmul.mubr.bf16.gmra.mxu1 %v8836_v13 }
 0x193   : > { %v10909_v36 = vadd.f32 %v8958_v43, %v10818_v56  ;;  %12575 = vst [vmem:[#allocation77_spill] sm:$0xff] %v10913_v58  ;;  %2964 = vst [vmem:[#allocation3 + $0x3b0] sm:$0xf] %v2855_v44  ;;  %v3665_v56 = vsel %vm9133_vm11, %v3660_v26, %v10899_v37  ;;  %v12577_v14 = vld [vmem:[#allocation17_spill] sm:$0xff]  ;;  %v12579_v41 = vld [vmem:[#allocation18_spill] sm:$0xff]  ;;  %v3292_v32 = vrot.slane %v10845_v55, 4 }
 0x194   : > { %vm12578_vm12 = vnez %v12577_v14  ;;  %vm12580_vm7 = vnez %v12579_v41  ;;  %v2860_v61 = vrot.slane %v2859_v60, 4  ;;  %3891 = vst [vmem:[#allocation3 + $0x1e8] sm:$0xf] %v3665_v56  ;;  %vm943_vm10 = vcmp.le.s32.totalorder %v705_v22, 14  ;;  %v3472_v5 = vld [vmem:[#allocation2 + $0x4c] sm:$0xf]  ;;  %v10937_v22 = vpop.f32.mrf.mxu1 }
 0x195   : > { %v3032_v27 = vsel %vm12578_vm12, %v2999_v48, 0  ;;  %v3033_v43 = vsel %vm12580_vm7, %v3000_v51, 0  ;;  %v2869_v20 = vor.u32 %v2868_v30, %v2864_v1  ;;  %12581 = vst [vmem:[#allocation79_spill] sm:$0xff] %v10928_v47  ;;  %vm2194_vm8 = vmpackc.low %vm943_vm10, %vm943_vm10  ;;  %v3504_v48 = vsel %vm10422_vm1, %v3471_v16, 0  ;;  %v8846_v47 = vld [vmem:[#allocation3 + $0x1c0] ss:$36 sps:$4 sm:$0xff]  }
 0x196   : > { %v3294_v19 = vshrl.u32 %v3032_v27, 16  ;;  %v3297_v44 = vshll.u32 %v3032_v27, 16  ;;  %v3303_v26 = vshrl.u32 %v3033_v43, 16  ;;  %v3306_v35 = vshll.u32 %v3033_v43, 16  ;;  %v4363_v63 = vld [vmem:[#allocation2 + $0x90] sm:$0xf] }
 0x197   : > { %v2865_v51 = vsel %vm9133_vm11, %v2860_v61, %v2864_v1  ;;  %v2226_v55 = vsel %vm2194_vm8, 65537, %v12431_v17  ;;  %v10935_v13 = vrot.slane %v2869_v20, 4  ;;  %vm12582_vm10 = vcmp.ne.s16.totalorder %v10418_v0, 0  ;;  %v10945_v61 = vpop.f32.mrf.mxu0  ;;  %v4352_v20 = vld [vmem:[#allocation2 + $0x64] sm:$0xf]  ;;  %v10953_v0 = vpop.f32.mrf.mxu1 }
 0x198   : > { %v3296_v60 = vrot.slane %v3294_v19, 7  ;;  %2965 = vst [vmem:[#allocation3 + $0x3d4] sm:$0xf] %v2865_v51  ;;  %v2490_v30 = vshrl.u32 %v2226_v55, 16  ;;  %v2493_v56 = vshll.u32 %v2226_v55, 16  ;;  %v10939_v41 = vrot.slane %v3303_v26, 7 }
 0x199   : > { %v10943_v27 = vsel %vm12582_vm10, %v3472_v5, 0  ;;  %v3668_v14 = vrot.slane %v3666_v52, 4  ;;  %v3672_v1 = vshll.u32 %v3504_v48, 16  ;;  %v3676_v39 = vshrl.u32 %v3504_v48, 16  ;;  %v4353_v55 = vld [vmem:[#allocation2 + $0x68] sm:$0xf] }
 0x19a   : > { %v3299_v16 = vor.u32 %v3297_v44, %v3296_v60  ;;  %v3301_v43 = vrot.slane %v3296_v60, 4  ;;  %v2492_v62 = vrot.slane %v2490_v30, 7  ;;  %v3308_v19 = vor.u32 %v3306_v35, %v10939_v41  ;;  %4384 = vst [vmem:[#allocation3 + $0x2ec] sm:$0xf] %v4352_v20  ;;  %v3001_v60 = vld [vmem:[#allocation2 + $0x84] sm:$0xf] }
 0x19b   : > { %v3682_v51 = vshll.u32 %v10943_v27, 16  ;;  %v3669_v5 = vor.u32 %v3668_v14, %v10899_v37  ;;  %v3674_v44 = vrot.slane %v3672_v1, 5  ;;  %4385 = vst [vmem:[#allocation3 + $0x310] sm:$0xf] %v4353_v55  ;;  %v8844_v30 = vld [vmem:[#allocation3 + $0x1c4] ss:$36 sps:$4 sm:$0xff]   ;;  %v10964_v55 = vpop.f32.mrf.mxu0 }
 0x19c   : > { %v3300_v26 = vsel %vm9192_vm14, %v3292_v32, %v3299_v16  ;;  %v2495_v35 = vor.u32 %v2493_v56, %v2492_v62  ;;  %v2497_v48 = vrot.slane %v2492_v62, 4  ;;  %v3309_v45 = vsel %vm9192_vm14, %v3301_v43, %v3308_v19  ;;  %v2097_v37 = vld [vmem:[#allocation2 + $0x78] sm:$0xf]  ;;  %6724 = vmatprep.mubr.bf16.mxu0 %v8844_v30  ;;  %v2098_v62 = vld [vmem:[#allocation2 + $0x7c] sm:$0xf]  ;;  %v10983_v30 = vpop.f32.mrf.mxu1 }
 0x19d   : > { %3388 = vst [vmem:[#allocation3 + $0x3fc] sm:$0xf] %v3300_v26  ;;  %v10959_v32 = vadd.f32 %v10786_v11, %v10776_v2  ;;  %3389 = vst [vmem:[#allocation3 + $0x420] sm:$0xf] %v3309_v45  ;;  %v3670_v14 = vrot.slane %v3669_v5, 4  ;;  %v3678_v16 = vrot.slane %v3676_v39, 4  ;;  %6725 = vmatmul.mubr.bf16.gmra.mxu0 %v8846_v47 }
 0x19e   : > { %v10961_v1 = vrot.slane %v3682_v51, 5  ;;  %v448_v20 = vmax.f32 %v10909_v36, 0.0  ;;  %v2496_v56 = vsel %vm9192_vm14, %v9681_v29, %v2495_v35  ;;  %v10972_v2 = vsel %vm9192_vm14, %v2497_v48, %v9679_v8  ;;  %v12585_v39 = vld [vmem:[#allocation21_spill] sm:$0xff]  ;;  %v8841_v43 = vld [vmem:[#allocation3 + $0x3b4] ss:$36 sps:$4 sm:$0xff]  }
 0x19f   : > { %12583 = vst [vmem:[#allocation80_spill] sm:$0xff] %v10959_v32  ;;  %12584 = vst [vmem:[#allocation81_spill] sm:$0xff] %v10972_v2  ;;  %v497_v11 = vadd.s32 248, %v9035_v7  ;;  %vm12586_vm8 = vnez %v12585_v39  ;;  %v8843_v36 = vld [vmem:[#allocation3 + $0x3b0] ss:$36 sps:$4 sm:$0xff]   ;;  %vm10977_vm10 = vcmp.ne.s16.totalorder %v2496_v56, 0  ;;  %v3675_v51 = vsel %vm9133_vm11, %v3670_v14, %v3674_v44  ;;  %6619 = vmatprep.mubr.bf16.mxu1 %v8841_v43  ;;  %v10996_v43 = vpop.f32.mrf.mxu1 }
 0x1a0   : > { %v3034_v45 = vsel %vm12586_vm8, %v3001_v60, 0  ;;  %v12587_v19 = vmov 0  ;;  %v3679_v26 = vor.u32 %v3678_v16, %v3674_v44  ;;  %v7828_v5 = vpack.c.bf16 %v448_v20, %v448_v20  ;;  %3892 = vst [vmem:[#allocation3 + $0x20c] sm:$0xf] %v3675_v51  ;;  %v10991_v44 = vpop.f32.mrf.mxu0  ;;  %6620 = vmatmul.mubr.bf16.gmra.mxu1 %v8843_v36  ;;  %4395 = vst [vmem:[#allocation3 + $0x478] sm:$0xf] %v4363_v63 }
 0x1a1   : > { %v12588_v19 = vsel %vm10977_vm10, 4294967295, %v12587_v19  ;;  %vm12336_vm7 = vcmp.ne.s16.totalorder %v10972_v2, 0  ;;  %v2578_v7 = vsel %vm10977_vm10, %v2097_v37, 0  ;;  %v719_v60 = vand.u32 15, %v497_v11  ;;  %12590 = vst [vmem:[#allocation83_spill] sm:$0xff] %v10991_v44 }
 0x1a2   : > { %12589 = vst [vmem:[#allocation82_spill] sm:$0xff] %v12588_v19  ;;  %v3310_v47 = vrot.slane %v10939_v41, 4  ;;  %v2579_v35 = vsel %vm12336_vm7, %v2098_v62, 0  ;;  %v2872_v48 = vshll.u32 %v2578_v7, 16  ;;  %v2876_v56 = vshrl.u32 %v2578_v7, 16  ;;  %v11004_v32 = vpop.f32.mrf.mxu0 }
 0x1a3   : > { %v3680_v14 = vrot.slane %v3679_v26, 4  ;;  %1095 = vst [vmem:[#allocation2 + $0x88] sm:$0xf] %v7828_v5  ;;  %v2882_v16 = vshll.u32 %v2579_v35, 16  ;;  %v2886_v20 = vshrl.u32 %v2579_v35, 16  ;;  %vm945_vm8 = vcmp.le.s32.totalorder %v719_v60, 14 }
 0x1a4   : > { %v3312_v52 = vshrl.u32 %v3034_v45, 16  ;;  %v2874_v37 = vrot.slane %v2872_v48, 5  ;;  %v2878_v51 = vrot.slane %v2876_v56, 4  ;;  %vm2196_vm12 = vmpackc.low %vm945_vm8, %vm945_vm8  ;;  %v3315_v11 = vshll.u32 %v3034_v45, 16  ;;  %v3473_v62 = vld [vmem:[#allocation2 + $0x50] sm:$0xf] }
 0x1a5   : > { %v3685_v41 = vsel %vm9133_vm11, %v3680_v14, %v10961_v1  ;;  %v2884_v26 = vrot.slane %v2882_v16, 5  ;;  %v2228_v5 = vsel %vm2196_vm12, 65537, %v12431_v17  ;;  %v2888_v36 = vrot.slane %v2886_v20, 4  ;;  %v3474_v60 = vld [vmem:[#allocation2 + $0x54] sm:$0xf]  ;;  %12591 = vst [vmem:[#allocation84_spill] sm:$0xff] %v11004_v32 }
 0x1a6   : > { %3893 = vst [vmem:[#allocation3 + $0x230] sm:$0xf] %v3685_v41  ;;  %v10999_v7 = vrot.slane %v3312_v52, 7  ;;  %v2875_v35 = vsel %vm9133_vm11, %v10935_v13, %v2874_v37  ;;  %v2879_v48 = vor.u32 %v2878_v51, %v2874_v37  ;;  %v2508_v56 = vshrl.u32 %v2228_v5, 16  ;;  %v4354_v52 = vld [vmem:[#allocation2 + $0x6c] sm:$0xf] }
 0x1a7   : > { %v2511_v14 = vshll.u32 %v2228_v5, 16  ;;  %2966 = vst [vmem:[#allocation3 + $0x3f8] sm:$0xf] %v2875_v35  ;;  %v2889_v45 = vor.u32 %v2888_v36, %v2884_v26  ;;  %v3506_v17 = vsel %vm10497_vm13, %v3473_v62, 0  ;;  %v4355_v20 = vld [vmem:[#allocation2 + $0x70] sm:$0xf]  ;;  %v11016_v5 = vpop.f32.mrf.mxu1 }
 0x1a8   : > { %v3317_v16 = vor.u32 %v3315_v11, %v10999_v7  ;;  %v2880_v39 = vrot.slane %v2879_v48, 4  ;;  %v2510_v44 = vrot.slane %v2508_v56, 7  ;;  %vm12592_vm12 = vcmp.ne.s16.totalorder %v10494_v59, 0  ;;  %4386 = vst [vmem:[#allocation3 + $0x334] sm:$0xf] %v4354_v52 }
 0x1a9   : > { %v11012_v13 = vsel %vm12592_vm12, %v3474_v60, 0  ;;  %v12593_v37 = vshrl.u32 %v10943_v27, 16  ;;  %4387 = vst [vmem:[#allocation3 + $0x358] sm:$0xf] %v4355_v20  ;;  %v11018_v11 = vrot.slane %v2889_v45, 4  ;;  %v3692_v35 = vshll.u32 %v3506_v17, 16  ;;  %v11026_v20 = vpop.f32.mrf.mxu0 }
 0x1aa   : > { %v3002_v36 = vld [vmem:[#allocation2 + $0x88] sm:$0xf]  ;;  %v3318_v62 = vsel %vm9192_vm14, %v3310_v47, %v3317_v16  ;;  %v3696_v48 = vshrl.u32 %v3506_v17, 16  ;;  %v2885_v56 = vsel %vm9133_vm11, %v2880_v39, %v2884_v26  ;;  %v2100_v60 = vld [vmem:[#allocation2 + $0x84] sm:$0x1]  ;;  %v2513_v41 = vor.u32 %v2511_v14, %v2510_v44 }
 0x1ab   : > { %v3688_v51 = vrot.slane %v12593_v37, 4  ;;  %v2515_v59 = vrot.slane %v2510_v44, 4  ;;  %v12594_v27 = vld [vmem:[#allocation5_spill] sm:$0xff]  ;;  %3390 = vst [vmem:[#allocation3 + $0x444] sm:$0xf] %v3318_v62  ;;  %v3694_v16 = vrot.slane %v3692_v35, 5  ;;  %v11038_v14 = vadd.f32 %v10794_v34, %v10778_v49  ;;  %v11051_v34 = vpop.f32.mrf.mxu0 }
 0x1ac   : > { %vm12595_vm8 = vcmp.ne.s16.totalorder %v12594_v27, 0  ;;  %v3423_v52 = vld [vmem:[#allocation2 + $0x88] sm:$0xf]  ;;  %2967 = vst [vmem:[#allocation3 + $0x41c] sm:$0xf] %v2885_v56  ;;  %v2514_v44 = vsel %vm9192_vm14, %v9681_v29, %v2513_v41  ;;  %v12596_v26 = vmov 0 }
 0x1ad   : > { %v3035_v37 = vsel %vm12595_vm8, %v3002_v36, 0  ;;  %v2099_v45 = vld [vmem:[#allocation2 + $0x80] sm:$0xf]  ;;  %v3689_v47 = vor.u32 %v3688_v51, %v10961_v1  ;;  %3455 = vst [vmem:[#allocation3 + $0x46c] sm:$0xf] %v3423_v52  ;;  %vm11032_vm12 = vcmp.ne.s16.totalorder %v2515_v59, 0  ;;  %v11040_v36 = vpop.f32.mrf.mxu1 }
 0x1ae   : > { %v3321_v25 = vshrl.u32 %v3035_v37, 16  ;;  %v3324_v32 = vshll.u32 %v3035_v37, 16  ;;  %v8852_v17 = vld [vmem:[#allocation3 + $0x20c] ss:$36 sps:$4 sm:$0xff]   ;;  %v12597_v26 = vsel %vm11032_vm12, 4294967295, %v12596_v26  ;;  %12599 = vst [vmem:[#allocation86_spill] sm:$0xff] %v11038_v14 }
 0x1af   : > { %v8855_v39 = vld [vmem:[#allocation3 + $0x208] ss:$36 sps:$4 sm:$0xff]   ;;  %12598 = vst [vmem:[#allocation85_spill] sm:$0xff] %v12597_v26  ;;  %vm11042_vm8 = vcmp.ne.s16.totalorder %v2514_v44, 0  ;;  %v12600_v1 = vmov 0  ;;  %v2581_v51 = vsel %vm11032_vm12, %v2100_v60, 0  ;;  %6732 = vmatprep.mubr.bf16.mxu0 %v8852_v17 }
 0x1b0   : > { %v12601_v1 = vsel %vm11042_vm8, 4294967295, %v12600_v1  ;;  %v3323_v62 = vrot.slane %v3321_v25, 7  ;;  %v3690_v35 = vrot.slane %v3689_v47, 4  ;;  %v3910_v29 = vld [vmem:[#allocation2 + $0x10] sm:$0x8]  ;;  %v2580_v59 = vsel %vm11042_vm8, %v2099_v45, 0  ;;  %6733 = vmatmul.mubr.bf16.gmra.mxu0 %v8855_v39 }
 0x1b1   : > { %12602 = vst [vmem:[#allocation87_spill] sm:$0xff] %v12601_v1  ;;  %v2902_v41 = vshll.u32 %v2581_v51, 16  ;;  %v3698_v56 = vrot.slane %v3696_v48, 4  ;;  %v3702_v49 = vshll.u32 %v11012_v13, 16  ;;  %v2892_v37 = vshll.u32 %v2580_v59, 16  ;;  %v11058_v51 = vpop.f32.mrf.mxu1  ;;  %v12676_v26 = vld [vmem:[#allocation79_spill] sm:$0xff] }
 0x1b2   : > { %v2896_v52 = vshrl.u32 %v2580_v59, 16  ;;  %v3326_v44 = vor.u32 %v3324_v32, %v3323_v62  ;;  %v3695_v60 = vsel %vm9133_vm11, %v3690_v35, %v3694_v16  ;;  %v3911_v25 = vld [vmem:[#allocation2 + $0x14] sm:$0xf]  ;;  %v3706_v45 = vshrl.u32 %v11012_v13, 16  ;;  %v3912_v48 = vld [vmem:[#allocation2 + $0x18] sm:$0xf] }
 0x1b3   : > { %v2904_v47 = vrot.slane %v2902_v41, 5  ;;  %v3699_v27 = vor.u32 %v3698_v56, %v3694_v16  ;;  %v11055_v17 = vrot.slane %v3702_v49, 5  ;;  %3894 = vst [vmem:[#allocation3 + $0x254] sm:$0xf] %v3695_v60  ;;  %v2894_v14 = vrot.slane %v2892_v37, 5  ;;  %v12604_v62 = vld [vmem:[#allocation4_spill] sm:$0xff] }
 0x1b4   : > { %v2898_v58 = vrot.slane %v2896_v52, 4  ;;  %v12603_v39 = vrot.slane %v10999_v7, 4  ;;  %vm12605_vm7 = vcmp.ne.s16.totalorder %v12604_v62, 0  ;;  %v3475_v59 = vld [vmem:[#allocation2 + $0x58] sm:$0xf]  ;;  %v12606_v13 = vld [vmem:[#allocation30_spill] sm:$0xff]  ;;  %v11072_v37 = vadd.f32 %v10872_v40, %v10847_v24  ;;  %v11074_v7 = vpop.f32.mrf.mxu0 }
 0x1b5   : > { %v3943_v35 = vsel %vm12605_vm7, %v3910_v29, 0  ;;  %v8847_v16 = vld [vmem:[#allocation3 + $0x3fc] ss:$36 sps:$4 sm:$0xff]   ;;  %v3700_v56 = vrot.slane %v3699_v27, 4  ;;  %12609 = vst [vmem:[#allocation30_spill] sm:$0xff] %v11074_v7  ;;  %v2895_v29 = vsel %vm9133_vm11, %v11018_v11, %v2894_v14  ;;  %v11086_v7 = vpop.f32.mrf.mxu1 }
 0x1b6   : > { %v3327_v32 = vsel %vm9192_vm14, %v12603_v39, %v3326_v44  ;;  %v8851_v41 = vld [vmem:[#allocation3 + $0x3f8] ss:$36 sps:$4 sm:$0xff]   ;;  %12608 = vst [vmem:[#allocation4_spill] sm:$0xff] %v11072_v37  ;;  %v2899_v52 = vor.u32 %v2898_v58, %v2894_v14  ;;  %v12610_v44 = vld [vmem:[#allocation6_spill] sm:$0xff]  ;;  %v3476_v62 = vld [vmem:[#allocation2 + $0x5c] sm:$0xf]  ;;  %6627 = vmatprep.mubr.bf16.mxu1 %v8847_v16 }
 0x1b7   : > { %3391 = vst [vmem:[#allocation3 + $0x468] sm:$0xf] %v3327_v32  ;;  %v12607_v49 = vld [vmem:[#allocation31_spill] sm:$0xff]  ;;  %vm12611_vm7 = vnez %v12610_v44  ;;  %2968 = vst [vmem:[#allocation3 + $0x440] sm:$0xf] %v2895_v29  ;;  %v3705_v24 = vsel %vm9133_vm11, %v3700_v56, %v11055_v17  ;;  %v3977_v40 = vshrl.u32 %v3943_v35, 16  ;;  %6628 = vmatmul.mubr.bf16.gmra.mxu1 %v8851_v41  ;;  %v11092_v44 = vpop.f32.mrf.mxu0 }
 0x1b8   : > { %v4505_v60 = vsel %vm9133_vm11, %v12607_v49, %v12606_v13  ;;  %v3944_v39 = vsel %vm12611_vm7, %v3911_v25, 0  ;;  %v12612_v27 = vld [vmem:[#allocation7_spill] sm:$0xff]  ;;  %v2900_v11 = vrot.slane %v2899_v52, 4  ;;  %3895 = vst [vmem:[#allocation3 + $0x278] sm:$0xf] %v3705_v24  ;;  %v3708_v56 = vrot.slane %v3706_v45, 4 }
 0x1b9   : > { %vm12613_vm13 = vnez %v12612_v27  ;;  %4821 = vst [vmem:[#allocation3 + $0x8c] sm:$0xf] %v4505_v60  ;;  %v3982_v49 = vshrl.u32 %v3944_v39, 16  ;;  %v3985_v37 = vshll.u32 %v3944_v39, 16  ;;  %v4356_v58 = vld [vmem:[#allocation2 + $0x74] sm:$0xf] }
 0x1ba   : > { %v3945_v32 = vsel %vm12613_vm13, %v3912_v48, 0  ;;  %v3508_v48 = vsel %vm10562_vm4, %v3475_v59, 0  ;;  %v4357_v16 = vld [vmem:[#allocation2 + $0x78] sm:$0xf]  ;;  %4388 = vst [vmem:[#allocation3 + $0x37c] sm:$0xf] %v4356_v58  ;;  %v2905_v41 = vsel %vm9133_vm11, %v2900_v11, %v2904_v47 }
 0x1bb   : > { %v3991_v14 = vshrl.u32 %v3945_v32, 16  ;;  %v3994_v25 = vshll.u32 %v3945_v32, 16  ;;  %v7546_v60 = vrot.slane %v3977_v40, 11  ;;  %v3984_v29 = vrot.slane %v3982_v49, 7  ;;  %12615 = vst [vmem:[#allocation31_spill] sm:$0xff] %v11092_v44 }
 0x1bc   : > { %vm12614_vm13 = vcmp.ne.s16.totalorder %v10555_v9, 0  ;;  %4389 = vst [vmem:[#allocation3 + $0x3a0] sm:$0xf] %v4357_v16  ;;  %v3712_v39 = vshll.u32 %v3508_v48, 16  ;;  %v3716_v27 = vshrl.u32 %v3508_v48, 16  ;;  %v3709_v40 = vor.u32 %v3708_v56, %v11055_v17 }
 0x1bd   : > { %v3509_v35 = vsel %vm12614_vm13, %v3476_v62, 0  ;;  %v11096_v52 = vrot.slane %v3991_v14, 7  ;;  %v3913_v32 = vld [vmem:[#allocation2 + $0x1c] sm:$0xf]  ;;  %2969 = vst [vmem:[#allocation3 + $0x464] sm:$0xf] %v2905_v41  ;;  %v3987_v59 = vor.u32 %v3985_v37, %v3984_v29  ;;  %v11099_v62 = vpop.f32.mrf.mxu1 }
 0x1be   : > { %v3989_v24 = vrot.slane %v3984_v29, 4  ;;  %v3722_v49 = vshll.u32 %v3509_v35, 16  ;;  %v3914_v58 = vld [vmem:[#allocation2 + $0x20] sm:$0xf]  ;;  %v3714_v16 = vrot.slane %v3712_v39, 5  ;;  %v3718_v9 = vrot.slane %v3716_v27, 4  ;;  %v11106_v29 = vpop.f32.mrf.mxu0 }
 0x1bf   : > { %v3996_v45 = vor.u32 %v3994_v25, %v11096_v52  ;;  %v3726_v12 = vshrl.u32 %v3509_v35, 16  ;;  %v3477_v47 = vld [vmem:[#allocation2 + $0x60] sm:$0xf]  ;;  %v3988_v11 = vsel %vm9192_vm14, %v7546_v60, %v3987_v59  ;;  %v3710_v14 = vrot.slane %v3709_v40, 4  ;;  %v12616_v41 = vld [vmem:[#allocation11_spill] sm:$0xff]  ;;  %12618 = vst [vmem:[#allocation6_spill] sm:$0xff] %v11106_v29 }
 0x1c0   : > { %v3724_v48 = vrot.slane %v3722_v49, 5  ;;  %vm12617_vm7 = vnez %v12616_v41  ;;  %4300 = vst [vmem:[#allocation3 + $0x18] sm:$0xf] %v3988_v11  ;;  %v3719_v56 = vor.u32 %v3718_v9, %v3714_v16  ;;  %v12619_v25 = vld [vmem:[#allocation13_spill] sm:$0xff]  ;;  %v3998_v35 = vrot.slane %v11096_v52, 4 }
 0x1c1   : > { %v3946_v37 = vsel %vm12617_vm7, %v3913_v32, 0  ;;  %v3997_v17 = vsel %vm9192_vm14, %v3989_v24, %v3996_v45  ;;  %vm12620_vm13 = vnez %v12619_v25  ;;  %v3478_v27 = vld [vmem:[#allocation2 + $0x64] sm:$0xf]  ;;  %v8859_v44 = vld [vmem:[#allocation3 + $0x254] ss:$36 sps:$4 sm:$0xff]   ;;  %v3715_v59 = vsel %vm9133_vm11, %v3710_v14, %v3714_v16  ;;  %v11119_v24 = vpop.f32.mrf.mxu1 }
 0x1c2   : > { %v3947_v39 = vsel %vm12620_vm13, %v3914_v58, 0  ;;  %v8861_v60 = vld [vmem:[#allocation3 + $0x250] ss:$36 sps:$4 sm:$0xff]   ;;  %4301 = vst [vmem:[#allocation3 + $0x3c] sm:$0xf] %v3997_v17  ;;  %v4000_v32 = vshrl.u32 %v3946_v37, 16  ;;  %v11117_v40 = vadd.f32 %v10889_v18, %v10858_v54  ;;  %6740 = vmatprep.mubr.bf16.mxu0 %v8859_v44  ;;  %v11125_v17 = vpop.f32.mrf.mxu0  ;;  %v11133_v44 = vadd.f32 %v10659_v42, %v10653_v21 }
 0x1c3   : > { %v3720_v9 = vrot.slane %v3719_v56, 4  ;;  %3896 = vst [vmem:[#allocation3 + $0x29c] sm:$0xf] %v3715_v59  ;;  %v4003_v49 = vshll.u32 %v3946_v37, 16  ;;  %v4009_v58 = vshrl.u32 %v3947_v39, 16  ;;  %v4012_v45 = vshll.u32 %v3947_v39, 16  ;;  %6741 = vmatmul.mubr.bf16.gmra.mxu0 %v8861_v60  ;;  %v11137_v59 = vpop.f32.mrf.mxu1 }
 0x1c4   : > { %v4002_v52 = vrot.slane %v4000_v32, 7  ;;  %v3510_v11 = vsel %vm10630_vm9, %v3477_v47, 0  ;;  %vm12621_vm7 = vcmp.ne.s16.totalorder %v10622_v4, 0  ;;  %v3728_v14 = vrot.slane %v3726_v12, 4  ;;  %v3915_v41 = vld [vmem:[#allocation2 + $0x24] sm:$0xf] }
 0x1c5   : > { %v3511_v16 = vsel %vm12621_vm7, %v3478_v27, 0  ;;  %12622 = vst [vmem:[#allocation7_spill] sm:$0xff] %v11125_v17  ;;  %v8856_v54 = vld [vmem:[#allocation3 + $0x444] ss:$36 sps:$4 sm:$0xff]   ;;  %v3725_v37 = vsel %vm9133_vm11, %v3720_v9, %v3724_v48  ;;  %v11129_v56 = vrot.slane %v4009_v58, 7  ;;  %v8255_v47 = vadd.f32 %v10953_v0, %v10937_v22 }
 0x1c6   : > { %v8858_v18 = vld [vmem:[#allocation3 + $0x440] ss:$36 sps:$4 sm:$0xff]   ;;  %3897 = vst [vmem:[#allocation3 + $0x2c0] sm:$0xf] %v3725_v37  ;;  %v4005_v12 = vor.u32 %v4003_v49, %v4002_v52  ;;  %v4007_v25 = vrot.slane %v4002_v52, 4  ;;  %v3729_v39 = vor.u32 %v3728_v14, %v3724_v48  ;;  %v3732_v27 = vshll.u32 %v3510_v11, 16  ;;  %6635 = vmatprep.mubr.bf16.mxu1 %v8856_v54  ;;  %v11144_v14 = vpop.f32.mrf.mxu0 }
 0x1c7   : > { %v4358_v60 = vld [vmem:[#allocation2 + $0x7c] sm:$0xf]  ;;  %v4359_v32 = vld [vmem:[#allocation2 + $0x80] sm:$0xf]  ;;  %v4014_v9 = vor.u32 %v4012_v45, %v11129_v56  ;;  %v3736_v58 = vshrl.u32 %v3510_v11, 16  ;;  %v3742_v17 = vshll.u32 %v3511_v16, 16  ;;  %6636 = vmatmul.mubr.bf16.gmra.mxu1 %v8858_v18  ;;  %v11149_v18 = vadd.f32 %v8255_v47, %v10730_v15 }
 0x1c8   : > { %v3746_v29 = vshrl.u32 %v3511_v16, 16  ;;  %v3916_v21 = vld [vmem:[#allocation2 + $0x28] sm:$0xf]  ;;  %4390 = vst [vmem:[#allocation3 + $0x3c4] sm:$0xf] %v4358_v60  ;;  %v4006_v0 = vsel %vm9192_vm14, %v3998_v35, %v4005_v12  ;;  %v3730_v42 = vrot.slane %v3729_v39, 4  ;;  %v11153_v35 = vadd.f32 %v10964_v55, %v10945_v61 }
 0x1c9   : > { %4391 = vst [vmem:[#allocation3 + $0x3e8] sm:$0xf] %v4359_v32  ;;  %v3734_v22 = vrot.slane %v3732_v27, 5  ;;  %v12623_v48 = vld [vmem:[#allocation15_spill] sm:$0xff]  ;;  %v3479_v52 = vld [vmem:[#allocation2 + $0x68] sm:$0xf]  ;;  %v4015_v45 = vsel %vm9192_vm14, %v4007_v25, %v4014_v9  ;;  %v11160_v27 = vpop.f32.mrf.mxu1 }
 0x1ca   : > { %vm12624_vm13 = vnez %v12623_v48  ;;  %12625 = vst [vmem:[#allocation11_spill] sm:$0xff] %v11144_v14  ;;  %v8864_v54 = vld [vmem:[#allocation3 + $0x1c] ss:$36 sps:$4 sm:$0xff]   ;;  %4302 = vst [vmem:[#allocation3 + $0x60] sm:$0xf] %v4006_v0  ;;  %v3738_v11 = vrot.slane %v3736_v58, 4  ;;  %v8258_v48 = vadd.f32 %v10996_v43, %v10983_v30 }
 0x1cb   : > { %v3948_v49 = vsel %vm12624_vm13, %v3915_v41, 0  ;;  %v3480_v16 = vld [vmem:[#allocation2 + $0x6c] sm:$0xf]  ;;  %12626 = vst [vmem:[#allocation13_spill] sm:$0xff] %v11149_v18  ;;  %4303 = vst [vmem:[#allocation3 + $0x84] sm:$0xf] %v4015_v45  ;;  %v3735_v41 = vsel %vm9133_vm11, %v3730_v42, %v3734_v22  ;;  %6837 = vmatprep.mubr.bf16.mxu1 %v8864_v54 }
 0x1cc   : > { %v3744_v37 = vrot.slane %v3742_v17, 5  ;;  %v12627_v12 = vld [vmem:[#allocation16_spill] sm:$0xff]  ;;  %v4016_v25 = vrot.slane %v11129_v56, 4  ;;  %v3739_v60 = vor.u32 %v3738_v11, %v3734_v22  ;;  %3898 = vst [vmem:[#allocation3 + $0x2e4] sm:$0xf] %v3735_v41  ;;  %v4018_v15 = vshrl.u32 %v3948_v49, 16 }
 0x1cd   : > { %vm12628_vm7 = vnez %v12627_v12  ;;  %v4021_v47 = vshll.u32 %v3948_v49, 16  ;;  %v8862_v61 = vld [vmem:[#allocation3 + $0x18] ss:$36 sps:$4 sm:$0xff]   ;;  %v3512_v9 = vsel %vm10696_vm0, %v3479_v52, 0  ;;  %vm12629_vm13 = vcmp.ne.s16.totalorder %v10692_v28, 0 }
 0x1ce   : > { %v3949_v39 = vsel %vm12628_vm7, %v3916_v21, 0  ;;  %v3513_v17 = vsel %vm12629_vm13, %v3480_v16, 0  ;;  %v3748_v58 = vrot.slane %v3746_v29, 4  ;;  %v11166_v21 = vpop.f32.mrf.mxu0  ;;  %v8866_v56 = vld [vmem:[#allocation3 + $0x29c] ss:$36 sps:$4 sm:$0xff]   ;;  %v3740_v42 = vrot.slane %v3739_v60, 4  ;;  %v11178_v16 = vpop.f32.mrf.mxu1 }
 0x1cf   : > { %v4027_v32 = vshrl.u32 %v3949_v39, 16  ;;  %v4030_v55 = vshll.u32 %v3949_v39, 16  ;;  %12630 = vst [vmem:[#allocation15_spill] sm:$0xff] %v11166_v21  ;;  %v8868_v0 = vld [vmem:[#allocation3 + $0x298] ss:$36 sps:$4 sm:$0xff]   ;;  %v11170_v22 = vadd.f32 %v10713_v33, %v10705_v31  ;;  %v8261_v49 = vadd.f32 %v11040_v36, %v11016_v5  ;;  %6748 = vmatprep.mubr.bf16.mxu0 %v8866_v56  ;;  %6838 = vmatmul.mubr.bf16.vlgmr.msra.gmra.mxu1 %v8862_v61 }
 0x1d0   : > { %v4020_v52 = vrot.slane %v4018_v15, 7  ;;  %v3749_v45 = vor.u32 %v3748_v58, %v3744_v37  ;;  %v3752_v29 = vshll.u32 %v3512_v9, 16  ;;  %v3917_v11 = vld [vmem:[#allocation2 + $0x2c] sm:$0xf]  ;;  %v3745_v41 = vsel %vm9133_vm11, %v3740_v42, %v3744_v37  ;;  %v3918_v39 = vld [vmem:[#allocation2 + $0x30] sm:$0xf]  ;;  %6749 = vmatmul.mubr.bf16.gmra.mxu0 %v8868_v0  ;;  %v11183_v15 = vpop.f32.mrf.mxu0 }
 0x1d1   : > { %v11176_v54 = vrot.slane %v4027_v32, 7  ;;  %v3756_v33 = vshrl.u32 %v3512_v9, 16  ;;  %v3762_v31 = vshll.u32 %v3513_v17, 16  ;;  %v3766_v12 = vshrl.u32 %v3513_v17, 16  ;;  %3899 = vst [vmem:[#allocation3 + $0x308] sm:$0xf] %v3745_v41 }
 0x1d2   : > { %v4023_v30 = vor.u32 %v4021_v47, %v4020_v52  ;;  %v4025_v43 = vrot.slane %v4020_v52, 4  ;;  %v3750_v36 = vrot.slane %v3749_v45, 4  ;;  %v3481_v60 = vld [vmem:[#allocation2 + $0x70] sm:$0xf]  ;;  %v8869_v32 = vld [vmem:[#allocation3 + $0x64] ss:$36 sps:$4 sm:$0xff]   ;;  %v11186_v37 = vadd.f32 %v8258_v48, %v11133_v44  ;;  %v11199_v52 = vpop.f32.mrf.mxu1 }
 0x1d3   : > { %v4032_v5 = vor.u32 %v4030_v55, %v11176_v54  ;;  %v3754_v58 = vrot.slane %v3752_v29, 5  ;;  %v3482_v56 = vld [vmem:[#allocation2 + $0x74] sm:$0xf]  ;;  %v11189_v9 = vadd.f32 %v8261_v49, %v10792_v6  ;;  %v11193_v61 = vadd.f32 %v11051_v34, %v11026_v20  ;;  %v8873_v47 = vld [vmem:[#allocation3 + $0x60] ss:$36 sps:$4 sm:$0xff]   ;;  %6845 = vmatprep.mubr.bf16.mxu1 %v8869_v32 }
 0x1d4   : > { %12631 = vst [vmem:[#allocation16_spill] sm:$0xff] %v11186_v37  ;;  %v4024_v55 = vsel %vm9192_vm14, %v4016_v25, %v4023_v30  ;;  %v3758_v0 = vrot.slane %v3756_v33, 4  ;;  %v3764_v42 = vrot.slane %v3762_v31, 5  ;;  %v12634_v44 = vld [vmem:[#allocation19_spill] sm:$0xff]  ;;  %v12636_v34 = vld [vmem:[#allocation20_spill] sm:$0xff]  ;;  %v4034_v25 = vrot.slane %v11176_v54, 4  ;;  %v11208_v31 = vpop.f32.mrf.mxu0 }
 0x1d5   : > { %12632 = vst [vmem:[#allocation88_spill] sm:$0xff] %v11189_v9  ;;  %12633 = vst [vmem:[#allocation89_spill] sm:$0xff] %v11193_v61  ;;  %v4033_v17 = vsel %vm9192_vm14, %v4025_v43, %v4032_v5  ;;  %v3755_v6 = vsel %vm9133_vm11, %v3750_v36, %v3754_v58  ;;  %vm12635_vm7 = vnez %v12634_v44  ;;  %vm12637_vm13 = vnez %v12636_v34  ;;  %v4360_v49 = vld [vmem:[#allocation2 + $0x84] sm:$0xf]  ;;  %v4361_v30 = vld [vmem:[#allocation2 + $0x88] sm:$0xf] }
 0x1d6   : > { %4304 = vst [vmem:[#allocation3 + $0xa8] sm:$0xf] %v4024_v55  ;;  %4305 = vst [vmem:[#allocation3 + $0xcc] sm:$0xf] %v4033_v17  ;;  %v3950_v20 = vsel %vm12635_vm7, %v3917_v11, 0  ;;  %v3951_v48 = vsel %vm12637_vm13, %v3918_v39, 0  ;;  %v3759_v45 = vor.u32 %v3758_v0, %v3754_v58  ;;  %v11216_v17 = vpop.f32.mrf.mxu1 }
 0x1d7   : > { %3900 = vst [vmem:[#allocation3 + $0x32c] sm:$0xf] %v3755_v6  ;;  %v4036_v29 = vshrl.u32 %v3950_v20, 16  ;;  %v4039_v41 = vshll.u32 %v3950_v20, 16  ;;  %v4045_v33 = vshrl.u32 %v3951_v48, 16  ;;  %v4048_v43 = vshll.u32 %v3951_v48, 16  ;;  %6846 = vmatmul.mubr.bf16.gmra.mxu1 %v8873_v47 }
 0x1d8   : > { %4392 = vst [vmem:[#allocation3 + $0x40c] sm:$0xf] %v4360_v49  ;;  %v3514_v5 = vsel %vm10820_vm15, %v3481_v60, 0  ;;  %vm12638_vm7 = vcmp.ne.s16.totalorder %v10805_v57, 0  ;;  %v3768_v39 = vrot.slane %v3766_v12, 4  ;;  %v3760_v54 = vrot.slane %v3759_v45, 4 }
 0x1d9   : > { %v3515_v11 = vsel %vm12638_vm7, %v3482_v56, 0  ;;  %4393 = vst [vmem:[#allocation3 + $0x430] sm:$0xf] %v4361_v30  ;;  %v4038_v36 = vrot.slane %v4036_v29, 7  ;;  %v11214_v32 = vrot.slane %v4045_v33, 7  ;;  %v3772_v58 = vshll.u32 %v3514_v5, 16  ;;  %v11229_v30 = vpop.f32.mrf.mxu0 }
 0x1da   : > { %v3919_v55 = vld [vmem:[#allocation2 + $0x34] sm:$0xf]  ;;  %v8871_v0 = vld [vmem:[#allocation3 + $0x2e4] ss:$36 sps:$4 sm:$0xff]   ;;  %v3769_v44 = vor.u32 %v3768_v39, %v3764_v42  ;;  %v3776_v20 = vshrl.u32 %v3514_v5, 16  ;;  %v11224_v12 = vadd.f32 %v11086_v7, %v11058_v51  ;;  %v3765_v56 = vsel %vm9133_vm11, %v3760_v54, %v3764_v42 }
 0x1db   : > { %v8874_v6 = vld [vmem:[#allocation3 + $0x2e0] ss:$36 sps:$4 sm:$0xff]   ;;  %v12639_v34 = vld [vmem:[#allocation65_spill] sm:$0xff]  ;;  %v4041_v48 = vor.u32 %v4039_v41, %v4038_v36  ;;  %v4043_v49 = vrot.slane %v4038_v36, 4  ;;  %v4050_v45 = vor.u32 %v4048_v43, %v11214_v32  ;;  %6756 = vmatprep.mubr.bf16.mxu0 %v8871_v0  ;;  %3901 = vst [vmem:[#allocation3 + $0x350] sm:$0xf] %v3765_v56  ;;  %v11237_v36 = vpop.f32.mrf.mxu1 }
 0x1dc   : > { %v11220_v60 = vadd.f32 %v12639_v34, %v10757_v23  ;;  %v3920_v29 = vld [vmem:[#allocation2 + $0x38] sm:$0xf]  ;;  %v3770_v23 = vrot.slane %v3769_v44, 4  ;;  %v3774_v5 = vrot.slane %v3772_v58, 5  ;;  %v3778_v39 = vrot.slane %v3776_v20, 4  ;;  %6757 = vmatmul.mubr.bf16.gmra.mxu0 %v8874_v6  ;;  %v12640_v43 = vld [vmem:[#allocation22_spill] sm:$0xff] }
 0x1dd   : > { %v3483_v33 = vld [vmem:[#allocation2 + $0x78] sm:$0xf]  ;;  %v3782_v34 = vshll.u32 %v3515_v11, 16  ;;  %v3484_v51 = vld [vmem:[#allocation2 + $0x7c] sm:$0xf]  ;;  %v4042_v47 = vsel %vm9192_vm14, %v4034_v25, %v4041_v48  ;;  %v4051_v42 = vsel %vm9192_vm14, %v4043_v49, %v4050_v45  ;;  %v3786_v41 = vshrl.u32 %v3515_v11, 16  ;;  %v11244_v49 = vpop.f32.mrf.mxu0 }
 0x1de   : > { %v8875_v7 = vld [vmem:[#allocation3 + $0xac] ss:$36 sps:$4 sm:$0xff]   ;;  %vm12641_vm13 = vnez %v12640_v43  ;;  %4306 = vst [vmem:[#allocation3 + $0xf0] sm:$0xf] %v4042_v47  ;;  %4307 = vst [vmem:[#allocation3 + $0x114] sm:$0xf] %v4051_v42  ;;  %v3775_v58 = vsel %vm9133_vm11, %v3770_v23, %v3774_v5  ;;  %v3779_v0 = vor.u32 %v3778_v39, %v3774_v5  ;;  %v11252_v43 = vpop.f32.mrf.mxu1 }
 0x1df   : > { %v3952_v54 = vsel %vm12641_vm13, %v3919_v55, 0  ;;  %v3784_v6 = vrot.slane %v3782_v34, 5  ;;  %v12642_v44 = vld [vmem:[#allocation23_spill] sm:$0xff]  ;;  %6853 = vmatprep.mubr.bf16.mxu1 %v8875_v7  ;;  %v8880_v25 = vld [vmem:[#allocation3 + $0xa8] ss:$36 sps:$4 sm:$0xff]   ;;  %v4052_v11 = vrot.slane %v11214_v32, 4  ;;  %v11257_v37 = vpop.f32.mrf.mxu0 }
 0x1e0   : > { %vm12643_vm7 = vnez %v12642_v44  ;;  %3902 = vst [vmem:[#allocation3 + $0x374] sm:$0xf] %v3775_v58  ;;  %v4054_v56 = vshrl.u32 %v3952_v54, 16  ;;  %v4057_v48 = vshll.u32 %v3952_v54, 16  ;;  %v3780_v45 = vrot.slane %v3779_v0, 4  ;;  %6854 = vmatmul.mubr.bf16.gmra.mxu1 %v8880_v25  ;;  %v12695_v61 = vld [vmem:[#allocation31_spill] sm:$0xff] }
 0x1e1   : > { %v3953_v20 = vsel %vm12643_vm7, %v3920_v29, 0  ;;  %v3516_v23 = vsel %vm10883_vm3, %v3483_v33, 0  ;;  %vm12644_vm13 = vcmp.ne.s16.totalorder %v10880_v50, 0  ;;  %v3921_v39 = vld [vmem:[#allocation2 + $0x3c] sm:$0xf]  ;;  %v3788_v7 = vrot.slane %v3786_v41, 4 }
 0x1e2   : > { %v4063_v55 = vshrl.u32 %v3953_v20, 16  ;;  %v4066_v47 = vshll.u32 %v3953_v20, 16  ;;  %v3517_v5 = vsel %vm12644_vm13, %v3484_v51, 0  ;;  %v4056_v29 = vrot.slane %v4054_v56, 7  ;;  %v3922_v32 = vld [vmem:[#allocation2 + $0x40] sm:$0xf] }
 0x1e3   : > { %v3792_v42 = vshll.u32 %v3516_v23, 16  ;;  %v3785_v54 = vsel %vm9133_vm11, %v3780_v45, %v3784_v6  ;;  %v3796_v58 = vshrl.u32 %v3516_v23, 16  ;;  %v3802_v0 = vshll.u32 %v3517_v5, 16  ;;  %v3485_v20 = vld [vmem:[#allocation2 + $0x80] sm:$0xf]  ;;  %v12645_v50 = vld [vmem:[#allocation26_spill] sm:$0xff] }
 0x1e4   : > { %v11250_v34 = vrot.slane %v4063_v55, 7  ;;  %v3806_v44 = vshrl.u32 %v3517_v5, 16  ;;  %v4362_v33 = vld [vmem:[#allocation2 + $0x8c] sm:$0xf]  ;;  %v8878_v21 = vld [vmem:[#allocation3 + $0x32c] ss:$36 sps:$4 sm:$0xff]   ;;  %v4059_v56 = vor.u32 %v4057_v48, %v4056_v29  ;;  %v3789_v14 = vor.u32 %v3788_v7, %v3784_v6 }
 0x1e5   : > { %v8881_v51 = vld [vmem:[#allocation3 + $0x328] ss:$36 sps:$4 sm:$0xff]   ;;  %3903 = vst [vmem:[#allocation3 + $0x398] sm:$0xf] %v3785_v54  ;;  %v4061_v55 = vrot.slane %v4056_v29, 4  ;;  %v3794_v18 = vrot.slane %v3792_v42, 5  ;;  %vm12646_vm7 = vnez %v12645_v50  ;;  %6764 = vmatprep.mubr.bf16.mxu0 %v8878_v21  ;;  %v11267_v54 = vpop.f32.mrf.mxu1 }
 0x1e6   : > { %v4068_v41 = vor.u32 %v4066_v47, %v11250_v34  ;;  %v3486_v9 = vld [vmem:[#allocation2 + $0x84] sm:$0xf]  ;;  %4394 = vst [vmem:[#allocation3 + $0x454] sm:$0xf] %v4362_v33  ;;  %v3798_v45 = vrot.slane %v3796_v58, 4  ;;  %v3804_v23 = vrot.slane %v3802_v0, 5  ;;  %v4060_v48 = vsel %vm9192_vm14, %v4052_v11, %v4059_v56  ;;  %6765 = vmatmul.mubr.bf16.gmra.mxu0 %v8881_v51  ;;  %v11274_v33 = vpop.f32.mrf.mxu0 }
 0x1e7   : > { %v3954_v5 = vsel %vm12646_vm7, %v3921_v39, 0  ;;  %v8882_v25 = vld [vmem:[#allocation3 + $0xf4] ss:$36 sps:$4 sm:$0xff]   ;;  %v3790_v6 = vrot.slane %v3789_v14, 4  ;;  %4308 = vst [vmem:[#allocation3 + $0x138] sm:$0xf] %v4060_v48  ;;  %v11280_v48 = vpop.f32.mrf.mxu1 }
 0x1e8   : > { %v4069_v47 = vsel %vm9192_vm14, %v4061_v55, %v4068_v41  ;;  %v12647_v29 = vld [vmem:[#allocation27_spill] sm:$0xff]  ;;  %v3799_v50 = vor.u32 %v3798_v45, %v3794_v18  ;;  %v4070_v21 = vrot.slane %v11250_v34, 4  ;;  %v4072_v39 = vshrl.u32 %v3954_v5, 16  ;;  %6861 = vmatprep.mubr.bf16.mxu1 %v8882_v25  ;;  %v8886_v11 = vld [vmem:[#allocation3 + $0xf0] ss:$36 sps:$4 sm:$0xff]  }
 0x1e9   : > { %vm12648_vm13 = vnez %v12647_v29  ;;  %4309 = vst [vmem:[#allocation3 + $0x15c] sm:$0xf] %v4069_v47  ;;  %v4075_v42 = vshll.u32 %v3954_v5, 16  ;;  %v3795_v58 = vsel %vm9133_vm11, %v3790_v6, %v3794_v18  ;;  %vm12649_vm7 = vcmp.ne.s16.totalorder %v10972_v2, 0  ;;  %v3923_v55 = vld [vmem:[#allocation2 + $0x44] sm:$0xf]  ;;  %6862 = vmatmul.mubr.bf16.gmra.mxu1 %v8886_v11 }
 0x1ea   : > { %v3955_v7 = vsel %vm12648_vm13, %v3922_v32, 0  ;;  %v3518_v32 = vsel %vm10977_vm10, %v3485_v20, 0  ;;  %v3800_v63 = vrot.slane %v3799_v50, 4  ;;  %3904 = vst [vmem:[#allocation3 + $0x3bc] sm:$0xf] %v3795_v58  ;;  %v4074_v51 = vrot.slane %v4072_v39, 7 }
 0x1eb   : > { %v4081_v14 = vshrl.u32 %v3955_v7, 16  ;;  %v4084_v0 = vshll.u32 %v3955_v7, 16  ;;  %v3519_v34 = vsel %vm12649_vm7, %v3486_v9, 0  ;;  %v3808_v56 = vrot.slane %v3806_v44, 4  ;;  %v3924_v25 = vld [vmem:[#allocation2 + $0x48] sm:$0xf] }
 0x1ec   : > { %v3812_v45 = vshll.u32 %v3518_v32, 16  ;;  %v3816_v5 = vshrl.u32 %v3518_v32, 16  ;;  %v3822_v18 = vshll.u32 %v3519_v34, 16  ;;  %v8884_v47 = vld [vmem:[#allocation3 + $0x374] ss:$36 sps:$4 sm:$0xff]   ;;  %v3805_v6 = vsel %vm9133_vm11, %v3800_v63, %v3804_v23  ;;  %v11285_v32 = vpop.f32.mrf.mxu0  ;;  %v12651_v63 = vld [vmem:[#allocation32_spill] sm:$0xff] }
 0x1ed   : > { %v11278_v41 = vrot.slane %v4081_v14, 7  ;;  %v8887_v20 = vld [vmem:[#allocation3 + $0x370] ss:$36 sps:$4 sm:$0xff]   ;;  %v4077_v29 = vor.u32 %v4075_v42, %v4074_v51  ;;  %v4079_v7 = vrot.slane %v4074_v51, 4  ;;  %v3809_v50 = vor.u32 %v3808_v56, %v3804_v23  ;;  %3905 = vst [vmem:[#allocation3 + $0x3e0] sm:$0xf] %v3805_v6  ;;  %6772 = vmatprep.mubr.bf16.mxu0 %v8884_v47  ;;  %v11296_v47 = vpop.f32.mrf.mxu1 }
 0x1ee   : > { %v3814_v44 = vrot.slane %v3812_v45, 5  ;;  %v3818_v39 = vrot.slane %v3816_v5, 4  ;;  %v3824_v58 = vrot.slane %v3822_v18, 5  ;;  %v3488_v14 = vld [vmem:[#allocation2 + $0x8c] sm:$0x1]  ;;  %12650 = vst [vmem:[#allocation19_spill] sm:$0xff] %v11285_v32  ;;  %vm12652_vm13 = vnez %v12651_v63  ;;  %6773 = vmatmul.mubr.bf16.gmra.mxu0 %v8887_v20 }
 0x1ef   : > { %v4086_v9 = vor.u32 %v4084_v0, %v11278_v41  ;;  %v4078_v2 = vsel %vm9192_vm14, %v4070_v21, %v4077_v29  ;;  %v3810_v19 = vrot.slane %v3809_v50, 4  ;;  %v3826_v57 = vshrl.u32 %v3519_v34, 16  ;;  %v3487_v23 = vld [vmem:[#allocation2 + $0x88] sm:$0xf]  ;;  %v3925_v11 = vld [vmem:[#allocation2 + $0x4c] sm:$0xf]  ;;  %v11304_v50 = vpop.f32.mrf.mxu0 }
 0x1f0   : > { %v3956_v42 = vsel %vm12652_vm13, %v3923_v55, 0  ;;  %v8888_v51 = vld [vmem:[#allocation3 + $0x13c] ss:$36 sps:$4 sm:$0xff]   ;;  %4310 = vst [vmem:[#allocation3 + $0x180] sm:$0xf] %v4078_v2  ;;  %v3819_v56 = vor.u32 %v3818_v39, %v3814_v44  ;;  %v12653_v45 = vld [vmem:[#allocation33_spill] sm:$0xff] }
 0x1f1   : > { %v4087_v0 = vsel %vm9192_vm14, %v4079_v7, %v4086_v9  ;;  %vm12654_vm7 = vnez %v12653_v45  ;;  %v4088_v18 = vrot.slane %v11278_v41, 4  ;;  %v8893_v21 = vld [vmem:[#allocation3 + $0x138] ss:$36 sps:$4 sm:$0xff]   ;;  %v3815_v34 = vsel %vm9133_vm11, %v3810_v19, %v3814_v44  ;;  %6869 = vmatprep.mubr.bf16.mxu1 %v8888_v51  ;;  %12655 = vst [vmem:[#allocation20_spill] sm:$0xff] %v11304_v50 }
 0x1f2   : > { %v3957_v5 = vsel %vm12654_vm7, %v3924_v25, 0  ;;  %4311 = vst [vmem:[#allocation3 + $0x1a4] sm:$0xf] %v4087_v0  ;;  %v4090_v55 = vshrl.u32 %v3956_v42, 16  ;;  %v4093_v6 = vshll.u32 %v3956_v42, 16  ;;  %v3820_v7 = vrot.slane %v3819_v56, 4  ;;  %6870 = vmatmul.mubr.bf16.gmra.mxu1 %v8893_v21  ;;  %v11317_v0 = vpop.f32.mrf.mxu0 }
 0x1f3   : > { %v4099_v29 = vshrl.u32 %v3957_v5, 16  ;;  %3906 = vst [vmem:[#allocation3 + $0x404] sm:$0xf] %v3815_v34  ;;  %v4102_v2 = vshll.u32 %v3957_v5, 16  ;;  %v3520_v25 = vsel %vm11042_vm8, %v3487_v23, 0  ;;  %v3521_v41 = vsel %vm11032_vm12, %v3488_v14, 0  ;;  %v11312_v23 = vpop.f32.mrf.mxu1 }
 0x1f4   : > { %v4092_v20 = vrot.slane %v4090_v55, 7  ;;  %v3828_v39 = vrot.slane %v3826_v57, 4  ;;  %v3832_v19 = vshll.u32 %v3520_v25, 16  ;;  %v3926_v44 = vld [vmem:[#allocation2 + $0x50] sm:$0xf]  ;;  %v3825_v63 = vsel %vm9133_vm11, %v3820_v7, %v3824_v58  ;;  %v12661_v7 = vld [vmem:[#allocation24_spill] sm:$0xff] }
 0x1f5   : > { %v11306_v9 = vrot.slane %v4099_v29, 7  ;;  %v3836_v42 = vshrl.u32 %v3520_v25, 16  ;;  %v3842_v51 = vshll.u32 %v3521_v41, 16  ;;  %v3958_v56 = vsel %vm10027_vm5, %v3925_v11, 0  ;;  %v8891_v45 = vld [vmem:[#allocation3 + $0x3bc] ss:$36 sps:$4 sm:$0xff]  }
 0x1f6   : > { %v8894_v14 = vld [vmem:[#allocation3 + $0x3b8] ss:$36 sps:$4 sm:$0xff]   ;;  %3907 = vst [vmem:[#allocation3 + $0x428] sm:$0xf] %v3825_v63  ;;  %v4095_v5 = vor.u32 %v4093_v6, %v4092_v20  ;;  %v4097_v34 = vrot.slane %v4092_v20, 4  ;;  %v3829_v57 = vor.u32 %v3828_v39, %v3824_v58  ;;  %v3834_v29 = vrot.slane %v3832_v19, 5  ;;  %6780 = vmatprep.mubr.bf16.mxu0 %v8891_v45 }
 0x1f7   : > { %v4104_v55 = vor.u32 %v4102_v2, %v11306_v9  ;;  %v3838_v50 = vrot.slane %v3836_v42, 4  ;;  %v3844_v32 = vrot.slane %v3842_v51, 5  ;;  %v3959_v25 = vsel %vm10044_vm6, %v3926_v44, 0  ;;  %v4396_v41 = vld [vmem:[#allocation2 + $0x14] sm:$0xf]  ;;  %v11330_v42 = vpop.f32.mrf.mxu1  ;;  %v11332_v51 = vpop.f32.mrf.mxu0  ;;  %6781 = vmatmul.mubr.bf16.gmra.mxu0 %v8894_v14 }
 0x1f8   : > { %v4096_v11 = vsel %vm9192_vm14, %v4088_v18, %v4095_v5  ;;  %v3830_v20 = vrot.slane %v3829_v57, 4  ;;  %v4106_v58 = vrot.slane %v11306_v9, 4  ;;  %v4397_v21 = vld [vmem:[#allocation2 + $0x18] sm:$0xf]  ;;  %v8895_v2 = vld [vmem:[#allocation3 + $0x184] ss:$36 sps:$4 sm:$0xff]   ;;  %v11326_v63 = vadd.f32 %v11224_v12, %v11170_v22 }
 0x1f9   : > { %v4105_v6 = vsel %vm9192_vm14, %v4097_v34, %v4104_v55  ;;  %4312 = vst [vmem:[#allocation3 + $0x1c8] sm:$0xf] %v4096_v11  ;;  %v3839_v39 = vor.u32 %v3838_v50, %v3834_v29  ;;  %v4108_v19 = vshrl.u32 %v3958_v56, 16  ;;  %v4398_v44 = vld [vmem:[#allocation2 + $0x1c] sm:$0xf]  ;;  %v8267_v18 = vadd.f32 %v11119_v24, %v11099_v62  ;;  %6877 = vmatprep.mubr.bf16.mxu1 %v8895_v2  ;;  %v11340_v57 = vpop.f32.mrf.mxu0 }
 0x1fa   : > { %4313 = vst [vmem:[#allocation3 + $0x1ec] sm:$0xf] %v4105_v6  ;;  %12658 = vst [vmem:[#allocation65_spill] sm:$0xff] %v11326_v63  ;;  %v3835_v9 = vsel %vm9133_vm11, %v3830_v20, %v3834_v29  ;;  %v4111_v45 = vshll.u32 %v3958_v56, 16  ;;  %v4117_v5 = vshrl.u32 %v3959_v25, 16  ;;  %v4120_v50 = vshll.u32 %v3959_v25, 16 }
 0x1fb   : > { %v8899_v34 = vld [vmem:[#allocation3 + $0x180] ss:$36 sps:$4 sm:$0xff]   ;;  %v3840_v55 = vrot.slane %v3839_v39, 4  ;;  %3908 = vst [vmem:[#allocation3 + $0x44c] sm:$0xf] %v3835_v9  ;;  %v4110_v22 = vrot.slane %v4108_v19, 7 }
 0x1fc   : > { %vm12659_vm5 = vcmp.ne.s16.totalorder %v9679_v8, 0  ;;  %v4430_v24 = vsel %vm9714_vm2, %v4397_v21, 0  ;;  %v11342_v14 = vrot.slane %v4117_v5, 7  ;;  %vm12662_vm6 = vcmp.ne.s16.totalorder %v12661_v7, 0  ;;  %v3927_v11 = vld [vmem:[#allocation2 + $0x54] sm:$0xf]  ;;  %v11351_v21 = vpop.f32.mrf.mxu1  ;;  %6878 = vmatmul.mubr.bf16.gmra.mxu1 %v8899_v34  ;;  %v11356_v7 = vpop.f32.mrf.mxu0 }
 0x1fd   : > { %v4429_v12 = vsel %vm12659_vm5, %v4396_v41, 0  ;;  %v4431_v56 = vsel %vm12662_vm6, %v4398_v44, 0  ;;  %v8897_v6 = vld [vmem:[#allocation3 + $0x404] ss:$36 sps:$4 sm:$0xff]   ;;  %v3845_v20 = vsel %vm9133_vm11, %v3840_v55, %v3844_v32  ;;  %v4113_v2 = vor.u32 %v4111_v45, %v4110_v22  ;;  %v3928_v41 = vld [vmem:[#allocation2 + $0x58] sm:$0xf] }
 0x1fe   : > { %v4463_v29 = vshrl.u32 %v4429_v12, 16  ;;  %v4466_v25 = vshll.u32 %v4429_v12, 16  ;;  %v4115_v8 = vrot.slane %v4110_v22, 4  ;;  %v12663_v39 = vld [vmem:[#allocation77_spill] sm:$0xff]  ;;  %v8900_v9 = vld [vmem:[#allocation3 + $0x400] ss:$36 sps:$4 sm:$0xff]   ;;  %v4122_v5 = vor.u32 %v4120_v50, %v11342_v14  ;;  %6788 = vmatprep.mubr.bf16.mxu0 %v8897_v6 }
 0x1ff   : > { %v11349_v19 = vadd.f32 %v8267_v18, %v12663_v39  ;;  %3909 = vst [vmem:[#allocation3 + $0x470] sm:$0xf] %v3845_v20  ;;  %v4472_v12 = vshll.u32 %v4430_v24, 16  ;;  %v4114_v32 = vsel %vm9192_vm14, %v4106_v58, %v4113_v2  ;;  %v4476_v45 = vshrl.u32 %v4430_v24, 16  ;;  %v8901_v18 = vld [vmem:[#allocation3 + $0x1cc] ss:$36 sps:$4 sm:$0xff]   ;;  %v11364_v2 = vpop.f32.mrf.mxu1  ;;  %6789 = vmatmul.mubr.bf16.gmra.mxu0 %v8900_v9 }
 0x200   : > { %v4465_v44 = vrot.slane %v4463_v29, 4  ;;  %v4468_v62 = vrot.slane %v4466_v25, 5  ;;  %v4482_v55 = vshll.u32 %v4431_v56, 16  ;;  %v4486_v22 = vshrl.u32 %v4431_v56, 16  ;;  %4314 = vst [vmem:[#allocation3 + $0x210] sm:$0xf] %v4114_v32  ;;  %6885 = vmatprep.mubr.bf16.mxu1 %v8901_v18 }
 0x201   : > { %12664 = vst [vmem:[#allocation22_spill] sm:$0xff] %v11349_v19  ;;  %v4123_v39 = vsel %vm9192_vm14, %v4115_v8, %v4122_v5  ;;  %v4474_v50 = vrot.slane %v4472_v12, 5  ;;  %v12665_v29 = vld [vmem:[#allocation40_spill] sm:$0xff]  ;;  %v4478_v34 = vrot.slane %v4476_v45, 4  ;;  %v12667_v58 = vld [vmem:[#allocation41_spill] sm:$0xff]  ;;  %v12670_v8 = vld [vmem:[#allocation71_spill] sm:$0xff] }
 0x202   : > { %v4469_v20 = vor.u32 %v4468_v62, %v4465_v44  ;;  %vm12666_vm2 = vnez %v12665_v29  ;;  %4315 = vst [vmem:[#allocation3 + $0x234] sm:$0xf] %v4123_v39  ;;  %v4484_v6 = vrot.slane %v4482_v55, 5  ;;  %v4488_v19 = vrot.slane %v4486_v22, 4  ;;  %v4401_v56 = vld [vmem:[#allocation2 + $0x28] sm:$0xf] }
 0x203   : > { %v3960_v25 = vsel %vm12666_vm2, %v3927_v11, 0  ;;  %vm12668_vm13 = vnez %v12667_v58  ;;  %v12669_v63 = vld [vmem:[#allocation69_spill] sm:$0xff]  ;;  %v4402_v11 = vld [vmem:[#allocation2 + $0x2c] sm:$0xf]  ;;  %v4479_v45 = vor.u32 %v4478_v34, %v4474_v50  ;;  %v4124_v22 = vrot.slane %v11342_v14, 4  ;;  %v12673_v58 = vld [vmem:[#allocation35_spill] sm:$0xff] }
 0x204   : > { %v3961_v24 = vsel %vm12668_vm13, %v3928_v41, 0  ;;  %v11368_v5 = vadd.f32 %v12670_v8, %v12669_v63  ;;  %v4470_v44 = vrot.slane %v4469_v20, 4  ;;  %v4126_v62 = vshrl.u32 %v3960_v25, 16  ;;  %v8906_v32 = vld [vmem:[#allocation3 + $0x1c8] ss:$36 sps:$4 sm:$0xff]   ;;  %v11371_v41 = vpop.f32.mrf.mxu0 }
 0x205   : > { %v4129_v12 = vshll.u32 %v3960_v25, 16  ;;  %v4489_v55 = vor.u32 %v4488_v19, %v4484_v6  ;;  %v4135_v39 = vshrl.u32 %v3961_v24, 16  ;;  %12672 = vst [vmem:[#allocation26_spill] sm:$0xff] %v11371_v41  ;;  %v4138_v29 = vshll.u32 %v3961_v24, 16  ;;  %v12675_v25 = vld [vmem:[#allocation76_spill] sm:$0xff]  ;;  %v12677_v19 = vld [vmem:[#allocation34_spill] sm:$0xff]  ;;  %6886 = vmatmul.mubr.bf16.gmra.mxu1 %v8906_v32 }
 0x206   : > { %12671 = vst [vmem:[#allocation23_spill] sm:$0xff] %v11368_v5  ;;  %v4475_v9 = vsel %vm9133_vm11, %v4470_v44, %v4474_v50  ;;  %v4128_v18 = vrot.slane %v4126_v62, 7  ;;  %vm12674_vm7 = vnez %v12673_v58  ;;  %v8904_v20 = vld [vmem:[#allocation3 + $0x44c] ss:$36 sps:$4 sm:$0xff]   ;;  %v4480_v8 = vrot.slane %v4479_v45, 4  ;;  %v11387_v50 = vpop.f32.mrf.mxu1 }
 0x207   : > { %v4434_v63 = vsel %vm12674_vm7, %v4401_v56, 0  ;;  %4818 = vst [vmem:[#allocation3 + $0x20] sm:$0xf] %v4475_v9  ;;  %v11379_v34 = vadd.f32 %v12676_v26, %v12675_v25  ;;  %vm12678_vm5 = vcmp.ne.s16.totalorder %v12677_v19, 0  ;;  %v4403_v1 = vld [vmem:[#allocation2 + $0x30] sm:$0xf]  ;;  %v11385_v5 = vadd.f32 %v11160_v27, %v11137_v59  ;;  %6796 = vmatprep.mubr.bf16.mxu0 %v8904_v20  ;;  %v11394_v59 = vpop.f32.mrf.mxu0 }
 0x208   : > { %v4435_v14 = vsel %vm12678_vm5, %v4402_v11, 0  ;;  %v8907_v24 = vld [vmem:[#allocation3 + $0x448] ss:$36 sps:$4 sm:$0xff]   ;;  %v4490_v44 = vrot.slane %v4489_v55, 4  ;;  %v4131_v56 = vor.u32 %v4129_v12, %v4128_v18  ;;  %v4133_v62 = vrot.slane %v4128_v18, 4  ;;  %v12679_v9 = vld [vmem:[#allocation28_spill] sm:$0xff] }
 0x209   : > { %v11389_v45 = vrot.slane %v4135_v39, 7  ;;  %v4485_v26 = vsel %vm9133_vm11, %v4480_v8, %v4484_v6  ;;  %v4506_v11 = vshrl.u32 %v12679_v9, 16  ;;  %v4512_v58 = vshll.u32 %v4434_v63, 16  ;;  %v4404_v19 = vld [vmem:[#allocation2 + $0x34] sm:$0xf]  ;;  %12680 = vst [vmem:[#allocation27_spill] sm:$0xff] %v11394_v59  ;;  %v11402_v59 = vpop.f32.mrf.mxu1  ;;  %6797 = vmatmul.mubr.bf16.gmra.mxu0 %v8907_v24  ;;  %v11413_v24 = vpop.f32.mrf.mxu0 }
 0x20a   : > { %v4516_v25 = vshrl.u32 %v4434_v63, 16  ;;  %v8908_v27 = vld [vmem:[#allocation3 + $0x214] ss:$36 sps:$4 sm:$0xff]   ;;  %v4495_v12 = vsel %vm9133_vm11, %v4490_v44, %v12681_v46  ;;  %4819 = vst [vmem:[#allocation3 + $0x44] sm:$0xf] %v4485_v26  ;;  %v4132_v55 = vsel %vm9192_vm14, %v4124_v22, %v4131_v56  ;;  %v4522_v39 = vshll.u32 %v4435_v14, 16 }
 0x20b   : > { %v4140_v32 = vor.u32 %v4138_v29, %v11389_v45  ;;  %v3929_v6 = vld [vmem:[#allocation2 + $0x5c] sm:$0xf]  ;;  %4820 = vst [vmem:[#allocation3 + $0x68] sm:$0xf] %v4495_v12  ;;  %4316 = vst [vmem:[#allocation3 + $0x258] sm:$0xf] %v4132_v55  ;;  %6893 = vmatprep.mubr.bf16.mxu1 %v8908_v27 }
 0x20c   : > { %v4508_v18 = vrot.slane %v4506_v11, 4  ;;  %v4514_v63 = vrot.slane %v4512_v58, 5  ;;  %v4518_v20 = vrot.slane %v4516_v25, 4  ;;  %v4526_v8 = vshrl.u32 %v4435_v14, 16  ;;  %v3930_v9 = vld [vmem:[#allocation2 + $0x60] sm:$0xf] }
 0x20d   : > { %v4141_v46 = vsel %vm9192_vm14, %v4133_v62, %v4140_v32  ;;  %v4524_v44 = vrot.slane %v4522_v39, 5  ;;  %v12682_v22 = vld [vmem:[#allocation39_spill] sm:$0xff]  ;;  %v12684_v56 = vld [vmem:[#allocation38_spill] sm:$0xff]  ;;  %12686 = vst [vmem:[#allocation32_spill] sm:$0xff] %v11413_v24  ;;  %v12687_v55 = vld [vmem:[#allocation44_spill] sm:$0xff] }
 0x20e   : > { %vm12683_vm6 = vnez %v12682_v22  ;;  %vm12685_vm2 = vcmp.ne.s16.totalorder %v12684_v56, 0  ;;  %v8910_v11 = vld [vmem:[#allocation3 + $0x210] ss:$36 sps:$4 sm:$0xff]   ;;  %4317 = vst [vmem:[#allocation3 + $0x27c] sm:$0xf] %v4141_v46  ;;  %v4509_v14 = vor.u32 %v4508_v18, %v12606_v13  ;;  %v4519_v58 = vor.u32 %v4518_v20, %v4514_v63  ;;  %v11420_v13 = vpop.f32.mrf.mxu1 }
 0x20f   : > { %v4436_v29 = vsel %vm12683_vm6, %v4403_v1, 0  ;;  %v11410_v26 = vsel %vm12685_vm2, %v4404_v19, 0  ;;  %v4528_v25 = vrot.slane %v4526_v8, 4  ;;  %vm12688_vm13 = vnez %v12687_v55  ;;  %v12689_v1 = vld [vmem:[#allocation45_spill] sm:$0xff]  ;;  %v4405_v41 = vld [vmem:[#allocation2 + $0x38] sm:$0xf]  ;;  %6894 = vmatmul.mubr.bf16.gmra.mxu1 %v8910_v11 }
 0x210   : > { %v4532_v12 = vshll.u32 %v4436_v29, 16  ;;  %v4536_v27 = vshrl.u32 %v4436_v29, 16  ;;  %v4542_v62 = vshll.u32 %v11410_v26, 16  ;;  %v3962_v32 = vsel %vm12688_vm13, %v3929_v6, 0  ;;  %12691 = vst [vmem:[#allocation33_spill] sm:$0xff] %v11420_v13  ;;  %v12694_v13 = vld [vmem:[#allocation30_spill] sm:$0xff] }
 0x211   : > { %vm12690_vm7 = vnez %v12689_v1  ;;  %v4510_v19 = vrot.slane %v4509_v14, 4  ;;  %v4520_v22 = vrot.slane %v4519_v58, 4  ;;  %v4529_v56 = vor.u32 %v4528_v25, %v4524_v44  ;;  %v4406_v24 = vld [vmem:[#allocation2 + $0x3c] sm:$0xf]  ;;  %v11429_v25 = vpop.f32.mrf.mxu0 }
 0x212   : > { %v3963_v39 = vsel %vm12690_vm7, %v3930_v9, 0  ;;  %v4534_v46 = vrot.slane %v4532_v12, 5  ;;  %v4538_v18 = vrot.slane %v4536_v27, 4  ;;  %v11422_v20 = vrot.slane %v4542_v62, 5  ;;  %v8911_v55 = vld [vmem:[#allocation3 + $0x20] ss:$36 sps:$4 sm:$0xff]  }
 0x213   : > { %v4142_v8 = vrot.slane %v11389_v45, 4  ;;  %v4144_v29 = vshrl.u32 %v3962_v32, 16  ;;  %v4515_v6 = vsel %vm9133_vm11, %v4510_v19, %v4514_v63  ;;  %v4525_v9 = vsel %vm9133_vm11, %v4520_v22, %v4524_v44  ;;  %v8912_v12 = vld [vmem:[#allocation3 + $0x68] ss:$36 sps:$4 sm:$0xff]   ;;  %v12692_v62 = vld [vmem:[#allocation83_spill] sm:$0xff]  ;;  %v12693_v45 = vld [vmem:[#allocation84_spill] sm:$0xff]  ;;  %8613 = vmatprep.mubr.bf16.mxu0 %v8911_v55 }
 0x214   : > { %v4530_v14 = vrot.slane %v4529_v56, 4  ;;  %v4147_v58 = vshll.u32 %v3962_v32, 16  ;;  %4822 = vst [vmem:[#allocation3 + $0xb0] sm:$0xf] %v4515_v6  ;;  %4823 = vst [vmem:[#allocation3 + $0xd4] sm:$0xf] %v4525_v9  ;;  %v4539_v27 = vor.u32 %v4538_v18, %v4534_v46  ;;  %v11433_v1 = vadd.f32 %v12693_v45, %v12692_v62  ;;  %v11443_v18 = vpop.f32.mrf.mxu1  ;;  %8614 = vmatmul.mubr.bf16.vlgmr.msra.gmra.mxu0 %v8912_v12 }
 0x215   : > { %v4146_v11 = vrot.slane %v4144_v29, 7  ;;  %v11437_v28 = vadd.f32 %v12695_v61, %v12694_v13  ;;  %v4153_v44 = vshrl.u32 %v3963_v39, 16  ;;  %v4156_v32 = vshll.u32 %v3963_v39, 16  ;;  %v12696_v19 = vld [vmem:[#allocation43_spill] sm:$0xff]  ;;  %v4407_v56 = vld [vmem:[#allocation2 + $0x40] sm:$0xf] }
 0x216   : > { %v4535_v63 = vsel %vm9133_vm11, %v4530_v14, %v4534_v46  ;;  %vm12697_vm5 = vnez %v12696_v19  ;;  %v8915_v6 = vld [vmem:[#allocation3 + $0x25c] ss:$36 sps:$4 sm:$0xff]   ;;  %v4540_v9 = vrot.slane %v4539_v27, 4  ;;  %v4408_v62 = vld [vmem:[#allocation2 + $0x44] sm:$0xf]  ;;  %v11447_v61 = vadd.f32 %v11385_v5, %v11220_v60  ;;  %v11456_v27 = vpop.f32.mrf.mxu0 }
 0x217   : > { %v4438_v22 = vsel %vm12697_vm5, %v4405_v41, 0  ;;  %4824 = vst [vmem:[#allocation3 + $0xf8] sm:$0xf] %v4535_v63  ;;  %v4149_v29 = vor.u32 %v4147_v58, %v4146_v11  ;;  %v8273_v46 = vadd.f32 %v11199_v52, %v11178_v16  ;;  %v8913_v39 = vld [vmem:[#allocation3 + $0x258] ss:$36 sps:$4 sm:$0xff]   ;;  %v4151_v13 = vrot.slane %v4146_v11, 4  ;;  %6901 = vmatprep.mubr.bf16.mxu1 %v8915_v6  ;;  %v11464_v63 = vpop.f32.mrf.mxu1 }
 0x218   : > { %12698 = vst [vmem:[#allocation36_spill] sm:$0xff] %v11447_v61  ;;  %v11451_v55 = vrot.slane %v4153_v44, 7  ;;  %v12699_v41 = vld [vmem:[#allocation42_spill] sm:$0xff]  ;;  %v4546_v12 = vshrl.u32 %v11410_v26, 16  ;;  %v4545_v60 = vsel %vm9133_vm11, %v4540_v9, %v11422_v20  ;;  %v4552_v16 = vshll.u32 %v4438_v22, 16  ;;  %v11466_v44 = vpop.f32.mrf.mxu0  ;;  %v12701_v9 = vld [vmem:[#allocation47_spill] sm:$0xff]  ;;  %6902 = vmatmul.mubr.bf16.gmra.mxu1 %v8913_v39 }
 0x219   : > { %vm12700_vm6 = vcmp.ne.s16.totalorder %v12699_v41, 0  ;;  %v4150_v5 = vsel %vm9192_vm14, %v4142_v8, %v4149_v29  ;;  %v4556_v52 = vshrl.u32 %v4438_v22, 16  ;;  %4825 = vst [vmem:[#allocation3 + $0x11c] sm:$0xf] %v4545_v60  ;;  %v3931_v26 = vld [vmem:[#allocation2 + $0x64] sm:$0xf]  ;;  %vm12702_vm2 = vnez %v12701_v9 }
 0x21a   : > { %v4439_v14 = vsel %vm12700_vm6, %v4406_v24, 0  ;;  %v4158_v58 = vor.u32 %v4156_v32, %v11451_v55  ;;  %4318 = vst [vmem:[#allocation3 + $0x2a0] sm:$0xf] %v4150_v5  ;;  %v4548_v45 = vrot.slane %v4546_v12, 4  ;;  %v4554_v19 = vrot.slane %v4552_v16, 5  ;;  %v12703_v8 = vld [vmem:[#allocation46_spill] sm:$0xff] }
 0x21b   : > { %v4562_v24 = vshll.u32 %v4439_v14, 16  ;;  %v4566_v11 = vshrl.u32 %v4439_v14, 16  ;;  %v4558_v6 = vrot.slane %v4556_v52, 4  ;;  %v4440_v41 = vsel %vm12702_vm2, %v4407_v56, 0  ;;  %v3932_v29 = vld [vmem:[#allocation2 + $0x68] sm:$0xf]  ;;  %v11484_v56 = vpop.f32.mrf.mxu0 }
 0x21c   : > { %vm12704_vm13 = vcmp.ne.s16.totalorder %v12703_v8, 0  ;;  %v8916_v32 = vld [vmem:[#allocation3 + $0xb0] ss:$36 sps:$4 sm:$0xff]   ;;  %v4159_v14 = vsel %vm9192_vm14, %v4151_v13, %v4158_v58  ;;  %v4549_v12 = vor.u32 %v4548_v45, %v11422_v20  ;;  %v11482_v16 = vadd.f32 %v11208_v31, %v11183_v15  ;;  %v12708_v20 = vld [vmem:[#allocation48_spill] sm:$0xff]  ;;  %v11489_v58 = vpop.f32.mrf.mxu1 }
 0x21d   : > { %v11472_v22 = vsel %vm12704_vm13, %v4408_v62, 0  ;;  %v12705_v60 = vld [vmem:[#allocation86_spill] sm:$0xff]  ;;  %4319 = vst [vmem:[#allocation3 + $0x2c4] sm:$0xf] %v4159_v14  ;;  %v4559_v62 = vor.u32 %v4558_v6, %v4554_v19  ;;  %v4564_v52 = vrot.slane %v4562_v24, 5  ;;  %v4568_v9 = vrot.slane %v4566_v11, 4  ;;  %8617 = vmatprep.mubr.bf16.mxu0 %v8916_v32 }
 0x21e   : > { %v11478_v5 = vadd.f32 %v8273_v46, %v12705_v60  ;;  %12707 = vst [vmem:[#allocation25_spill] sm:$0xff] %v11482_v16  ;;  %v4572_v39 = vshll.u32 %v4440_v41, 16  ;;  %v4550_v8 = vrot.slane %v4549_v12, 4  ;;  %v4576_v61 = vshrl.u32 %v4440_v41, 16  ;;  %v12710_v60 = vld [vmem:[#allocation49_spill] sm:$0xff]  ;;  %v12728_v16 = vld [vmem:[#allocation55_spill] sm:$0xff] }
 0x21f   : > { %v4582_v13 = vshll.u32 %v11472_v22, 16  ;;  %vm12709_vm7 = vnez %v12708_v20  ;;  %v4560_v45 = vrot.slane %v4559_v62, 4  ;;  %v4569_v15 = vor.u32 %v4568_v9, %v4564_v52  ;;  %v4409_v6 = vld [vmem:[#allocation2 + $0x48] sm:$0xf]  ;;  %v4410_v12 = vld [vmem:[#allocation2 + $0x4c] sm:$0xf]  ;;  %v11498_v20 = vpop.f32.mrf.mxu0 }
 0x220   : > { %12706 = vst [vmem:[#allocation37_spill] sm:$0xff] %v11478_v5  ;;  %v3964_v46 = vsel %vm12709_vm7, %v3931_v26, 0  ;;  %v4574_v31 = vrot.slane %v4572_v39, 5  ;;  %vm12711_vm5 = vnez %v12710_v60  ;;  %v4555_v24 = vsel %vm9133_vm11, %v4550_v8, %v4554_v19  ;;  %v8917_v26 = vld [vmem:[#allocation3 + $0xf8] ss:$36 sps:$4 sm:$0xff]  }
 0x221   : > { %v3965_v14 = vsel %vm12711_vm5, %v3932_v29, 0  ;;  %v4578_v11 = vrot.slane %v4576_v61, 4  ;;  %v11495_v32 = vrot.slane %v4582_v13, 5  ;;  %v4160_v41 = vrot.slane %v11451_v55, 4  ;;  %4826 = vst [vmem:[#allocation3 + $0x140] sm:$0xf] %v4555_v24  ;;  %v11508_v13 = vpop.f32.mrf.mxu1  ;;  %8618 = vmatmul.mubr.bf16.gmra.mxu0 %v8917_v26 }
 0x222   : > { %v4565_v62 = vsel %vm9133_vm11, %v4560_v45, %v4564_v52  ;;  %v4570_v9 = vrot.slane %v4569_v15, 4  ;;  %v11504_v29 = vadd.f32 %v11237_v36, %v11216_v17  ;;  %v8279_v61 = vadd.f32 %v11267_v54, %v11252_v43  ;;  %v12712_v15 = vld [vmem:[#allocation51_spill] sm:$0xff]  ;;  %v12714_v17 = vld [vmem:[#allocation50_spill] sm:$0xff]  ;;  %v8920_v43 = vld [vmem:[#allocation3 + $0x2a4] ss:$36 sps:$4 sm:$0xff]  }
 0x223   : > { %4827 = vst [vmem:[#allocation3 + $0x164] sm:$0xf] %v4565_v62  ;;  %v4579_v19 = vor.u32 %v4578_v11, %v4574_v31  ;;  %v4162_v39 = vshrl.u32 %v3964_v46, 16  ;;  %v4165_v55 = vshll.u32 %v3964_v46, 16  ;;  %v4171_v8 = vshrl.u32 %v3965_v14, 16  ;;  %6909 = vmatprep.mubr.bf16.mxu1 %v8920_v43 }
 0x224   : > { %v4575_v52 = vsel %vm9133_vm11, %v4570_v9, %v4574_v31  ;;  %v4174_v45 = vshll.u32 %v3965_v14, 16  ;;  %vm12713_vm6 = vnez %v12712_v15  ;;  %vm12715_vm2 = vcmp.ne.s16.totalorder %v12714_v17, 0  ;;  %v8918_v24 = vld [vmem:[#allocation3 + $0x2a0] ss:$36 sps:$4 sm:$0xff]   ;;  %v11527_v14 = vpop.f32.mrf.mxu0  ;;  %v4411_v9 = vld [vmem:[#allocation2 + $0x50] sm:$0xf] }
 0x225   : > { %v4442_v60 = vsel %vm12713_vm6, %v4409_v6, 0  ;;  %v4443_v36 = vsel %vm12715_vm2, %v4410_v12, 0  ;;  %v4580_v54 = vrot.slane %v4579_v19, 4  ;;  %4828 = vst [vmem:[#allocation3 + $0x188] sm:$0xf] %v4575_v52  ;;  %v11517_v46 = vadd.f32 %v8279_v61, %v11117_v40  ;;  %6910 = vmatmul.mubr.bf16.gmra.mxu1 %v8918_v24 }
 0x226   : > { %v11521_v11 = vadd.f32 %v11274_v33, %v11257_v37  ;;  %v11525_v31 = vadd.f32 %v11296_v47, %v11280_v48  ;;  %v4164_v6 = vrot.slane %v4162_v39, 7  ;;  %v11529_v26 = vrot.slane %v4171_v8, 7  ;;  %v4412_v19 = vld [vmem:[#allocation2 + $0x54] sm:$0xf]  ;;  %v11535_v48 = vpop.f32.mrf.mxu1  ;;  %v3933_v52 = vld [vmem:[#allocation2 + $0x6c] sm:$0xf] }
 0x227   : > { %12716 = vst [vmem:[#allocation24_spill] sm:$0xff] %v11517_v46  ;;  %v4586_v12 = vshrl.u32 %v11472_v22, 16  ;;  %v4592_v62 = vshll.u32 %v4442_v60, 16  ;;  %v4585_v40 = vsel %vm9133_vm11, %v4580_v54, %v11495_v32  ;;  %v4596_v37 = vshrl.u32 %v4442_v60, 16  ;;  %v3934_v15 = vld [vmem:[#allocation2 + $0x70] sm:$0xf]  ;;  %v11538_v54 = vpop.f32.mrf.mxu0 }
 0x228   : > { %12717 = vst [vmem:[#allocation77_spill] sm:$0xff] %v11521_v11  ;;  %v4602_v33 = vshll.u32 %v4443_v36, 16  ;;  %v4606_v61 = vshrl.u32 %v4443_v36, 16  ;;  %4829 = vst [vmem:[#allocation3 + $0x1ac] sm:$0xf] %v4585_v40  ;;  %v4167_v47 = vor.u32 %v4165_v55, %v4164_v6  ;;  %v4169_v39 = vrot.slane %v4164_v6, 4 }
 0x229   : > { %v4176_v8 = vor.u32 %v4174_v45, %v11529_v26  ;;  %v4588_v22 = vrot.slane %v4586_v12, 4  ;;  %v4594_v17 = vrot.slane %v4592_v62, 5  ;;  %v4598_v43 = vrot.slane %v4596_v37, 4  ;;  %v12719_v40 = vld [vmem:[#allocation53_spill] sm:$0xff] }
 0x22a   : > { %v4604_v46 = vrot.slane %v4602_v33, 5  ;;  %v4608_v5 = vrot.slane %v4606_v61, 4  ;;  %v8921_v60 = vld [vmem:[#allocation3 + $0x140] ss:$36 sps:$4 sm:$0xff]   ;;  %v4168_v36 = vsel %vm9192_vm14, %v4160_v41, %v4167_v47  ;;  %v4444_v45 = vsel %vm10422_vm1, %v4411_v9, 0  ;;  %v11549_v61 = vpop.f32.mrf.mxu1 }
 0x22b   : > { %v4177_v24 = vsel %vm9192_vm14, %v4169_v39, %v4176_v8  ;;  %v4589_v55 = vor.u32 %v4588_v22, %v11495_v32  ;;  %4320 = vst [vmem:[#allocation3 + $0x2e8] sm:$0xf] %v4168_v36  ;;  %v4599_v12 = vor.u32 %v4598_v43, %v4594_v17  ;;  %vm12720_vm13 = vcmp.ne.s16.totalorder %v12719_v40, 0  ;;  %8621 = vmatprep.mubr.bf16.mxu0 %v8921_v60  ;;  %v12721_v39 = vld [vmem:[#allocation52_spill] sm:$0xff] }
 0x22c   : > { %4321 = vst [vmem:[#allocation3 + $0x30c] sm:$0xf] %v4177_v24  ;;  %v4609_v62 = vor.u32 %v4608_v5, %v4604_v46  ;;  %v4445_v37 = vsel %vm12720_vm13, %v4412_v19, 0  ;;  %v4612_v33 = vshll.u32 %v4444_v45, 16  ;;  %v4616_v47 = vshrl.u32 %v4444_v45, 16  ;;  %v12723_v36 = vld [vmem:[#allocation8_spill] sm:$0xff]  ;;  %v11555_v24 = vpop.f32.mrf.mxu0  ;;  %v11560_v40 = vpop.f32.mrf.mxu1 }
 0x22d   : > { %v4590_v41 = vrot.slane %v4589_v55, 4  ;;  %v4622_v11 = vshll.u32 %v4445_v37, 16  ;;  %vm12722_vm7 = vnez %v12721_v39  ;;  %v4600_v8 = vrot.slane %v4599_v12, 4  ;;  %v4413_v5 = vld [vmem:[#allocation2 + $0x58] sm:$0xf]  ;;  %12725 = vst [vmem:[#allocation40_spill] sm:$0xff] %v11555_v24 }
 0x22e   : > { %v3966_v32 = vsel %vm12722_vm7, %v3933_v52, 0  ;;  %v4610_v22 = vrot.slane %v4609_v62, 4  ;;  %v4614_v9 = vrot.slane %v4612_v33, 5  ;;  %vm12724_vm1 = vnez %v12723_v36  ;;  %v4414_v45 = vld [vmem:[#allocation2 + $0x5c] sm:$0xf] }
 0x22f   : > { %v3967_v43 = vsel %vm12724_vm1, %v3934_v15, 0  ;;  %v4595_v19 = vsel %vm9133_vm11, %v4590_v41, %v4594_v17  ;;  %v4618_v6 = vrot.slane %v4616_v47, 4  ;;  %v4624_v60 = vrot.slane %v4622_v11, 5  ;;  %v8922_v52 = vld [vmem:[#allocation3 + $0x188] ss:$36 sps:$4 sm:$0xff]   ;;  %v12726_v41 = vld [vmem:[#allocation56_spill] sm:$0xff] }
 0x230   : > { %v4178_v55 = vrot.slane %v11529_v26, 4  ;;  %v4605_v12 = vsel %vm9133_vm11, %v4600_v8, %v4604_v46  ;;  %4830 = vst [vmem:[#allocation3 + $0x1d0] sm:$0xf] %v4595_v19  ;;  %v4615_v15 = vsel %vm9133_vm11, %v4610_v22, %v4614_v9  ;;  %v4180_v62 = vshrl.u32 %v3966_v32, 16  ;;  %v4415_v47 = vld [vmem:[#allocation2 + $0x60] sm:$0xf]  ;;  %8622 = vmatmul.mubr.bf16.gmra.mxu0 %v8922_v52  ;;  %v11570_v22 = vpop.f32.mrf.mxu0 }
 0x231   : > { %v4183_v33 = vshll.u32 %v3966_v32, 16  ;;  %4831 = vst [vmem:[#allocation3 + $0x1f4] sm:$0xf] %v4605_v12  ;;  %v4619_v39 = vor.u32 %v4618_v6, %v4614_v9  ;;  %4832 = vst [vmem:[#allocation3 + $0x218] sm:$0xf] %v4615_v15  ;;  %v4189_v17 = vshrl.u32 %v3967_v43, 16  ;;  %vm12727_vm5 = vnez %v12726_v41  ;;  %v11582_v6 = vpop.f32.mrf.mxu1 }
 0x232   : > { %v4192_v11 = vshll.u32 %v3967_v43, 16  ;;  %v4446_v26 = vsel %vm12727_vm5, %v4413_v5, 0  ;;  %v4182_v36 = vrot.slane %v4180_v62, 7  ;;  %vm12729_vm6 = vcmp.ne.s16.totalorder %v12728_v16, 0  ;;  %v4416_v24 = vld [vmem:[#allocation2 + $0x64] sm:$0xf] }
 0x233   : > { %v4447_v46 = vsel %vm12729_vm6, %v4414_v45, 0  ;;  %v4626_v8 = vshrl.u32 %v4445_v37, 16  ;;  %v4632_v19 = vshll.u32 %v4446_v26, 16  ;;  %v8923_v32 = vld [vmem:[#allocation3 + $0x2e8] ss:$36 sps:$4 sm:$0xff]   ;;  %v4620_v12 = vrot.slane %v4619_v39, 4 }
 0x234   : > { %v11572_v9 = vrot.slane %v4189_v17, 7  ;;  %v11576_v43 = vadd.f32 %v11244_v49, %v11229_v30  ;;  %v11580_v5 = vadd.f32 %v11525_v31, %v11379_v34  ;;  %v8925_v16 = vld [vmem:[#allocation3 + $0x2ec] ss:$36 sps:$4 sm:$0xff]   ;;  %v4185_v37 = vor.u32 %v4183_v33, %v4182_v36 }
 0x235   : > { %v4187_v45 = vrot.slane %v4182_v36, 4  ;;  %v4628_v52 = vrot.slane %v4626_v8, 4  ;;  %v4634_v15 = vrot.slane %v4632_v19, 5  ;;  %v4625_v62 = vsel %vm9133_vm11, %v4620_v12, %v4624_v60  ;;  %6917 = vmatprep.mubr.bf16.mxu1 %v8925_v16  ;;  %v3935_v36 = vld [vmem:[#allocation2 + $0x74] sm:$0xf]  ;;  %v11591_v19 = vpop.f32.mrf.mxu0  ;;  %v12732_v16 = vld [vmem:[#allocation57_spill] sm:$0xff] }
 0x236   : > { %12730 = vst [vmem:[#allocation41_spill] sm:$0xff] %v11580_v5  ;;  %v4194_v39 = vor.u32 %v4192_v11, %v11572_v9  ;;  %v4636_v17 = vshrl.u32 %v4446_v26, 16  ;;  %v4642_v41 = vshll.u32 %v4447_v46, 16  ;;  %4833 = vst [vmem:[#allocation3 + $0x23c] sm:$0xf] %v4625_v62  ;;  %v4186_v30 = vsel %vm9192_vm14, %v4178_v55, %v4185_v37  ;;  %6918 = vmatmul.mubr.bf16.gmra.mxu1 %v8923_v32  ;;  %v12758_v5 = vld [vmem:[#allocation73_spill] sm:$0xff] }
 0x237   : > { %v4629_v49 = vor.u32 %v4628_v52, %v4624_v60  ;;  %v4646_v34 = vshrl.u32 %v4447_v46, 16  ;;  %v4448_v33 = vsel %vm10562_vm4, %v4415_v47, 0  ;;  %v3936_v8 = vld [vmem:[#allocation2 + $0x78] sm:$0xf]  ;;  %4322 = vst [vmem:[#allocation3 + $0x330] sm:$0xf] %v4186_v30  ;;  %v11599_v60 = vpop.f32.mrf.mxu1  ;;  %v8285_v47 = vadd.f32 %v11330_v42, %v11312_v23 }
 0x238   : > { %v4195_v11 = vsel %vm9192_vm14, %v4187_v45, %v4194_v39  ;;  %v4638_v26 = vrot.slane %v4636_v17, 4  ;;  %v4644_v12 = vrot.slane %v4642_v41, 5  ;;  %vm12733_vm2 = vcmp.ne.s16.totalorder %v12732_v16, 0  ;;  %v8926_v55 = vld [vmem:[#allocation3 + $0x1d0] ss:$36 sps:$4 sm:$0xff]   ;;  %v11613_v17 = vpop.f32.mrf.mxu0 }
 0x239   : > { %v11597_v62 = vsel %vm12733_vm2, %v4416_v24, 0  ;;  %4323 = vst [vmem:[#allocation3 + $0x354] sm:$0xf] %v4195_v11  ;;  %v11605_v46 = vadd.f32 %v11332_v51, %v11317_v0  ;;  %v8288_v32 = vadd.f32 %v11364_v2, %v11351_v21  ;;  %v11611_v37 = vadd.f32 %v11356_v7, %v11340_v57  ;;  %8625 = vmatprep.mubr.bf16.mxu0 %v8926_v55  ;;  %v12734_v42 = vld [vmem:[#allocation10_spill] sm:$0xff]  ;;  %v12736_v51 = vld [vmem:[#allocation9_spill] sm:$0xff] }
 0x23a   : > { %v4630_v24 = vrot.slane %v4629_v49, 4  ;;  %v4639_v45 = vor.u32 %v4638_v26, %v4634_v15  ;;  %v4648_v52 = vrot.slane %v4646_v34, 4  ;;  %v4652_v39 = vshll.u32 %v4448_v33, 16  ;;  %v11622_v49 = vpop.f32.mrf.mxu1  ;;  %v4417_v26 = vld [vmem:[#allocation2 + $0x68] sm:$0xf] }
 0x23b   : > { %v4656_v41 = vshrl.u32 %v4448_v33, 16  ;;  %v4662_v23 = vshll.u32 %v11597_v62, 16  ;;  %vm12735_vm4 = vnez %v12734_v42  ;;  %vm12737_vm13 = vnez %v12736_v51  ;;  %v8930_v42 = vld [vmem:[#allocation3 + $0x334] ss:$36 sps:$4 sm:$0xff]  }
 0x23c   : > { %v3968_v0 = vsel %vm12735_vm4, %v3935_v36, 0  ;;  %v3969_v21 = vsel %vm12737_vm13, %v3936_v8, 0  ;;  %v4635_v57 = vsel %vm9133_vm11, %v4630_v24, %v4634_v15  ;;  %v4640_v7 = vrot.slane %v4639_v45, 4  ;;  %v11632_v24 = vpop.f32.mrf.mxu0  ;;  %6925 = vmatprep.mubr.bf16.mxu1 %v8930_v42  ;;  %v12741_v42 = vld [vmem:[#allocation59_spill] sm:$0xff] }
 0x23d   : > { %v4649_v2 = vor.u32 %v4648_v52, %v4644_v12  ;;  %v4654_v30 = vrot.slane %v4652_v39, 5  ;;  %4834 = vst [vmem:[#allocation3 + $0x260] sm:$0xf] %v4635_v57  ;;  %v4658_v34 = vrot.slane %v4656_v41, 4  ;;  %v11624_v31 = vrot.slane %v4662_v23, 5 }
 0x23e   : > { %v4196_v33 = vrot.slane %v11572_v9, 4  ;;  %v4198_v11 = vshrl.u32 %v3968_v0, 16  ;;  %v8927_v36 = vld [vmem:[#allocation3 + $0x218] ss:$36 sps:$4 sm:$0xff]   ;;  %v4645_v8 = vsel %vm9133_vm11, %v4640_v7, %v4644_v12  ;;  %v4201_v55 = vshll.u32 %v3968_v0, 16  ;;  %v11645_v0 = vpop.f32.mrf.mxu1 }
 0x23f   : > { %v4650_v16 = vrot.slane %v4649_v2, 4  ;;  %v11630_v15 = vadd.f32 %v8285_v47, %v11153_v35  ;;  %4835 = vst [vmem:[#allocation3 + $0x284] sm:$0xf] %v4645_v8  ;;  %v4659_v45 = vor.u32 %v4658_v34, %v4654_v30  ;;  %v4207_v39 = vshrl.u32 %v3969_v21, 16  ;;  %v4418_v23 = vld [vmem:[#allocation2 + $0x6c] sm:$0xf]  ;;  %8626 = vmatmul.mubr.bf16.gmra.mxu0 %v8927_v36 }
 0x240   : > { %v4200_v52 = vrot.slane %v4198_v11, 7  ;;  %v4210_v41 = vshll.u32 %v3969_v21, 16  ;;  %v8928_v9 = vld [vmem:[#allocation3 + $0x330] ss:$36 sps:$4 sm:$0xff]   ;;  %v4450_v12 = vsel %vm10630_vm9, %v4417_v26, 0  ;;  %v11639_v35 = vadd.f32 %v8288_v32, %v11433_v1 }
 0x241   : > { %12738 = vst [vmem:[#allocation69_spill] sm:$0xff] %v11630_v15  ;;  %v4655_v51 = vsel %vm9133_vm11, %v4650_v16, %v4654_v30  ;;  %v11643_v47 = vadd.f32 %v11402_v59, %v11387_v50  ;;  %v4660_v21 = vrot.slane %v4659_v45, 4  ;;  %v11647_v2 = vrot.slane %v4207_v39, 7  ;;  %v4419_v34 = vld [vmem:[#allocation2 + $0x70] sm:$0xf]  ;;  %v11652_v50 = vpop.f32.mrf.mxu0  ;;  %6926 = vmatmul.mubr.bf16.gmra.mxu1 %v8928_v9  ;;  %v11660_v39 = vpop.f32.mrf.mxu1 }
 0x242   : > { %12739 = vst [vmem:[#allocation71_spill] sm:$0xff] %v11639_v35  ;;  %4836 = vst [vmem:[#allocation3 + $0x2a8] sm:$0xf] %v4655_v51  ;;  %v4203_v57 = vor.u32 %v4201_v55, %v4200_v52  ;;  %v4205_v7 = vrot.slane %v4200_v52, 4  ;;  %vm12740_vm7 = vcmp.ne.s16.totalorder %v10622_v4, 0  ;;  %v4666_v1 = vshrl.u32 %v11597_v62, 16 }
 0x243   : > { %v4451_v10 = vsel %vm12740_vm7, %v4418_v23, 0  ;;  %v4672_v32 = vshll.u32 %v4450_v12, 16  ;;  %v4676_v30 = vshrl.u32 %v4450_v12, 16  ;;  %v4420_v11 = vld [vmem:[#allocation2 + $0x74] sm:$0xf]  ;;  %v4665_v59 = vsel %vm9133_vm11, %v4660_v21, %v11624_v31 }
 0x244   : > { %v4204_v26 = vsel %vm9192_vm14, %v4196_v33, %v4203_v57  ;;  %v4212_v36 = vor.u32 %v4210_v41, %v11647_v2  ;;  %v4682_v8 = vshll.u32 %v4451_v10, 16  ;;  %v3937_v4 = vld [vmem:[#allocation2 + $0x7c] sm:$0xf]  ;;  %v3938_v16 = vld [vmem:[#allocation2 + $0x80] sm:$0xf]  ;;  %v4668_v62 = vrot.slane %v4666_v1, 4  ;;  %v11671_v1 = vpop.f32.mrf.mxu0 }
 0x245   : > { %4837 = vst [vmem:[#allocation3 + $0x2cc] sm:$0xf] %v4665_v59  ;;  %4324 = vst [vmem:[#allocation3 + $0x378] sm:$0xf] %v4204_v26  ;;  %v4674_v55 = vrot.slane %v4672_v32, 5  ;;  %v4678_v45 = vrot.slane %v4676_v30, 4  ;;  %v8379_v53 = vadd.f32 %v11613_v17, %v11591_v19 }
 0x246   : > { %v4686_v52 = vshrl.u32 %v4451_v10, 16  ;;  %v4213_v23 = vsel %vm9192_vm14, %v4205_v7, %v4212_v36  ;;  %v4684_v9 = vrot.slane %v4682_v8, 5  ;;  %v4452_v33 = vsel %vm10696_vm0, %v4419_v34, 0  ;;  %v8931_v51 = vld [vmem:[#allocation3 + $0x260] ss:$36 sps:$4 sm:$0xff]   ;;  %v12745_v34 = vld [vmem:[#allocation14_spill] sm:$0xff] }
 0x247   : > { %vm12742_vm9 = vcmp.ne.s16.totalorder %v12741_v42, 0  ;;  %4325 = vst [vmem:[#allocation3 + $0x39c] sm:$0xf] %v4213_v23  ;;  %v4669_v12 = vor.u32 %v4668_v62, %v11624_v31  ;;  %v4679_v21 = vor.u32 %v4678_v45, %v4674_v55  ;;  %v4692_v10 = vshll.u32 %v4452_v33, 16  ;;  %v12743_v30 = vld [vmem:[#allocation12_spill] sm:$0xff]  ;;  %8629 = vmatprep.mubr.bf16.mxu0 %v8931_v51  ;;  %v11678_v31 = vpop.f32.mrf.mxu1  ;;  %v12786_v19 = vld [vmem:[#allocation77_spill] sm:$0xff] }
 0x248   : > { %v11668_v41 = vsel %vm12742_vm9, %v4420_v11, 0  ;;  %v4688_v57 = vrot.slane %v4686_v52, 4  ;;  %v4696_v32 = vshrl.u32 %v4452_v33, 16  ;;  %vm12744_vm1 = vnez %v12743_v30  ;;  %v4421_v33 = vld [vmem:[#allocation2 + $0x78] sm:$0xf]  ;;  %v12749_v30 = vld [vmem:[#allocation26_spill] sm:$0xff] }
 0x249   : > { %v4702_v7 = vshll.u32 %v11668_v41, 16  ;;  %v3970_v3 = vsel %vm12744_vm1, %v3937_v4, 0  ;;  %vm12746_vm0 = vnez %v12745_v34  ;;  %v4670_v11 = vrot.slane %v4669_v12, 4  ;;  %v4422_v12 = vld [vmem:[#allocation2 + $0x7c] sm:$0xf]  ;;  %v12750_v34 = vld [vmem:[#allocation27_spill] sm:$0xff] }
 0x24a   : > { %v3971_v59 = vsel %vm12746_vm0, %v3938_v16, 0  ;;  %v4680_v26 = vrot.slane %v4679_v21, 4  ;;  %v4689_v36 = vor.u32 %v4688_v57, %v4684_v9  ;;  %v4694_v8 = vrot.slane %v4692_v10, 5  ;;  %v11687_v21 = vpop.f32.mrf.mxu0  ;;  %v4424_v35 = vld [vmem:[#allocation2 + $0x84] sm:$0xf] }
 0x24b   : > { %v4698_v62 = vrot.slane %v4696_v32, 4  ;;  %v11680_v45 = vrot.slane %v4702_v7, 5  ;;  %v4214_v52 = vrot.slane %v11647_v2, 4  ;;  %v4216_v23 = vshrl.u32 %v3970_v3, 16  ;;  %v12747_v7 = vld [vmem:[#allocation89_spill] sm:$0xff] }
 0x24c   : > { %v4675_v4 = vsel %vm9133_vm11, %v4670_v11, %v4674_v55  ;;  %v4685_v16 = vsel %vm9133_vm11, %v4680_v26, %v4684_v9  ;;  %v4690_v42 = vrot.slane %v4689_v36, 4  ;;  %v4219_v51 = vshll.u32 %v3970_v3, 16  ;;  %v8932_v57 = vld [vmem:[#allocation3 + $0x2a8] ss:$36 sps:$4 sm:$0xff]   ;;  %v11714_v15 = vpop.f32.mrf.mxu0 }
 0x24d   : > { %4838 = vst [vmem:[#allocation3 + $0x2f0] sm:$0xf] %v4675_v4  ;;  %4839 = vst [vmem:[#allocation3 + $0x314] sm:$0xf] %v4685_v16  ;;  %v4699_v10 = vor.u32 %v4698_v62, %v4694_v8  ;;  %v4218_v32 = vrot.slane %v4216_v23, 7  ;;  %v11691_v2 = vadd.f32 %v11643_v47, %v12747_v7  ;;  %v11695_v55 = vadd.f32 %v12750_v34, %v12749_v30  ;;  %v11701_v16 = vpop.f32.mrf.mxu1  ;;  %v12753_v34 = vld [vmem:[#allocation32_spill] sm:$0xff] }
 0x24e   : > { %v4695_v9 = vsel %vm9133_vm11, %v4690_v42, %v4694_v8  ;;  %v4225_v3 = vshrl.u32 %v3971_v59, 16  ;;  %v4228_v11 = vshll.u32 %v3971_v59, 16  ;;  %v4454_v36 = vsel %vm10820_vm15, %v4421_v33, 0  ;;  %v4423_v4 = vld [vmem:[#allocation2 + $0x80] sm:$0xf]  ;;  %8630 = vmatmul.mubr.bf16.gmra.mxu0 %v8932_v57  ;;  %v12755_v33 = vld [vmem:[#allocation66_spill] sm:$0xff] }
 0x24f   : > { %12748 = vst [vmem:[#allocation35_spill] sm:$0xff] %v11691_v2  ;;  %v8933_v62 = vld [vmem:[#allocation3 + $0x378] ss:$36 sps:$4 sm:$0xff]   ;;  %v4700_v47 = vrot.slane %v4699_v10, 4  ;;  %4840 = vst [vmem:[#allocation3 + $0x338] sm:$0xf] %v4695_v9  ;;  %v4221_v7 = vor.u32 %v4219_v51, %v4218_v32  ;;  %v11707_v8 = vadd.f32 %v11429_v25, %v12753_v34 }
 0x250   : > { %v8935_v23 = vld [vmem:[#allocation3 + $0x37c] ss:$36 sps:$4 sm:$0xff]   ;;  %v12752_v2 = vld [vmem:[#allocation33_spill] sm:$0xff]  ;;  %v4223_v59 = vrot.slane %v4218_v32, 4  ;;  %v11709_v42 = vrot.slane %v4225_v3, 7  ;;  %vm12756_vm15 = vcmp.ne.s16.totalorder %v12755_v33, 0  ;;  %v11721_v32 = vpop.f32.mrf.mxu1 }
 0x251   : > { %v8294_v30 = vadd.f32 %v11443_v18, %v12752_v2  ;;  %12754 = vst [vmem:[#allocation76_spill] sm:$0xff] %v11707_v8  ;;  %v4455_v26 = vsel %vm12756_vm15, %v4422_v12, 0  ;;  %v4706_v57 = vshrl.u32 %v11668_v41, 16  ;;  %6933 = vmatprep.mubr.bf16.mxu1 %v8935_v23  ;;  %v4705_v18 = vsel %vm9133_vm11, %v4700_v47, %v11680_v45  ;;  %v3939_v3 = vld [vmem:[#allocation2 + $0x84] sm:$0xf] }
 0x252   : > { %v4222_v25 = vsel %vm9192_vm14, %v4214_v52, %v4221_v7  ;;  %v4712_v51 = vshll.u32 %v4454_v36, 16  ;;  %v4716_v10 = vshrl.u32 %v4454_v36, 16  ;;  %6934 = vmatmul.mubr.bf16.gmra.mxu1 %v8933_v62  ;;  %4841 = vst [vmem:[#allocation3 + $0x35c] sm:$0xf] %v4705_v18  ;;  %v4230_v12 = vor.u32 %v4228_v11, %v11709_v42  ;;  %v3940_v36 = vld [vmem:[#allocation2 + $0x88] sm:$0xf]  ;;  %v11740_v18 = vpop.f32.mrf.mxu0 }
 0x253   : > { %4326 = vst [vmem:[#allocation3 + $0x3c0] sm:$0xf] %v4222_v25  ;;  %v4708_v41 = vrot.slane %v4706_v57, 4  ;;  %v4722_v2 = vshll.u32 %v4455_v26, 16  ;;  %v4726_v9 = vshrl.u32 %v4455_v26, 16  ;;  %v4456_v47 = vsel %vm10883_vm3, %v4423_v4, 0 }
 0x254   : > { %v4714_v23 = vrot.slane %v4712_v51, 5  ;;  %v4718_v34 = vrot.slane %v4716_v10, 4  ;;  %vm12759_vm5 = vcmp.ne.s16.totalorder %v12758_v5, 0  ;;  %v8936_v7 = vld [vmem:[#allocation3 + $0x2f0] ss:$36 sps:$4 sm:$0xff]   ;;  %v4231_v62 = vsel %vm9192_vm14, %v4223_v59, %v4230_v12  ;;  %v11742_v51 = vpop.f32.mrf.mxu1 }
 0x255   : > { %v11728_v52 = vsel %vm12759_vm5, %v4424_v35, 0  ;;  %v4709_v11 = vor.u32 %v4708_v41, %v11680_v45  ;;  %v11734_v57 = vadd.f32 %v8294_v30, %v11437_v28  ;;  %v11738_v26 = vadd.f32 %v11489_v58, %v11464_v63  ;;  %4327 = vst [vmem:[#allocation3 + $0x3e4] sm:$0xf] %v4231_v62  ;;  %8633 = vmatprep.mubr.bf16.mxu0 %v8936_v7  ;;  %v12762_v28 = vld [vmem:[#allocation17_spill] sm:$0xff]  ;;  %v12764_v41 = vld [vmem:[#allocation18_spill] sm:$0xff] }
 0x256   : > { %v4719_v5 = vor.u32 %v4718_v34, %v4714_v23  ;;  %v4724_v35 = vrot.slane %v4722_v2, 5  ;;  %v4728_v4 = vrot.slane %v4726_v9, 4  ;;  %v4732_v25 = vshll.u32 %v4456_v47, 16  ;;  %v4425_v34 = vld [vmem:[#allocation2 + $0x88] sm:$0xf] }
 0x257   : > { %12760 = vst [vmem:[#allocation79_spill] sm:$0xff] %v11734_v57  ;;  %12761 = vst [vmem:[#allocation34_spill] sm:$0xff] %v11738_v26  ;;  %v4710_v59 = vrot.slane %v4709_v11, 4  ;;  %v4736_v10 = vshrl.u32 %v4456_v47, 16  ;;  %v4742_v45 = vshll.u32 %v11728_v52, 16  ;;  %vm12763_vm3 = vnez %v12762_v28  ;;  %v11754_v11 = vpop.f32.mrf.mxu0  ;;  %v12766_v28 = vld [vmem:[#allocation23_spill] sm:$0xff] }
 0x258   : > { %v3972_v30 = vsel %vm12763_vm3, %v3939_v3, 0  ;;  %v4720_v12 = vrot.slane %v4719_v5, 4  ;;  %v4729_v63 = vor.u32 %v4728_v4, %v4724_v35  ;;  %v4734_v58 = vrot.slane %v4732_v25, 5  ;;  %v4426_v7 = vld [vmem:[#allocation2 + $0x8c] sm:$0xf]  ;;  %v11764_v25 = vpop.f32.mrf.mxu1 }
 0x259   : > { %vm12765_vm6 = vnez %v12764_v41  ;;  %v4715_v2 = vsel %vm9133_vm11, %v4710_v59, %v4714_v23  ;;  %v4738_v9 = vrot.slane %v4736_v10, 4  ;;  %v11751_v62 = vrot.slane %v4742_v45, 5  ;;  %v8937_v5 = vld [vmem:[#allocation3 + $0x338] ss:$36 sps:$4 sm:$0xff]   ;;  %v11766_v41 = vpop.f32.mrf.mxu0 }
 0x25a   : > { %v3973_v33 = vsel %vm12765_vm6, %v3940_v36, 0  ;;  %v4232_v47 = vrot.slane %v11709_v42, 4  ;;  %v11758_v3 = vadd.f32 %v11504_v29, %v12766_v28  ;;  %v4725_v36 = vsel %vm9133_vm11, %v4720_v12, %v4724_v35  ;;  %4842 = vst [vmem:[#allocation3 + $0x380] sm:$0xf] %v4715_v2  ;;  %8634 = vmatmul.mubr.bf16.gmra.mxu0 %v8937_v5  ;;  %v8940_v2 = vld [vmem:[#allocation3 + $0x3c4] ss:$36 sps:$4 sm:$0xff]  }
 0x25b   : > { %v4730_v4 = vrot.slane %v4729_v63, 4  ;;  %v8367_v23 = vadd.f32 %v11466_v44, %v11456_v27  ;;  %4843 = vst [vmem:[#allocation3 + $0x3a4] sm:$0xf] %v4725_v36  ;;  %v4739_v42 = vor.u32 %v4738_v9, %v4734_v58  ;;  %v4234_v59 = vshrl.u32 %v3972_v30, 16  ;;  %v12768_v63 = vld [vmem:[#allocation81_spill] sm:$0xff]  ;;  %6941 = vmatprep.mubr.bf16.mxu1 %v8940_v2 }
 0x25c   : > { %v4237_v10 = vshll.u32 %v3972_v30, 16  ;;  %v4243_v45 = vshrl.u32 %v3973_v33, 16  ;;  %v4246_v28 = vshll.u32 %v3973_v33, 16  ;;  %v4458_v12 = vsel %vm10977_vm10, %v4425_v34, 0  ;;  %v8938_v44 = vld [vmem:[#allocation3 + $0x3c0] ss:$36 sps:$4 sm:$0xff]  }
 0x25d   : > { %v4735_v29 = vsel %vm9133_vm11, %v4730_v4, %v4734_v58  ;;  %vm12769_vm2 = vcmp.ne.s16.totalorder %v12768_v63, 0  ;;  %v4740_v36 = vrot.slane %v4739_v42, 4  ;;  %v12770_v9 = vld [vmem:[#allocation13_spill] sm:$0xff]  ;;  %v11779_v5 = vadd.f32 %v11535_v48, %v11508_v13  ;;  %v4427_v35 = vld [vmem:[#allocation2 + $0x90] sm:$0xf]  ;;  %v11788_v42 = vpop.f32.mrf.mxu1  ;;  %6942 = vmatmul.mubr.bf16.gmra.mxu1 %v8938_v44 }
 0x25e   : > { %v4459_v27 = vsel %vm12769_vm2, %v4426_v7, 0  ;;  %4844 = vst [vmem:[#allocation3 + $0x3c8] sm:$0xf] %v4735_v29  ;;  %v11775_v30 = vadd.f32 %v8367_v23, %v12770_v9  ;;  %v11783_v58 = vadd.f32 %v11498_v20, %v11484_v56  ;;  %v4236_v33 = vrot.slane %v4234_v59, 7  ;;  %v4428_v63 = vld [vmem:[#allocation2 + $0x94] sm:$0x1]  ;;  %v11793_v56 = vpop.f32.mrf.mxu0 }
 0x25f   : > { %12772 = vst [vmem:[#allocation29_spill] sm:$0xff] %v11779_v5  ;;  %v11785_v34 = vrot.slane %v4243_v45, 7  ;;  %v4746_v7 = vshrl.u32 %v11728_v52, 16  ;;  %v4752_v4 = vshll.u32 %v4458_v12, 16  ;;  %v4745_v23 = vsel %vm9133_vm11, %v4740_v36, %v11751_v62  ;;  %v3941_v9 = vld [vmem:[#allocation2 + $0x8c] sm:$0xf] }
 0x260   : > { %12771 = vst [vmem:[#allocation28_spill] sm:$0xff] %v11775_v30  ;;  %v4756_v13 = vshrl.u32 %v4458_v12, 16  ;;  %v4762_v48 = vshll.u32 %v4459_v27, 16  ;;  %v4766_v29 = vshrl.u32 %v4459_v27, 16  ;;  %4845 = vst [vmem:[#allocation3 + $0x3ec] sm:$0xf] %v4745_v23  ;;  %v4239_v20 = vor.u32 %v4237_v10, %v4236_v33 }
 0x261   : > { %v4241_v59 = vrot.slane %v4236_v33, 4  ;;  %v4248_v52 = vor.u32 %v4246_v28, %v11785_v34  ;;  %v4748_v45 = vrot.slane %v4746_v7, 4  ;;  %v3942_v30 = vld [vmem:[#allocation2 + $0x90] sm:$0xf]  ;;  %v4754_v2 = vrot.slane %v4752_v4, 5  ;;  %v11803_v28 = vpop.f32.mrf.mxu1 }
 0x262   : > { %v4758_v5 = vrot.slane %v4756_v13, 4  ;;  %v4764_v26 = vrot.slane %v4762_v48, 5  ;;  %v4768_v57 = vrot.slane %v4766_v29, 4  ;;  %v8941_v36 = vld [vmem:[#allocation3 + $0x380] ss:$36 sps:$4 sm:$0xff]   ;;  %v4240_v12 = vsel %vm9192_vm14, %v4232_v47, %v4239_v20  ;;  %v11807_v29 = vpop.f32.mrf.mxu0 }
 0x263   : > { %v4249_v27 = vsel %vm9192_vm14, %v4241_v59, %v4248_v52  ;;  %v4749_v44 = vor.u32 %v4748_v45, %v11751_v62  ;;  %v4460_v33 = vsel %vm11042_vm8, %v4427_v35, 0  ;;  %4328 = vst [vmem:[#allocation3 + $0x408] sm:$0xf] %v4240_v12  ;;  %v4461_v13 = vsel %vm11032_vm12, %v4428_v63, 0  ;;  %8637 = vmatprep.mubr.bf16.mxu0 %v8941_v36  ;;  %v12775_v62 = vld [vmem:[#allocation21_spill] sm:$0xff] }
 0x264   : > { %4329 = vst [vmem:[#allocation3 + $0x42c] sm:$0xf] %v4249_v27  ;;  %v4759_v7 = vor.u32 %v4758_v5, %v4754_v2  ;;  %v4769_v4 = vor.u32 %v4768_v57, %v4764_v26  ;;  %v4772_v48 = vshll.u32 %v4460_v33, 16  ;;  %v4776_v20 = vshrl.u32 %v4460_v33, 16  ;;  %v12777_v12 = vld [vmem:[#allocation5_spill] sm:$0xff]  ;;  %v12779_v57 = vld [vmem:[#allocation19_spill] sm:$0xff] }
 0x265   : > { %v4750_v47 = vrot.slane %v4749_v44, 4  ;;  %v4782_v59 = vshll.u32 %v4461_v13, 16  ;;  %vm12776_vm10 = vnez %v12775_v62  ;;  %vm12778_vm8 = vcmp.ne.s16.totalorder %v12777_v12, 0  ;;  %v12780_v27 = vld [vmem:[#allocation20_spill] sm:$0xff]  ;;  %v11817_v44 = vpop.f32.mrf.mxu1  ;;  %v8395_v13 = vpop.f32.mrf.mxu0 }
 0x266   : > { %v3974_v52 = vsel %vm12776_vm10, %v3941_v9, 0  ;;  %v4760_v35 = vrot.slane %v4759_v7, 4  ;;  %v4770_v45 = vrot.slane %v4769_v4, 4  ;;  %v4774_v10 = vrot.slane %v4772_v48, 5  ;;  %v12781_v62 = vld [vmem:[#allocation16_spill] sm:$0xff] }
 0x267   : > { %v3975_v5 = vsel %vm12778_vm8, %v3942_v30, 0  ;;  %v8200_v23 = vadd.f32 %v12780_v27, %v12779_v57  ;;  %v4755_v63 = vsel %vm9133_vm11, %v4750_v47, %v4754_v2  ;;  %v4778_v8 = vrot.slane %v4776_v20, 4  ;;  %v8942_v33 = vld [vmem:[#allocation3 + $0x3c8] ss:$36 sps:$4 sm:$0xff]   ;;  %v8323_v27 = vpop.f32.mrf.mxu1 }
 0x268   : > { %v4784_v36 = vrot.slane %v4782_v59, 5  ;;  %v4765_v9 = vsel %vm9133_vm11, %v4760_v35, %v4764_v26  ;;  %4846 = vst [vmem:[#allocation3 + $0x410] sm:$0xf] %v4755_v63  ;;  %v4775_v7 = vsel %vm9133_vm11, %v4770_v45, %v4774_v10  ;;  %v4252_v4 = vshrl.u32 %v3974_v52, 16  ;;  %8638 = vmatmul.mubr.bf16.gmra.mxu0 %v8942_v33  ;;  %v8396_v35 = vpop.f32.mrf.mxu0  ;;  %v8945_v63 = vld [vmem:[#allocation3 + $0x40c] ss:$36 sps:$4 sm:$0xff]  }
 0x269   : > { %v4255_v30 = vshll.u32 %v3974_v52, 16  ;;  %4847 = vst [vmem:[#allocation3 + $0x434] sm:$0xf] %v4765_v9  ;;  %v4779_v48 = vor.u32 %v4778_v8, %v4774_v10  ;;  %4848 = vst [vmem:[#allocation3 + $0x458] sm:$0xf] %v4775_v7  ;;  %v4250_v2 = vrot.slane %v11785_v34, 4  ;;  %v11826_v12 = vadd.f32 %v11783_v58, %v12781_v62  ;;  %6949 = vmatprep.mubr.bf16.mxu1 %v8945_v63 }
 0x26a   : > { %v4261_v47 = vshrl.u32 %v3975_v5, 16  ;;  %v4264_v20 = vshll.u32 %v3975_v5, 16  ;;  %v4254_v59 = vrot.slane %v4252_v4, 7  ;;  %v8303_v26 = vadd.f32 %v11560_v40, %v11549_v61  ;;  %v12782_v5 = vld [vmem:[#allocation40_spill] sm:$0xff]  ;;  %v12783_v9 = vld [vmem:[#allocation25_spill] sm:$0xff] }
 0x26b   : > { %v8373_v52 = vadd.f32 %v11538_v54, %v11527_v14  ;;  %v8943_v45 = vld [vmem:[#allocation3 + $0x408] ss:$36 sps:$4 sm:$0xff]   ;;  %v4780_v8 = vrot.slane %v4779_v48, 4  ;;  %v8306_v34 = vadd.f32 %v11599_v60, %v11582_v6  ;;  %v8376_v57 = vadd.f32 %v11570_v22, %v12782_v5  ;;  %v12784_v61 = vld [vmem:[#allocation88_spill] sm:$0xff]  ;;  %v8398_v22 = vpop.f32.mrf.mxu0  ;;  %v12793_v5 = vld [vmem:[#allocation62_spill] sm:$0xff] }
 0x26c   : > { %v4263_v10 = vrot.slane %v4261_v47, 7  ;;  %v4257_v58 = vor.u32 %v4255_v30, %v4254_v59  ;;  %v4259_v33 = vrot.slane %v4254_v59, 4  ;;  %v11837_v7 = vadd.f32 %v8303_v26, %v12783_v9  ;;  %v12785_v6 = vld [vmem:[#allocation65_spill] sm:$0xff]  ;;  %6950 = vmatmul.mubr.bf16.gmra.mxu1 %v8943_v45 }
 0x26d   : > { %v11840_v40 = vadd.f32 %v8373_v52, %v12784_v61  ;;  %v4785_v14 = vsel %vm9133_vm11, %v4780_v8, %v4784_v36  ;;  %v11845_v4 = vadd.f32 %v8306_v34, %v11576_v43  ;;  %v11848_v60 = vadd.f32 %v8376_v57, %v12785_v6  ;;  %v8399_v26 = vpop.f32.mrf.mxu0  ;;  %v8950_v61 = vld [vmem:[#allocation3 + $0x454] ss:$36 sps:$4 sm:$0xff]  }
 0x26e   : > { %v4266_v54 = vor.u32 %v4264_v20, %v4263_v10  ;;  %4849 = vst [vmem:[#allocation3 + $0x47c] sm:$0xf] %v4785_v14  ;;  %v4258_v30 = vsel %vm9192_vm14, %v4250_v2, %v4257_v58  ;;  %v8309_v48 = vadd.f32 %v11645_v0, %v11622_v49  ;;  %v8312_v36 = vadd.f32 %v11678_v31, %v11660_v39  ;;  %v8325_v0 = vpop.f32.mrf.mxu1  ;;  %v12787_v39 = vld [vmem:[#allocation22_spill] sm:$0xff]  ;;  %v12790_v10 = vld [vmem:[#allocation24_spill] sm:$0xff]  ;;  %v12797_v58 = vld [vmem:[#allocation71_spill] sm:$0xff] }
 0x26f   : > { %4330 = vst [vmem:[#allocation3 + $0x450] sm:$0xf] %v4258_v30  ;;  %v8382_v47 = vadd.f32 %v11652_v50, %v11632_v24  ;;  %v8315_v2 = vadd.f32 %v11721_v32, %v11701_v16  ;;  %v8385_v49 = vadd.f32 %v11687_v21, %v11671_v1  ;;  %v11870_v31 = vadd.f32 %v8379_v53, %v12787_v39  ;;  %v12788_v50 = vld [vmem:[#allocation36_spill] sm:$0xff]  ;;  %v12789_v1 = vld [vmem:[#allocation37_spill] sm:$0xff] }
 0x270   : > { %v4267_v43 = vsel %vm9192_vm14, %v4259_v33, %v4266_v54  ;;  %v8946_v20 = vld [vmem:[#allocation3 + $0x410] ss:$36 sps:$4 sm:$0xff]   ;;  %v11867_v17 = vadd.f32 %v8309_v48, %v12786_v19  ;;  %v11872_v38 = vadd.f32 %v8312_v36, %v8200_v23  ;;  %v8318_v24 = vadd.f32 %v11764_v25, %v11742_v51  ;;  %v8326_v62 = vpop.f32.mrf.mxu1  ;;  %6957 = vmatprep.mubr.bf16.mxu1 %v8950_v61  ;;  %v8401_v54 = vpop.f32.mrf.mxu0  ;;  %v12798_v36 = vld [vmem:[#allocation35_spill] sm:$0xff] }
 0x271   : > { %4331 = vst [vmem:[#allocation3 + $0x474] sm:$0xf] %v4267_v43  ;;  %v11877_v59 = vadd.f32 %v8382_v47, %v12788_v50  ;;  %v11880_v16 = vadd.f32 %v8315_v2, %v11605_v46  ;;  %v11883_v21 = vadd.f32 %v8385_v49, %v12789_v1  ;;  %v8388_v32 = vadd.f32 %v11740_v18, %v11714_v15  ;;  %v12801_v1 = vld [vmem:[#allocation63_spill] sm:$0xff] }
 0x272   : > { %8641 = vmatprep.mubr.bf16.mxu0 %v8946_v20  ;;  %v11888_v23 = vadd.f32 %v8318_v24, %v11611_v37  ;;  %v8321_v51 = vadd.f32 %v11803_v28, %v11788_v42  ;;  %v8391_v25 = vadd.f32 %v11766_v41, %v11754_v11  ;;  %v8324_v46 = vadd.f32 %v8323_v27, %v11817_v44  ;;  %v8328_v8 = vpop.f32.mrf.mxu1  ;;  %v12791_v42 = vld [vmem:[#allocation76_spill] sm:$0xff]  ;;  %v12792_v44 = vld [vmem:[#allocation41_spill] sm:$0xff]  ;;  %v8402_v6 = vpop.f32.mrf.mxu0  ;;  %v12800_v24 = vld [vmem:[#allocation79_spill] sm:$0xff] }
 0x273   : > { %v11896_v52 = vadd.f32 %v8388_v32, %v11758_v3  ;;  %v8394_v15 = vadd.f32 %v11807_v29, %v11793_v56  ;;  %v8327_v18 = vadd.f32 %v8326_v62, %v8325_v0  ;;  %v8397_v45 = vadd.f32 %v8396_v35, %v8395_v13  ;;  %v12794_v56 = vld [vmem:[#allocation69_spill] sm:$0xff]  ;;  %v12799_v20 = vld [vmem:[#allocation72_spill] sm:$0xff] }
 0x274   : > { %v11901_v37 = vadd.f32 %v8321_v51, %v11695_v55  ;;  %v11904_v34 = vadd.f32 %v8391_v25, %v12790_v10  ;;  %v11907_v28 = vadd.f32 %v8324_v46, %v12791_v42  ;;  %v8400_v11 = vadd.f32 %v8399_v26, %v8398_v22  ;;  %v8329_v13 = vpop.f32.mrf.mxu1  ;;  %v12795_v55 = vld [vmem:[#allocation60_spill] sm:$0xff]  ;;  %v12796_v35 = vld [vmem:[#allocation61_spill] sm:$0xff]  ;;  %v8404_v48 = vpop.f32.mrf.mxu0  ;;  %v12803_v46 = vld [vmem:[#allocation6_spill] sm:$0xff] }
 0x275   : > { %v8947_v41 = vld [vmem:[#allocation3 + $0x458] ss:$36 sps:$4 sm:$0xff]   ;;  %v11910_v3 = vadd.f32 %v8394_v15, %v12792_v44  ;;  %v11913_v57 = vadd.f32 %v8327_v18, %v12793_v5  ;;  %v11916_v29 = vadd.f32 %v8397_v45, %v12794_v56  ;;  %v8218_v27 = vadd.f32 %v12796_v35, %v12795_v55  ;;  %v12802_v32 = vld [vmem:[#allocation64_spill] sm:$0xff]  ;;  %v12808_v35 = vld [vmem:[#allocation29_spill] sm:$0xff] }
 0x276   : > { %v8330_v63 = vadd.f32 %v8329_v13, %v8328_v8  ;;  %v11921_v33 = vadd.f32 %v8400_v11, %v12797_v58  ;;  %8642 = vmatmul.mubr.bf16.gmra.mxu0 %v8947_v41  ;;  %v8331_v22 = vpop.f32.mrf.mxu1  ;;  %v8403_v30 = vadd.f32 %v8402_v6, %v8401_v54  ;;  %v8405_v2 = vpop.f32.mrf.mxu0  ;;  %v8224_v62 = vadd.f32 %v12802_v32, %v12801_v1  ;;  %v12804_v15 = vld [vmem:[#allocation7_spill] sm:$0xff]  ;;  %v12805_v8 = vld [vmem:[#allocation34_spill] sm:$0xff]  ;;  %v12809_v6 = vld [vmem:[#allocation80_spill] sm:$0xff] }
 0x277   : > { %v8406_v0 = vadd.f32 %v8405_v2, %v8404_v48  ;;  %v8185_v18 = vadd.f32 %v12804_v15, %v12803_v46  ;;  %v12806_v41 = vld [vmem:[#allocation11_spill] sm:$0xff]  ;;  %v12812_v15 = vld [vmem:[#allocation4_spill] sm:$0xff] }
 0x278   : > { %v8948_v9 = vld [vmem:[#allocation3 + $0x450] ss:$36 sps:$4 sm:$0xff]   ;;  %v11923_v14 = vadd.f32 %v8330_v63, %v8218_v27  ;;  %v8332_v53 = vpop.f32.mrf.mxu1  ;;  %v11926_v43 = vadd.f32 %v8403_v30, %v12798_v36  ;;  %v8407_v25 = vpop.f32.mrf.mxu0  ;;  %v12807_v44 = vld [vmem:[#allocation15_spill] sm:$0xff] }
 0x279   : > { %6958 = vmatmul.mubr.bf16.gmra.mxu1 %v8948_v9  ;;  %v8333_v47 = vadd.f32 %v8332_v53, %v8331_v22  ;;  %v11932_v50 = vadd.f32 %v8406_v0, %v12800_v24  ;;  %v6574_v10 = vadd.f32 %v12805_v8, %v8185_v18  ;;  %v8188_v5 = vadd.f32 %v12807_v44, %v12806_v41  ;;  %v12810_v48 = vld [vmem:[#allocation67_spill] sm:$0xff]  ;;  %v12811_v53 = vld [vmem:[#allocation70_spill] sm:$0xff] }
 0x27a   : > { %v8334_v49 = vpop.f32.mrf.mxu1  ;;  %v8408_v45 = vpop.f32.mrf.mxu0  ;;  %v8230_v36 = vadd.f32 %v12811_v53, %v12810_v48 }
 0x27b   : > { %v11929_v19 = vadd.f32 %v8333_v47, %v12799_v20  ;;  %v8409_v42 = vadd.f32 %v8408_v45, %v8407_v25  ;;  %v6577_v27 = vadd.f32 %v12808_v35, %v8188_v5 }
 0x27c   : > { %v8335_v39 = vpop.f32.mrf.mxu1  ;;  %v8410_v11 = vpop.f32.mrf.mxu0 }
 0x27d   : > { %v8336_v26 = vadd.f32 %v8335_v39, %v8334_v49  ;;  %v11943_v56 = vadd.f32 %v8409_v42, %v6574_v10  ;;  %v12813_v10 = vld [vmem:[#allocation75_spill] sm:$0xff]  ;;  %v12814_v42 = vld [vmem:[#allocation78_spill] sm:$0xff] }
 0x27e   : > { %v8337_v13 = vpop.f32.mrf.mxu1  ;;  %v8411_v55 = vpop.f32.mrf.mxu0 }
 0x27f   : > { %v11936_v51 = vadd.f32 %v8336_v26, %v8224_v62  ;;  %v8412_v63 = vadd.f32 %v8411_v55, %v8410_v11  ;;  %v8236_v11 = vadd.f32 %v12814_v42, %v12813_v10 }
 0x280   : > { %v8338_v58 = vpop.f32.mrf.mxu1 }
 0x281   : > { %v8339_v9 = vadd.f32 %v8338_v58, %v8337_v13  ;;  %v11946_v61 = vadd.f32 %v8412_v63, %v6577_v27 }
 0x282   : > { %v8340_v54 = vpop.f32.mrf.mxu1 }
 0x283   : > { %v11949_v22 = vadd.f32 %v8339_v9, %v12809_v6  ;;  %v8413_v49 = vpop.f32.mrf.mxu0 }
 0x284   : > { %v8341_v30 = vpop.f32.mrf.mxu1 }
 0x285   : > { %v8342_v47 = vadd.f32 %v8341_v30, %v8340_v54  ;;  %v8414_v0 = vpop.f32.mrf.mxu0 }
 0x286   : > { %v8415_v39 = vadd.f32 %v8414_v0, %v8413_v49 }
 0x287   : > { %v11953_v2 = vadd.f32 %v8342_v47, %v8230_v36  ;;  %v8343_v20 = vpop.f32.mrf.mxu1  ;;  %v8416_v24 = vpop.f32.mrf.mxu0 }
 0x288   : > { %v11956_v32 = vadd.f32 %v8415_v39, %v11837_v7 }
 0x289   : > { %v8344_v1 = vpop.f32.mrf.mxu1  ;;  %v8417_v26 = vpop.f32.mrf.mxu0 }
 0x28a   : > { %v8345_v62 = vadd.f32 %v8344_v1, %v8343_v20  ;;  %v8418_v46 = vadd.f32 %v8417_v26, %v8416_v24 }
 0x28b   : > { %v8346_v25 = vpop.f32.mrf.mxu1 }
 0x28c   : > { %v11959_v18 = vadd.f32 %v8345_v62, %v12812_v15  ;;  %v11962_v8 = vadd.f32 %v8418_v46, %v11845_v4 }
 0x28d   : > { %v8347_v45 = vpop.f32.mrf.mxu1 }
 0x28e   : > { %v8348_v41 = vadd.f32 %v8347_v45, %v8346_v25 }
 0x28f   : > { %v11966_v44 = vpop.f32.mrf.mxu1 }
 0x290   : > { %v8419_v5 = vpop.f32.mrf.mxu0  ;;  %v11968_v7 = vadd.f32 %v8348_v41, %v8236_v11 }
 0x291   : > { %v11970_v13 = vpop.f32.mrf.mxu1 }
 0x292   : > { %v8420_v55 = vpop.f32.mrf.mxu0 }
 0x293   : > { %v8421_v35 = vadd.f32 %v8420_v55, %v8419_v5  ;;  %v11972_v27 = vpop.f32.mrf.mxu1 }
 0x294   : > { %v8422_v63 = vpop.f32.mrf.mxu0 }
 0x295   : > { %v11975_v58 = vadd.f32 %v8421_v35, %v11867_v17  ;;  %v11977_v4 = vpop.f32.mrf.mxu1 }
 0x296   : > { %v8423_v9 = vpop.f32.mrf.mxu0 }
 0x297   : > { %v8424_v54 = vadd.f32 %v8423_v9, %v8422_v63  ;;  %v11979_v6 = vpop.f32.mrf.mxu1 }
 0x299   : > { %v11982_v30 = vadd.f32 %v8424_v54, %v11872_v38  ;;  %v11984_v53 = vpop.f32.mrf.mxu1 }
 0x29b   : > { %v11986_v47 = vpop.f32.mrf.mxu1 }
 0x29c   : > { %v8425_v48 = vpop.f32.mrf.mxu0 }
 0x29d   : > { %v11988_v20 = vpop.f32.mrf.mxu1 }
 0x29e   : > { %v8426_v36 = vpop.f32.mrf.mxu0 }
 0x29f   : > { %v8427_v49 = vadd.f32 %v8426_v36, %v8425_v48 }
 0x2a0   : > { %v8428_v0 = vpop.f32.mrf.mxu0  ;;  %v11993_v24 = vpop.f32.mrf.mxu1 }
 0x2a1   : > { %v11991_v17 = vadd.f32 %v8427_v49, %v11880_v16 }
 0x2a2   : > { %v8429_v39 = vpop.f32.mrf.mxu0  ;;  %v11995_v62 = vpop.f32.mrf.mxu1 }
 0x2a3   : > { %v8430_v1 = vadd.f32 %v8429_v39, %v8428_v0 }
 0x2a4   : > { %v12000_v25 = vpop.f32.mrf.mxu1 }
 0x2a5   : > { %v11998_v38 = vadd.f32 %v8430_v1, %v11888_v23 }
 0x2a6   : > { %v8431_v26 = vpop.f32.mrf.mxu0  ;;  %v12002_v45 = vpop.f32.mrf.mxu1 }
 0x2a7   : > { %12815 = vst [vmem:[#allocation39_spill] sm:$0xff] %v11998_v38 }
 0x2a8   : > { %v8432_v46 = vpop.f32.mrf.mxu0 }
 0x2a9   : > { %v8433_v15 = vadd.f32 %v8432_v46, %v8431_v26  ;;  %v12007_v42 = vpop.f32.mrf.mxu1 }
 0x2aa   : > { %v8434_v10 = vpop.f32.mrf.mxu0 }
 0x2ab   : > { %v12005_v16 = vadd.f32 %v8433_v15, %v11901_v37  ;;  %v12009_v5 = vpop.f32.mrf.mxu1 }
 0x2ac   : > { %v8435_v11 = vpop.f32.mrf.mxu0 }
 0x2ad   : > { %v8436_v41 = vadd.f32 %v8435_v11, %v8434_v10  ;;  %v12014_v35 = vpop.f32.mrf.mxu1 }
 0x2ae   : > { %v8437_v55 = vpop.f32.mrf.mxu0 }
 0x2af   : > { %v12012_v23 = vadd.f32 %v8436_v41, %v11907_v28  ;;  %v12016_v54 = vpop.f32.mrf.mxu1 }
 0x2b0   : > { %v8438_v63 = vpop.f32.mrf.mxu0 }
 0x2b1   : > { %12816 = vst [vmem:[#allocation38_spill] sm:$0xff] %v12012_v23  ;;  %v8439_v9 = vadd.f32 %v8438_v63, %v8437_v55 }
 0x2b2   : > { %v8440_v48 = vpop.f32.mrf.mxu0  ;;  %v12021_v36 = vpop.f32.mrf.mxu1 }
 0x2b3   : > { %v12019_v37 = vadd.f32 %v8439_v9, %v11913_v57 }
 0x2b4   : > { %v8441_v49 = vpop.f32.mrf.mxu0  ;;  %v12023_v39 = vpop.f32.mrf.mxu1 }
 0x2b5   : > { %12817 = vst [vmem:[#allocation44_spill] sm:$0xff] %v12019_v37  ;;  %v8442_v0 = vadd.f32 %v8441_v49, %v8440_v48 }
 0x2b6   : > { %v12028_v26 = vpop.f32.mrf.mxu1 }
 0x2b7   : > { %v8443_v1 = vpop.f32.mrf.mxu0  ;;  %v12026_v28 = vadd.f32 %v8442_v0, %v11923_v14 }
 0x2b8   : > { %v12030_v10 = vpop.f32.mrf.mxu1 }
 0x2b9   : > { %12818 = vst [vmem:[#allocation45_spill] sm:$0xff] %v12026_v28  ;;  %v8444_v46 = vpop.f32.mrf.mxu0 }
 0x2ba   : > { %v8445_v15 = vadd.f32 %v8444_v46, %v8443_v1 }
 0x2bb   : > { %v8446_v11 = vpop.f32.mrf.mxu0 }
 0x2bc   : > { %v12033_v57 = vadd.f32 %v8445_v15, %v11929_v19  ;;  %v12035_v41 = vpop.f32.mrf.mxu1 }
 0x2bd   : > { %v8447_v55 = vpop.f32.mrf.mxu0 }
 0x2be   : > { %12819 = vst [vmem:[#allocation83_spill] sm:$0xff] %v12033_v57  ;;  %v8448_v63 = vadd.f32 %v8447_v55, %v8446_v11  ;;  %v12037_v9 = vpop.f32.mrf.mxu1 }
 0x2bf   : > { %v8449_v48 = vpop.f32.mrf.mxu0 }
 0x2c0   : > { %v12040_v14 = vadd.f32 %v8448_v63, %v11936_v51  ;;  %v12042_v49 = vpop.f32.mrf.mxu1 }
 0x2c1   : > { %v8450_v0 = vpop.f32.mrf.mxu0 }
 0x2c2   : > { %12820 = vst [vmem:[#allocation84_spill] sm:$0xff] %v12040_v14  ;;  %v8451_v1 = vadd.f32 %v8450_v0, %v8449_v48  ;;  %v12044_v46 = vpop.f32.mrf.mxu1 }
 0x2c3   : > { %v8452_v28 = vpop.f32.mrf.mxu0 }
 0x2c4   : > { %v12047_v19 = vadd.f32 %v8451_v1, %v11949_v22 }
 0x2c5   : > { %v12049_v15 = vpop.f32.mrf.mxu1  ;;  %v8453_v37 = vpop.f32.mrf.mxu0 }
 0x2c6   : > { %12821 = vst [vmem:[#allocation30_spill] sm:$0xff] %v12047_v19  ;;  %v8454_v11 = vadd.f32 %v8453_v37, %v8452_v28  ;;  %v8479_v37 = vadd.f32 %v11970_v13, %v11966_v44  ;;  %v8488_v28 = vadd.f32 %v11988_v20, %v11986_v47 }
 0x2c7   : > { %v12051_v55 = vpop.f32.mrf.mxu1 }
 0x2c8   : > { %v12054_v51 = vadd.f32 %v8454_v11, %v11953_v2  ;;  %v8485_v2 = vadd.f32 %v11984_v53, %v11979_v6  ;;  %v12824_v6 = vld [vmem:[#allocation28_spill] sm:$0xff]  ;;  %v6851_v47 = vadd.f32 %v8488_v28, %v11848_v60 }
 0x2c9   : > { %v8455_v57 = vpop.f32.mrf.mxu0  ;;  %v12056_v63 = vpop.f32.mrf.mxu1  ;;  %v6840_v53 = vadd.f32 %v8479_v37, %v12824_v6 }
 0x2ca   : > { %12822 = vst [vmem:[#allocation31_spill] sm:$0xff] %v12054_v51  ;;  %v6848_v13 = vadd.f32 %v8485_v2, %v11840_v40  ;;  %v8491_v2 = vadd.f32 %v11995_v62, %v11993_v24  ;;  %v8494_v24 = vadd.f32 %v12002_v45, %v12000_v25 }
 0x2cb   : > { %v8456_v14 = vpop.f32.mrf.mxu0  ;;  %v12058_v0 = vpop.f32.mrf.mxu1 }
 0x2cc   : > { %v8457_v48 = vadd.f32 %v8456_v14, %v8455_v57 }
 0x2cd   : > { %v8458_v38 = vpop.f32.mrf.mxu0 }
 0x2ce   : > { %v12061_v22 = vadd.f32 %v8457_v48, %v11959_v18  ;;  %v8482_v18 = vadd.f32 %v11977_v4, %v11972_v27 }
 0x2cf   : > { %v12063_v1 = vpop.f32.mrf.mxu1  ;;  %v8459_v19 = vpop.f32.mrf.mxu0 }
 0x2d0   : > { %12823 = vst [vmem:[#allocation43_spill] sm:$0xff] %v12061_v22  ;;  %v8460_v11 = vadd.f32 %v8459_v19, %v8458_v38  ;;  %v6843_v27 = vadd.f32 %v8482_v18, %v11826_v12 }
 0x2d1   : > { %v12071_v57 = vpop.f32.mrf.mxu1 }
 0x2d2   : > { %v12076_v48 = vadd.f32 %v8460_v11, %v11968_v7 }
 0x2d3   : > { %v12078_v22 = vpop.f32.mrf.mxu1 }
 0x2d4   : > { %v8615_v14 = vpop.f32.mrf.mxu0 }
 0x2d5   : > { %v12083_v20 = vpop.f32.mrf.mxu1  ;;  %v7009_v19 = vadd.f32 %v8615_v14, %v6848_v13  ;;  %v8500_v13 = vadd.f32 %v12016_v54, %v12014_v35 }
 0x2d6   : > { %v7000_v44 = vpop.f32.mrf.mxu0 }
 0x2d7   : > { %v7001_v51 = vadd.f32 %v7000_v44, %v6840_v53  ;;  %v8497_v44 = vadd.f32 %v12009_v5, %v12007_v42  ;;  %v7327_v6 = vmul.f32 %v7009_v19, %v7009_v19  ;;  %v6867_v54 = vadd.f32 %v8500_v13, %v11896_v52 }
 0x2d8   : > { %v8616_v38 = vpop.f32.mrf.mxu0  ;;  %v12086_v4 = vpop.f32.mrf.mxu1 }
 0x2d9   : > { %v7012_v23 = vadd.f32 %v8616_v38, %v6851_v47  ;;  %v7325_v28 = vmul.f32 %v7001_v51, %v7001_v51  ;;  %v6864_v42 = vadd.f32 %v8497_v44, %v11883_v21 }
 0x2da   : > { %v7003_v40 = vpop.f32.mrf.mxu0  ;;  %v12095_v37 = vpop.f32.mrf.mxu1 }
 0x2db   : > { %v8008_v60 = vpack.c.bf16 %v7012_v23, %v7009_v19  ;;  %v7004_v7 = vadd.f32 %v7003_v40, %v6843_v27  ;;  %v6856_v40 = vadd.f32 %v8491_v2, %v11870_v31 }
 0x2dc   : > { %v12100_v18 = vpop.f32.mrf.mxu1 }
 0x2dd   : > { %8110 = vst [vmem:[%s12093_s13 + $0x8] sm:$0xff] %v8008_v60   ;;  %v8003_v12 = vpack.c.bf16 %v7004_v7, %v7001_v51  ;;  %v7287_v11 = vadd.f32 %v7004_v7, %v7001_v51  ;;  %v7326_v14 = vmul.f32 %v7004_v7, %v7004_v7  ;;  %v7328_v51 = vmul.f32 %v7012_v23, %v7012_v23 }
 0x2de   : > { %v12109_v38 = vpop.f32.mrf.mxu1 }
 0x2df   : > { %8004 = vst [vmem:[%s12093_s13] sm:$0xff] %v8003_v12   ;;  %v7288_v53 = vadd.f32 %v7287_v11, %v7009_v19  ;;  %v7357_v47 = vadd.f32 %v7326_v14, %v7325_v28  ;;  %v6859_v28 = vadd.f32 %v8494_v24, %v11877_v59  ;;  %v8503_v59 = vadd.f32 %v12023_v39, %v12021_v36 }
 0x2e1   : > { %v8619_v62 = vpop.f32.mrf.mxu0  ;;  %v7358_v27 = vadd.f32 %v7357_v47, %v7327_v6  ;;  %v7289_v60 = vadd.f32 %v7288_v53, %v7012_v23  ;;  %v6872_v36 = vadd.f32 %v8503_v59, %v11904_v34  ;;  %v8521_v59 = vadd.f32 %v12071_v57, %v12063_v1 }
 0x2e2   : > { %v7025_v45 = vadd.f32 %v8619_v62, %v6864_v42 }
 0x2e3   : > { %v7016_v7 = vpop.f32.mrf.mxu0  ;;  %v7359_v35 = vadd.f32 %v7358_v27, %v7328_v51  ;;  %v8509_v51 = vadd.f32 %v12037_v9, %v12035_v41  ;;  %v8512_v27 = vadd.f32 %v12044_v46, %v12042_v49 }
 0x2e4   : > { %v7017_v5 = vadd.f32 %v7016_v7, %v6856_v40  ;;  %v7331_v47 = vmul.f32 %v7025_v45, %v7025_v45  ;;  %v8506_v40 = vadd.f32 %v12030_v10, %v12028_v26 }
 0x2e5   : > { %v8620_v19 = vpop.f32.mrf.mxu0  ;;  %v12115_v25 = vpop.f32.mrf.mxu1  ;;  %v6883_v9 = vadd.f32 %v8512_v27, %v11921_v33 }
 0x2e6   : > { %v7290_v12 = vadd.f32 %v7289_v60, %v7017_v5  ;;  %v7329_v11 = vmul.f32 %v7017_v5, %v7017_v5  ;;  %v7028_v14 = vadd.f32 %v8620_v19, %v6867_v54  ;;  %v6880_v19 = vadd.f32 %v8509_v51, %v11916_v29 }
 0x2e7   : > { %v7019_v31 = vpop.f32.mrf.mxu0  ;;  %v12117_v23 = vpop.f32.mrf.mxu1  ;;  %v6875_v46 = vadd.f32 %v8506_v40, %v11910_v3  ;;  %v8515_v3 = vadd.f32 %v12051_v55, %v12049_v15 }
 0x2e8   : > { %v7360_v2 = vadd.f32 %v7359_v35, %v7329_v11  ;;  %v8018_v21 = vpack.c.bf16 %v7028_v14, %v7025_v45  ;;  %v7020_v44 = vadd.f32 %v7019_v31, %v6859_v28  ;;  %v7332_v60 = vmul.f32 %v7028_v14, %v7028_v14 }
 0x2e9   : > { %v12122_v13 = vpop.f32.mrf.mxu1  ;;  %v6888_v15 = vadd.f32 %v8515_v3, %v11926_v43 }
 0x2ea   : > { %8112 = vst [vmem:[%s12093_s13 + $0x18] sm:$0xff] %v8018_v21   ;;  %v8013_v6 = vpack.c.bf16 %v7020_v44, %v7017_v5  ;;  %v7291_v53 = vadd.f32 %v7290_v12, %v7020_v44  ;;  %v7330_v52 = vmul.f32 %v7020_v44, %v7020_v44 }
 0x2eb   : > { %v12132_v39 = vpop.f32.mrf.mxu1 }
 0x2ec   : > { %8111 = vst [vmem:[%s12093_s13 + $0x10] sm:$0xff] %v8013_v6   ;;  %v7292_v24 = vadd.f32 %v7291_v53, %v7025_v45  ;;  %v7361_v62 = vadd.f32 %v7360_v2, %v7330_v52 }
 0x2ee   : > { %v7362_v7 = vadd.f32 %v7361_v62, %v7331_v47  ;;  %v7293_v5 = vadd.f32 %v7292_v24, %v7028_v14  ;;  %v8524_v47 = vadd.f32 %v12083_v20, %v12078_v22  ;;  %v8518_v62 = vadd.f32 %v12058_v0, %v12056_v63 }
 0x2f0   : > { %v8623_v42 = vpop.f32.mrf.mxu0  ;;  %v7363_v54 = vadd.f32 %v7362_v7, %v7332_v60  ;;  %v6899_v57 = vadd.f32 %v8524_v47, %v11946_v61  ;;  %v8527_v61 = vadd.f32 %v12095_v37, %v12086_v4 }
 0x2f1   : > { %v7041_v26 = vadd.f32 %v8623_v42, %v6880_v19  ;;  %v6896_v42 = vadd.f32 %v8521_v59, %v11943_v56 }
 0x2f2   : > { %v7032_v35 = vpop.f32.mrf.mxu0  ;;  %v6904_v4 = vadd.f32 %v8527_v61, %v11956_v32 }
 0x2f3   : > { %v7033_v41 = vadd.f32 %v7032_v35, %v6872_v36  ;;  %v7335_v6 = vmul.f32 %v7041_v26, %v7041_v26 }
 0x2f4   : > { %v8624_v49 = vpop.f32.mrf.mxu0 }
 0x2f5   : > { %v7294_v10 = vadd.f32 %v7293_v5, %v7033_v41  ;;  %v7333_v28 = vmul.f32 %v7033_v41, %v7033_v41  ;;  %v7044_v45 = vadd.f32 %v8624_v49, %v6883_v9  ;;  %v6891_v5 = vadd.f32 %v8518_v62, %v11932_v50 }
 0x2f6   : > { %v12137_v12 = vpop.f32.mrf.mxu1  ;;  %v7035_v34 = vpop.f32.mrf.mxu0 }
 0x2f7   : > { %v7364_v11 = vadd.f32 %v7363_v54, %v7333_v28  ;;  %v8028_v14 = vpack.c.bf16 %v7044_v45, %v7041_v26  ;;  %v7036_v31 = vadd.f32 %v7035_v34, %v6875_v46  ;;  %v7336_v51 = vmul.f32 %v7044_v45, %v7044_v45 }
 0x2f8   : > { %v12139_v2 = vpop.f32.mrf.mxu1  ;;  %v8536_v34 = vadd.f32 %v12132_v39, %v12122_v13 }
 0x2f9   : > { %8114 = vst [vmem:[%s12093_s13 + $0x28] sm:$0xff] %v8028_v14   ;;  %v8023_v29 = vpack.c.bf16 %v7036_v31, %v7033_v41  ;;  %v7295_v21 = vadd.f32 %v7294_v10, %v7036_v31  ;;  %v7334_v33 = vmul.f32 %v7036_v31, %v7036_v31  ;;  %v8530_v14 = vadd.f32 %v12109_v38, %v12100_v18 }
 0x2fa   : > { %v12142_v44 = vpop.f32.mrf.mxu1 }
 0x2fb   : > { %8113 = vst [vmem:[%s12093_s13 + $0x20] sm:$0xff] %v8023_v29   ;;  %v7296_v53 = vadd.f32 %v7295_v21, %v7041_v26  ;;  %v7365_v52 = vadd.f32 %v7364_v11, %v7334_v33  ;;  %v6907_v39 = vadd.f32 %v8530_v14, %v11962_v8 }
 0x2fc   : > { %v12151_v24 = vpop.f32.mrf.mxu1 }
 0x2fd   : > { %v7366_v27 = vadd.f32 %v7365_v52, %v7335_v6  ;;  %v7297_v60 = vadd.f32 %v7296_v53, %v7044_v45  ;;  %v8533_v45 = vadd.f32 %v12117_v23, %v12115_v25  ;;  %v6915_v25 = vadd.f32 %v8536_v34, %v11982_v30 }
 0x2ff   : > { %v8627_v40 = vpop.f32.mrf.mxu0  ;;  %v7367_v7 = vadd.f32 %v7366_v27, %v7336_v51  ;;  %v6912_v6 = vadd.f32 %v8533_v45, %v11975_v58  ;;  %v8539_v58 = vadd.f32 %v12139_v2, %v12137_v12 }
 0x300   : > { %v7057_v36 = vadd.f32 %v8627_v40, %v6896_v42 }
 0x301   : > { %v7048_v55 = vpop.f32.mrf.mxu0  ;;  %v8543_v22 = vpop.f32.mrf.mxu1 }
 0x302   : > { %v7049_v1 = vadd.f32 %v7048_v55, %v6888_v15  ;;  %v7339_v10 = vmul.f32 %v7057_v36, %v7057_v36 }
 0x303   : > { %v8628_v20 = vpop.f32.mrf.mxu0  ;;  %v8544_v54 = vpop.f32.mrf.mxu1 }
 0x304   : > { %v7298_v63 = vadd.f32 %v7297_v60, %v7049_v1  ;;  %v7337_v0 = vmul.f32 %v7049_v1, %v7049_v1  ;;  %v7060_v35 = vadd.f32 %v8628_v20, %v6899_v57  ;;  %v8545_v55 = vadd.f32 %v8544_v54, %v8543_v22  ;;  %v12825_v54 = vld [vmem:[#allocation38_spill] sm:$0xff] }
 0x305   : > { %v7051_v19 = vpop.f32.mrf.mxu0  ;;  %v8546_v49 = vpop.f32.mrf.mxu1  ;;  %v8542_v57 = vadd.f32 %v12151_v24, %v12142_v44 }
 0x306   : > { %v7368_v43 = vadd.f32 %v7367_v7, %v7337_v0  ;;  %v8038_v41 = vpack.c.bf16 %v7060_v35, %v7057_v36  ;;  %v7052_v9 = vadd.f32 %v7051_v19, %v6891_v5  ;;  %v7340_v31 = vmul.f32 %v7060_v35, %v7060_v35 }
 0x307   : > { %v8547_v11 = vpop.f32.mrf.mxu1  ;;  %v6920_v0 = vadd.f32 %v8539_v58, %v11991_v17 }
 0x308   : > { %8116 = vst [vmem:[%s12093_s13 + $0x38] sm:$0xff] %v8038_v41   ;;  %v8033_v56 = vpack.c.bf16 %v7052_v9, %v7049_v1  ;;  %v7299_v46 = vadd.f32 %v7298_v63, %v7052_v9  ;;  %v7338_v26 = vmul.f32 %v7052_v9, %v7052_v9  ;;  %v8548_v7 = vadd.f32 %v8547_v11, %v8546_v49  ;;  %v12826_v9 = vld [vmem:[#allocation39_spill] sm:$0xff] }
 0x309   : > { %v6923_v49 = vadd.f32 %v8542_v57, %v12826_v9 }
 0x30a   : > { %8115 = vst [vmem:[%s12093_s13 + $0x30] sm:$0xff] %v8033_v56   ;;  %v7300_v50 = vadd.f32 %v7299_v46, %v7057_v36  ;;  %v7369_v28 = vadd.f32 %v7368_v43, %v7338_v26  ;;  %v6931_v43 = vadd.f32 %v8548_v7, %v12825_v54  ;;  %v12831_v54 = vld [vmem:[#allocation30_spill] sm:$0xff] }
 0x30c   : > { %v7370_v29 = vadd.f32 %v7369_v28, %v7339_v10  ;;  %v7301_v33 = vadd.f32 %v7300_v50, %v7060_v35  ;;  %v6928_v35 = vadd.f32 %v8545_v55, %v12005_v16 }
 0x30e   : > { %v8631_v21 = vpop.f32.mrf.mxu0  ;;  %v7371_v3 = vadd.f32 %v7370_v29, %v7340_v31 }
 0x30f   : > { %v7073_v52 = vadd.f32 %v8631_v21, %v6912_v6 }
 0x310   : > { %v7064_v37 = vpop.f32.mrf.mxu0 }
 0x311   : > { %v7065_v53 = vadd.f32 %v7064_v37, %v6904_v4  ;;  %v7343_v8 = vmul.f32 %v7073_v52, %v7073_v52 }
 0x312   : > { %v8549_v23 = vpop.f32.mrf.mxu1  ;;  %v8632_v13 = vpop.f32.mrf.mxu0 }
 0x313   : > { %v7302_v18 = vadd.f32 %v7301_v33, %v7065_v53  ;;  %v7341_v38 = vmul.f32 %v7065_v53, %v7065_v53  ;;  %v7076_v59 = vadd.f32 %v8632_v13, %v6915_v25 }
 0x314   : > { %v8550_v47 = vpop.f32.mrf.mxu1  ;;  %v7067_v62 = vpop.f32.mrf.mxu0 }
 0x315   : > { %v7372_v32 = vadd.f32 %v7371_v3, %v7341_v38  ;;  %v8048_v51 = vpack.c.bf16 %v7076_v59, %v7073_v52  ;;  %v7068_v27 = vadd.f32 %v7067_v62, %v6907_v39  ;;  %v7344_v36 = vmul.f32 %v7076_v59, %v7076_v59  ;;  %v12827_v39 = vld [vmem:[#allocation83_spill] sm:$0xff] }
 0x316   : > { %v8552_v40 = vpop.f32.mrf.mxu1  ;;  %v8551_v14 = vadd.f32 %v8550_v47, %v8549_v23 }
 0x317   : > { %8118 = vst [vmem:[%s12093_s13 + $0x48] sm:$0xff] %v8048_v51   ;;  %v8043_v30 = vpack.c.bf16 %v7068_v27, %v7065_v53  ;;  %v7303_v60 = vadd.f32 %v7302_v18, %v7068_v27  ;;  %v7342_v15 = vmul.f32 %v7068_v27, %v7068_v27  ;;  %v12828_v18 = vld [vmem:[#allocation44_spill] sm:$0xff]  ;;  %v12830_v27 = vld [vmem:[#allocation45_spill] sm:$0xff] }
 0x318   : > { %v8553_v5 = vpop.f32.mrf.mxu1  ;;  %v6936_v38 = vadd.f32 %v8551_v14, %v12828_v18 }
 0x319   : > { %8117 = vst [vmem:[%s12093_s13 + $0x40] sm:$0xff] %v8043_v30   ;;  %v7304_v42 = vadd.f32 %v7303_v60, %v7073_v52  ;;  %v7373_v1 = vadd.f32 %v7372_v32, %v7342_v15  ;;  %v8554_v6 = vadd.f32 %v8553_v5, %v8552_v40 }
 0x31a   : > { %v8635_v20 = vpop.f32.mrf.mxu0 }
 0x31b   : > { %v7374_v63 = vadd.f32 %v7373_v1, %v7343_v8  ;;  %v7305_v12 = vadd.f32 %v7304_v42, %v7076_v59  ;;  %v7089_v44 = vadd.f32 %v8635_v20, %v6928_v35  ;;  %v12829_v59 = vld [vmem:[#allocation84_spill] sm:$0xff]  ;;  %v6939_v58 = vadd.f32 %v8554_v6, %v12830_v27 }
 0x31c   : > { %v7080_v2 = vpop.f32.mrf.mxu0 }
 0x31d   : > { %v7081_v19 = vadd.f32 %v7080_v2, %v6920_v0  ;;  %v7375_v22 = vadd.f32 %v7374_v63, %v7344_v36  ;;  %v8555_v56 = vpop.f32.mrf.mxu1  ;;  %v7347_v21 = vmul.f32 %v7089_v44, %v7089_v44 }
 0x31e   : > { %v8636_v41 = vpop.f32.mrf.mxu0 }
 0x31f   : > { %v7306_v24 = vadd.f32 %v7305_v12, %v7081_v19  ;;  %v7345_v46 = vmul.f32 %v7081_v19, %v7081_v19  ;;  %v7092_v26 = vadd.f32 %v8636_v41, %v6931_v43  ;;  %v8556_v17 = vpop.f32.mrf.mxu1 }
 0x320   : > { %v7083_v61 = vpop.f32.mrf.mxu0  ;;  %v8557_v31 = vadd.f32 %v8556_v17, %v8555_v56 }
 0x321   : > { %v7376_v10 = vadd.f32 %v7375_v22, %v7345_v46  ;;  %v8058_v50 = vpack.c.bf16 %v7092_v26, %v7089_v44  ;;  %v7084_v28 = vadd.f32 %v7083_v61, %v6923_v49  ;;  %v8558_v16 = vpop.f32.mrf.mxu1  ;;  %v7348_v3 = vmul.f32 %v7092_v26, %v7092_v26  ;;  %v12832_v61 = vld [vmem:[#allocation31_spill] sm:$0xff] }
 0x322   : > { %v6944_v52 = vadd.f32 %v8557_v31, %v12827_v39 }
 0x323   : > { %8120 = vst [vmem:[%s12093_s13 + $0x58] sm:$0xff] %v8058_v50   ;;  %v8053_v45 = vpack.c.bf16 %v7084_v28, %v7081_v19  ;;  %v7307_v34 = vadd.f32 %v7306_v24, %v7084_v28  ;;  %v7346_v11 = vmul.f32 %v7084_v28, %v7084_v28  ;;  %v8559_v29 = vpop.f32.mrf.mxu1 }
 0x324   : > { %v8560_v37 = vadd.f32 %v8559_v29, %v8558_v16  ;;  %v12833_v29 = vld [vmem:[#allocation43_spill] sm:$0xff] }
 0x325   : > { %8119 = vst [vmem:[%s12093_s13 + $0x50] sm:$0xff] %v8053_v45   ;;  %v7308_v33 = vadd.f32 %v7307_v34, %v7089_v44  ;;  %v7377_v4 = vadd.f32 %v7376_v10, %v7346_v11 }
 0x326   : > { %v6947_v62 = vadd.f32 %v8560_v37, %v12829_v59 }
 0x327   : > { %v7378_v53 = vadd.f32 %v7377_v4, %v7347_v21  ;;  %v7309_v13 = vadd.f32 %v7308_v33, %v7092_v26 }
 0x328   : > { %v8639_v25 = vpop.f32.mrf.mxu0 }
 0x329   : > { %v7379_v23 = vadd.f32 %v7378_v53, %v7348_v3  ;;  %v7105_v30 = vadd.f32 %v8639_v25, %v6944_v52 }
 0x32a   : > { %v7096_v32 = vpop.f32.mrf.mxu0 }
 0x32b   : > { %v7097_v47 = vadd.f32 %v7096_v32, %v6936_v38  ;;  %v7351_v12 = vmul.f32 %v7105_v30, %v7105_v30 }
 0x32c   : > { %v8640_v51 = vpop.f32.mrf.mxu0  ;;  %v8561_v55 = vpop.f32.mrf.mxu1 }
 0x32d   : > { %v7310_v60 = vadd.f32 %v7309_v13, %v7097_v47  ;;  %v7349_v15 = vmul.f32 %v7097_v47, %v7097_v47  ;;  %v7108_v40 = vadd.f32 %v8640_v51, %v6947_v62 }
 0x32e   : > { %v7099_v8 = vpop.f32.mrf.mxu0  ;;  %v8562_v57 = vpop.f32.mrf.mxu1 }
 0x32f   : > { %v7380_v7 = vadd.f32 %v7379_v23, %v7349_v15  ;;  %v8068_v42 = vpack.c.bf16 %v7108_v40, %v7105_v30  ;;  %v7100_v1 = vadd.f32 %v7099_v8, %v6939_v58  ;;  %v8563_v20 = vadd.f32 %v8562_v57, %v8561_v55 }
 0x330   : > { %v8564_v0 = vpop.f32.mrf.mxu1  ;;  %v7352_v2 = vmul.f32 %v7108_v40, %v7108_v40 }
 0x331   : > { %8122 = vst [vmem:[%s12093_s13 + $0x68] sm:$0xff] %v8068_v42   ;;  %v8063_v5 = vpack.c.bf16 %v7100_v1, %v7097_v47  ;;  %v7311_v36 = vadd.f32 %v7310_v60, %v7100_v1  ;;  %v7350_v63 = vmul.f32 %v7100_v1, %v7100_v1  ;;  %v6952_v43 = vadd.f32 %v8563_v20, %v12831_v54 }
 0x332   : > { %v8565_v22 = vpop.f32.mrf.mxu1 }
 0x333   : > { %8121 = vst [vmem:[%s12093_s13 + $0x60] sm:$0xff] %v8063_v5   ;;  %v7312_v35 = vadd.f32 %v7311_v36, %v7105_v30  ;;  %v7381_v19 = vadd.f32 %v7380_v7, %v7350_v63  ;;  %v8566_v41 = vadd.f32 %v8565_v22, %v8564_v0 }
 0x335   : > { %v7382_v9 = vadd.f32 %v7381_v19, %v7351_v12  ;;  %v7313_v56 = vadd.f32 %v7312_v35, %v7108_v40  ;;  %v6955_v17 = vadd.f32 %v8566_v41, %v12832_v61 }
 0x336   : > { %v8643_v49 = vpop.f32.mrf.mxu0 }
 0x337   : > { %v7383_v24 = vadd.f32 %v7382_v9, %v7352_v2 }
 0x338   : > { %v7112_v44 = vpop.f32.mrf.mxu0 }
 0x339   : > { %v7113_v46 = vadd.f32 %v7112_v44, %v6952_v43  ;;  %v8567_v26 = vpop.f32.mrf.mxu1 }
 0x33a   : > { %v8644_v10 = vpop.f32.mrf.mxu0 }
 0x33b   : > { %v7314_v50 = vadd.f32 %v7313_v56, %v7113_v46  ;;  %v7353_v28 = vmul.f32 %v7113_v46, %v7113_v46  ;;  %v8568_v16 = vpop.f32.mrf.mxu1 }
 0x33c   : > { %v7115_v45 = vpop.f32.mrf.mxu0  ;;  %v8569_v34 = vadd.f32 %v8568_v16, %v8567_v26 }
 0x33d   : > { %v7384_v11 = vadd.f32 %v7383_v24, %v7353_v28  ;;  %v7116_v14 = vadd.f32 %v7115_v45, %v6955_v17  ;;  %v8570_v31 = vpop.f32.mrf.mxu1 }
 0x33e   : > { %v6960_v21 = vadd.f32 %v8569_v34, %v12833_v29 }
 0x33f   : > { %v8073_v33 = vpack.c.bf16 %v7116_v14, %v7113_v46  ;;  %v7315_v4 = vadd.f32 %v7314_v50, %v7116_v14  ;;  %v7354_v37 = vmul.f32 %v7116_v14, %v7116_v14  ;;  %v8571_v3 = vpop.f32.mrf.mxu1 }
 0x340   : > { %v7121_v6 = vadd.f32 %v8643_v49, %v6960_v21  ;;  %v8572_v53 = vadd.f32 %v8571_v3, %v8570_v31 }
 0x341   : > { %8123 = vst [vmem:[%s12093_s13 + $0x70] sm:$0xff] %v8073_v33   ;;  %v7385_v25 = vadd.f32 %v7384_v11, %v7354_v37 }
 0x342   : > { %v7316_v13 = vadd.f32 %v7315_v4, %v7121_v6  ;;  %v7355_v39 = vmul.f32 %v7121_v6, %v7121_v6  ;;  %v6963_v52 = vadd.f32 %v8572_v53, %v12076_v48 }
 0x344   : > { %v7386_v18 = vadd.f32 %v7385_v25, %v7355_v39  ;;  %v7124_v38 = vadd.f32 %v8644_v10, %v6963_v52 }
 0x346   : > { %v8078_v59 = vpack.c.bf16 %v7124_v38, %v7121_v6  ;;  %v7317_v62 = vadd.f32 %v7316_v13, %v7124_v38  ;;  %v7356_v32 = vmul.f32 %v7124_v38, %v7124_v38 }
 0x348   : > { %8124 = vst [vmem:[%s12093_s13 + $0x78] sm:$0xff] %v8078_v59   ;;  %v7318_v23 = vrot.slane %v7317_v62, 4  ;;  %v7387_v47 = vadd.f32 %v7386_v18, %v7356_v32 }
 0x34a   : > { %v7319_v51 = vadd.f32 %v7318_v23, %v7317_v62  ;;  %v7388_v27 = vrot.slane %v7387_v47, 4 }
 0x34c   : > { %v7320_v58 = vrot.slane %v7319_v51, 2  ;;  %v7389_v30 = vadd.f32 %v7388_v27, %v7387_v47 }
 0x34e   : > { %v7321_v60 = vadd.f32 %v7320_v58, %v7319_v51  ;;  %v7390_v15 = vrot.slane %v7389_v30, 2 }
 0x350   : > { %v7322_v40 = vrot.slane %v7321_v60, 1  ;;  %v7391_v55 = vadd.f32 %v7390_v15, %v7389_v30 }
 0x352   : > { %v7323_v48 = vadd.f32 %v7322_v40, %v7321_v60  ;;  %v7392_v8 = vrot.slane %v7391_v55, 1 }
 0x354   : > { %7324 = vst [vmem:[%s268_s14] sm:$0x1] %v7323_v48  ;;  %v7393_v7 = vadd.f32 %v7392_v8, %v7391_v55 }
 0x356   : > { %7394 = vst [vmem:[%s271_s17] sm:$0x1] %v7393_v7 }
 0x357 PF: > { %s17_s21 = sadd.s32 1, %s8965_s21  }
 0x358   : > { %p14_p5 = scmp.ge.s32.totalorder %s17_s21, 4  }
 0x35a   :  { %16 = sbr.rel (!%p14_p5) target bundleno = 1 (0x1), region = 90 }

</bundles_post_ra>
